<compile_context>
chip_gen: v7x
topology: tpu7x:2x2x1
jax: 0.10.0
libtpu: 0.0.40
codegen_flags: <defaults>
</compile_context>

<pallas_src>
import jax
import jax.numpy as jnp
import numpy as np
from jax.experimental import pallas as pl
from jax.experimental.pallas import tpu as pltpu


# ----------------------------------------------------------------------------
# fc1 kernel: bf16_out = PReLU(a @ W + b).
# Grid = (N//tn, K//tk); the f32 VMEM scratch carries the K reduction and the
# bf16 output block (index depends only on j) is written once, at the last k.
# ----------------------------------------------------------------------------
def _fc1_kernel(alpha_ref, a_ref, w_ref, b_ref, o_ref, acc_ref):
    k = pl.program_id(1)
    nk = pl.num_programs(1)

    @pl.when(k == 0)
    def _():
        acc_ref[...] = jnp.zeros_like(acc_ref)

    # bf16 x bf16 -> f32 accumulate on the MXU.
    partial = jnp.dot(a_ref[...], w_ref[...],
                      preferred_element_type=jnp.float32)

    @pl.when(k < nk - 1)
    def _():
        acc_ref[...] += partial

    @pl.when(k == nk - 1)
    def _():
        y = acc_ref[...] + partial + b_ref[...]         # finish in registers
        alpha = alpha_ref[0]                            # scalar from SMEM
        y = jnp.where(y > 0.0, y, alpha * y)            # PReLU (shared alpha)
        o_ref[...] = y.astype(o_ref.dtype)              # single bf16 store


def fc1_forward(a, w, b, alpha, *, tk=2048, tn=1024):
    """a:(M,K) bf16, w:(K,N) bf16, b:(1,N) f32, alpha:(1,) f32 -> (M,N) bf16."""
    M, K = a.shape
    K2, N = w.shape
    assert K == K2 and K % tk == 0 and N % tn == 0
    nk, nj = K // tk, N // tn

    grid_spec = pltpu.PrefetchScalarGridSpec(
        num_scalar_prefetch=0,
        grid=(nj, nk),
        in_specs=[
            pl.BlockSpec(memory_space=pltpu.MemorySpace.SMEM),   # PReLU alpha
            pl.BlockSpec((M, tk), lambda j, k: (0, k)),          # activations
            pl.BlockSpec((tk, tn), lambda j, k: (k, j)),         # weights (bf16)
            pl.BlockSpec((1, tn), lambda j, k: (0, j)),          # bias (f32)
        ],
        out_specs=pl.BlockSpec((M, tn), lambda j, k: (0, j)),
        scratch_shapes=[pltpu.VMEM((M, tn), jnp.float32)],
    )
    return pl.pallas_call(
        _fc1_kernel,
        out_shape=jax.ShapeDtypeStruct((M, N), jnp.bfloat16),
        grid_spec=grid_spec,
        compiler_params=pltpu.CompilerParams(
            dimension_semantics=("parallel", "arbitrary")),
    )(alpha, a, w, b)


# ----------------------------------------------------------------------------
# Tail kernel: fc2 + PReLU + fc3 + PReLU + [embedding head | classifier head]
# fused into a single pallas_call.  Grid = (K2//tk,) over fc2's contraction;
# the (M, 512) f32 scratch is the resident fc2 accumulator, and the whole tail
# epilogue runs once in the last-k branch, emitting two outputs.
# ----------------------------------------------------------------------------
def _tail_kernel(alpha_ref, a_ref, w2_ref, b2_ref, w3_ref, b3_ref,
                 we_ref, be_ref, wc_ref, bc_ref, emb_ref, cls_ref, acc_ref):
    k = pl.program_id(0)
    nk = pl.num_programs(0)

    @pl.when(k == 0)
    def _():
        acc_ref[...] = jnp.zeros_like(acc_ref)

    partial = jnp.dot(a_ref[...], w2_ref[...],
                      preferred_element_type=jnp.float32)

    @pl.when(k < nk - 1)
    def _():
        acc_ref[...] += partial

    @pl.when(k == nk - 1)
    def _():
        a2 = alpha_ref[0]
        a3 = alpha_ref[1]
        # fc2 epilogue
        y2 = acc_ref[...] + partial + b2_ref[...]
        y2 = jnp.where(y2 > 0.0, y2, a2 * y2)
        # fc3 (full block, runs once)
        y3 = jnp.dot(y2.astype(jnp.bfloat16), w3_ref[...],
                     preferred_element_type=jnp.float32) + b3_ref[...]
        y3 = jnp.where(y3 > 0.0, y3, a3 * y3)
        y3b = y3.astype(jnp.bfloat16)
        # heads
        e = jnp.dot(y3b, we_ref[...],
                    preferred_element_type=jnp.float32) + be_ref[...]
        c = jnp.dot(y3b, wc_ref[...],
                    preferred_element_type=jnp.float32) + bc_ref[...]
        # F.normalize(p=2, dim=1), eps=1e-12 — embedding branch only
        nrm = jnp.sqrt(jnp.sum(e * e, axis=1, keepdims=True))
        e = e / jnp.maximum(nrm, 1e-12)
        emb_ref[...] = e.astype(emb_ref.dtype)
        cls_ref[...] = c.astype(cls_ref.dtype)


def tail_forward(a, kp, *, tk=1024):
    M, K = a.shape
    N2 = kp["fc2_w"].shape[1]
    N3 = kp["fc3_w"].shape[1]
    De = kp["emb_w"].shape[1]
    Dc = kp["cls_w"].shape[1]
    assert K % tk == 0
    nk = K // tk

    grid_spec = pltpu.PrefetchScalarGridSpec(
        num_scalar_prefetch=0,
        grid=(nk,),
        in_specs=[
            pl.BlockSpec(memory_space=pltpu.MemorySpace.SMEM),   # (2,) PReLU alphas
            pl.BlockSpec((M, tk), lambda k: (0, k)),             # fc1 output
            pl.BlockSpec((tk, N2), lambda k: (k, 0)),            # fc2 weights
            pl.BlockSpec((1, N2), lambda k: (0, 0)),             # fc2 bias
            pl.BlockSpec((N2, N3), lambda k: (0, 0)),            # fc3 weights
            pl.BlockSpec((1, N3), lambda k: (0, 0)),             # fc3 bias
            pl.BlockSpec((N3, De), lambda k: (0, 0)),            # embedding weights
            pl.BlockSpec((1, De), lambda k: (0, 0)),             # embedding bias
            pl.BlockSpec((N3, Dc), lambda k: (0, 0)),            # classifier weights
            pl.BlockSpec((1, Dc), lambda k: (0, 0)),             # classifier bias
        ],
        out_specs=[
            pl.BlockSpec((M, De), lambda k: (0, 0)),
            pl.BlockSpec((M, Dc), lambda k: (0, 0)),
        ],
        scratch_shapes=[pltpu.VMEM((M, N2), jnp.float32)],
    )
    return pl.pallas_call(
        _tail_kernel,
        out_shape=(jax.ShapeDtypeStruct((M, De), jnp.float32),
                   jax.ShapeDtypeStruct((M, Dc), jnp.float32)),
        grid_spec=grid_spec,
        compiler_params=pltpu.CompilerParams(
            dimension_semantics=("arbitrary",)),
    )(kp["prelu23"], a, kp["fc2_w"], kp["fc2_b"], kp["fc3_w"], kp["fc3_b"],
      kp["emb_w"], kp["emb_b"], kp["cls_w"], kp["cls_b"])


# ----------------------------------------------------------------------------
# Parameters
# ----------------------------------------------------------------------------
def init_params(key, output_dim, n_classes):
    """Canonical f32 parameters mirroring the PyTorch module layout."""
    ks = jax.random.split(key, 12)

    def lin(kw, kb, fan_in, fan_out):
        scale = 1.0 / np.sqrt(fan_in)
        w = jax.random.normal(kw, (fan_in, fan_out), jnp.float32) * scale
        b = jax.random.normal(kb, (fan_out,), jnp.float32) * scale
        return w, b

    p = {}
    p["conv_w"], p["conv_b"] = lin(ks[0], ks[1], 128, 64)     # Conv2d 1x1 as matmul
    p["fc1_w"], p["fc1_b"] = lin(ks[2], ks[3], 8192, 2048)
    p["fc2_w"], p["fc2_b"] = lin(ks[4], ks[5], 2048, 512)
    p["fc3_w"], p["fc3_b"] = lin(ks[6], ks[7], 512, 256)
    p["emb_w"], p["emb_b"] = lin(ks[8], ks[9], 256, output_dim)
    p["cls_w"], p["cls_b"] = lin(ks[10], ks[11], 256, n_classes)
    # nn.PReLU() default: single shared parameter initialized to 0.25
    p["prelu1"] = jnp.float32(0.25)
    p["prelu2"] = jnp.float32(0.25)
    p["prelu3"] = jnp.float32(0.25)
    return p


def prepare_params(p, H, W):
    """Kernel-ready params: bf16 weights, (1,N) f32 biases, the NCHW-flatten
    permutation folded into fc1's weight rows, PReLU alphas packed for SMEM."""
    kp = {}
    kp["conv_w"] = p["conv_w"].astype(jnp.bfloat16)
    kp["conv_b"] = p["conv_b"].astype(jnp.float32)
    # Canonical fc1 rows are (c, h, w)-ordered (PyTorch flatten of NCHW); the
    # conv matmul emits (h, w, c)-ordered features, so reorder rows once:
    fc1_w = p["fc1_w"].reshape(64, H, W, -1).transpose(1, 2, 0, 3)
    kp["fc1_w"] = fc1_w.reshape(64 * H * W, -1).astype(jnp.bfloat16)
    kp["fc1_b"] = p["fc1_b"].reshape(1, -1).astype(jnp.float32)
    kp["fc2_w"] = p["fc2_w"].astype(jnp.bfloat16)
    kp["fc2_b"] = p["fc2_b"].reshape(1, -1).astype(jnp.float32)
    kp["fc3_w"] = p["fc3_w"].astype(jnp.bfloat16)
    kp["fc3_b"] = p["fc3_b"].reshape(1, -1).astype(jnp.float32)
    kp["emb_w"] = p["emb_w"].astype(jnp.bfloat16)
    kp["emb_b"] = p["emb_b"].reshape(1, -1).astype(jnp.float32)
    kp["cls_w"] = p["cls_w"].astype(jnp.bfloat16)
    kp["cls_b"] = p["cls_b"].reshape(1, -1).astype(jnp.float32)
    kp["prelu1"] = jnp.asarray(p["prelu1"], jnp.float32).reshape(1)
    kp["prelu23"] = jnp.stack([p["prelu2"], p["prelu3"]]).astype(jnp.float32)
    return kp


# ----------------------------------------------------------------------------
# Forward
# ----------------------------------------------------------------------------
def combine_net_forward(x, kp):
    """x: NCHW (B, 128, H, W) with 64*H*W == 8192."""
    B, C, H, W = x.shape

    # --- 1x1 conv + ReLU as a plain XLA matmul over pixels ---
    # (a grid=(1,1) pallas_call here costs more than the work it does)
    xm = jnp.transpose(x, (0, 2, 3, 1)).reshape(B * H * W, C)
    y = jnp.dot(xm.astype(jnp.bfloat16), kp["conv_w"],
                preferred_element_type=jnp.float32) + kp["conv_b"]
    y = jnp.maximum(y, 0.0).astype(jnp.bfloat16)
    # Flatten permutation is baked into fc1_w: plain contiguous reshape only.
    y = y.reshape(B, H * W * 64)

    # --- fc1: dominant weight stream, its own pipelined kernel ---
    y = fc1_forward(y, kp["fc1_w"], kp["fc1_b"], kp["prelu1"],
                    tk=2048, tn=1024)

    # --- fused tail: fc2 + fc3 + l2-normalized embedding + logits ---
    embedds, confs = tail_forward(y, kp, tk=1024)
    return embedds, confs


combine_net_forward_jit = jax.jit(combine_net_forward)


# ----------------------------------------------------------------------------
# References
# ----------------------------------------------------------------------------
def reference_forward_f32(x, p):
    """Pure-JAX f32 reference mirroring the PyTorch module exactly."""
    B, C, H, W = x.shape
    xm = jnp.transpose(x, (0, 2, 3, 1)).reshape(B * H * W, C)
    y = jnp.maximum(xm @ p["conv_w"] + p["conv_b"], 0.0)
    y = y.reshape(B, H, W, 64).transpose(0, 3, 1, 2).reshape(B, 64 * H * W)

    def prelu(v, a):
        return jnp.where(v > 0, v, a * v)

    y = prelu(y @ p["fc1_w"] + p["fc1_b"], p["prelu1"])
    y = prelu(y @ p["fc2_w"] + p["fc2_b"], p["prelu2"])
    y = prelu(y @ p["fc3_w"] + p["fc3_b"], p["prelu3"])
    e = y @ p["emb_w"] + p["emb_b"]
    e = e / jnp.maximum(jnp.sqrt(jnp.sum(e * e, axis=1, keepdims=True)), 1e-12)
    c = y @ p["cls_w"] + p["cls_b"]
    return e, c


def reference_forward_bf16(x, p):
    """Same math, but with bf16 matmul inputs + f32 accumulation (matches the
    kernel's precision) — used for the tight correctness check."""
    def mm(a, w):
        return jnp.dot(a.astype(jnp.bfloat16), w.astype(jnp.bfloat16),
                       preferred_element_type=jnp.float32)

    B, C, H, W = x.shape
    xm = jnp.transpose(x, (0, 2, 3, 1)).reshape(B * H * W, C)
    y = jnp.maximum(mm(xm, p["conv_w"]) + p["conv_b"], 0.0)
    y = y.reshape(B, H, W, 64).transpose(0, 3, 1, 2).reshape(B, 64 * H * W)

    def prelu(v, a):
        return jnp.where(v > 0, v, a * v)

    y = prelu(mm(y, p["fc1_w"]) + p["fc1_b"], p["prelu1"])
    y = prelu(mm(y, p["fc2_w"]) + p["fc2_b"], p["prelu2"])
    y = prelu(mm(y, p["fc3_w"]) + p["fc3_b"], p["prelu3"])
    e = mm(y, p["emb_w"]) + p["emb_b"]
    e = e / jnp.maximum(jnp.sqrt(jnp.sum(e * e, axis=1, keepdims=True)), 1e-12)
    c = mm(y, p["cls_w"]) + p["cls_b"]
    return e, c


if __name__ == "__main__":
    # Module fixes Conv2d(128->64) and Linear(8192, ...), so 64*H*W must be 8192.
    B, C, H, W = 2, 128, 16, 8
    output_dim, n_classes = 128, 16

    key = jax.random.PRNGKey(0)
    kx, kp_key = jax.random.split(key)
    x = jax.random.normal(kx, (B, C, H, W), jnp.float32)
    params = init_params(kp_key, output_dim, n_classes)
    kparams = prepare_params(params, H, W)          # one-time bf16 / relayout

    embedds, confs = combine_net_forward_jit(x, kparams)
    jax.block_until_ready((embedds, confs))

    # Tight check vs. precision-matched (bf16-input, f32-accumulate) reference.
    e_ref, c_ref = reference_forward_bf16(x, params)
    np.testing.assert_allclose(np.asarray(embedds), np.asarray(e_ref),
                               rtol=5e-3, atol=5e-3)
    np.testing.assert_allclose(np.asarray(confs), np.asarray(c_ref),
                               rtol=5e-3, atol=5e-3)

    # Loose sanity check vs. the exact f32 PyTorch-semantics reference
    # (bf16 weight streaming introduces ~1% level quantization error).
    e_f32, c_f32 = reference_forward_f32(x, params)
    np.testing.assert_allclose(np.asarray(embedds), np.asarray(e_f32),
                               rtol=1e-1, atol=5e-2)
    np.testing.assert_allclose(np.asarray(confs), np.asarray(c_f32),
                               rtol=1e-1, atol=5e-2)

    assert embedds.shape == (B, output_dim)
    assert confs.shape == (B, n_classes)
    print("KERNEL_OK")
</pallas_src>

<mosaic_0001>
module attributes {stable_mosaic.version = 11 : i64} {
  func.func @_fc1_kernel(%arg0: i32, %arg1: i32, %arg2: memref<1xf32, #tpu.memory_space<smem>>, %arg3: memref<2x2048xbf16, #tpu.memory_space<vmem>>, %arg4: memref<2048x1024xbf16, #tpu.memory_space<vmem>>, %arg5: memref<1x1024xf32, #tpu.memory_space<vmem>>, %arg6: memref<2x1024xbf16, #tpu.memory_space<vmem>>, %arg7: memref<2x1024xf32, #tpu.memory_space<vmem>>) attributes {dimension_semantics = [#tpu.dimension_semantics<parallel>, #tpu.dimension_semantics<arbitrary>], iteration_bounds = array<i64: 2, 4>, scalar_prefetch = 0 : i64, scratch_operands = 1 : i64, tpu.core_type = #tpu.core_type<tc>, window_params = [{transform_indices = @transform_0, window_bounds = array<i64: 1>}, {transform_indices = @transform_1, window_bounds = array<i64: 2, 2048>}, {transform_indices = @transform_2, window_bounds = array<i64: 2048, 1024>}, {transform_indices = @transform_3, window_bounds = array<i64: 1, 1024>}, {transform_indices = @transform_4, window_bounds = array<i64: 2, 1024>}]} {
    %c0_i32 = arith.constant 0 : i32
    %0 = arith.cmpi eq, %arg1, %c0_i32 : i32
    %1 = arith.extui %0 : i1 to i32
    %c0_i32_0 = arith.constant 0 : i32
    %2 = arith.cmpi ne, %1, %c0_i32_0 : i32
    scf.if %2 {
      %cst_7 = arith.constant 0.000000e+00 : f32
      %12 = vector.broadcast %cst_7 : f32 to vector<2x1024xf32>
      %c0_8 = arith.constant 0 : index
      %c0_9 = arith.constant 0 : index
      %13 = vector.load %arg7[%c0_8, %c0_9] : memref<2x1024xf32, #tpu.memory_space<vmem>>, vector<2x1024xf32>
      tpu.vector_store %arg7[%c0_8, %c0_9], %12 {strides = array<i32>} : memref<2x1024xf32, #tpu.memory_space<vmem>>, vector<2x1024xf32>,
    } else {
    }
    %c0 = arith.constant 0 : index
    %c0_1 = arith.constant 0 : index
    %3 = vector.load %arg3[%c0, %c0_1] : memref<2x2048xbf16, #tpu.memory_space<vmem>>, vector<2x2048xbf16>
    %c0_2 = arith.constant 0 : index
    %c0_3 = arith.constant 0 : index
    %4 = vector.load %arg4[%c0_2, %c0_3] : memref<2048x1024xbf16, #tpu.memory_space<vmem>>, vector<2048x1024xbf16>
    %cst = arith.constant dense<0.000000e+00> : vector<2x1024xf32>
    %5 = tpu.matmul %3, %4, %cst {dimension_numbers = #tpu.dot_dimension_numbers<[1], [0], [0], [1], [0, 0, 1, 1], [], []>} : vector<2x2048xbf16>, vector<2048x1024xbf16>, vector<2x1024xf32> -> vector<2x1024xf32>
    %c3_i32 = arith.constant 3 : i32
    %6 = arith.cmpi slt, %arg1, %c3_i32 : i32
    %7 = arith.extui %6 : i1 to i32
    %c0_i32_4 = arith.constant 0 : i32
    %8 = arith.cmpi ne, %7, %c0_i32_4 : i32
    scf.if %8 {
      %c0_7 = arith.constant 0 : index
      %c0_8 = arith.constant 0 : index
      %12 = vector.load %arg7[%c0_7, %c0_8] : memref<2x1024xf32, #tpu.memory_space<vmem>>, vector<2x1024xf32>
      %13 = arith.addf %12, %5 : vector<2x1024xf32>
      %c0_9 = arith.constant 0 : index
      %c0_10 = arith.constant 0 : index
      %14 = vector.load %arg7[%c0_9, %c0_10] : memref<2x1024xf32, #tpu.memory_space<vmem>>, vector<2x1024xf32>
      tpu.vector_store %arg7[%c0_9, %c0_10], %13 {strides = array<i32>} : memref<2x1024xf32, #tpu.memory_space<vmem>>, vector<2x1024xf32>,
    } else {
    }
    %c3_i32_5 = arith.constant 3 : i32
    %9 = arith.cmpi eq, %arg1, %c3_i32_5 : i32
    %10 = arith.extui %9 : i1 to i32
    %c0_i32_6 = arith.constant 0 : i32
    %11 = arith.cmpi ne, %10, %c0_i32_6 : i32
    scf.if %11 {
      %c0_7 = arith.constant 0 : index
      %c0_8 = arith.constant 0 : index
      %12 = vector.load %arg7[%c0_7, %c0_8] : memref<2x1024xf32, #tpu.memory_space<vmem>>, vector<2x1024xf32>
      %13 = arith.addf %12, %5 : vector<2x1024xf32>
      %c0_9 = arith.constant 0 : index
      %c0_10 = arith.constant 0 : index
      %14 = vector.load %arg5[%c0_9, %c0_10] : memref<1x1024xf32, #tpu.memory_space<vmem>>, vector<1x1024xf32>
      %15 = vector.broadcast %14 : vector<1x1024xf32> to vector<2x1024xf32>
      %16 = arith.addf %13, %15 : vector<2x1024xf32>
      %c0_11 = arith.constant 0 : index
      %17 = memref.load %arg2[%c0_11] : memref<1xf32, #tpu.memory_space<smem>>
      %cst_12 = arith.constant 0.000000e+00 : f32
      %18 = vector.broadcast %cst_12 : f32 to vector<2x1024xf32>
      %19 = arith.cmpf ogt, %16, %18 : vector<2x1024xf32>
      %20 = vector.broadcast %17 : f32 to vector<2x1024xf32>
      %21 = arith.mulf %20, %16 : vector<2x1024xf32>
      %22 = arith.select %19, %16, %21 : vector<2x1024xi1>, vector<2x1024xf32>
      %23 = arith.truncf %22 : vector<2x1024xf32> to vector<2x1024xbf16>
      %c0_13 = arith.constant 0 : index
      %c0_14 = arith.constant 0 : index
      %24 = vector.load %arg6[%c0_13, %c0_14] : memref<2x1024xbf16, #tpu.memory_space<vmem>>, vector<2x1024xbf16>
      tpu.vector_store %arg6[%c0_13, %c0_14], %23 {strides = array<i32>} : memref<2x1024xbf16, #tpu.memory_space<vmem>>, vector<2x1024xbf16>,
    } else {
    }
    return
  }
  func.func @transform_0(%arg0: i32, %arg1: i32) -> i32 {
    %c0_i32 = arith.constant 0 : i32
    %c0_i32_0 = arith.constant 0 : i32
    return %c0_i32 : i32
  }
  func.func @transform_1(%arg0: i32, %arg1: i32) -> (i32, i32) {
    %c0_i32 = arith.constant 0 : i32
    %c0_i32_0 = arith.constant 0 : i32
    return %c0_i32, %arg1 : i32, i32
  }
  func.func @transform_2(%arg0: i32, %arg1: i32) -> (i32, i32) {
    %c0_i32 = arith.constant 0 : i32
    return %arg1, %arg0 : i32, i32
  }
  func.func @transform_3(%arg0: i32, %arg1: i32) -> (i32, i32) {
    %c0_i32 = arith.constant 0 : i32
    %c0_i32_0 = arith.constant 0 : i32
    return %c0_i32, %arg0 : i32, i32
  }
  func.func @transform_4(%arg0: i32, %arg1: i32) -> (i32, i32) {
    %c0_i32 = arith.constant 0 : i32
    %c0_i32_0 = arith.constant 0 : i32
    return %c0_i32, %arg0 : i32, i32
  }
}

module attributes {stable_mosaic.version = 11 : i64} {
  func.func @_tail_kernel(%arg0: i32, %arg1: memref<2xf32, #tpu.memory_space<smem>>, %arg2: memref<2x1024xbf16, #tpu.memory_space<vmem>>, %arg3: memref<1024x512xbf16, #tpu.memory_space<vmem>>, %arg4: memref<1x512xf32, #tpu.memory_space<vmem>>, %arg5: memref<512x256xbf16, #tpu.memory_space<vmem>>, %arg6: memref<1x256xf32, #tpu.memory_space<vmem>>, %arg7: memref<256x128xbf16, #tpu.memory_space<vmem>>, %arg8: memref<1x128xf32, #tpu.memory_space<vmem>>, %arg9: memref<256x16xbf16, #tpu.memory_space<vmem>>, %arg10: memref<1x16xf32, #tpu.memory_space<vmem>>, %arg11: memref<2x128xf32, #tpu.memory_space<vmem>>, %arg12: memref<2x16xf32, #tpu.memory_space<vmem>>, %arg13: memref<2x512xf32, #tpu.memory_space<vmem>>) attributes {dimension_semantics = [#tpu.dimension_semantics<arbitrary>], iteration_bounds = array<i64: 2>, scalar_prefetch = 0 : i64, scratch_operands = 1 : i64, tpu.core_type = #tpu.core_type<tc>, window_params = [{transform_indices = @transform_0, window_bounds = array<i64: 2>}, {transform_indices = @transform_1, window_bounds = array<i64: 2, 1024>}, {transform_indices = @transform_2, window_bounds = array<i64: 1024, 512>}, {pipeline_mode = #tpu.pipeline_mode<synchronous>, transform_indices = @transform_3, window_bounds = array<i64: 1, 512>}, {pipeline_mode = #tpu.pipeline_mode<synchronous>, transform_indices = @transform_4, window_bounds = array<i64: 512, 256>}, {pipeline_mode = #tpu.pipeline_mode<synchronous>, transform_indices = @transform_5, window_bounds = array<i64: 1, 256>}, {pipeline_mode = #tpu.pipeline_mode<synchronous>, transform_indices = @transform_6, window_bounds = array<i64: 256, 128>}, {pipeline_mode = #tpu.pipeline_mode<synchronous>, transform_indices = @transform_7, window_bounds = array<i64: 1, 128>}, {pipeline_mode = #tpu.pipeline_mode<synchronous>, transform_indices = @transform_8, window_bounds = array<i64: 256, 16>}, {pipeline_mode = #tpu.pipeline_mode<synchronous>, transform_indices = @transform_9, window_bounds = array<i64: 1, 16>}, {pipeline_mode = #tpu.pipeline_mode<synchronous>, transform_indices = @transform_10, window_bounds = array<i64: 2, 128>}, {pipeline_mode = #tpu.pipeline_mode<synchronous>, transform_indices = @transform_11, window_bounds = array<i64: 2, 16>}]} {
    %c0_i32 = arith.constant 0 : i32
    %0 = arith.cmpi eq, %arg0, %c0_i32 : i32
    %1 = arith.extui %0 : i1 to i32
    %c0_i32_0 = arith.constant 0 : i32
    %2 = arith.cmpi ne, %1, %c0_i32_0 : i32
    scf.if %2 {
      %cst_7 = arith.constant 0.000000e+00 : f32
      %12 = vector.broadcast %cst_7 : f32 to vector<2x512xf32>
      %c0_8 = arith.constant 0 : index
      %c0_9 = arith.constant 0 : index
      %13 = vector.load %arg13[%c0_8, %c0_9] : memref<2x512xf32, #tpu.memory_space<vmem>>, vector<2x512xf32>
      tpu.vector_store %arg13[%c0_8, %c0_9], %12 {strides = array<i32>} : memref<2x512xf32, #tpu.memory_space<vmem>>, vector<2x512xf32>,
    } else {
    }
    %c0 = arith.constant 0 : index
    %c0_1 = arith.constant 0 : index
    %3 = vector.load %arg2[%c0, %c0_1] : memref<2x1024xbf16, #tpu.memory_space<vmem>>, vector<2x1024xbf16>
    %c0_2 = arith.constant 0 : index
    %c0_3 = arith.constant 0 : index
    %4 = vector.load %arg3[%c0_2, %c0_3] : memref<1024x512xbf16, #tpu.memory_space<vmem>>, vector<1024x512xbf16>
    %cst = arith.constant dense<0.000000e+00> : vector<2x512xf32>
    %5 = tpu.matmul %3, %4, %cst {dimension_numbers = #tpu.dot_dimension_numbers<[1], [0], [0], [1], [0, 0, 1, 1], [], []>} : vector<2x1024xbf16>, vector<1024x512xbf16>, vector<2x512xf32> -> vector<2x512xf32>
    %c1_i32 = arith.constant 1 : i32
    %6 = arith.cmpi slt, %arg0, %c1_i32 : i32
    %7 = arith.extui %6 : i1 to i32
    %c0_i32_4 = arith.constant 0 : i32
    %8 = arith.cmpi ne, %7, %c0_i32_4 : i32
    scf.if %8 {
      %c0_7 = arith.constant 0 : index
      %c0_8 = arith.constant 0 : index
      %12 = vector.load %arg13[%c0_7, %c0_8] : memref<2x512xf32, #tpu.memory_space<vmem>>, vector<2x512xf32>
      %13 = arith.addf %12, %5 : vector<2x512xf32>
      %c0_9 = arith.constant 0 : index
      %c0_10 = arith.constant 0 : index
      %14 = vector.load %arg13[%c0_9, %c0_10] : memref<2x512xf32, #tpu.memory_space<vmem>>, vector<2x512xf32>
      tpu.vector_store %arg13[%c0_9, %c0_10], %13 {strides = array<i32>} : memref<2x512xf32, #tpu.memory_space<vmem>>, vector<2x512xf32>,
    } else {
    }
    %c1_i32_5 = arith.constant 1 : i32
    %9 = arith.cmpi eq, %arg0, %c1_i32_5 : i32
    %10 = arith.extui %9 : i1 to i32
    %c0_i32_6 = arith.constant 0 : i32
    %11 = arith.cmpi ne, %10, %c0_i32_6 : i32
    scf.if %11 {
      %c0_7 = arith.constant 0 : index
      %12 = memref.load %arg1[%c0_7] : memref<2xf32, #tpu.memory_space<smem>>
      %c1 = arith.constant 1 : index
      %13 = memref.load %arg1[%c1] : memref<2xf32, #tpu.memory_space<smem>>
      %c0_8 = arith.constant 0 : index
      %c0_9 = arith.constant 0 : index
      %14 = vector.load %arg13[%c0_8, %c0_9] : memref<2x512xf32, #tpu.memory_space<vmem>>, vector<2x512xf32>
      %15 = arith.addf %14, %5 : vector<2x512xf32>
      %c0_10 = arith.constant 0 : index
      %c0_11 = arith.constant 0 : index
      %16 = vector.load %arg4[%c0_10, %c0_11] : memref<1x512xf32, #tpu.memory_space<vmem>>, vector<1x512xf32>
      %17 = vector.broadcast %16 : vector<1x512xf32> to vector<2x512xf32>
      %18 = arith.addf %15, %17 : vector<2x512xf32>
      %cst_12 = arith.constant 0.000000e+00 : f32
      %19 = vector.broadcast %cst_12 : f32 to vector<2x512xf32>
      %20 = arith.cmpf ogt, %18, %19 : vector<2x512xf32>
      %21 = vector.broadcast %12 : f32 to vector<2x512xf32>
      %22 = arith.mulf %21, %18 : vector<2x512xf32>
      %23 = arith.select %20, %18, %22 : vector<2x512xi1>, vector<2x512xf32>
      %24 = arith.truncf %23 : vector<2x512xf32> to vector<2x512xbf16>
      %c0_13 = arith.constant 0 : index
      %c0_14 = arith.constant 0 : index
      %25 = vector.load %arg5[%c0_13, %c0_14] : memref<512x256xbf16, #tpu.memory_space<vmem>>, vector<512x256xbf16>
      %cst_15 = arith.constant dense<0.000000e+00> : vector<2x256xf32>
      %26 = tpu.matmul %24, %25, %cst_15 {dimension_numbers = #tpu.dot_dimension_numbers<[1], [0], [0], [1], [0, 0, 1, 1], [], []>} : vector<2x512xbf16>, vector<512x256xbf16>, vector<2x256xf32> -> vector<2x256xf32>
      %c0_16 = arith.constant 0 : index
      %c0_17 = arith.constant 0 : index
      %27 = vector.load %arg6[%c0_16, %c0_17] : memref<1x256xf32, #tpu.memory_space<vmem>>, vector<1x256xf32>
      %28 = vector.broadcast %27 : vector<1x256xf32> to vector<2x256xf32>
      %29 = arith.addf %26, %28 : vector<2x256xf32>
      %cst_18 = arith.constant 0.000000e+00 : f32
      %30 = vector.broadcast %cst_18 : f32 to vector<2x256xf32>
      %31 = arith.cmpf ogt, %29, %30 : vector<2x256xf32>
      %32 = vector.broadcast %13 : f32 to vector<2x256xf32>
      %33 = arith.mulf %32, %29 : vector<2x256xf32>
      %34 = arith.select %31, %29, %33 : vector<2x256xi1>, vector<2x256xf32>
      %35 = arith.truncf %34 : vector<2x256xf32> to vector<2x256xbf16>
      %c0_19 = arith.constant 0 : index
      %c0_20 = arith.constant 0 : index
      %36 = vector.load %arg7[%c0_19, %c0_20] : memref<256x128xbf16, #tpu.memory_space<vmem>>, vector<256x128xbf16>
      %cst_21 = arith.constant dense<0.000000e+00> : vector<2x128xf32>
      %37 = tpu.matmul %35, %36, %cst_21 {dimension_numbers = #tpu.dot_dimension_numbers<[1], [0], [0], [1], [0, 0, 1, 1], [], []>} : vector<2x256xbf16>, vector<256x128xbf16>, vector<2x128xf32> -> vector<2x128xf32>
      %c0_22 = arith.constant 0 : index
      %c0_23 = arith.constant 0 : index
      %38 = vector.load %arg8[%c0_22, %c0_23] : memref<1x128xf32, #tpu.memory_space<vmem>>, vector<1x128xf32>
      %39 = vector.broadcast %38 : vector<1x128xf32> to vector<2x128xf32>
      %40 = arith.addf %37, %39 : vector<2x128xf32>
      %c0_24 = arith.constant 0 : index
      %c0_25 = arith.constant 0 : index
      %41 = vector.load %arg9[%c0_24, %c0_25] : memref<256x16xbf16, #tpu.memory_space<vmem>>, vector<256x16xbf16>
      %cst_26 = arith.constant dense<0.000000e+00> : vector<2x16xf32>
      %42 = tpu.matmul %35, %41, %cst_26 {dimension_numbers = #tpu.dot_dimension_numbers<[1], [0], [0], [1], [0, 0, 1, 1], [], []>} : vector<2x256xbf16>, vector<256x16xbf16>, vector<2x16xf32> -> vector<2x16xf32>
      %c0_27 = arith.constant 0 : index
      %c0_28 = arith.constant 0 : index
      %43 = vector.load %arg10[%c0_27, %c0_28] : memref<1x16xf32, #tpu.memory_space<vmem>>, vector<1x16xf32>
      %44 = vector.broadcast %43 : vector<1x16xf32> to vector<2x16xf32>
      %45 = arith.addf %42, %44 : vector<2x16xf32>
      %46 = arith.mulf %40, %40 : vector<2x128xf32>
      %cst_29 = arith.constant dense<0.000000e+00> : vector<2xf32>
      %47 = vector.multi_reduction <add>, %46, %cst_29 [1] : vector<2x128xf32> to vector<2xf32>
      %48 = vector.shape_cast %47 : vector<2xf32> to vector<2x1xf32>
      %49 = math.sqrt %48 : vector<2x1xf32>
      %cst_30 = arith.constant 9.99999996E-13 : f32
      %50 = vector.broadcast %cst_30 : f32 to vector<2x1xf32>
      %51 = arith.maximumf %49, %50 : vector<2x1xf32>
      %52 = vector.broadcast %51 : vector<2x1xf32> to vector<2x128xf32>
      %53 = arith.divf %40, %52 : vector<2x128xf32>
      %c0_31 = arith.constant 0 : index
      %c0_32 = arith.constant 0 : index
      %54 = vector.load %arg11[%c0_31, %c0_32] : memref<2x128xf32, #tpu.memory_space<vmem>>, vector<2x128xf32>
      tpu.vector_store %arg11[%c0_31, %c0_32], %53 {strides = array<i32>} : memref<2x128xf32, #tpu.memory_space<vmem>>, vector<2x128xf32>,
      %c0_33 = arith.constant 0 : index
      %c0_34 = arith.constant 0 : index
      %55 = vector.load %arg12[%c0_33, %c0_34] : memref<2x16xf32, #tpu.memory_space<vmem>>, vector<2x16xf32>
      tpu.vector_store %arg12[%c0_33, %c0_34], %45 {strides = array<i32>} : memref<2x16xf32, #tpu.memory_space<vmem>>, vector<2x16xf32>,
    } else {
    }
    return
  }
  func.func @transform_0(%arg0: i32) -> i32 {
    %c0_i32 = arith.constant 0 : i32
    %c0_i32_0 = arith.constant 0 : i32
    return %c0_i32 : i32
  }
  func.func @transform_1(%arg0: i32) -> (i32, i32) {
    %c0_i32 = arith.constant 0 : i32
    %c0_i32_0 = arith.constant 0 : i32
    return %c0_i32, %arg0 : i32, i32
  }
  func.func @transform_2(%arg0: i32) -> (i32, i32) {
    %c0_i32 = arith.constant 0 : i32
    %c0_i32_0 = arith.constant 0 : i32
    return %arg0, %c0_i32 : i32, i32
  }
  func.func @transform_3(%arg0: i32) -> (i32, i32) {
    %c0_i32 = arith.constant 0 : i32
    %c0_i32_0 = arith.constant 0 : i32
    %c0_i32_1 = arith.constant 0 : i32
    return %c0_i32, %c0_i32_0 : i32, i32
  }
  func.func @transform_4(%arg0: i32) -> (i32, i32) {
    %c0_i32 = arith.constant 0 : i32
    %c0_i32_0 = arith.constant 0 : i32
    %c0_i32_1 = arith.constant 0 : i32
    return %c0_i32, %c0_i32_0 : i32, i32
  }
  func.func @transform_5(%arg0: i32) -> (i32, i32) {
    %c0_i32 = arith.constant 0 : i32
    %c0_i32_0 = arith.constant 0 : i32
    %c0_i32_1 = arith.constant 0 : i32
    return %c0_i32, %c0_i32_0 : i32, i32
  }
  func.func @transform_6(%arg0: i32) -> (i32, i32) {
    %c0_i32 = arith.constant 0 : i32
    %c0_i32_0 = arith.constant 0 : i32
    %c0_i32_1 = arith.constant 0 : i32
    return %c0_i32, %c0_i32_0 : i32, i32
  }
  func.func @transform_7(%arg0: i32) -> (i32, i32) {
    %c0_i32 = arith.constant 0 : i32
    %c0_i32_0 = arith.constant 0 : i32
    %c0_i32_1 = arith.constant 0 : i32
    return %c0_i32, %c0_i32_0 : i32, i32
  }
  func.func @transform_8(%arg0: i32) -> (i32, i32) {
    %c0_i32 = arith.constant 0 : i32
    %c0_i32_0 = arith.constant 0 : i32
    %c0_i32_1 = arith.constant 0 : i32
    return %c0_i32, %c0_i32_0 : i32, i32
  }
  func.func @transform_9(%arg0: i32) -> (i32, i32) {
    %c0_i32 = arith.constant 0 : i32
    %c0_i32_0 = arith.constant 0 : i32
    %c0_i32_1 = arith.constant 0 : i32
    return %c0_i32, %c0_i32_0 : i32, i32
  }
  func.func @transform_10(%arg0: i32) -> (i32, i32) {
    %c0_i32 = arith.constant 0 : i32
    %c0_i32_0 = arith.constant 0 : i32
    %c0_i32_1 = arith.constant 0 : i32
    return %c0_i32, %c0_i32_0 : i32, i32
  }
  func.func @transform_11(%arg0: i32) -> (i32, i32) {
    %c0_i32 = arith.constant 0 : i32
    %c0_i32_0 = arith.constant 0 : i32
    %c0_i32_1 = arith.constant 0 : i32
    return %c0_i32, %c0_i32_0 : i32, i32
  }
}

</mosaic_0001>

<bundles_post_ra>
// kernel: combine_net_forward.2
= control target key start
LH: loop header
LB: loop body
LE: loop exit
PB: predicated region body
PF: predicated region fallthrough
CT: control target
= control target key end

     0   :  { %s11263_s0 = inlined_call_operand.<no memory space> [shape: f32[1], index: 0, kind: input, shape index: {}]   ;;  %s11264_s1 = inlined_call_operand.vmem [shape: bf16[2,8192], index: 1, kind: input, shape index: {}]   ;;  %s11265_s2 = inlined_call_operand.hbm [shape: bf16[8192,2048], index: 2, kind: input, shape index: {}]   ;;  %s11266_s3 = inlined_call_operand.hbm [shape: f32[1,2048], index: 3, kind: input, shape index: {}]   ;;  %s11267_s4 = inlined_call_operand.vmem [shape: bf16[2,2048], index: 4, kind: output, shape index: {}]  }
   0x1   :  { %11273 = sst [smem:[#allocation11_spill]] %s11265_s2 }
   0x2   :  { %9 = sst [smem:[#allocation3]] %s11263_s0 }
   0x3   :  { %10 = vsyncpa [#allocation5], 0 }
   0x4   :  { %12 = vsyncpa [#allocation5 + $0x1], 0 }
   0x5   :  { %13 = vsyncpa [#allocation7], 0 }
   0x6   :  { %15 = vsyncpa [#allocation7 + $0x1], 0  ;;  %s9746_s17 = smov 0   ;;  %s9748_s18 = smov 0  }
   0x7   :  { %s9750_s19 = smov 0   ;;  %s9752_s20 = smov 0  }
   0x8   :  { %s9754_s21 = smov 0   ;;  %s9756_s22 = smov 0  }
   0x9   :  { %s9758_s23 = smov 0   ;;  %s9760_s24 = smov 0  }
   0xa   :  { %s9762_s0 = smov 0   ;;  %s9764_s25 = smov 0  }
   0xb   :  { %s9766_s26 = smov 0  }
   0xc LB: > { %s30_s27 = sadd.s32 1, %s9699_s0  ;;  %s89_s28 = sadd.s32 1, %s9687_s22  ;;  %s9707_s26 = sphi %s9766_s26, %s21_s26   ;;  %s9703_s25 = sphi %s9764_s25, %s11299_s25   ;;  %s9699_s0 = sphi %s9762_s0, %s11298_s0   ;;  %s9695_s24 = sphi %s9760_s24, %s11297_s24   ;;  %s9691_s23 = sphi %s9758_s23, %s11296_s23   ;;  %s9687_s22 = sphi %s9756_s22, %s11295_s22   ;;  %s9683_s21 = sphi %s9754_s21, %s11294_s21   ;;  %s9679_s20 = sphi %s9752_s20, %s11293_s20   ;;  %s9675_s19 = sphi %s9750_s19, %s11292_s19   ;;  %s9671_s18 = sphi %s9748_s18, %s11291_s18   ;;  %s9667_s17 = sphi %s9746_s17, %s11290_s17  }
   0xd   : > { %p9803_p0 = scmp.ge.s32.totalorder %s30_s27, 4  ;;  %p96_p1 = scmp.ne.s32.totalorder %s9687_s22, %s9683_s21 }
   0xe   : > { %p11269_p2 = scmp.eq.s32.totalorder %s9707_s26, 0  ;;  %p11268_p4 = scmp.lt.s32.totalorder %s9707_s26, 8 }
   0xf   : > { %s11301_s27 = smov (%p9803_p0, %s30_s27), 0  ;;  %s189_s5 = sand.u32 1, %s9687_s22  }
  0x10   : > { %p98_p3 = por %p11269_p2, %p96_p1  ;;  %s84_s30 = ssub.s32 %s9699_s0, %s11301_s27 }
  0x11   : > { %s8284_s6 = sshll.u32 %s189_s5, 13  ;;  %s8286_s7 = sshll.u32 %s9703_s25, 3 }
  0x12   : > { %s9330_s8 = sshll.u32 %s9699_s0, 12  ;;  %s193_s9 = scalar_lea.vmem [#allocation4], %s8284_s6 }
  0x13   : > { %s203_s10 = sshll.u32 %s193_s9, 4  ;;  %s200_s11 = sadd.s32 %s9330_s8, %s8286_s7  ;;  %s9822_s10 = int_to_ptr.vmem [resolvable:$true] %s203_s10 }
  0x14   : > { %s8288_s12 = sshll.u32 %s200_s11, 6  ;;  %p9826_p5 = pnand %p11268_p4, %p98_p3 }
  0x15   : > { %s11276_s2 = sld [smem:[#allocation11_spill]]  ;;  %s9836_s6 = scalar_lea.sflag [#allocation5], %s189_s5 }
  0x16   : > { %p9555_p8 = pneg %p9826_p5 }
  0x1b   : > { %s9833_s16 = scalar_lea.hbm %s11276_s2, %s8288_s12  ;;  %s9558_s11 = scalar_lea.hbm %s11276_s2, 1048576 }
  0x1c   : > { %s9553_s7 = scalar_lea.hbm %s9833_s16, 131072  ;;  %p9559_p11 = scmp.lt.u32.totalorder %s9833_s16, %s11276_s2 }
  0x1d   : > { %p9554_p7 = scmp.ne.s32.totalorder %s9833_s16, %s9553_s7  ;;  %p9560_p12 = scmp.lt.u32.totalorder %s9558_s11, %s9553_s7 }
  0x1e   : > { %p9562_p1 = scmp.lt.u32.totalorder %s9553_s7, %s9833_s16 }
  0x1f   : > { %p9556_p9 = pnand %p9555_p8, %p9554_p7  ;;  %p9561_p13 = por %p9560_p12, %p9559_p11 }
  0x21   : > { %p9557_p10 = pneg %p9556_p9  ;;  %p9563_p3 = por %p9562_p1, %p9561_p13 }
  0x23   : > { %p9564_p4 = pnand %p9563_p3, %p9557_p10 }
  0x25   : > { %9567 = shalt.err (!%p9564_p4)
}
  0x26   : > { %s9568_s5 = scalar_lea.vmem %s9822_s10, 131072  ;;  %s9709_s15 = smov [#allocation4]  }
  0x27   : > { %p9569_p7 = scmp.ne.s32.totalorder %s9822_s10, %s9568_s5  ;;  %s9573_s8 = sshll.u32 %s9709_s15, 4  ;;  %s9574_s8 = int_to_ptr.vmem [resolvable:$false] %s9573_s8 }
  0x28   : > { %s9575_s9 = scalar_lea.vmem %s9574_s8, 262144  ;;  %p9576_p6 = scmp.lt.s32.totalorder %s9822_s10, %s9574_s8 }
  0x29   : > { %p9571_p9 = pnand %p9569_p7, %p9555_p8  ;;  %p9577_p11 = scmp.lt.s32.totalorder %s9575_s9, %s9568_s5 }
  0x2b   : > { %p9572_p2 = pneg %p9571_p9  ;;  %p9578_p12 = por %p9577_p11, %p9576_p6 }
  0x2d   : > { %p9579_p13 = pnand %p9578_p12, %p9572_p2 }
  0x2f   : > { %9582 = shalt.err (!%p9579_p13)
}
  0x30   : > { %s9710_s7 = smov 1024   ;;  %s9711_s11 = smov 512  }
  0x31   : > { %s9712_s12 = smov 32   ;;  %p230_p2 = scmp.lt.s32.totalorder %s9707_s26, 9 }
  0x32   : > { %9451 = dma.hbm_to_vmem [thread:$0]  (!%p9826_p5), %s9833_s16, 131072, %s9822_s10, %s9836_s6, %s9710_s7, %s9711_s11, %s9712_s12  }
  0x33   : > { %p11277_p4 = scmp.ge.s32.totalorder %s9707_s26, 1  ;;  %s8280_s5 = sadd.s32 4294967295, %s9707_s26  }
  0x34   : > { %s33_s15 = sadd.s32 1, %s9703_s25  ;;  %p102_p8 = scmp.ne.s32.totalorder %s9683_s21, %s9679_s20 }
  0x35   : > { %p9867_p6 = pnand %p11277_p4, %p230_p2  ;;  %s11303_s15 = smov (!%p9803_p0, %s33_s15), %s9703_s25 }
  0x36   : > { %p9878_p10 = scmp.eq.s32.totalorder %s8280_s5, 0  ;;  %p35_p5 = scmp.ge.s32.totalorder %s11303_s15, 2 }
  0x37   : > { %s115_s10 = sadd.s32 1, %s9675_s19  ;;  %p122_p3 = scmp.ne.s32.totalorder %s9675_s19, %s9671_s18 }
  0x38   : > { %p9885_p1 = por %p9878_p10, %p102_p8  ;;  %s11305_s15 = smov (%p35_p5, %s11303_s15), 0 }
  0x39   : > { %11281 = sst [smem:[#allocation10_spill]] %s11305_s15  ;;  %p11282_p0 = scmp.eq.s32.totalorder %s9707_s26, 0 }
  0x3a   : > { %s11280_s16 = scalar_select %p9885_p1, 1, 0 }
  0x3b   : > { %p9895_p7 = por %p122_p3, %p11282_p0  ;;  %p128_p9 = scmp.ne.s32.totalorder %s9671_s18, %s9667_s17 }
  0x3c   : > { %s85_s29 = ssub.s32 %s9703_s25, %s11305_s15  ;;  %s213_s6 = sand.u32 1, %s9675_s19  }
  0x3d   : > { %s86_s8 = sor.u32 %s85_s29, %s84_s30  ;;  %p113_p11 = scmp.eq.s32.totalorder %s85_s29, 0 }
  0x3e   : > { %p87_p12 = scmp.eq.s32.totalorder %s86_s8, 0  ;;  %p9909_p13 = por %p128_p9, %p9878_p10 }
  0x3f   : > { %s9914_s7 = scalar_select %p113_p11, %s9675_s19, %s115_s10  }
  0x40   : > { %s11284_s9 = scalar_select %p9909_p13, 1, 0 }
  0x41   : > { %s9919_s11 = scalar_select %p87_p12, %s9687_s22, %s89_s28  }
  0x42   : > { %s8289_s12 = sshll.u32 %s213_s6, 3  ;;  %s9331_s5 = sshll.u32 %s9703_s25, 7 }
  0x43   : > { %s9925_s15 = scalar_lea.hbm %s11266_s3, %s9331_s5  ;;  %s217_s30 = scalar_lea.vmem [#allocation6], %s8289_s12 }
  0x44   : > { %s225_s13 = sshll.u32 %s217_s30, 4  ;;  %p11285_p2 = scmp.lt.s32.totalorder %s9707_s26, 8  ;;  %s9927_s13 = int_to_ptr.vmem [resolvable:$true] %s225_s13 }
  0x45   : > { %s214_s10 = scalar_lea.sflag [#allocation7], %s213_s6  ;;  %s9583_s2 = scalar_lea.hbm %s9925_s15, 128 }
  0x46   : > { %p9933_p4 = pnand %p11285_p2, %p9895_p7  ;;  %p9584_p8 = scmp.ne.s32.totalorder %s9925_s15, %s9583_s2 }
  0x47   : > { %s9588_s20 = scalar_lea.hbm %s11266_s3, 256  ;;  %p9589_p0 = scmp.lt.u32.totalorder %s9925_s15, %s11266_s3 }
  0x48   : > { %p9585_p10 = pneg %p9933_p4  ;;  %p9590_p7 = scmp.lt.u32.totalorder %s9588_s20, %s9583_s2 }
  0x49   : > { %p9592_p11 = scmp.lt.u32.totalorder %s9583_s2, %s9925_s15 }
  0x4a   : > { %p9586_p5 = pnand %p9585_p10, %p9584_p8  ;;  %p9591_p9 = por %p9590_p7, %p9589_p0 }
  0x4c   : > { %p9587_p3 = pneg %p9586_p5  ;;  %p9593_p12 = por %p9592_p11, %p9591_p9 }
  0x4e   : > { %p9594_p2 = pnand %p9593_p12, %p9587_p3 }
  0x50   : > { %9597 = shalt.err (!%p9594_p2)
}
  0x51   : > { %s9598_s6 = scalar_lea.vmem %s9927_s13, 128  ;;  %s9713_s17 = smov [#allocation6]  }
  0x52   : > { %p9599_p8 = scmp.ne.s32.totalorder %s9927_s13, %s9598_s6  ;;  %s9603_s30 = sshll.u32 %s9713_s17, 4  ;;  %s9604_s30 = int_to_ptr.vmem [resolvable:$false] %s9603_s30 }
  0x53   : > { %s9605_s29 = scalar_lea.vmem %s9604_s30, 256  ;;  %p9606_p1 = scmp.lt.s32.totalorder %s9927_s13, %s9604_s30 }
  0x54   : > { %p9601_p5 = pnand %p9599_p8, %p9585_p10  ;;  %p9607_p0 = scmp.lt.s32.totalorder %s9605_s29, %s9598_s6 }
  0x56   : > { %p9602_p13 = pneg %p9601_p5  ;;  %p9608_p7 = por %p9607_p0, %p9606_p1 }
  0x58   : > { %p9609_p9 = pnand %p9608_p7, %p9602_p13 }
  0x5a   : > { %9612 = shalt.err (!%p9609_p9)
}
  0x5b   : > { %9454 = dma.hbm_to_vmem [thread:$0]  (!%p9933_p4), %s9925_s15, 128, %s9927_s13, %s214_s10  }
  0x5c   : > { %234 = sbr.rel (%p9867_p6) target bundleno = 1405 (0x57d), region = 36  ;;  %s236_s2 = sand.u32 (!%p9867_p6), 1, %s9683_s21  }
  0x5d   : > { %s8293_s8 = sshll.u32 (!%p9867_p6), %s236_s2, 13  ;;  %s237_s20 = scalar_lea.sflag (!%p9867_p6), [#allocation5], %s236_s2 }
  0x5e   : > { %s9965_s12 = scalar_lea.vmem (!%p9867_p6), [#allocation4], %s8293_s8  ;;  %p11287_p10 = scmp.ne.s32.totalorder (!%p9867_p6), %s11280_s16, 0 }
  0x63   : > { %9658 = dma.done.wait (%p11287_p10), %s237_s20, 131072  }
  0x64   : > { %9660 = vsyncadd (%p11287_p10), %s237_s20, 4294836224  ;;  %s245_s28 = sand.u32 1, %s9671_s18   ;;  %p11288_p6 = scmp.ne.s32.totalorder %s11284_s9, 0 }
  0x65   : > { %s9972_s5 = sshll.u32 %s245_s28, 3  ;;  %s246_s14 = scalar_lea.sflag [#allocation7], %s245_s28 }
  0x66   : > { %s249_s15 = scalar_lea.vmem [#allocation6], %s9972_s5 }
  0x67   : > { %9662 = dma.done.wait (%p11288_p6), %s246_s14, 128  }
  0x68   : > { %9664 = vsyncadd (%p11288_p6), %s246_s14, 4294967168  ;;  %s8295_s13 = sshll.u32 %s9691_s23, 4  ;;  %s8296_s10 = sshll.u32 %s9695_s24, 3 }
  0x69   : > { %p283_p1 = scmp.lt.s32.totalorder %s8295_s13, 63  ;;  %p291_p13 = scmp.lt.s32.totalorder %s8296_s10, 15 }
  0x6a   : > { %p8297_p4 = scmp.ne.s32.totalorder %s9691_s23, 0 }
  0x6b   : > { %s11307_s13 = smov (!%p283_p1, %s8295_s13), 63  ;;  %s11309_s10 = smov (!%p291_p13, %s8296_s10), 15 }
  0x6c   : > { %s9986_s17 = scalar_lea.vmem %s11264_s1, %s11307_s13  ;;  %s293_s9 = scalar_lea.vmem %s11267_s4, %s11309_s10  ;;  %v9714_v0 = vmov (!%p8297_p4), 0.0  }
  0x6d   : > { %298 = sbr.rel (%p8297_p4) target bundleno = 116 (0x74), region = 48  ;;  %299 = vst [vmem:[#allocation2] sm:$0xff] (!%p8297_p4), %v9714_v0  ;;  %300 = vst [vmem:[#allocation2 + $0x8] sm:$0xff] (!%p8297_p4), %v9714_v0 }
  0x74 PF: > { %v303_v1 = vld [vmem:[%s9965_s12] sm:$0xff]  ;;  %v304_v3 = vld [vmem:[%s9965_s12 + $0x8] sm:$0xff]  ;;  %v9715_v33 = vmov 1966171168   ;;  %v1333_v35 = vlaneseq  ;;  %v10027_v60 = vld [vmem:[%s9986_s17] sm:$0xff]  ;;  %p9322_p3 = scmp.ge.s32.totalorder %s9691_s23, 3 }
  0x75   : > { %v307_v2 = vld [vmem:[%s9965_s12 + $0x20] sm:$0xff]  ;;  %v308_v5 = vld [vmem:[%s9965_s12 + $0x28] sm:$0xff]  ;;  %v1331_v34 = vunpack.c.l.s4 %v9715_v33 }
  0x76   : > { %v8299_v4 = vcombine.high %v303_v1, %v307_v2  ;;  %v8298_v6 = vcombine.low %v303_v1, %v307_v2  ;;  %v311_v7 = vld [vmem:[%s9965_s12 + $0x40] sm:$0xff]  ;;  %v8301_v9 = vcombine.high %v304_v3, %v308_v5  ;;  %v8300_v10 = vcombine.low %v304_v3, %v308_v5  ;;  %v312_v12 = vld [vmem:[%s9965_s12 + $0x48] sm:$0xff] }
  0x77   : > { %v315_v8 = vld [vmem:[%s9965_s12 + $0x60] sm:$0xff]  ;;  %v316_v13 = vld [vmem:[%s9965_s12 + $0x68] sm:$0xff]  ;;  %v1332_v44 = vunpack.c.0.s8 %v1331_v34  ;;  %v10015_v45 = vshrl.u32 %v1333_v35, 7 }
  0x78   : > { %v8307_v11 = vcombine.high %v311_v7, %v315_v8  ;;  %v319_v14 = vld [vmem:[%s9965_s12 + $0x80] sm:$0xff]  ;;  %6563 = vmatprep.subr.bf16.mxu0 %v8299_v4  ;;  %v8309_v15 = vcombine.high %v312_v12, %v316_v13  ;;  %v320_v17 = vld [vmem:[%s9965_s12 + $0x88] sm:$0xff]  ;;  %6891 = vmatprep.subr.bf16.mxu1 %v8301_v9  ;;  %v8306_v19 = vcombine.low %v311_v7, %v315_v8 }
  0x79   : > { %v323_v16 = vld [vmem:[%s9965_s12 + $0xa0] sm:$0xff]  ;;  %v324_v18 = vld [vmem:[%s9965_s12 + $0xa8] sm:$0xff]  ;;  %6564 = vmatpush1.bf16.msra.mxu0 %v8298_v6  ;;  %6892 = vmatpush1.bf16.msra.mxu1 %v8300_v10  ;;  %v8308_v20 = vcombine.low %v312_v12, %v316_v13  ;;  %v10022_v54 = vsub.s32 %v1332_v44, %v10015_v45 }
  0x7a   : > { %6565 = vmatprep.subr.bf16.mxu0 %v8307_v11  ;;  %v8315_v21 = vcombine.high %v319_v14, %v323_v16  ;;  %6893 = vmatprep.subr.bf16.mxu1 %v8309_v15  ;;  %v8317_v22 = vcombine.high %v320_v17, %v324_v18  ;;  %v327_v23 = vld [vmem:[%s9965_s12 + $0xc0] sm:$0xff]  ;;  %v328_v25 = vld [vmem:[%s9965_s12 + $0xc8] sm:$0xff]  ;;  %v8314_v27 = vcombine.low %v319_v14, %v323_v16 }
  0x7b   : > { %v331_v24 = vld [vmem:[%s9965_s12 + $0xe0] sm:$0xff]  ;;  %v332_v26 = vld [vmem:[%s9965_s12 + $0xe8] sm:$0xff]  ;;  %v8316_v28 = vcombine.low %v320_v17, %v324_v18  ;;  %v10033_v0 = vrot.slane %v10027_v60, %v10022_v54 }
  0x7c   : > { %v8323_v29 = vcombine.high %v327_v23, %v331_v24  ;;  %v8325_v30 = vcombine.high %v328_v25, %v332_v26  ;;  %v335_v31 = vld [vmem:[%s9965_s12 + $0x100] sm:$0xff]  ;;  %v336_v36 = vld [vmem:[%s9965_s12 + $0x108] sm:$0xff]  ;;  %v8322_v38 = vcombine.low %v327_v23, %v331_v24  ;;  %v8324_v39 = vcombine.low %v328_v25, %v332_v26 }
  0x7d   : > { %6566 = vmatpush1.bf16.msra.mxu0 %v8306_v19  ;;  %6894 = vmatpush1.bf16.msra.mxu1 %v8308_v20  ;;  %v339_v32 = vld [vmem:[%s9965_s12 + $0x120] sm:$0xff]  ;;  %v340_v37 = vld [vmem:[%s9965_s12 + $0x128] sm:$0xff]  ;;  %v1344_v4 = vcombine.high %v10033_v0, %v10033_v0 }
  0x7e   : > { %6567 = vmatprep.subr.bf16.mxu0 %v8315_v21  ;;  %6895 = vmatprep.subr.bf16.mxu1 %v8317_v22  ;;  %v8331_v40 = vcombine.high %v335_v31, %v339_v32  ;;  %v8333_v41 = vcombine.high %v336_v36, %v340_v37  ;;  %v343_v42 = vld [vmem:[%s9965_s12 + $0x140] sm:$0xff]  ;;  %v344_v46 = vld [vmem:[%s9965_s12 + $0x148] sm:$0xff]  ;;  %v8330_v48 = vcombine.low %v335_v31, %v339_v32 }
  0x7f   : > { %v347_v43 = vld [vmem:[%s9965_s12 + $0x160] sm:$0xff]  ;;  %v348_v47 = vld [vmem:[%s9965_s12 + $0x168] sm:$0xff]  ;;  %v8332_v49 = vcombine.low %v336_v36, %v340_v37  ;;  %v10042_v10 = vrot.slane %v1344_v4, %v10022_v54 }
  0x80   : > { %v8339_v50 = vcombine.high %v343_v42, %v347_v43  ;;  %v8341_v51 = vcombine.high %v344_v46, %v348_v47  ;;  %v351_v52 = vld [vmem:[%s9965_s12 + $0x180] sm:$0xff]  ;;  %v352_v55 = vld [vmem:[%s9965_s12 + $0x188] sm:$0xff]  ;;  %v8338_v57 = vcombine.low %v343_v42, %v347_v43  ;;  %v8340_v58 = vcombine.low %v344_v46, %v348_v47 }
  0x81   : > { %6568 = vmatpush1.bf16.msra.mxu0 %v8314_v27  ;;  %6896 = vmatpush1.bf16.msra.mxu1 %v8316_v28  ;;  %v355_v53 = vld [vmem:[%s9965_s12 + $0x1a0] sm:$0xff]  ;;  %v356_v56 = vld [vmem:[%s9965_s12 + $0x1a8] sm:$0xff] }
  0x82   : > { %6569 = vmatprep.subr.bf16.mxu0 %v8323_v29  ;;  %6897 = vmatprep.subr.bf16.mxu1 %v8325_v30  ;;  %v8347_v59 = vcombine.high %v351_v52, %v355_v53  ;;  %v8349_v61 = vcombine.high %v352_v55, %v356_v56  ;;  %v359_v62 = vld [vmem:[%s9965_s12 + $0x1c0] sm:$0xff]  ;;  %v360_v1 = vld [vmem:[%s9965_s12 + $0x1c8] sm:$0xff]  ;;  %v8346_v3 = vcombine.low %v351_v52, %v355_v53 }
  0x83   : > { %v363_v63 = vld [vmem:[%s9965_s12 + $0x1e0] sm:$0xff]  ;;  %v364_v2 = vld [vmem:[%s9965_s12 + $0x1e8] sm:$0xff]  ;;  %v8348_v5 = vcombine.low %v352_v55, %v356_v56  ;;  %6595 = vmatprep.mubr.bf16.mxu0 %v10042_v10  ;;  %6923 = vmatprep.mubr.bf16.mxu1 %v10042_v10 }
  0x84   : > { %v8355_v6 = vcombine.high %v359_v62, %v363_v63  ;;  %v8357_v7 = vcombine.high %v360_v1, %v364_v2  ;;  %v367_v8 = vld [vmem:[%s9965_s12 + $0x200] sm:$0xff]  ;;  %v368_v11 = vld [vmem:[%s9965_s12 + $0x208] sm:$0xff]  ;;  %v8354_v13 = vcombine.low %v359_v62, %v363_v63  ;;  %v8356_v14 = vcombine.low %v360_v1, %v364_v2 }
  0x85   : > { %6570 = vmatpush1.bf16.msra.mxu0 %v8322_v38  ;;  %6898 = vmatpush1.bf16.msra.mxu1 %v8324_v39  ;;  %v371_v9 = vld [vmem:[%s9965_s12 + $0x220] sm:$0xff]  ;;  %v372_v12 = vld [vmem:[%s9965_s12 + $0x228] sm:$0xff] }
  0x86   : > { %6571 = vmatprep.subr.bf16.mxu0 %v8331_v40  ;;  %6899 = vmatprep.subr.bf16.mxu1 %v8333_v41  ;;  %v8363_v15 = vcombine.high %v367_v8, %v371_v9  ;;  %v8365_v16 = vcombine.high %v368_v11, %v372_v12  ;;  %v375_v17 = vld [vmem:[%s9965_s12 + $0x240] sm:$0xff]  ;;  %v376_v19 = vld [vmem:[%s9965_s12 + $0x248] sm:$0xff]  ;;  %v8362_v21 = vcombine.low %v367_v8, %v371_v9 }
  0x87   : > { %v379_v18 = vld [vmem:[%s9965_s12 + $0x260] sm:$0xff]  ;;  %v380_v20 = vld [vmem:[%s9965_s12 + $0x268] sm:$0xff]  ;;  %v8364_v22 = vcombine.low %v368_v11, %v372_v12 }
  0x88   : > { %v8371_v23 = vcombine.high %v375_v17, %v379_v18  ;;  %v8373_v24 = vcombine.high %v376_v19, %v380_v20  ;;  %v383_v25 = vld [vmem:[%s9965_s12 + $0x280] sm:$0xff]  ;;  %v384_v27 = vld [vmem:[%s9965_s12 + $0x288] sm:$0xff]  ;;  %v8370_v29 = vcombine.low %v375_v17, %v379_v18  ;;  %v8372_v30 = vcombine.low %v376_v19, %v380_v20 }
  0x89   : > { %6572 = vmatpush1.bf16.msra.mxu0 %v8330_v48  ;;  %6900 = vmatpush1.bf16.msra.mxu1 %v8332_v49  ;;  %v387_v26 = vld [vmem:[%s9965_s12 + $0x2a0] sm:$0xff]  ;;  %v388_v28 = vld [vmem:[%s9965_s12 + $0x2a8] sm:$0xff] }
  0x8a   : > { %6573 = vmatprep.subr.bf16.mxu0 %v8339_v50  ;;  %6901 = vmatprep.subr.bf16.mxu1 %v8341_v51  ;;  %v8379_v31 = vcombine.high %v383_v25, %v387_v26  ;;  %v8381_v32 = vcombine.high %v384_v27, %v388_v28  ;;  %v391_v33 = vld [vmem:[%s9965_s12 + $0x2c0] sm:$0xff]  ;;  %v392_v35 = vld [vmem:[%s9965_s12 + $0x2c8] sm:$0xff]  ;;  %v8378_v37 = vcombine.low %v383_v25, %v387_v26 }
  0x8b   : > { %v395_v34 = vld [vmem:[%s9965_s12 + $0x2e0] sm:$0xff]  ;;  %v396_v36 = vld [vmem:[%s9965_s12 + $0x2e8] sm:$0xff]  ;;  %v8380_v38 = vcombine.low %v384_v27, %v388_v28 }
  0x8c   : > { %v8387_v39 = vcombine.high %v391_v33, %v395_v34  ;;  %v8389_v40 = vcombine.high %v392_v35, %v396_v36  ;;  %v399_v41 = vld [vmem:[%s9965_s12 + $0x300] sm:$0xff]  ;;  %v400_v43 = vld [vmem:[%s9965_s12 + $0x308] sm:$0xff]  ;;  %v8386_v46 = vcombine.low %v391_v33, %v395_v34  ;;  %v8388_v47 = vcombine.low %v392_v35, %v396_v36 }
  0x8d   : > { %6574 = vmatpush1.bf16.msra.mxu0 %v8338_v57  ;;  %6902 = vmatpush1.bf16.msra.mxu1 %v8340_v58  ;;  %v403_v42 = vld [vmem:[%s9965_s12 + $0x320] sm:$0xff]  ;;  %v404_v44 = vld [vmem:[%s9965_s12 + $0x328] sm:$0xff]  ;;  %v10092_v33 = vcombine.high %v10042_v10, %v10042_v10 }
  0x8e   : > { %6575 = vmatprep.subr.bf16.mxu0 %v8347_v59  ;;  %6903 = vmatprep.subr.bf16.mxu1 %v8349_v61  ;;  %v8395_v48 = vcombine.high %v399_v41, %v403_v42  ;;  %v8397_v49 = vcombine.high %v400_v43, %v404_v44  ;;  %v407_v50 = vld [vmem:[%s9965_s12 + $0x340] sm:$0xff]  ;;  %v408_v52 = vld [vmem:[%s9965_s12 + $0x348] sm:$0xff]  ;;  %v8394_v55 = vcombine.low %v399_v41, %v403_v42 }
  0x8f   : > { %v411_v51 = vld [vmem:[%s9965_s12 + $0x360] sm:$0xff]  ;;  %v412_v53 = vld [vmem:[%s9965_s12 + $0x368] sm:$0xff]  ;;  %v8396_v56 = vcombine.low %v400_v43, %v404_v44 }
  0x90   : > { %v8403_v57 = vcombine.high %v407_v50, %v411_v51  ;;  %v8405_v58 = vcombine.high %v408_v52, %v412_v53  ;;  %v415_v59 = vld [vmem:[%s9965_s12 + $0x380] sm:$0xff]  ;;  %v416_v62 = vld [vmem:[%s9965_s12 + $0x388] sm:$0xff]  ;;  %v8402_v1 = vcombine.low %v407_v50, %v411_v51  ;;  %v8404_v2 = vcombine.low %v408_v52, %v412_v53 }
  0x91   : > { %6576 = vmatpush1.bf16.msra.mxu0 %v8346_v3  ;;  %6904 = vmatpush1.bf16.msra.mxu1 %v8348_v5  ;;  %v419_v61 = vld [vmem:[%s9965_s12 + $0x3a0] sm:$0xff]  ;;  %v420_v63 = vld [vmem:[%s9965_s12 + $0x3a8] sm:$0xff] }
  0x92   : > { %6577 = vmatprep.subr.bf16.mxu0 %v8355_v6  ;;  %6905 = vmatprep.subr.bf16.mxu1 %v8357_v7  ;;  %v8411_v3 = vcombine.high %v415_v59, %v419_v61  ;;  %v8413_v4 = vcombine.high %v416_v62, %v420_v63  ;;  %v423_v5 = vld [vmem:[%s9965_s12 + $0x3c0] sm:$0xff]  ;;  %v424_v7 = vld [vmem:[%s9965_s12 + $0x3c8] sm:$0xff]  ;;  %v8410_v9 = vcombine.low %v415_v59, %v419_v61 }
  0x93   : > { %v427_v6 = vld [vmem:[%s9965_s12 + $0x3e0] sm:$0xff]  ;;  %v428_v8 = vld [vmem:[%s9965_s12 + $0x3e8] sm:$0xff]  ;;  %v8412_v11 = vcombine.low %v416_v62, %v420_v63 }
  0x94   : > { %v8419_v12 = vcombine.high %v423_v5, %v427_v6  ;;  %v436_v17 = vld [vmem:[%s9965_s12 + $0x428] sm:$0xff]  ;;  %v8418_v18 = vcombine.low %v423_v5, %v427_v6  ;;  %v8420_v19 = vcombine.low %v424_v7, %v428_v8 }
  0x95   : > { %6578 = vmatpush1.bf16.msra.mxu0 %v8354_v13  ;;  %6906 = vmatpush1.bf16.msra.mxu1 %v8356_v14  ;;  %v8421_v13 = vcombine.high %v424_v7, %v428_v8  ;;  %v431_v14 = vld [vmem:[%s9965_s12 + $0x400] sm:$0xff]  ;;  %v440_v25 = vld [vmem:[%s9965_s12 + $0x448] sm:$0xff] }
  0x96   : > { %6579 = vmatprep.subr.bf16.mxu0 %v8363_v15  ;;  %6907 = vmatprep.subr.bf16.mxu1 %v8365_v16  ;;  %v435_v15 = vld [vmem:[%s9965_s12 + $0x420] sm:$0xff]  ;;  %v432_v16 = vld [vmem:[%s9965_s12 + $0x408] sm:$0xff] }
  0x97   : > { %v8427_v20 = vcombine.high %v431_v14, %v435_v15  ;;  %v444_v26 = vld [vmem:[%s9965_s12 + $0x468] sm:$0xff]  ;;  %v8426_v27 = vcombine.low %v431_v14, %v435_v15  ;;  %v8428_v28 = vcombine.low %v432_v16, %v436_v17 }
  0x98   : > { %v452_v34 = vld [vmem:[%s9965_s12 + $0x4a8] sm:$0xff]  ;;  %v8436_v36 = vcombine.low %v440_v25, %v444_v26 }
  0x99   : > { %6580 = vmatpush1.bf16.msra.mxu0 %v8362_v21  ;;  %6908 = vmatpush1.bf16.msra.mxu1 %v8364_v22  ;;  %v8429_v21 = vcombine.high %v432_v16, %v436_v17  ;;  %v439_v22 = vld [vmem:[%s9965_s12 + $0x440] sm:$0xff]  ;;  %v456_v41 = vld [vmem:[%s9965_s12 + $0x4c8] sm:$0xff] }
  0x9a   : > { %6581 = vmatprep.subr.bf16.mxu0 %v8371_v23  ;;  %6909 = vmatprep.subr.bf16.mxu1 %v8373_v24  ;;  %v443_v23 = vld [vmem:[%s9965_s12 + $0x460] sm:$0xff]  ;;  %v10084_v24 = vrot.slane %v10033_v0, %v10022_v54  ;;  %v448_v0 = vld [vmem:[%s9965_s12 + $0x488] sm:$0xff] }
  0x9b   : > { %v8434_v35 = vcombine.low %v439_v22, %v443_v23  ;;  %v460_v42 = vld [vmem:[%s9965_s12 + $0x4e8] sm:$0xff]  ;;  %v8444_v44 = vcombine.low %v448_v0, %v452_v34 }
  0x9c   : > { %v464_v50 = vld [vmem:[%s9965_s12 + $0x508] sm:$0xff]  ;;  %v8452_v53 = vcombine.low %v456_v41, %v460_v42 }
  0x9d   : > { %6582 = vmatpush1.bf16.msra.mxu0 %v8370_v29  ;;  %6910 = vmatpush1.bf16.msra.mxu1 %v8372_v30  ;;  %v8435_v29 = vcombine.high %v439_v22, %v443_v23  ;;  %v8437_v30 = vcombine.high %v440_v25, %v444_v26  ;;  %v468_v51 = vld [vmem:[%s9965_s12 + $0x528] sm:$0xff] }
  0x9e   : > { %6583 = vmatprep.subr.bf16.mxu0 %v8379_v31  ;;  %6911 = vmatprep.subr.bf16.mxu1 %v8381_v32  ;;  %v447_v31 = vld [vmem:[%s9965_s12 + $0x480] sm:$0xff]  ;;  %v472_v59 = vld [vmem:[%s9965_s12 + $0x548] sm:$0xff]  ;;  %v8460_v63 = vcombine.low %v464_v50, %v468_v51 }
  0x9f   : > { %v451_v32 = vld [vmem:[%s9965_s12 + $0x4a0] sm:$0xff]  ;;  %v476_v61 = vld [vmem:[%s9965_s12 + $0x568] sm:$0xff] }
  0xa0   : > { %v8442_v43 = vcombine.low %v447_v31, %v451_v32  ;;  %v480_v5 = vld [vmem:[%s9965_s12 + $0x588] sm:$0xff]  ;;  %v8468_v8 = vcombine.low %v472_v59, %v476_v61 }
  0xa1   : > { %6584 = vmatpush1.bf16.msra.mxu0 %v8378_v37  ;;  %6912 = vmatpush1.bf16.msra.mxu1 %v8380_v38  ;;  %v8443_v37 = vcombine.high %v447_v31, %v451_v32  ;;  %v8445_v38 = vcombine.high %v448_v0, %v452_v34  ;;  %v484_v6 = vld [vmem:[%s9965_s12 + $0x5a8] sm:$0xff] }
  0xa2   : > { %6585 = vmatprep.subr.bf16.mxu0 %v8387_v39  ;;  %6913 = vmatprep.subr.bf16.mxu1 %v8389_v40  ;;  %v455_v39 = vld [vmem:[%s9965_s12 + $0x4c0] sm:$0xff]  ;;  %v488_v14 = vld [vmem:[%s9965_s12 + $0x5c8] sm:$0xff]  ;;  %v8476_v17 = vcombine.low %v480_v5, %v484_v6 }
  0xa3   : > { %v459_v40 = vld [vmem:[%s9965_s12 + $0x4e0] sm:$0xff]  ;;  %v492_v15 = vld [vmem:[%s9965_s12 + $0x5e8] sm:$0xff] }
  0xa4   : > { %v8450_v52 = vcombine.low %v455_v39, %v459_v40  ;;  %v496_v22 = vld [vmem:[%s9965_s12 + $0x608] sm:$0xff]  ;;  %v8484_v26 = vcombine.low %v488_v14, %v492_v15 }
  0xa5   : > { %6586 = vmatpush1.bf16.msra.mxu0 %v8386_v46  ;;  %6914 = vmatpush1.bf16.msra.mxu1 %v8388_v47  ;;  %v8451_v46 = vcombine.high %v455_v39, %v459_v40  ;;  %v8453_v47 = vcombine.high %v456_v41, %v460_v42  ;;  %v500_v23 = vld [vmem:[%s9965_s12 + $0x628] sm:$0xff] }
  0xa6   : > { %6587 = vmatprep.subr.bf16.mxu0 %v8395_v48  ;;  %6915 = vmatprep.subr.bf16.mxu1 %v8397_v49  ;;  %v463_v48 = vld [vmem:[%s9965_s12 + $0x500] sm:$0xff]  ;;  %v504_v31 = vld [vmem:[%s9965_s12 + $0x648] sm:$0xff]  ;;  %v8492_v34 = vcombine.low %v496_v22, %v500_v23 }
  0xa7   : > { %v467_v49 = vld [vmem:[%s9965_s12 + $0x520] sm:$0xff]  ;;  %v508_v32 = vld [vmem:[%s9965_s12 + $0x668] sm:$0xff] }
  0xa8   : > { %v8458_v62 = vcombine.low %v463_v48, %v467_v49  ;;  %v512_v39 = vld [vmem:[%s9965_s12 + $0x688] sm:$0xff]  ;;  %v8500_v42 = vcombine.low %v504_v31, %v508_v32 }
  0xa9   : > { %6588 = vmatpush1.bf16.msra.mxu0 %v8394_v55  ;;  %6916 = vmatpush1.bf16.msra.mxu1 %v8396_v56  ;;  %v8459_v55 = vcombine.high %v463_v48, %v467_v49  ;;  %v8461_v56 = vcombine.high %v464_v50, %v468_v51  ;;  %v516_v40 = vld [vmem:[%s9965_s12 + $0x6a8] sm:$0xff] }
  0xaa   : > { %6589 = vmatprep.subr.bf16.mxu0 %v8403_v57  ;;  %6917 = vmatprep.subr.bf16.mxu1 %v8405_v58  ;;  %v471_v57 = vld [vmem:[%s9965_s12 + $0x540] sm:$0xff]  ;;  %v520_v48 = vld [vmem:[%s9965_s12 + $0x6c8] sm:$0xff]  ;;  %v8508_v51 = vcombine.low %v512_v39, %v516_v40 }
  0xab   : > { %v475_v58 = vld [vmem:[%s9965_s12 + $0x560] sm:$0xff]  ;;  %v524_v49 = vld [vmem:[%s9965_s12 + $0x6e8] sm:$0xff] }
  0xac   : > { %v8466_v7 = vcombine.low %v471_v57, %v475_v58 }
  0xad   : > { %6590 = vmatpush1.bf16.msra.mxu0 %v8402_v1  ;;  %6918 = vmatpush1.bf16.msra.mxu1 %v8404_v2  ;;  %v8467_v1 = vcombine.high %v471_v57, %v475_v58  ;;  %v8469_v2 = vcombine.high %v472_v59, %v476_v61  ;;  %v528_v57 = vld [vmem:[%s9965_s12 + $0x708] sm:$0xff]  ;;  %v8516_v61 = vcombine.low %v520_v48, %v524_v49 }
  0xae   : > { %6591 = vmatprep.subr.bf16.mxu0 %v8411_v3  ;;  %6919 = vmatprep.subr.bf16.mxu1 %v8413_v4  ;;  %v479_v3 = vld [vmem:[%s9965_s12 + $0x580] sm:$0xff]  ;;  %v532_v58 = vld [vmem:[%s9965_s12 + $0x728] sm:$0xff] }
  0xaf   : > { %v483_v4 = vld [vmem:[%s9965_s12 + $0x5a0] sm:$0xff] }
  0xb0   : > { %v8474_v16 = vcombine.low %v479_v3, %v483_v4 }
  0xb1   : > { %6592 = vmatpush1.bf16.msra.mxu0 %v8410_v9  ;;  %6920 = vmatpush1.bf16.msra.mxu1 %v8412_v11  ;;  %v8475_v9 = vcombine.high %v479_v3, %v483_v4  ;;  %v8477_v11 = vcombine.high %v480_v5, %v484_v6  ;;  %v536_v3 = vld [vmem:[%s9965_s12 + $0x748] sm:$0xff]  ;;  %v8524_v6 = vcombine.low %v528_v57, %v532_v58 }
  0xb2   : > { %6593 = vmatprep.subr.bf16.mxu0 %v8419_v12  ;;  %6921 = vmatprep.subr.bf16.mxu1 %v8421_v13  ;;  %v487_v12 = vld [vmem:[%s9965_s12 + $0x5c0] sm:$0xff]  ;;  %v540_v4 = vld [vmem:[%s9965_s12 + $0x768] sm:$0xff] }
  0xb3   : > { %v491_v13 = vld [vmem:[%s9965_s12 + $0x5e0] sm:$0xff] }
  0xb4   : > { %v8482_v25 = vcombine.low %v487_v12, %v491_v13 }
  0xb5   : > { %6594 = vmatpush1.bf16.msra.mxu0 %v8418_v18  ;;  %6922 = vmatpush1.bf16.msra.mxu1 %v8420_v19  ;;  %v8483_v18 = vcombine.high %v487_v12, %v491_v13  ;;  %v8485_v19 = vcombine.high %v488_v14, %v492_v15  ;;  %v544_v12 = vld [vmem:[%s9965_s12 + $0x788] sm:$0xff]  ;;  %v8532_v15 = vcombine.low %v536_v3, %v540_v4 }
  0xb6   : > { %6604 = vmatprep.subr.bf16.mxu0 %v8427_v20  ;;  %6932 = vmatprep.subr.bf16.mxu1 %v8429_v21  ;;  %v495_v20 = vld [vmem:[%s9965_s12 + $0x600] sm:$0xff]  ;;  %v548_v13 = vld [vmem:[%s9965_s12 + $0x7a8] sm:$0xff] }
  0xb7   : > { %v499_v21 = vld [vmem:[%s9965_s12 + $0x620] sm:$0xff] }
  0xb8   : > { %6596 = vmatmul.mubr.bf16.vlgmr.msra.gmra.mrb[0].mxu0 %v10084_v24  ;;  %6924 = vmatmul.mubr.bf16.vlgmr.msra.gmra.mrb[0].mxu1 %v10084_v24  ;;  %v8490_v0 = vcombine.low %v495_v20, %v499_v21 }
  0xb9   : > { %6605 = vmatpush1.bf16.msra.mxu0 %v8426_v27  ;;  %6933 = vmatpush1.bf16.msra.mxu1 %v8428_v28  ;;  %v8491_v27 = vcombine.high %v495_v20, %v499_v21  ;;  %v8493_v28 = vcombine.high %v496_v22, %v500_v23  ;;  %v1329_v20 = vcombine.high %v10027_v60, %v10027_v60  ;;  %v552_v21 = vld [vmem:[%s9965_s12 + $0x7c8] sm:$0xff] }
  0xba   : > { %6606 = vmatprep.subr.bf16.mxu0 %v8435_v29  ;;  %6934 = vmatprep.subr.bf16.mxu1 %v8437_v30  ;;  %v503_v29 = vld [vmem:[%s9965_s12 + $0x640] sm:$0xff]  ;;  %v556_v22 = vld [vmem:[%s9965_s12 + $0x7e8] sm:$0xff] }
  0xbb   : > { %6636 = vmatprep.mubr.bf16.mxu0 %v10092_v33  ;;  %6964 = vmatprep.mubr.bf16.mxu1 %v10092_v33  ;;  %v507_v30 = vld [vmem:[%s9965_s12 + $0x660] sm:$0xff]  ;;  %v560_v60 = vld [vmem:[%s9965_s12 + $0x808] sm:$0xff] }
  0xbc   : > { %v8498_v41 = vcombine.low %v503_v29, %v507_v30 }
  0xbd   : > { %6607 = vmatpush1.bf16.msra.mxu0 %v8434_v35  ;;  %6935 = vmatpush1.bf16.msra.mxu1 %v8436_v36  ;;  %v8499_v35 = vcombine.high %v503_v29, %v507_v30  ;;  %v8501_v36 = vcombine.high %v504_v31, %v508_v32  ;;  %v563_v29 = vld [vmem:[%s9965_s12 + $0x820] sm:$0xff]  ;;  %v10157_v30 = vrot.slane %v1329_v20, %v10022_v54  ;;  %v564_v31 = vld [vmem:[%s9965_s12 + $0x828] sm:$0xff] }
  0xbe   : > { %6608 = vmatprep.subr.bf16.mxu0 %v8443_v37  ;;  %6936 = vmatprep.subr.bf16.mxu1 %v8445_v38  ;;  %v511_v37 = vld [vmem:[%s9965_s12 + $0x680] sm:$0xff] }
  0xbf   : > { %v515_v38 = vld [vmem:[%s9965_s12 + $0x6a0] sm:$0xff] }
  0xc0   : > { %v8506_v50 = vcombine.low %v511_v37, %v515_v38  ;;  %v607_v20 = vld [vmem:[%s9965_s12 + $0x980] sm:$0xff] }
  0xc1   : > { %6609 = vmatpush1.bf16.msra.mxu0 %v8442_v43  ;;  %6937 = vmatpush1.bf16.msra.mxu1 %v8444_v44  ;;  %v8507_v43 = vcombine.high %v511_v37, %v515_v38  ;;  %v8509_v44 = vcombine.high %v512_v39, %v516_v40  ;;  %v571_v37 = vld [vmem:[%s9965_s12 + $0x860] sm:$0xff]  ;;  %v1345_v38 = vcombine.high %v10157_v30, %v10157_v30  ;;  %v568_v40 = vld [vmem:[%s9965_s12 + $0x848] sm:$0xff] }
  0xc2   : > { %6610 = vmatprep.subr.bf16.mxu0 %v8451_v46  ;;  %6938 = vmatprep.subr.bf16.mxu1 %v8453_v47  ;;  %v519_v46 = vld [vmem:[%s9965_s12 + $0x6c0] sm:$0xff]  ;;  %v10167_v39 = vcombine.high %v10084_v24, %v10084_v24 }
  0xc3   : > { %v523_v47 = vld [vmem:[%s9965_s12 + $0x6e0] sm:$0xff] }
  0xc4   : > { %v8514_v59 = vcombine.low %v519_v46, %v523_v47 }
  0xc5   : > { %6611 = vmatpush1.bf16.msra.mxu0 %v8450_v52  ;;  %6939 = vmatpush1.bf16.msra.mxu1 %v8452_v53  ;;  %v8515_v52 = vcombine.high %v519_v46, %v523_v47  ;;  %v8517_v53 = vcombine.high %v520_v48, %v524_v49  ;;  %v575_v47 = vld [vmem:[%s9965_s12 + $0x880] sm:$0xff]  ;;  %v10174_v49 = vrot.slane %v1345_v38, %v10022_v54 }
  0xc6   : > { %6612 = vmatprep.subr.bf16.mxu0 %v8459_v55  ;;  %6940 = vmatprep.subr.bf16.mxu1 %v8461_v56  ;;  %v527_v55 = vld [vmem:[%s9965_s12 + $0x700] sm:$0xff] }
  0xc7   : > { %v531_v56 = vld [vmem:[%s9965_s12 + $0x720] sm:$0xff] }
  0xc8   : > { %v8522_v5 = vcombine.low %v527_v55, %v531_v56  ;;  %v579_v48 = vld [vmem:[%s9965_s12 + $0x8a0] sm:$0xff] }
  0xc9   : > { %6613 = vmatpush1.bf16.msra.mxu0 %v8458_v62  ;;  %6941 = vmatpush1.bf16.msra.mxu1 %v8460_v63  ;;  %v8523_v62 = vcombine.high %v527_v55, %v531_v56  ;;  %v8525_v63 = vcombine.high %v528_v57, %v532_v58  ;;  %v8571_v55 = vcombine.high %v575_v47, %v579_v48  ;;  %v583_v57 = vld [vmem:[%s9965_s12 + $0x8c0] sm:$0xff] }
  0xca   : > { %6614 = vmatprep.subr.bf16.mxu0 %v8467_v1  ;;  %6942 = vmatprep.subr.bf16.mxu1 %v8469_v2  ;;  %v535_v1 = vld [vmem:[%s9965_s12 + $0x740] sm:$0xff] }
  0xcb   : > { %v539_v2 = vld [vmem:[%s9965_s12 + $0x760] sm:$0xff] }
  0xcc   : > { %v8530_v14 = vcombine.low %v535_v1, %v539_v2  ;;  %v587_v58 = vld [vmem:[%s9965_s12 + $0x8e0] sm:$0xff] }
  0xcd   : > { %6615 = vmatpush1.bf16.msra.mxu0 %v8466_v7  ;;  %6943 = vmatpush1.bf16.msra.mxu1 %v8468_v8  ;;  %v8531_v7 = vcombine.high %v535_v1, %v539_v2  ;;  %v8533_v8 = vcombine.high %v536_v3, %v540_v4  ;;  %v8579_v1 = vcombine.high %v583_v57, %v587_v58  ;;  %v591_v3 = vld [vmem:[%s9965_s12 + $0x900] sm:$0xff] }
  0xce   : > { %6616 = vmatprep.subr.bf16.mxu0 %v8475_v9  ;;  %6944 = vmatprep.subr.bf16.mxu1 %v8477_v11  ;;  %v543_v9 = vld [vmem:[%s9965_s12 + $0x780] sm:$0xff] }
  0xcf   : > { %v547_v11 = vld [vmem:[%s9965_s12 + $0x7a0] sm:$0xff] }
  0xd0   : > { %v8538_v23 = vcombine.low %v543_v9, %v547_v11  ;;  %v595_v4 = vld [vmem:[%s9965_s12 + $0x920] sm:$0xff] }
  0xd1   : > { %6617 = vmatpush1.bf16.msra.mxu0 %v8474_v16  ;;  %6945 = vmatpush1.bf16.msra.mxu1 %v8476_v17  ;;  %v8539_v16 = vcombine.high %v543_v9, %v547_v11  ;;  %v8541_v17 = vcombine.high %v544_v12, %v548_v13  ;;  %v8587_v9 = vcombine.high %v591_v3, %v595_v4  ;;  %v627_v38 = vld [vmem:[%s9965_s12 + $0xa20] sm:$0xff] }
  0xd2   : > { %6618 = vmatprep.subr.bf16.mxu0 %v8483_v18  ;;  %6946 = vmatprep.subr.bf16.mxu1 %v8485_v19  ;;  %v551_v18 = vld [vmem:[%s9965_s12 + $0x7c0] sm:$0xff] }
  0xd3   : > { %v555_v19 = vld [vmem:[%s9965_s12 + $0x7e0] sm:$0xff] }
  0xd4   : > { %v8546_v32 = vcombine.low %v551_v18, %v555_v19 }
  0xd5   : > { %6619 = vmatpush1.bf16.msra.mxu0 %v8482_v25  ;;  %6947 = vmatpush1.bf16.msra.mxu1 %v8484_v26  ;;  %v8540_v25 = vcombine.low %v544_v12, %v548_v13  ;;  %v8547_v26 = vcombine.high %v551_v18, %v555_v19  ;;  %v599_v12 = vld [vmem:[%s9965_s12 + $0x940] sm:$0xff] }
  0xd6   : > { %6620 = vmatprep.subr.bf16.mxu0 %v8491_v27  ;;  %6948 = vmatprep.subr.bf16.mxu1 %v8493_v28  ;;  %v8549_v27 = vcombine.high %v552_v21, %v556_v22  ;;  %v559_v28 = vld [vmem:[%s9965_s12 + $0x800] sm:$0xff] }
  0xd7   : > { %v603_v13 = vld [vmem:[%s9965_s12 + $0x960] sm:$0xff] }
  0xd8   : > { %v8595_v18 = vcombine.high %v599_v12, %v603_v13 }
  0xd9   : > { %6621 = vmatpush1.bf16.msra.mxu0 %v8490_v0  ;;  %6949 = vmatpush1.bf16.msra.mxu1 %v8492_v34  ;;  %v8548_v0 = vcombine.low %v552_v21, %v556_v22  ;;  %v8555_v34 = vcombine.high %v559_v28, %v563_v29  ;;  %v611_v21 = vld [vmem:[%s9965_s12 + $0x9a0] sm:$0xff]  ;;  %v608_v22 = vld [vmem:[%s9965_s12 + $0x988] sm:$0xff] }
  0xda   : > { %6622 = vmatprep.subr.bf16.mxu0 %v8499_v35  ;;  %6950 = vmatprep.subr.bf16.mxu1 %v8501_v36  ;;  %v8557_v35 = vcombine.high %v560_v60, %v564_v31  ;;  %v567_v36 = vld [vmem:[%s9965_s12 + $0x840] sm:$0xff] }
  0xdd   : > { %6623 = vmatpush1.bf16.msra.mxu0 %v8498_v41  ;;  %6951 = vmatpush1.bf16.msra.mxu1 %v8500_v42  ;;  %v572_v41 = vld [vmem:[%s9965_s12 + $0x868] sm:$0xff]  ;;  %v8554_v42 = vcombine.low %v559_v28, %v563_v29  ;;  %v615_v29 = vld [vmem:[%s9965_s12 + $0x9c0] sm:$0xff] }
  0xde   : > { %6624 = vmatprep.subr.bf16.mxu0 %v8507_v43  ;;  %6952 = vmatprep.subr.bf16.mxu1 %v8509_v44  ;;  %v8556_v43 = vcombine.low %v560_v60, %v564_v31  ;;  %v8563_v44 = vcombine.high %v567_v36, %v571_v37  ;;  %v8565_v46 = vcombine.high %v568_v40, %v572_v41  ;;  %v619_v60 = vld [vmem:[%s9965_s12 + $0x9e0] sm:$0xff]  ;;  %v616_v31 = vld [vmem:[%s9965_s12 + $0x9c8] sm:$0xff] }
  0xe1   : > { %6625 = vmatpush1.bf16.msra.mxu0 %v8506_v50  ;;  %6953 = vmatpush1.bf16.msra.mxu1 %v8508_v51  ;;  %v576_v50 = vld [vmem:[%s9965_s12 + $0x888] sm:$0xff] }
  0xe2   : > { %6626 = vmatprep.subr.bf16.mxu0 %v8515_v52  ;;  %6954 = vmatprep.subr.bf16.mxu1 %v8517_v53  ;;  %v580_v51 = vld [vmem:[%s9965_s12 + $0x8a8] sm:$0xff]  ;;  %v8562_v52 = vcombine.low %v567_v36, %v571_v37  ;;  %v8564_v53 = vcombine.low %v568_v40, %v572_v41  ;;  %v623_v37 = vld [vmem:[%s9965_s12 + $0xa00] sm:$0xff] }
  0xe3   : > { %v8573_v56 = vcombine.high %v576_v50, %v580_v51  ;;  %v624_v40 = vld [vmem:[%s9965_s12 + $0xa08] sm:$0xff] }
  0xe4   : > { %v628_v41 = vld [vmem:[%s9965_s12 + $0xa28] sm:$0xff] }
  0xe5   : > { %6627 = vmatpush1.bf16.msra.mxu0 %v8514_v59  ;;  %6955 = vmatpush1.bf16.msra.mxu1 %v8516_v61  ;;  %v584_v59 = vld [vmem:[%s9965_s12 + $0x8c8] sm:$0xff] }
  0xe6   : > { %6628 = vmatprep.subr.bf16.mxu0 %v8523_v62  ;;  %6956 = vmatprep.subr.bf16.mxu1 %v8525_v63  ;;  %v588_v61 = vld [vmem:[%s9965_s12 + $0x8e8] sm:$0xff]  ;;  %v8570_v62 = vcombine.low %v575_v47, %v579_v48  ;;  %v8572_v63 = vcombine.low %v576_v50, %v580_v51  ;;  %v631_v47 = vld [vmem:[%s9965_s12 + $0xa40] sm:$0xff] }
  0xe7   : > { %v8581_v2 = vcombine.high %v584_v59, %v588_v61  ;;  %v635_v48 = vld [vmem:[%s9965_s12 + $0xa60] sm:$0xff]  ;;  %v632_v50 = vld [vmem:[%s9965_s12 + $0xa48] sm:$0xff] }
  0xe8   : > { %v636_v51 = vld [vmem:[%s9965_s12 + $0xa68] sm:$0xff] }
  0xe9   : > { %6629 = vmatpush1.bf16.msra.mxu0 %v8522_v5  ;;  %6957 = vmatpush1.bf16.msra.mxu1 %v8524_v6  ;;  %v592_v5 = vld [vmem:[%s9965_s12 + $0x908] sm:$0xff] }
  0xea   : > { %6630 = vmatprep.subr.bf16.mxu0 %v8531_v7  ;;  %6958 = vmatprep.subr.bf16.mxu1 %v8533_v8  ;;  %v596_v6 = vld [vmem:[%s9965_s12 + $0x928] sm:$0xff]  ;;  %v8578_v7 = vcombine.low %v583_v57, %v587_v58  ;;  %v8580_v8 = vcombine.low %v584_v59, %v588_v61  ;;  %v639_v57 = vld [vmem:[%s9965_s12 + $0xa80] sm:$0xff] }
  0xeb   : > { %v8589_v11 = vcombine.high %v592_v5, %v596_v6  ;;  %v643_v58 = vld [vmem:[%s9965_s12 + $0xaa0] sm:$0xff]  ;;  %v640_v59 = vld [vmem:[%s9965_s12 + $0xa88] sm:$0xff] }
  0xec   : > { %v644_v61 = vld [vmem:[%s9965_s12 + $0xaa8] sm:$0xff] }
  0xed   : > { %6631 = vmatpush1.bf16.msra.mxu0 %v8530_v14  ;;  %6959 = vmatpush1.bf16.msra.mxu1 %v8532_v15  ;;  %v600_v14 = vld [vmem:[%s9965_s12 + $0x948] sm:$0xff] }
  0xee   : > { %6632 = vmatprep.subr.bf16.mxu0 %v8539_v16  ;;  %6960 = vmatprep.subr.bf16.mxu1 %v8541_v17  ;;  %v604_v15 = vld [vmem:[%s9965_s12 + $0x968] sm:$0xff]  ;;  %v8586_v16 = vcombine.low %v591_v3, %v595_v4  ;;  %v8588_v17 = vcombine.low %v592_v5, %v596_v6  ;;  %v647_v3 = vld [vmem:[%s9965_s12 + $0xac0] sm:$0xff] }
  0xef   : > { %v8597_v19 = vcombine.high %v600_v14, %v604_v15  ;;  %v651_v4 = vld [vmem:[%s9965_s12 + $0xae0] sm:$0xff]  ;;  %v648_v5 = vld [vmem:[%s9965_s12 + $0xac8] sm:$0xff] }
  0xf0   : > { %v652_v6 = vld [vmem:[%s9965_s12 + $0xae8] sm:$0xff] }
  0xf1   : > { %6633 = vmatpush1.bf16.msra.mxu0 %v8538_v23  ;;  %6961 = vmatpush1.bf16.msra.mxu1 %v8540_v25  ;;  %v612_v23 = vld [vmem:[%s9965_s12 + $0x9a8] sm:$0xff]  ;;  %v8594_v25 = vcombine.low %v599_v12, %v603_v13  ;;  %v655_v12 = vld [vmem:[%s9965_s12 + $0xb00] sm:$0xff] }
  0xf2   : > { %6634 = vmatprep.subr.bf16.mxu0 %v8547_v26  ;;  %6962 = vmatprep.subr.bf16.mxu1 %v8549_v27  ;;  %v8596_v26 = vcombine.low %v600_v14, %v604_v15  ;;  %v8603_v27 = vcombine.high %v607_v20, %v611_v21  ;;  %v8605_v28 = vcombine.high %v608_v22, %v612_v23  ;;  %v659_v13 = vld [vmem:[%s9965_s12 + $0xb20] sm:$0xff]  ;;  %v656_v14 = vld [vmem:[%s9965_s12 + $0xb08] sm:$0xff] }
  0xf3   : > { %v660_v15 = vld [vmem:[%s9965_s12 + $0xb28] sm:$0xff] }
  0xf5   : > { %6635 = vmatpush1.bf16.msra.mxu0 %v8546_v32  ;;  %6963 = vmatpush1.bf16.msra.mxu1 %v8548_v0  ;;  %v620_v32 = vld [vmem:[%s9965_s12 + $0x9e8] sm:$0xff]  ;;  %v8602_v0 = vcombine.low %v607_v20, %v611_v21  ;;  %v663_v20 = vld [vmem:[%s9965_s12 + $0xb40] sm:$0xff] }
  0xf6   : > { %6645 = vmatprep.subr.bf16.mxu0 %v8555_v34  ;;  %6973 = vmatprep.subr.bf16.mxu1 %v8557_v35  ;;  %v8604_v34 = vcombine.low %v608_v22, %v612_v23  ;;  %v8611_v35 = vcombine.high %v615_v29, %v619_v60  ;;  %v8613_v36 = vcombine.high %v616_v31, %v620_v32  ;;  %v667_v21 = vld [vmem:[%s9965_s12 + $0xb60] sm:$0xff]  ;;  %v664_v22 = vld [vmem:[%s9965_s12 + $0xb48] sm:$0xff] }
  0xf7   : > { %v668_v23 = vld [vmem:[%s9965_s12 + $0xb68] sm:$0xff] }
  0xf8   : > { %6637 = vmatmul.mubr.bf16.vlgmr.msra.gmra.mrb[0].mxu0 %v10167_v39  ;;  %6965 = vmatmul.mubr.bf16.vlgmr.msra.gmra.mrb[0].mxu1 %v10167_v39 }
  0xf9   : > { %6646 = vmatpush1.bf16.msra.mxu0 %v8554_v42  ;;  %6974 = vmatpush1.bf16.msra.mxu1 %v8556_v43  ;;  %v8610_v42 = vcombine.low %v615_v29, %v619_v60  ;;  %v8612_v43 = vcombine.low %v616_v31, %v620_v32  ;;  %v671_v29 = vld [vmem:[%s9965_s12 + $0xb80] sm:$0xff]  ;;  %v672_v31 = vld [vmem:[%s9965_s12 + $0xb88] sm:$0xff] }
  0xfa   : > { %6647 = vmatprep.subr.bf16.mxu0 %v8563_v44  ;;  %6975 = vmatprep.subr.bf16.mxu1 %v8565_v46  ;;  %v8619_v44 = vcombine.high %v623_v37, %v627_v38  ;;  %v8621_v46 = vcombine.high %v624_v40, %v628_v41  ;;  %v675_v60 = vld [vmem:[%s9965_s12 + $0xba0] sm:$0xff]  ;;  %v676_v32 = vld [vmem:[%s9965_s12 + $0xba8] sm:$0xff] }
  0xfb   : > { %6677 = vmatprep.mubr.bf16.mxu0 %v10174_v49  ;;  %7005 = vmatprep.mubr.bf16.mxu1 %v10174_v49 }
  0xfd   : > { %6648 = vmatpush1.bf16.msra.mxu0 %v8562_v52  ;;  %6976 = vmatpush1.bf16.msra.mxu1 %v8564_v53  ;;  %v8618_v52 = vcombine.low %v623_v37, %v627_v38  ;;  %v8620_v53 = vcombine.low %v624_v40, %v628_v41  ;;  %v679_v37 = vld [vmem:[%s9965_s12 + $0xbc0] sm:$0xff]  ;;  %v680_v40 = vld [vmem:[%s9965_s12 + $0xbc8] sm:$0xff] }
  0xfe   : > { %6649 = vmatprep.subr.bf16.mxu0 %v8571_v55  ;;  %6977 = vmatprep.subr.bf16.mxu1 %v8573_v56  ;;  %v8627_v55 = vcombine.high %v631_v47, %v635_v48  ;;  %v8629_v56 = vcombine.high %v632_v50, %v636_v51  ;;  %v683_v38 = vld [vmem:[%s9965_s12 + $0xbe0] sm:$0xff]  ;;  %v684_v41 = vld [vmem:[%s9965_s12 + $0xbe8] sm:$0xff] }
 0x101   : > { %6650 = vmatpush1.bf16.msra.mxu0 %v8570_v62  ;;  %6978 = vmatpush1.bf16.msra.mxu1 %v8572_v63  ;;  %v8626_v62 = vcombine.low %v631_v47, %v635_v48  ;;  %v8628_v63 = vcombine.low %v632_v50, %v636_v51  ;;  %v687_v47 = vld [vmem:[%s9965_s12 + $0xc00] sm:$0xff]  ;;  %v688_v50 = vld [vmem:[%s9965_s12 + $0xc08] sm:$0xff] }
 0x102   : > { %6651 = vmatprep.subr.bf16.mxu0 %v8579_v1  ;;  %6979 = vmatprep.subr.bf16.mxu1 %v8581_v2  ;;  %v8635_v1 = vcombine.high %v639_v57, %v643_v58  ;;  %v8637_v2 = vcombine.high %v640_v59, %v644_v61  ;;  %v691_v48 = vld [vmem:[%s9965_s12 + $0xc20] sm:$0xff]  ;;  %v692_v51 = vld [vmem:[%s9965_s12 + $0xc28] sm:$0xff] }
 0x105   : > { %6652 = vmatpush1.bf16.msra.mxu0 %v8578_v7  ;;  %6980 = vmatpush1.bf16.msra.mxu1 %v8580_v8  ;;  %v8634_v7 = vcombine.low %v639_v57, %v643_v58  ;;  %v8636_v8 = vcombine.low %v640_v59, %v644_v61  ;;  %v695_v57 = vld [vmem:[%s9965_s12 + $0xc40] sm:$0xff]  ;;  %v10242_v59 = vrot.slane %v10157_v30, %v10022_v54  ;;  %v696_v61 = vld [vmem:[%s9965_s12 + $0xc48] sm:$0xff] }
 0x106   : > { %6653 = vmatprep.subr.bf16.mxu0 %v8587_v9  ;;  %6981 = vmatprep.subr.bf16.mxu1 %v8589_v11  ;;  %v8643_v9 = vcombine.high %v647_v3, %v651_v4  ;;  %v8645_v11 = vcombine.high %v648_v5, %v652_v6  ;;  %v699_v58 = vld [vmem:[%s9965_s12 + $0xc60] sm:$0xff]  ;;  %v704_v30 = vld [vmem:[%s9965_s12 + $0xc88] sm:$0xff] }
 0x109   : > { %6654 = vmatpush1.bf16.msra.mxu0 %v8586_v16  ;;  %6982 = vmatpush1.bf16.msra.mxu1 %v8588_v17  ;;  %v8642_v16 = vcombine.low %v647_v3, %v651_v4  ;;  %v8644_v17 = vcombine.low %v648_v5, %v652_v6  ;;  %v703_v4 = vld [vmem:[%s9965_s12 + $0xc80] sm:$0xff]  ;;  %v10250_v6 = vcombine.high %v10174_v49, %v10174_v49 }
 0x10a   : > { %6655 = vmatprep.subr.bf16.mxu0 %v8595_v18  ;;  %6983 = vmatprep.subr.bf16.mxu1 %v8597_v19  ;;  %v8651_v18 = vcombine.high %v655_v12, %v659_v13  ;;  %v8653_v19 = vcombine.high %v656_v14, %v660_v15  ;;  %v707_v5 = vld [vmem:[%s9965_s12 + $0xca0] sm:$0xff] }
 0x10d   : > { %6656 = vmatpush1.bf16.msra.mxu0 %v8594_v25  ;;  %6984 = vmatpush1.bf16.msra.mxu1 %v8596_v26  ;;  %v8650_v25 = vcombine.low %v655_v12, %v659_v13  ;;  %v8652_v26 = vcombine.low %v656_v14, %v660_v15  ;;  %v711_v13 = vld [vmem:[%s9965_s12 + $0xcc0] sm:$0xff]  ;;  %v712_v15 = vld [vmem:[%s9965_s12 + $0xcc8] sm:$0xff] }
 0x10e   : > { %6657 = vmatprep.subr.bf16.mxu0 %v8603_v27  ;;  %6985 = vmatprep.subr.bf16.mxu1 %v8605_v28  ;;  %v8659_v27 = vcombine.high %v663_v20, %v667_v21  ;;  %v8661_v28 = vcombine.high %v664_v22, %v668_v23  ;;  %v715_v14 = vld [vmem:[%s9965_s12 + $0xce0] sm:$0xff] }
 0x111   : > { %6658 = vmatpush1.bf16.msra.mxu0 %v8602_v0  ;;  %6986 = vmatpush1.bf16.msra.mxu1 %v8604_v34  ;;  %v8658_v0 = vcombine.low %v663_v20, %v667_v21  ;;  %v8660_v34 = vcombine.low %v664_v22, %v668_v23  ;;  %v719_v21 = vld [vmem:[%s9965_s12 + $0xd00] sm:$0xff]  ;;  %v720_v23 = vld [vmem:[%s9965_s12 + $0xd08] sm:$0xff] }
 0x112   : > { %6659 = vmatprep.subr.bf16.mxu0 %v8611_v35  ;;  %6987 = vmatprep.subr.bf16.mxu1 %v8613_v36  ;;  %v8667_v35 = vcombine.high %v671_v29, %v675_v60  ;;  %v8669_v36 = vcombine.high %v672_v31, %v676_v32  ;;  %v723_v22 = vld [vmem:[%s9965_s12 + $0xd20] sm:$0xff] }
 0x115   : > { %6660 = vmatpush1.bf16.msra.mxu0 %v8610_v42  ;;  %6988 = vmatpush1.bf16.msra.mxu1 %v8612_v43  ;;  %v8666_v42 = vcombine.low %v671_v29, %v675_v60  ;;  %v8668_v43 = vcombine.low %v672_v31, %v676_v32  ;;  %v727_v60 = vld [vmem:[%s9965_s12 + $0xd40] sm:$0xff]  ;;  %v728_v32 = vld [vmem:[%s9965_s12 + $0xd48] sm:$0xff] }
 0x116   : > { %6661 = vmatprep.subr.bf16.mxu0 %v8619_v44  ;;  %6989 = vmatprep.subr.bf16.mxu1 %v8621_v46  ;;  %v8675_v44 = vcombine.high %v679_v37, %v683_v38  ;;  %v8677_v46 = vcombine.high %v680_v40, %v684_v41  ;;  %v731_v31 = vld [vmem:[%s9965_s12 + $0xd60] sm:$0xff] }
 0x119   : > { %6662 = vmatpush1.bf16.msra.mxu0 %v8618_v52  ;;  %6990 = vmatpush1.bf16.msra.mxu1 %v8620_v53  ;;  %v8674_v52 = vcombine.low %v679_v37, %v683_v38  ;;  %v8676_v53 = vcombine.low %v680_v40, %v684_v41  ;;  %v735_v38 = vld [vmem:[%s9965_s12 + $0xd80] sm:$0xff]  ;;  %v736_v41 = vld [vmem:[%s9965_s12 + $0xd88] sm:$0xff] }
 0x11a   : > { %6663 = vmatprep.subr.bf16.mxu0 %v8627_v55  ;;  %6991 = vmatprep.subr.bf16.mxu1 %v8629_v56  ;;  %v8683_v55 = vcombine.high %v687_v47, %v691_v48  ;;  %v8685_v56 = vcombine.high %v688_v50, %v692_v51  ;;  %v739_v40 = vld [vmem:[%s9965_s12 + $0xda0] sm:$0xff] }
 0x11d   : > { %6664 = vmatpush1.bf16.msra.mxu0 %v8626_v62  ;;  %6992 = vmatpush1.bf16.msra.mxu1 %v8628_v63  ;;  %v700_v62 = vld [vmem:[%s9965_s12 + $0xc68] sm:$0xff]  ;;  %v8682_v63 = vcombine.low %v687_v47, %v691_v48  ;;  %v743_v48 = vld [vmem:[%s9965_s12 + $0xdc0] sm:$0xff] }
 0x11e   : > { %6665 = vmatprep.subr.bf16.mxu0 %v8635_v1  ;;  %6993 = vmatprep.subr.bf16.mxu1 %v8637_v2  ;;  %v8684_v1 = vcombine.low %v688_v50, %v692_v51  ;;  %v8691_v2 = vcombine.high %v695_v57, %v699_v58  ;;  %v8693_v3 = vcombine.high %v696_v61, %v700_v62  ;;  %v747_v50 = vld [vmem:[%s9965_s12 + $0xde0] sm:$0xff]  ;;  %v744_v51 = vld [vmem:[%s9965_s12 + $0xdc8] sm:$0xff] }
 0x121   : > { %6666 = vmatpush1.bf16.msra.mxu0 %v8634_v7  ;;  %6994 = vmatpush1.bf16.msra.mxu1 %v8636_v8  ;;  %v708_v7 = vld [vmem:[%s9965_s12 + $0xca8] sm:$0xff]  ;;  %v8690_v8 = vcombine.low %v695_v57, %v699_v58  ;;  %v751_v58 = vld [vmem:[%s9965_s12 + $0xe00] sm:$0xff] }
 0x122   : > { %6667 = vmatprep.subr.bf16.mxu0 %v8643_v9  ;;  %6995 = vmatprep.subr.bf16.mxu1 %v8645_v11  ;;  %v8692_v9 = vcombine.low %v696_v61, %v700_v62  ;;  %v8699_v11 = vcombine.high %v703_v4, %v707_v5  ;;  %v8701_v12 = vcombine.high %v704_v30, %v708_v7  ;;  %v755_v61 = vld [vmem:[%s9965_s12 + $0xe20] sm:$0xff]  ;;  %v752_v62 = vld [vmem:[%s9965_s12 + $0xe08] sm:$0xff] }
 0x125   : > { %6668 = vmatpush1.bf16.msra.mxu0 %v8642_v16  ;;  %6996 = vmatpush1.bf16.msra.mxu1 %v8644_v17  ;;  %v716_v16 = vld [vmem:[%s9965_s12 + $0xce8] sm:$0xff]  ;;  %v8698_v17 = vcombine.low %v703_v4, %v707_v5  ;;  %v759_v5 = vld [vmem:[%s9965_s12 + $0xe40] sm:$0xff] }
 0x126   : > { %6669 = vmatprep.subr.bf16.mxu0 %v8651_v18  ;;  %6997 = vmatprep.subr.bf16.mxu1 %v8653_v19  ;;  %v8700_v18 = vcombine.low %v704_v30, %v708_v7  ;;  %v8707_v19 = vcombine.high %v711_v13, %v715_v14  ;;  %v8709_v20 = vcombine.high %v712_v15, %v716_v16  ;;  %v763_v30 = vld [vmem:[%s9965_s12 + $0xe60] sm:$0xff]  ;;  %v760_v7 = vld [vmem:[%s9965_s12 + $0xe48] sm:$0xff] }
 0x129   : > { %6670 = vmatpush1.bf16.msra.mxu0 %v8650_v25  ;;  %6998 = vmatpush1.bf16.msra.mxu1 %v8652_v26  ;;  %v724_v25 = vld [vmem:[%s9965_s12 + $0xd28] sm:$0xff]  ;;  %v8706_v26 = vcombine.low %v711_v13, %v715_v14  ;;  %v767_v14 = vld [vmem:[%s9965_s12 + $0xe80] sm:$0xff] }
 0x12a   : > { %6671 = vmatprep.subr.bf16.mxu0 %v8659_v27  ;;  %6999 = vmatprep.subr.bf16.mxu1 %v8661_v28  ;;  %v8708_v27 = vcombine.low %v712_v15, %v716_v16  ;;  %v8715_v28 = vcombine.high %v719_v21, %v723_v22  ;;  %v8717_v29 = vcombine.high %v720_v23, %v724_v25  ;;  %v771_v15 = vld [vmem:[%s9965_s12 + $0xea0] sm:$0xff]  ;;  %v768_v16 = vld [vmem:[%s9965_s12 + $0xe88] sm:$0xff] }
 0x12d   : > { %6672 = vmatpush1.bf16.msra.mxu0 %v8658_v0  ;;  %7000 = vmatpush1.bf16.msra.mxu1 %v8660_v34  ;;  %v732_v0 = vld [vmem:[%s9965_s12 + $0xd68] sm:$0xff]  ;;  %v8714_v34 = vcombine.low %v719_v21, %v723_v22  ;;  %v775_v22 = vld [vmem:[%s9965_s12 + $0xec0] sm:$0xff] }
 0x12e   : > { %6673 = vmatprep.subr.bf16.mxu0 %v8667_v35  ;;  %7001 = vmatprep.subr.bf16.mxu1 %v8669_v36  ;;  %v8716_v35 = vcombine.low %v720_v23, %v724_v25  ;;  %v8723_v36 = vcombine.high %v727_v60, %v731_v31  ;;  %v8725_v37 = vcombine.high %v728_v32, %v732_v0  ;;  %v779_v23 = vld [vmem:[%s9965_s12 + $0xee0] sm:$0xff]  ;;  %v776_v25 = vld [vmem:[%s9965_s12 + $0xec8] sm:$0xff] }
 0x131   : > { %6674 = vmatpush1.bf16.msra.mxu0 %v8666_v42  ;;  %7002 = vmatpush1.bf16.msra.mxu1 %v8668_v43  ;;  %v740_v42 = vld [vmem:[%s9965_s12 + $0xda8] sm:$0xff]  ;;  %v8722_v43 = vcombine.low %v727_v60, %v731_v31  ;;  %v783_v31 = vld [vmem:[%s9965_s12 + $0xf00] sm:$0xff] }
 0x132   : > { %6675 = vmatprep.subr.bf16.mxu0 %v8675_v44  ;;  %7003 = vmatprep.subr.bf16.mxu1 %v8677_v46  ;;  %v8724_v44 = vcombine.low %v728_v32, %v732_v0  ;;  %v8731_v46 = vcombine.high %v735_v38, %v739_v40  ;;  %v8733_v47 = vcombine.high %v736_v41, %v740_v42  ;;  %v787_v32 = vld [vmem:[%s9965_s12 + $0xf20] sm:$0xff]  ;;  %v784_v0 = vld [vmem:[%s9965_s12 + $0xf08] sm:$0xff] }
 0x135   : > { %6676 = vmatpush1.bf16.msra.mxu0 %v8674_v52  ;;  %7004 = vmatpush1.bf16.msra.mxu1 %v8676_v53  ;;  %v748_v52 = vld [vmem:[%s9965_s12 + $0xde8] sm:$0xff]  ;;  %v8730_v53 = vcombine.low %v735_v38, %v739_v40  ;;  %v791_v40 = vld [vmem:[%s9965_s12 + $0xf40] sm:$0xff] }
 0x136   : > { %6686 = vmatprep.subr.bf16.mxu0 %v8683_v55  ;;  %7014 = vmatprep.subr.bf16.mxu1 %v8685_v56  ;;  %v8732_v55 = vcombine.low %v736_v41, %v740_v42  ;;  %v8739_v56 = vcombine.high %v743_v48, %v747_v50  ;;  %v8741_v57 = vcombine.high %v744_v51, %v748_v52  ;;  %v795_v41 = vld [vmem:[%s9965_s12 + $0xf60] sm:$0xff]  ;;  %v792_v42 = vld [vmem:[%s9965_s12 + $0xf48] sm:$0xff] }
 0x138   : > { %6678 = vmatmul.mubr.bf16.vlgmr.msra.gmra.mrb[0].mxu0 %v10242_v59  ;;  %7006 = vmatmul.mubr.bf16.vlgmr.msra.gmra.mrb[0].mxu1 %v10242_v59 }
 0x139   : > { %6687 = vmatpush1.bf16.msra.mxu0 %v8682_v63  ;;  %7015 = vmatpush1.bf16.msra.mxu1 %v8684_v1  ;;  %v756_v63 = vld [vmem:[%s9965_s12 + $0xe28] sm:$0xff]  ;;  %v8738_v1 = vcombine.low %v743_v48, %v747_v50  ;;  %v799_v50 = vld [vmem:[%s9965_s12 + $0xf80] sm:$0xff] }
 0x13a   : > { %6688 = vmatprep.subr.bf16.mxu0 %v8691_v2  ;;  %7016 = vmatprep.subr.bf16.mxu1 %v8693_v3  ;;  %v8740_v2 = vcombine.low %v744_v51, %v748_v52  ;;  %v8747_v3 = vcombine.high %v751_v58, %v755_v61  ;;  %v8749_v4 = vcombine.high %v752_v62, %v756_v63  ;;  %v803_v51 = vld [vmem:[%s9965_s12 + $0xfa0] sm:$0xff]  ;;  %v800_v52 = vld [vmem:[%s9965_s12 + $0xf88] sm:$0xff] }
 0x13b   : > { %6718 = vmatprep.mubr.bf16.mxu0 %v10250_v6  ;;  %7046 = vmatprep.mubr.bf16.mxu1 %v10250_v6 }
 0x13d   : > { %6689 = vmatpush1.bf16.msra.mxu0 %v8690_v8  ;;  %7017 = vmatpush1.bf16.msra.mxu1 %v8692_v9  ;;  %v764_v8 = vld [vmem:[%s9965_s12 + $0xe68] sm:$0xff]  ;;  %v8746_v9 = vcombine.low %v751_v58, %v755_v61  ;;  %v807_v61 = vld [vmem:[%s9965_s12 + $0xfc0] sm:$0xff] }
 0x13e   : > { %6690 = vmatprep.subr.bf16.mxu0 %v8699_v11  ;;  %7018 = vmatprep.subr.bf16.mxu1 %v8701_v12  ;;  %v8748_v11 = vcombine.low %v752_v62, %v756_v63  ;;  %v8755_v12 = vcombine.high %v759_v5, %v763_v30  ;;  %v8757_v13 = vcombine.high %v760_v7, %v764_v8  ;;  %v811_v62 = vld [vmem:[%s9965_s12 + $0xfe0] sm:$0xff]  ;;  %v808_v63 = vld [vmem:[%s9965_s12 + $0xfc8] sm:$0xff] }
 0x141   : > { %6691 = vmatpush1.bf16.msra.mxu0 %v8698_v17  ;;  %7019 = vmatpush1.bf16.msra.mxu1 %v8700_v18  ;;  %v772_v17 = vld [vmem:[%s9965_s12 + $0xea8] sm:$0xff]  ;;  %v8754_v18 = vcombine.low %v759_v5, %v763_v30  ;;  %v8803_v5 = vcombine.high %v807_v61, %v811_v62 }
 0x142   : > { %6692 = vmatprep.subr.bf16.mxu0 %v8707_v19  ;;  %7020 = vmatprep.subr.bf16.mxu1 %v8709_v20  ;;  %v8756_v19 = vcombine.low %v760_v7, %v764_v8  ;;  %v8763_v20 = vcombine.high %v767_v14, %v771_v15  ;;  %v8765_v21 = vcombine.high %v768_v16, %v772_v17  ;;  %v815_v7 = vld [vmem:[%s9965_s12 + $0x1000] sm:$0xff] }
 0x143   : > { %v819_v8 = vld [vmem:[%s9965_s12 + $0x1020] sm:$0xff] }
 0x145   : > { %6693 = vmatpush1.bf16.msra.mxu0 %v8706_v26  ;;  %7021 = vmatpush1.bf16.msra.mxu1 %v8708_v27  ;;  %v780_v26 = vld [vmem:[%s9965_s12 + $0xee8] sm:$0xff]  ;;  %v8762_v27 = vcombine.low %v767_v14, %v771_v15  ;;  %v8811_v15 = vcombine.high %v815_v7, %v819_v8 }
 0x146   : > { %6694 = vmatprep.subr.bf16.mxu0 %v8715_v28  ;;  %7022 = vmatprep.subr.bf16.mxu1 %v8717_v29  ;;  %v8764_v28 = vcombine.low %v768_v16, %v772_v17  ;;  %v8771_v29 = vcombine.high %v775_v22, %v779_v23  ;;  %v8773_v60 = vcombine.high %v776_v25, %v780_v26  ;;  %v823_v17 = vld [vmem:[%s9965_s12 + $0x1040] sm:$0xff] }
 0x149   : > { %6695 = vmatpush1.bf16.msra.mxu0 %v8714_v34  ;;  %7023 = vmatpush1.bf16.msra.mxu1 %v8716_v35  ;;  %v788_v34 = vld [vmem:[%s9965_s12 + $0xf28] sm:$0xff]  ;;  %v8770_v35 = vcombine.low %v775_v22, %v779_v23  ;;  %v8810_v23 = vcombine.low %v815_v7, %v819_v8 }
 0x14a   : > { %6696 = vmatprep.subr.bf16.mxu0 %v8723_v36  ;;  %7024 = vmatprep.subr.bf16.mxu1 %v8725_v37  ;;  %v8772_v36 = vcombine.low %v776_v25, %v780_v26  ;;  %v8779_v37 = vcombine.high %v783_v31, %v787_v32  ;;  %v8781_v38 = vcombine.high %v784_v0, %v788_v34  ;;  %v828_v22 = vld [vmem:[%s9965_s12 + $0x1068] sm:$0xff] }
 0x14b   : > { %v864_v7 = vld [vmem:[%s9965_s12 + $0x1188] sm:$0xff] }
 0x14c   : > { %v868_v8 = vld [vmem:[%s9965_s12 + $0x11a8] sm:$0xff] }
 0x14d   : > { %6697 = vmatpush1.bf16.msra.mxu0 %v8722_v43  ;;  %7025 = vmatpush1.bf16.msra.mxu1 %v8724_v44  ;;  %v796_v43 = vld [vmem:[%s9965_s12 + $0xf68] sm:$0xff]  ;;  %v8778_v44 = vcombine.low %v783_v31, %v787_v32 }
 0x14e   : > { %6698 = vmatprep.subr.bf16.mxu0 %v8731_v46  ;;  %7026 = vmatprep.subr.bf16.mxu1 %v8733_v47  ;;  %v8780_v46 = vcombine.low %v784_v0, %v788_v34  ;;  %v8787_v47 = vcombine.high %v791_v40, %v795_v41  ;;  %v8789_v48 = vcombine.high %v792_v42, %v796_v43  ;;  %v832_v31 = vld [vmem:[%s9965_s12 + $0x1088] sm:$0xff] }
 0x14f   : > { %v836_v32 = vld [vmem:[%s9965_s12 + $0x10a8] sm:$0xff] }
 0x151   : > { %6699 = vmatpush1.bf16.msra.mxu0 %v8730_v53  ;;  %7027 = vmatpush1.bf16.msra.mxu1 %v8732_v55  ;;  %v804_v53 = vld [vmem:[%s9965_s12 + $0xfa8] sm:$0xff]  ;;  %v8786_v55 = vcombine.low %v791_v40, %v795_v41 }
 0x152   : > { %6700 = vmatprep.subr.bf16.mxu0 %v8739_v56  ;;  %7028 = vmatprep.subr.bf16.mxu1 %v8741_v57  ;;  %v8788_v56 = vcombine.low %v792_v42, %v796_v43  ;;  %v8795_v57 = vcombine.high %v799_v50, %v803_v51  ;;  %v8797_v58 = vcombine.high %v800_v52, %v804_v53  ;;  %v840_v40 = vld [vmem:[%s9965_s12 + $0x10c8] sm:$0xff] }
 0x153   : > { %v844_v41 = vld [vmem:[%s9965_s12 + $0x10e8] sm:$0xff]  ;;  %v8828_v43 = vcombine.low %v832_v31, %v836_v32 }
 0x155   : > { %6701 = vmatpush1.bf16.msra.mxu0 %v8738_v1  ;;  %7029 = vmatpush1.bf16.msra.mxu1 %v8740_v2  ;;  %v812_v1 = vld [vmem:[%s9965_s12 + $0xfe8] sm:$0xff]  ;;  %v10311_v2 = vld [vmem:[%s9986_s17 + $0x8] sm:$0xff] }
 0x156   : > { %6702 = vmatprep.subr.bf16.mxu0 %v8747_v3  ;;  %7030 = vmatprep.subr.bf16.mxu1 %v8749_v4  ;;  %v8794_v3 = vcombine.low %v799_v50, %v803_v51  ;;  %v8796_v4 = vcombine.low %v800_v52, %v804_v53  ;;  %v8805_v30 = vcombine.high %v808_v63, %v812_v1  ;;  %v848_v50 = vld [vmem:[%s9965_s12 + $0x1108] sm:$0xff] }
 0x157   : > { %v8804_v14 = vcombine.low %v808_v63, %v812_v1  ;;  %v852_v51 = vld [vmem:[%s9965_s12 + $0x1128] sm:$0xff]  ;;  %v8836_v53 = vcombine.low %v840_v40, %v844_v41 }
 0x158   : > { %v8844_v1 = vcombine.low %v848_v50, %v852_v51 }
 0x159   : > { %6703 = vmatpush1.bf16.msra.mxu0 %v8746_v9  ;;  %7031 = vmatpush1.bf16.msra.mxu1 %v8748_v11  ;;  %v10317_v9 = vrot.slane %v10311_v2, %v10022_v54  ;;  %v816_v11 = vld [vmem:[%s9965_s12 + $0x1008] sm:$0xff] }
 0x15a   : > { %6704 = vmatprep.subr.bf16.mxu0 %v8755_v12  ;;  %7032 = vmatprep.subr.bf16.mxu1 %v8757_v13  ;;  %v820_v12 = vld [vmem:[%s9965_s12 + $0x1028] sm:$0xff]  ;;  %v8802_v13 = vcombine.low %v807_v61, %v811_v62 }
 0x15b   : > { %v8813_v16 = vcombine.high %v816_v11, %v820_v12  ;;  %v8812_v25 = vcombine.low %v816_v11, %v820_v12  ;;  %v856_v61 = vld [vmem:[%s9965_s12 + $0x1148] sm:$0xff] }
 0x15c   : > { %v860_v62 = vld [vmem:[%s9965_s12 + $0x1168] sm:$0xff] }
 0x15d   : > { %6705 = vmatpush1.bf16.msra.mxu0 %v8754_v18  ;;  %7033 = vmatpush1.bf16.msra.mxu1 %v8756_v19  ;;  %v827_v18 = vld [vmem:[%s9965_s12 + $0x1060] sm:$0xff]  ;;  %v1393_v19 = vcombine.high %v10317_v9, %v10317_v9  ;;  %v8852_v12 = vcombine.low %v856_v61, %v860_v62 }
 0x15e   : > { %6706 = vmatprep.subr.bf16.mxu0 %v8763_v20  ;;  %7034 = vmatprep.subr.bf16.mxu1 %v8765_v21  ;;  %v10327_v20 = vcombine.high %v10242_v59, %v10242_v59  ;;  %v824_v21 = vld [vmem:[%s9965_s12 + $0x1048] sm:$0xff]  ;;  %v8819_v26 = vcombine.high %v823_v17, %v827_v18  ;;  %v8818_v0 = vcombine.low %v823_v17, %v827_v18 }
 0x15f   : > { %v8820_v34 = vcombine.low %v824_v21, %v828_v22  ;;  %v872_v17 = vld [vmem:[%s9965_s12 + $0x11c8] sm:$0xff] }
 0x160   : > { %v876_v18 = vld [vmem:[%s9965_s12 + $0x11e8] sm:$0xff] }
 0x161   : > { %6707 = vmatpush1.bf16.msra.mxu0 %v8762_v27  ;;  %7035 = vmatpush1.bf16.msra.mxu1 %v8764_v28  ;;  %v8821_v27 = vcombine.high %v824_v21, %v828_v22  ;;  %v831_v28 = vld [vmem:[%s9965_s12 + $0x1080] sm:$0xff]  ;;  %v8860_v21 = vcombine.low %v864_v7, %v868_v8 }
 0x162   : > { %6708 = vmatprep.subr.bf16.mxu0 %v8771_v29  ;;  %7036 = vmatprep.subr.bf16.mxu1 %v8773_v60  ;;  %v835_v29 = vld [vmem:[%s9965_s12 + $0x10a0] sm:$0xff]  ;;  %v10334_v60 = vrot.slane %v1393_v19, %v10022_v54 }
 0x163   : > { %v8826_v42 = vcombine.low %v831_v28, %v835_v29 }
 0x165   : > { %6709 = vmatpush1.bf16.msra.mxu0 %v8770_v35  ;;  %7037 = vmatpush1.bf16.msra.mxu1 %v8772_v36  ;;  %v8827_v35 = vcombine.high %v831_v28, %v835_v29  ;;  %v8829_v36 = vcombine.high %v832_v31, %v836_v32  ;;  %v884_v28 = vld [vmem:[%s9965_s12 + $0x1228] sm:$0xff]  ;;  %v8868_v31 = vcombine.low %v872_v17, %v876_v18 }
 0x166   : > { %6710 = vmatprep.subr.bf16.mxu0 %v8779_v37  ;;  %7038 = vmatprep.subr.bf16.mxu1 %v8781_v38  ;;  %v839_v37 = vld [vmem:[%s9965_s12 + $0x10c0] sm:$0xff] }
 0x167   : > { %v843_v38 = vld [vmem:[%s9965_s12 + $0x10e0] sm:$0xff] }
 0x168   : > { %v8834_v52 = vcombine.low %v839_v37, %v843_v38 }
 0x169   : > { %6711 = vmatpush1.bf16.msra.mxu0 %v8778_v44  ;;  %7039 = vmatpush1.bf16.msra.mxu1 %v8780_v46  ;;  %v8835_v44 = vcombine.high %v839_v37, %v843_v38  ;;  %v8837_v46 = vcombine.high %v840_v40, %v844_v41  ;;  %v892_v37 = vld [vmem:[%s9965_s12 + $0x1268] sm:$0xff] }
 0x16a   : > { %6712 = vmatprep.subr.bf16.mxu0 %v8787_v47  ;;  %7040 = vmatprep.subr.bf16.mxu1 %v8789_v48  ;;  %v847_v47 = vld [vmem:[%s9965_s12 + $0x1100] sm:$0xff] }
 0x16b   : > { %v851_v48 = vld [vmem:[%s9965_s12 + $0x1120] sm:$0xff] }
 0x16c   : > { %v8842_v63 = vcombine.low %v847_v47, %v851_v48 }
 0x16d   : > { %6713 = vmatpush1.bf16.msra.mxu0 %v8786_v55  ;;  %7041 = vmatpush1.bf16.msra.mxu1 %v8788_v56  ;;  %v8843_v55 = vcombine.high %v847_v47, %v851_v48  ;;  %v8845_v56 = vcombine.high %v848_v50, %v852_v51  ;;  %v900_v47 = vld [vmem:[%s9965_s12 + $0x12a8] sm:$0xff] }
 0x16e   : > { %6714 = vmatprep.subr.bf16.mxu0 %v8795_v57  ;;  %7042 = vmatprep.subr.bf16.mxu1 %v8797_v58  ;;  %v855_v57 = vld [vmem:[%s9965_s12 + $0x1140] sm:$0xff] }
 0x16f   : > { %v859_v58 = vld [vmem:[%s9965_s12 + $0x1160] sm:$0xff] }
 0x170   : > { %v8850_v11 = vcombine.low %v855_v57, %v859_v58 }
 0x171   : > { %6715 = vmatpush1.bf16.msra.mxu0 %v8794_v3  ;;  %7043 = vmatpush1.bf16.msra.mxu1 %v8796_v4  ;;  %v8851_v3 = vcombine.high %v855_v57, %v859_v58  ;;  %v8853_v4 = vcombine.high %v856_v61, %v860_v62  ;;  %v908_v57 = vld [vmem:[%s9965_s12 + $0x12e8] sm:$0xff] }
 0x172   : > { %6716 = vmatprep.subr.bf16.mxu0 %v8803_v5  ;;  %7044 = vmatprep.subr.bf16.mxu1 %v8805_v30  ;;  %v863_v5 = vld [vmem:[%s9965_s12 + $0x1180] sm:$0xff] }
 0x173   : > { %v867_v30 = vld [vmem:[%s9965_s12 + $0x11a0] sm:$0xff] }
 0x174   : > { %v8858_v19 = vcombine.low %v863_v5, %v867_v30 }
 0x175   : > { %6717 = vmatpush1.bf16.msra.mxu0 %v8802_v13  ;;  %7045 = vmatpush1.bf16.msra.mxu1 %v8804_v14  ;;  %v8859_v13 = vcombine.high %v863_v5, %v867_v30  ;;  %v8861_v14 = vcombine.high %v864_v7, %v868_v8  ;;  %v916_v5 = vld [vmem:[%s9965_s12 + $0x1328] sm:$0xff] }
 0x176   : > { %6727 = vmatprep.subr.bf16.mxu0 %v8811_v15  ;;  %7055 = vmatprep.subr.bf16.mxu1 %v8813_v16  ;;  %v871_v15 = vld [vmem:[%s9965_s12 + $0x11c0] sm:$0xff] }
 0x177   : > { %v875_v16 = vld [vmem:[%s9965_s12 + $0x11e0] sm:$0xff] }
 0x178   : > { %6719 = vmatmul.mubr.bf16.vlgmr.msra.gmra.mrb[0].mxu0 %v10327_v20  ;;  %7047 = vmatmul.mubr.bf16.vlgmr.msra.gmra.mrb[0].mxu1 %v10327_v20  ;;  %v8867_v22 = vcombine.high %v871_v15, %v875_v16  ;;  %v8866_v29 = vcombine.low %v871_v15, %v875_v16  ;;  %v924_v15 = vld [vmem:[%s9965_s12 + $0x1368] sm:$0xff] }
 0x179   : > { %6728 = vmatpush1.bf16.msra.mxu0 %v8810_v23  ;;  %7056 = vmatpush1.bf16.msra.mxu1 %v8812_v25  ;;  %v8869_v23 = vcombine.high %v872_v17, %v876_v18  ;;  %v879_v25 = vld [vmem:[%s9965_s12 + $0x1200] sm:$0xff] }
 0x17a   : > { %6729 = vmatprep.subr.bf16.mxu0 %v8819_v26  ;;  %7057 = vmatprep.subr.bf16.mxu1 %v8821_v27  ;;  %v883_v26 = vld [vmem:[%s9965_s12 + $0x1220] sm:$0xff]  ;;  %v880_v27 = vld [vmem:[%s9965_s12 + $0x1208] sm:$0xff] }
 0x17b   : > { %6759 = vmatprep.mubr.bf16.mxu0 %v10334_v60  ;;  %7087 = vmatprep.mubr.bf16.mxu1 %v10334_v60  ;;  %v8875_v32 = vcombine.high %v879_v25, %v883_v26  ;;  %v8874_v38 = vcombine.low %v879_v25, %v883_v26  ;;  %v8876_v40 = vcombine.low %v880_v27, %v884_v28  ;;  %v932_v25 = vld [vmem:[%s9965_s12 + $0x13a8] sm:$0xff] }
 0x17d   : > { %6730 = vmatpush1.bf16.msra.mxu0 %v8818_v0  ;;  %7058 = vmatpush1.bf16.msra.mxu1 %v8820_v34  ;;  %v8877_v0 = vcombine.high %v880_v27, %v884_v28  ;;  %v887_v34 = vld [vmem:[%s9965_s12 + $0x1240] sm:$0xff] }
 0x17e   : > { %6731 = vmatprep.subr.bf16.mxu0 %v8827_v35  ;;  %7059 = vmatprep.subr.bf16.mxu1 %v8829_v36  ;;  %v891_v35 = vld [vmem:[%s9965_s12 + $0x1260] sm:$0xff]  ;;  %v888_v36 = vld [vmem:[%s9965_s12 + $0x1248] sm:$0xff] }
 0x17f   : > { %v8883_v41 = vcombine.high %v887_v34, %v891_v35  ;;  %v8882_v48 = vcombine.low %v887_v34, %v891_v35  ;;  %v8884_v50 = vcombine.low %v888_v36, %v892_v37  ;;  %v940_v34 = vld [vmem:[%s9965_s12 + $0x13e8] sm:$0xff] }
 0x181   : > { %6732 = vmatpush1.bf16.msra.mxu0 %v8826_v42  ;;  %7060 = vmatpush1.bf16.msra.mxu1 %v8828_v43  ;;  %v8885_v42 = vcombine.high %v888_v36, %v892_v37  ;;  %v895_v43 = vld [vmem:[%s9965_s12 + $0x1280] sm:$0xff] }
 0x182   : > { %6733 = vmatprep.subr.bf16.mxu0 %v8835_v44  ;;  %7061 = vmatprep.subr.bf16.mxu1 %v8837_v46  ;;  %v899_v44 = vld [vmem:[%s9965_s12 + $0x12a0] sm:$0xff]  ;;  %v896_v46 = vld [vmem:[%s9965_s12 + $0x1288] sm:$0xff] }
 0x183   : > { %v8891_v51 = vcombine.high %v895_v43, %v899_v44  ;;  %v8890_v58 = vcombine.low %v895_v43, %v899_v44  ;;  %v8892_v61 = vcombine.low %v896_v46, %v900_v47  ;;  %v948_v43 = vld [vmem:[%s9965_s12 + $0x1428] sm:$0xff] }
 0x185   : > { %6734 = vmatpush1.bf16.msra.mxu0 %v8834_v52  ;;  %7062 = vmatpush1.bf16.msra.mxu1 %v8836_v53  ;;  %v8893_v52 = vcombine.high %v896_v46, %v900_v47  ;;  %v903_v53 = vld [vmem:[%s9965_s12 + $0x12c0] sm:$0xff] }
 0x186   : > { %6735 = vmatprep.subr.bf16.mxu0 %v8843_v55  ;;  %7063 = vmatprep.subr.bf16.mxu1 %v8845_v56  ;;  %v907_v55 = vld [vmem:[%s9965_s12 + $0x12e0] sm:$0xff]  ;;  %v904_v56 = vld [vmem:[%s9965_s12 + $0x12c8] sm:$0xff] }
 0x187   : > { %v8899_v62 = vcombine.high %v903_v53, %v907_v55  ;;  %v8898_v30 = vcombine.low %v903_v53, %v907_v55  ;;  %v8900_v7 = vcombine.low %v904_v56, %v908_v57  ;;  %v952_v53 = vld [vmem:[%s9965_s12 + $0x1448] sm:$0xff] }
 0x188   : > { %v956_v55 = vld [vmem:[%s9965_s12 + $0x1468] sm:$0xff] }
 0x189   : > { %6736 = vmatpush1.bf16.msra.mxu0 %v8842_v63  ;;  %7064 = vmatpush1.bf16.msra.mxu1 %v8844_v1  ;;  %v8901_v63 = vcombine.high %v904_v56, %v908_v57  ;;  %v911_v1 = vld [vmem:[%s9965_s12 + $0x1300] sm:$0xff] }
 0x18a   : > { %6737 = vmatprep.subr.bf16.mxu0 %v8851_v3  ;;  %7065 = vmatprep.subr.bf16.mxu1 %v8853_v4  ;;  %v915_v3 = vld [vmem:[%s9965_s12 + $0x1320] sm:$0xff]  ;;  %v912_v4 = vld [vmem:[%s9965_s12 + $0x1308] sm:$0xff] }
 0x18b   : > { %v8907_v8 = vcombine.high %v911_v1, %v915_v3  ;;  %v8906_v16 = vcombine.low %v911_v1, %v915_v3  ;;  %v8908_v17 = vcombine.low %v912_v4, %v916_v5  ;;  %v10410_v1 = vcombine.high %v10334_v60, %v10334_v60  ;;  %v964_v3 = vld [vmem:[%s9965_s12 + $0x14a8] sm:$0xff] }
 0x18d   : > { %6738 = vmatpush1.bf16.msra.mxu0 %v8850_v11  ;;  %7066 = vmatpush1.bf16.msra.mxu1 %v8852_v12  ;;  %v8909_v11 = vcombine.high %v912_v4, %v916_v5  ;;  %v919_v12 = vld [vmem:[%s9965_s12 + $0x1340] sm:$0xff]  ;;  %v8948_v5 = vcombine.low %v952_v53, %v956_v55 }
 0x18e   : > { %6739 = vmatprep.subr.bf16.mxu0 %v8859_v13  ;;  %7067 = vmatprep.subr.bf16.mxu1 %v8861_v14  ;;  %v923_v13 = vld [vmem:[%s9965_s12 + $0x1360] sm:$0xff]  ;;  %v920_v14 = vld [vmem:[%s9965_s12 + $0x1348] sm:$0xff] }
 0x18f   : > { %v8915_v18 = vcombine.high %v919_v12, %v923_v13  ;;  %v8914_v26 = vcombine.low %v919_v12, %v923_v13  ;;  %v8916_v27 = vcombine.low %v920_v14, %v924_v15  ;;  %v968_v12 = vld [vmem:[%s9965_s12 + $0x14c8] sm:$0xff] }
 0x190   : > { %v972_v13 = vld [vmem:[%s9965_s12 + $0x14e8] sm:$0xff] }
 0x191   : > { %6740 = vmatpush1.bf16.msra.mxu0 %v8858_v19  ;;  %7068 = vmatpush1.bf16.msra.mxu1 %v8860_v21  ;;  %v8917_v19 = vcombine.high %v920_v14, %v924_v15  ;;  %v927_v21 = vld [vmem:[%s9965_s12 + $0x1380] sm:$0xff] }
 0x192   : > { %6741 = vmatprep.subr.bf16.mxu0 %v8867_v22  ;;  %7069 = vmatprep.subr.bf16.mxu1 %v8869_v23  ;;  %v931_v22 = vld [vmem:[%s9965_s12 + $0x13a0] sm:$0xff]  ;;  %v928_v23 = vld [vmem:[%s9965_s12 + $0x1388] sm:$0xff] }
 0x193   : > { %v8923_v28 = vcombine.high %v927_v21, %v931_v22  ;;  %v8922_v35 = vcombine.low %v927_v21, %v931_v22  ;;  %v8924_v36 = vcombine.low %v928_v23, %v932_v25  ;;  %v976_v21 = vld [vmem:[%s9965_s12 + $0x1508] sm:$0xff] }
 0x194   : > { %v980_v22 = vld [vmem:[%s9965_s12 + $0x1528] sm:$0xff] }
 0x195   : > { %6742 = vmatpush1.bf16.msra.mxu0 %v8866_v29  ;;  %7070 = vmatpush1.bf16.msra.mxu1 %v8868_v31  ;;  %v8925_v29 = vcombine.high %v928_v23, %v932_v25  ;;  %v935_v31 = vld [vmem:[%s9965_s12 + $0x13c0] sm:$0xff]  ;;  %v8964_v25 = vcombine.low %v968_v12, %v972_v13 }
 0x196   : > { %6743 = vmatprep.subr.bf16.mxu0 %v8875_v32  ;;  %7071 = vmatprep.subr.bf16.mxu1 %v8877_v0  ;;  %v939_v32 = vld [vmem:[%s9965_s12 + $0x13e0] sm:$0xff]  ;;  %v936_v0 = vld [vmem:[%s9965_s12 + $0x13c8] sm:$0xff] }
 0x197   : > { %v8931_v37 = vcombine.high %v935_v31, %v939_v32  ;;  %v8930_v44 = vcombine.low %v935_v31, %v939_v32  ;;  %v8932_v46 = vcombine.low %v936_v0, %v940_v34  ;;  %v984_v31 = vld [vmem:[%s9965_s12 + $0x1548] sm:$0xff] }
 0x198   : > { %v988_v32 = vld [vmem:[%s9965_s12 + $0x1568] sm:$0xff] }
 0x199   : > { %6744 = vmatpush1.bf16.msra.mxu0 %v8874_v38  ;;  %7072 = vmatpush1.bf16.msra.mxu1 %v8876_v40  ;;  %v8933_v38 = vcombine.high %v936_v0, %v940_v34  ;;  %v943_v40 = vld [vmem:[%s9965_s12 + $0x1400] sm:$0xff]  ;;  %v8972_v34 = vcombine.low %v976_v21, %v980_v22 }
 0x19a   : > { %6745 = vmatprep.subr.bf16.mxu0 %v8883_v41  ;;  %7073 = vmatprep.subr.bf16.mxu1 %v8885_v42  ;;  %v947_v41 = vld [vmem:[%s9965_s12 + $0x1420] sm:$0xff]  ;;  %v944_v42 = vld [vmem:[%s9965_s12 + $0x1408] sm:$0xff] }
 0x19b   : > { %v8939_v47 = vcombine.high %v943_v40, %v947_v41  ;;  %v8938_v56 = vcombine.low %v943_v40, %v947_v41  ;;  %v8940_v57 = vcombine.low %v944_v42, %v948_v43  ;;  %v992_v40 = vld [vmem:[%s9965_s12 + $0x1588] sm:$0xff] }
 0x19c   : > { %v996_v41 = vld [vmem:[%s9965_s12 + $0x15a8] sm:$0xff] }
 0x19d   : > { %6746 = vmatpush1.bf16.msra.mxu0 %v8882_v48  ;;  %7074 = vmatpush1.bf16.msra.mxu1 %v8884_v50  ;;  %v8941_v48 = vcombine.high %v944_v42, %v948_v43  ;;  %v951_v50 = vld [vmem:[%s9965_s12 + $0x1440] sm:$0xff]  ;;  %v8980_v43 = vcombine.low %v984_v31, %v988_v32 }
 0x19e   : > { %6747 = vmatprep.subr.bf16.mxu0 %v8891_v51  ;;  %7075 = vmatprep.subr.bf16.mxu1 %v8893_v52  ;;  %v955_v51 = vld [vmem:[%s9965_s12 + $0x1460] sm:$0xff]  ;;  %v10402_v52 = vrot.slane %v10317_v9, %v10022_v54  ;;  %v960_v9 = vld [vmem:[%s9965_s12 + $0x1488] sm:$0xff] }
 0x19f   : > { %v8946_v4 = vcombine.low %v951_v50, %v955_v51  ;;  %v8956_v15 = vcombine.low %v960_v9, %v964_v3 }
 0x1a1   : > { %6748 = vmatpush1.bf16.msra.mxu0 %v8890_v58  ;;  %7076 = vmatpush1.bf16.msra.mxu1 %v8892_v61  ;;  %v8947_v58 = vcombine.high %v951_v50, %v955_v51  ;;  %v8949_v61 = vcombine.high %v952_v53, %v956_v55  ;;  %v1000_v50 = vld [vmem:[%s9965_s12 + $0x15c8] sm:$0xff]  ;;  %v8988_v55 = vcombine.low %v992_v40, %v996_v41 }
 0x1a2   : > { %6749 = vmatprep.subr.bf16.mxu0 %v8899_v62  ;;  %7077 = vmatprep.subr.bf16.mxu1 %v8901_v63  ;;  %v959_v62 = vld [vmem:[%s9965_s12 + $0x1480] sm:$0xff]  ;;  %v1004_v51 = vld [vmem:[%s9965_s12 + $0x15e8] sm:$0xff] }
 0x1a3   : > { %v963_v63 = vld [vmem:[%s9965_s12 + $0x14a0] sm:$0xff] }
 0x1a4   : > { %v8954_v14 = vcombine.low %v959_v62, %v963_v63 }
 0x1a5   : > { %6750 = vmatpush1.bf16.msra.mxu0 %v8898_v30  ;;  %7078 = vmatpush1.bf16.msra.mxu1 %v8900_v7  ;;  %v8955_v30 = vcombine.high %v959_v62, %v963_v63  ;;  %v8957_v7 = vcombine.high %v960_v9, %v964_v3  ;;  %v1008_v62 = vld [vmem:[%s9965_s12 + $0x1608] sm:$0xff]  ;;  %v8996_v3 = vcombine.low %v1000_v50, %v1004_v51 }
 0x1a6   : > { %6751 = vmatprep.subr.bf16.mxu0 %v8907_v8  ;;  %7079 = vmatprep.subr.bf16.mxu1 %v8909_v11  ;;  %v967_v8 = vld [vmem:[%s9965_s12 + $0x14c0] sm:$0xff]  ;;  %v1012_v63 = vld [vmem:[%s9965_s12 + $0x1628] sm:$0xff] }
 0x1a7   : > { %v971_v11 = vld [vmem:[%s9965_s12 + $0x14e0] sm:$0xff] }
 0x1a8   : > { %v8962_v23 = vcombine.low %v967_v8, %v971_v11 }
 0x1a9   : > { %6752 = vmatpush1.bf16.msra.mxu0 %v8906_v16  ;;  %7080 = vmatpush1.bf16.msra.mxu1 %v8908_v17  ;;  %v8963_v16 = vcombine.high %v967_v8, %v971_v11  ;;  %v8965_v17 = vcombine.high %v968_v12, %v972_v13  ;;  %v1016_v8 = vld [vmem:[%s9965_s12 + $0x1648] sm:$0xff]  ;;  %v9004_v13 = vcombine.low %v1008_v62, %v1012_v63 }
 0x1aa   : > { %6753 = vmatprep.subr.bf16.mxu0 %v8915_v18  ;;  %7081 = vmatprep.subr.bf16.mxu1 %v8917_v19  ;;  %v975_v18 = vld [vmem:[%s9965_s12 + $0x1500] sm:$0xff]  ;;  %v1020_v11 = vld [vmem:[%s9965_s12 + $0x1668] sm:$0xff] }
 0x1ab   : > { %v979_v19 = vld [vmem:[%s9965_s12 + $0x1520] sm:$0xff] }
 0x1ac   : > { %v8970_v0 = vcombine.low %v975_v18, %v979_v19 }
 0x1ad   : > { %6754 = vmatpush1.bf16.msra.mxu0 %v8914_v26  ;;  %7082 = vmatpush1.bf16.msra.mxu1 %v8916_v27  ;;  %v8971_v26 = vcombine.high %v975_v18, %v979_v19  ;;  %v8973_v27 = vcombine.high %v976_v21, %v980_v22  ;;  %v1024_v18 = vld [vmem:[%s9965_s12 + $0x1688] sm:$0xff]  ;;  %v9012_v22 = vcombine.low %v1016_v8, %v1020_v11 }
 0x1ae   : > { %6755 = vmatprep.subr.bf16.mxu0 %v8923_v28  ;;  %7083 = vmatprep.subr.bf16.mxu1 %v8925_v29  ;;  %v983_v28 = vld [vmem:[%s9965_s12 + $0x1540] sm:$0xff]  ;;  %v1028_v19 = vld [vmem:[%s9965_s12 + $0x16a8] sm:$0xff] }
 0x1af   : > { %v987_v29 = vld [vmem:[%s9965_s12 + $0x1560] sm:$0xff] }
 0x1b0   : > { %v8978_v42 = vcombine.low %v983_v28, %v987_v29 }
 0x1b1   : > { %6756 = vmatpush1.bf16.msra.mxu0 %v8922_v35  ;;  %7084 = vmatpush1.bf16.msra.mxu1 %v8924_v36  ;;  %v8979_v35 = vcombine.high %v983_v28, %v987_v29  ;;  %v8981_v36 = vcombine.high %v984_v31, %v988_v32  ;;  %v1032_v28 = vld [vmem:[%s9965_s12 + $0x16c8] sm:$0xff]  ;;  %v9020_v32 = vcombine.low %v1024_v18, %v1028_v19 }
 0x1b2   : > { %6757 = vmatprep.subr.bf16.mxu0 %v8931_v37  ;;  %7085 = vmatprep.subr.bf16.mxu1 %v8933_v38  ;;  %v991_v37 = vld [vmem:[%s9965_s12 + $0x1580] sm:$0xff]  ;;  %v1036_v29 = vld [vmem:[%s9965_s12 + $0x16e8] sm:$0xff] }
 0x1b3   : > { %v995_v38 = vld [vmem:[%s9965_s12 + $0x15a0] sm:$0xff] }
 0x1b4   : > { %v8986_v53 = vcombine.low %v991_v37, %v995_v38 }
 0x1b5   : > { %6758 = vmatpush1.bf16.msra.mxu0 %v8930_v44  ;;  %7086 = vmatpush1.bf16.msra.mxu1 %v8932_v46  ;;  %v8987_v44 = vcombine.high %v991_v37, %v995_v38  ;;  %v8989_v46 = vcombine.high %v992_v40, %v996_v41  ;;  %v1040_v37 = vld [vmem:[%s9965_s12 + $0x1708] sm:$0xff]  ;;  %v9028_v41 = vcombine.low %v1032_v28, %v1036_v29 }
 0x1b6   : > { %6768 = vmatprep.subr.bf16.mxu0 %v8939_v47  ;;  %7096 = vmatprep.subr.bf16.mxu1 %v8941_v48  ;;  %v999_v47 = vld [vmem:[%s9965_s12 + $0x15c0] sm:$0xff]  ;;  %v1044_v38 = vld [vmem:[%s9965_s12 + $0x1728] sm:$0xff] }
 0x1b7   : > { %v1003_v48 = vld [vmem:[%s9965_s12 + $0x15e0] sm:$0xff] }
 0x1b8   : > { %6760 = vmatmul.mubr.bf16.vlgmr.msra.gmra.mrb[0].mxu0 %v10402_v52  ;;  %7088 = vmatmul.mubr.bf16.vlgmr.msra.gmra.mrb[0].mxu1 %v10402_v52  ;;  %v8994_v9 = vcombine.low %v999_v47, %v1003_v48 }
 0x1b9   : > { %6769 = vmatpush1.bf16.msra.mxu0 %v8938_v56  ;;  %7097 = vmatpush1.bf16.msra.mxu1 %v8940_v57  ;;  %v8995_v56 = vcombine.high %v999_v47, %v1003_v48  ;;  %v8997_v57 = vcombine.high %v1000_v50, %v1004_v51  ;;  %v1048_v47 = vld [vmem:[%s9965_s12 + $0x1748] sm:$0xff]  ;;  %v9036_v51 = vcombine.low %v1040_v37, %v1044_v38 }
 0x1ba   : > { %6770 = vmatprep.subr.bf16.mxu0 %v8947_v58  ;;  %7098 = vmatprep.subr.bf16.mxu1 %v8949_v61  ;;  %v1007_v58 = vld [vmem:[%s9965_s12 + $0x1600] sm:$0xff]  ;;  %v1052_v48 = vld [vmem:[%s9965_s12 + $0x1768] sm:$0xff] }
 0x1bb   : > { %6800 = vmatprep.mubr.bf16.mxu0 %v10410_v1  ;;  %7128 = vmatprep.mubr.bf16.mxu1 %v10410_v1  ;;  %v1011_v61 = vld [vmem:[%s9965_s12 + $0x1620] sm:$0xff] }
 0x1bc   : > { %v9002_v12 = vcombine.low %v1007_v58, %v1011_v61 }
 0x1bd   : > { %6771 = vmatpush1.bf16.msra.mxu0 %v8946_v4  ;;  %7099 = vmatpush1.bf16.msra.mxu1 %v8948_v5  ;;  %v9003_v4 = vcombine.high %v1007_v58, %v1011_v61  ;;  %v9005_v5 = vcombine.high %v1008_v62, %v1012_v63  ;;  %v1056_v58 = vld [vmem:[%s9965_s12 + $0x1788] sm:$0xff]  ;;  %v9044_v63 = vcombine.low %v1048_v47, %v1052_v48 }
 0x1be   : > { %6772 = vmatprep.subr.bf16.mxu0 %v8955_v30  ;;  %7100 = vmatprep.subr.bf16.mxu1 %v8957_v7  ;;  %v1015_v30 = vld [vmem:[%s9965_s12 + $0x1640] sm:$0xff]  ;;  %v1060_v61 = vld [vmem:[%s9965_s12 + $0x17a8] sm:$0xff] }
 0x1bf   : > { %v1019_v7 = vld [vmem:[%s9965_s12 + $0x1660] sm:$0xff] }
 0x1c0   : > { %v9010_v21 = vcombine.low %v1015_v30, %v1019_v7 }
 0x1c1   : > { %6773 = vmatpush1.bf16.msra.mxu0 %v8954_v14  ;;  %7101 = vmatpush1.bf16.msra.mxu1 %v8956_v15  ;;  %v9011_v14 = vcombine.high %v1015_v30, %v1019_v7  ;;  %v9013_v15 = vcombine.high %v1016_v8, %v1020_v11  ;;  %v1378_v30 = vcombine.high %v10311_v2, %v10311_v2  ;;  %v1064_v7 = vld [vmem:[%s9965_s12 + $0x17c8] sm:$0xff] }
 0x1c2   : > { %6774 = vmatprep.subr.bf16.mxu0 %v8963_v16  ;;  %7102 = vmatprep.subr.bf16.mxu1 %v8965_v17  ;;  %v1023_v16 = vld [vmem:[%s9965_s12 + $0x1680] sm:$0xff]  ;;  %v1068_v8 = vld [vmem:[%s9965_s12 + $0x17e8] sm:$0xff] }
 0x1c3   : > { %v1027_v17 = vld [vmem:[%s9965_s12 + $0x16a0] sm:$0xff]  ;;  %v1072_v2 = vld [vmem:[%s9965_s12 + $0x1808] sm:$0xff] }
 0x1c4   : > { %v9018_v31 = vcombine.low %v1023_v16, %v1027_v17 }
 0x1c5   : > { %6775 = vmatpush1.bf16.msra.mxu0 %v8962_v23  ;;  %7103 = vmatpush1.bf16.msra.mxu1 %v8964_v25  ;;  %v9019_v23 = vcombine.high %v1023_v16, %v1027_v17  ;;  %v9021_v25 = vcombine.high %v1024_v18, %v1028_v19  ;;  %v1075_v16 = vld [vmem:[%s9965_s12 + $0x1820] sm:$0xff]  ;;  %v10475_v17 = vrot.slane %v1378_v30, %v10022_v54  ;;  %v1076_v18 = vld [vmem:[%s9965_s12 + $0x1828] sm:$0xff] }
 0x1c6   : > { %6776 = vmatprep.subr.bf16.mxu0 %v8971_v26  ;;  %7104 = vmatprep.subr.bf16.mxu1 %v8973_v27  ;;  %v1031_v26 = vld [vmem:[%s9965_s12 + $0x16c0] sm:$0xff] }
 0x1c7   : > { %v1035_v27 = vld [vmem:[%s9965_s12 + $0x16e0] sm:$0xff] }
 0x1c8   : > { %v9026_v40 = vcombine.low %v1031_v26, %v1035_v27  ;;  %v1111_v30 = vld [vmem:[%s9965_s12 + $0x1940] sm:$0xff] }
 0x1c9   : > { %6777 = vmatpush1.bf16.msra.mxu0 %v8970_v0  ;;  %7105 = vmatpush1.bf16.msra.mxu1 %v8972_v34  ;;  %v9027_v0 = vcombine.high %v1031_v26, %v1035_v27  ;;  %v9029_v34 = vcombine.high %v1032_v28, %v1036_v29  ;;  %v1083_v26 = vld [vmem:[%s9965_s12 + $0x1860] sm:$0xff]  ;;  %v1394_v27 = vcombine.high %v10475_v17, %v10475_v17  ;;  %v1080_v29 = vld [vmem:[%s9965_s12 + $0x1848] sm:$0xff] }
 0x1ca   : > { %6778 = vmatprep.subr.bf16.mxu0 %v8979_v35  ;;  %7106 = vmatprep.subr.bf16.mxu1 %v8981_v36  ;;  %v1039_v35 = vld [vmem:[%s9965_s12 + $0x1700] sm:$0xff]  ;;  %v10485_v28 = vcombine.high %v10402_v52, %v10402_v52 }
 0x1cb   : > { %v1043_v36 = vld [vmem:[%s9965_s12 + $0x1720] sm:$0xff] }
 0x1cc   : > { %v9034_v50 = vcombine.low %v1039_v35, %v1043_v36 }
 0x1cd   : > { %6779 = vmatpush1.bf16.msra.mxu0 %v8978_v42  ;;  %7107 = vmatpush1.bf16.msra.mxu1 %v8980_v43  ;;  %v9035_v42 = vcombine.high %v1039_v35, %v1043_v36  ;;  %v9037_v43 = vcombine.high %v1040_v37, %v1044_v38  ;;  %v1087_v36 = vld [vmem:[%s9965_s12 + $0x1880] sm:$0xff]  ;;  %v10492_v38 = vrot.slane %v1394_v27, %v10022_v54 }
 0x1ce   : > { %6780 = vmatprep.subr.bf16.mxu0 %v8987_v44  ;;  %7108 = vmatprep.subr.bf16.mxu1 %v8989_v46  ;;  %v1047_v44 = vld [vmem:[%s9965_s12 + $0x1740] sm:$0xff] }
 0x1cf   : > { %v1051_v46 = vld [vmem:[%s9965_s12 + $0x1760] sm:$0xff] }
 0x1d0   : > { %v9042_v62 = vcombine.low %v1047_v44, %v1051_v46  ;;  %v1091_v37 = vld [vmem:[%s9965_s12 + $0x18a0] sm:$0xff] }
 0x1d1   : > { %6781 = vmatpush1.bf16.msra.mxu0 %v8986_v53  ;;  %7109 = vmatpush1.bf16.msra.mxu1 %v8988_v55  ;;  %v9043_v53 = vcombine.high %v1047_v44, %v1051_v46  ;;  %v9045_v55 = vcombine.high %v1048_v47, %v1052_v48  ;;  %v9083_v44 = vcombine.high %v1087_v36, %v1091_v37  ;;  %v1095_v47 = vld [vmem:[%s9965_s12 + $0x18c0] sm:$0xff] }
 0x1d2   : > { %6782 = vmatprep.subr.bf16.mxu0 %v8995_v56  ;;  %7110 = vmatprep.subr.bf16.mxu1 %v8997_v57  ;;  %v1055_v56 = vld [vmem:[%s9965_s12 + $0x1780] sm:$0xff] }
 0x1d3   : > { %v1059_v57 = vld [vmem:[%s9965_s12 + $0x17a0] sm:$0xff] }
 0x1d4   : > { %v9050_v11 = vcombine.low %v1055_v56, %v1059_v57  ;;  %v1099_v48 = vld [vmem:[%s9965_s12 + $0x18e0] sm:$0xff] }
 0x1d5   : > { %6783 = vmatpush1.bf16.msra.mxu0 %v8994_v9  ;;  %7111 = vmatpush1.bf16.msra.mxu1 %v8996_v3  ;;  %v9051_v9 = vcombine.high %v1055_v56, %v1059_v57  ;;  %v9053_v3 = vcombine.high %v1056_v58, %v1060_v61  ;;  %v9091_v56 = vcombine.high %v1095_v47, %v1099_v48  ;;  %v1131_v27 = vld [vmem:[%s9965_s12 + $0x19e0] sm:$0xff] }
 0x1d6   : > { %6784 = vmatprep.subr.bf16.mxu0 %v9003_v4  ;;  %7112 = vmatprep.subr.bf16.mxu1 %v9005_v5  ;;  %v1063_v4 = vld [vmem:[%s9965_s12 + $0x17c0] sm:$0xff] }
 0x1d7   : > { %v1067_v5 = vld [vmem:[%s9965_s12 + $0x17e0] sm:$0xff] }
 0x1d8   : > { %v9058_v19 = vcombine.low %v1063_v4, %v1067_v5 }
 0x1d9   : > { %6785 = vmatpush1.bf16.msra.mxu0 %v9002_v12  ;;  %7113 = vmatpush1.bf16.msra.mxu1 %v9004_v13  ;;  %v9052_v12 = vcombine.low %v1056_v58, %v1060_v61  ;;  %v9059_v13 = vcombine.high %v1063_v4, %v1067_v5  ;;  %v1103_v58 = vld [vmem:[%s9965_s12 + $0x1900] sm:$0xff] }
 0x1da   : > { %6786 = vmatprep.subr.bf16.mxu0 %v9011_v14  ;;  %7114 = vmatprep.subr.bf16.mxu1 %v9013_v15  ;;  %v9061_v14 = vcombine.high %v1064_v7, %v1068_v8  ;;  %v1071_v15 = vld [vmem:[%s9965_s12 + $0x1800] sm:$0xff] }
 0x1db   : > { %v1107_v61 = vld [vmem:[%s9965_s12 + $0x1920] sm:$0xff] }
 0x1dc   : > { %v9099_v4 = vcombine.high %v1103_v58, %v1107_v61 }
 0x1dd   : > { %6787 = vmatpush1.bf16.msra.mxu0 %v9010_v21  ;;  %7115 = vmatpush1.bf16.msra.mxu1 %v9012_v22  ;;  %v9060_v21 = vcombine.low %v1064_v7, %v1068_v8  ;;  %v9067_v22 = vcombine.high %v1071_v15, %v1075_v16  ;;  %v1115_v7 = vld [vmem:[%s9965_s12 + $0x1960] sm:$0xff]  ;;  %v1112_v8 = vld [vmem:[%s9965_s12 + $0x1948] sm:$0xff] }
 0x1de   : > { %6788 = vmatprep.subr.bf16.mxu0 %v9019_v23  ;;  %7116 = vmatprep.subr.bf16.mxu1 %v9021_v25  ;;  %v9069_v23 = vcombine.high %v1072_v2, %v1076_v18  ;;  %v1079_v25 = vld [vmem:[%s9965_s12 + $0x1840] sm:$0xff] }
 0x1e1   : > { %6789 = vmatpush1.bf16.msra.mxu0 %v9018_v31  ;;  %7117 = vmatpush1.bf16.msra.mxu1 %v9020_v32  ;;  %v1084_v31 = vld [vmem:[%s9965_s12 + $0x1868] sm:$0xff]  ;;  %v9066_v32 = vcombine.low %v1071_v15, %v1075_v16  ;;  %v1119_v16 = vld [vmem:[%s9965_s12 + $0x1980] sm:$0xff] }
 0x1e2   : > { %6790 = vmatprep.subr.bf16.mxu0 %v9027_v0  ;;  %7118 = vmatprep.subr.bf16.mxu1 %v9029_v34  ;;  %v9068_v0 = vcombine.low %v1072_v2, %v1076_v18  ;;  %v9075_v34 = vcombine.high %v1079_v25, %v1083_v26  ;;  %v9077_v35 = vcombine.high %v1080_v29, %v1084_v31  ;;  %v1123_v2 = vld [vmem:[%s9965_s12 + $0x19a0] sm:$0xff]  ;;  %v1120_v18 = vld [vmem:[%s9965_s12 + $0x1988] sm:$0xff] }
 0x1e5   : > { %6791 = vmatpush1.bf16.msra.mxu0 %v9026_v40  ;;  %7119 = vmatpush1.bf16.msra.mxu1 %v9028_v41  ;;  %v1088_v40 = vld [vmem:[%s9965_s12 + $0x1888] sm:$0xff] }
 0x1e6   : > { %6792 = vmatprep.subr.bf16.mxu0 %v9035_v42  ;;  %7120 = vmatprep.subr.bf16.mxu1 %v9037_v43  ;;  %v1092_v41 = vld [vmem:[%s9965_s12 + $0x18a8] sm:$0xff]  ;;  %v9074_v42 = vcombine.low %v1079_v25, %v1083_v26  ;;  %v9076_v43 = vcombine.low %v1080_v29, %v1084_v31  ;;  %v1127_v26 = vld [vmem:[%s9965_s12 + $0x19c0] sm:$0xff] }
 0x1e7   : > { %v9085_v46 = vcombine.high %v1088_v40, %v1092_v41  ;;  %v1128_v29 = vld [vmem:[%s9965_s12 + $0x19c8] sm:$0xff] }
 0x1e8   : > { %v1132_v31 = vld [vmem:[%s9965_s12 + $0x19e8] sm:$0xff] }
 0x1e9   : > { %6793 = vmatpush1.bf16.msra.mxu0 %v9034_v50  ;;  %7121 = vmatpush1.bf16.msra.mxu1 %v9036_v51  ;;  %v1096_v50 = vld [vmem:[%s9965_s12 + $0x18c8] sm:$0xff] }
 0x1ea   : > { %6794 = vmatprep.subr.bf16.mxu0 %v9043_v53  ;;  %7122 = vmatprep.subr.bf16.mxu1 %v9045_v55  ;;  %v1100_v51 = vld [vmem:[%s9965_s12 + $0x18e8] sm:$0xff]  ;;  %v9082_v53 = vcombine.low %v1087_v36, %v1091_v37  ;;  %v9084_v55 = vcombine.low %v1088_v40, %v1092_v41  ;;  %v1135_v36 = vld [vmem:[%s9965_s12 + $0x1a00] sm:$0xff] }
 0x1eb   : > { %v9093_v57 = vcombine.high %v1096_v50, %v1100_v51  ;;  %v1139_v37 = vld [vmem:[%s9965_s12 + $0x1a20] sm:$0xff]  ;;  %v1136_v40 = vld [vmem:[%s9965_s12 + $0x1a08] sm:$0xff] }
 0x1ec   : > { %v1140_v41 = vld [vmem:[%s9965_s12 + $0x1a28] sm:$0xff] }
 0x1ed   : > { %6795 = vmatpush1.bf16.msra.mxu0 %v9042_v62  ;;  %7123 = vmatpush1.bf16.msra.mxu1 %v9044_v63  ;;  %v1104_v62 = vld [vmem:[%s9965_s12 + $0x1908] sm:$0xff] }
 0x1ee   : > { %6796 = vmatprep.subr.bf16.mxu0 %v9051_v9  ;;  %7124 = vmatprep.subr.bf16.mxu1 %v9053_v3  ;;  %v1108_v63 = vld [vmem:[%s9965_s12 + $0x1928] sm:$0xff]  ;;  %v9090_v9 = vcombine.low %v1095_v47, %v1099_v48  ;;  %v9092_v3 = vcombine.low %v1096_v50, %v1100_v51  ;;  %v1143_v47 = vld [vmem:[%s9965_s12 + $0x1a40] sm:$0xff] }
 0x1ef   : > { %v9101_v5 = vcombine.high %v1104_v62, %v1108_v63  ;;  %v1147_v48 = vld [vmem:[%s9965_s12 + $0x1a60] sm:$0xff]  ;;  %v1144_v50 = vld [vmem:[%s9965_s12 + $0x1a48] sm:$0xff] }
 0x1f0   : > { %v1148_v51 = vld [vmem:[%s9965_s12 + $0x1a68] sm:$0xff] }
 0x1f1   : > { %6797 = vmatpush1.bf16.msra.mxu0 %v9050_v11  ;;  %7125 = vmatpush1.bf16.msra.mxu1 %v9052_v12  ;;  %v1116_v11 = vld [vmem:[%s9965_s12 + $0x1968] sm:$0xff]  ;;  %v9098_v12 = vcombine.low %v1103_v58, %v1107_v61  ;;  %v1151_v58 = vld [vmem:[%s9965_s12 + $0x1a80] sm:$0xff] }
 0x1f2   : > { %6798 = vmatprep.subr.bf16.mxu0 %v9059_v13  ;;  %7126 = vmatprep.subr.bf16.mxu1 %v9061_v14  ;;  %v9100_v13 = vcombine.low %v1104_v62, %v1108_v63  ;;  %v9107_v14 = vcombine.high %v1111_v30, %v1115_v7  ;;  %v9109_v15 = vcombine.high %v1112_v8, %v1116_v11  ;;  %v1155_v61 = vld [vmem:[%s9965_s12 + $0x1aa0] sm:$0xff]  ;;  %v1152_v62 = vld [vmem:[%s9965_s12 + $0x1a88] sm:$0xff] }
 0x1f3   : > { %v1156_v63 = vld [vmem:[%s9965_s12 + $0x1aa8] sm:$0xff] }
 0x1f5   : > { %6799 = vmatpush1.bf16.msra.mxu0 %v9058_v19  ;;  %7127 = vmatpush1.bf16.msra.mxu1 %v9060_v21  ;;  %v1124_v19 = vld [vmem:[%s9965_s12 + $0x19a8] sm:$0xff]  ;;  %v9106_v21 = vcombine.low %v1111_v30, %v1115_v7  ;;  %v1159_v30 = vld [vmem:[%s9965_s12 + $0x1ac0] sm:$0xff] }
 0x1f6   : > { %6809 = vmatprep.subr.bf16.mxu0 %v9067_v22  ;;  %7137 = vmatprep.subr.bf16.mxu1 %v9069_v23  ;;  %v9108_v22 = vcombine.low %v1112_v8, %v1116_v11  ;;  %v9115_v23 = vcombine.high %v1119_v16, %v1123_v2  ;;  %v9117_v25 = vcombine.high %v1120_v18, %v1124_v19  ;;  %v1163_v7 = vld [vmem:[%s9965_s12 + $0x1ae0] sm:$0xff]  ;;  %v1160_v8 = vld [vmem:[%s9965_s12 + $0x1ac8] sm:$0xff] }
 0x1f7   : > { %v1164_v11 = vld [vmem:[%s9965_s12 + $0x1ae8] sm:$0xff] }
 0x1f8   : > { %6801 = vmatmul.mubr.bf16.vlgmr.msra.gmra.mrb[0].mxu0 %v10485_v28  ;;  %7129 = vmatmul.mubr.bf16.vlgmr.msra.gmra.mrb[0].mxu1 %v10485_v28 }
 0x1f9   : > { %6810 = vmatpush1.bf16.msra.mxu0 %v9066_v32  ;;  %7138 = vmatpush1.bf16.msra.mxu1 %v9068_v0  ;;  %v9114_v32 = vcombine.low %v1119_v16, %v1123_v2  ;;  %v9116_v0 = vcombine.low %v1120_v18, %v1124_v19  ;;  %v1167_v16 = vld [vmem:[%s9965_s12 + $0x1b00] sm:$0xff]  ;;  %v1168_v18 = vld [vmem:[%s9965_s12 + $0x1b08] sm:$0xff] }
 0x1fa   : > { %6811 = vmatprep.subr.bf16.mxu0 %v9075_v34  ;;  %7139 = vmatprep.subr.bf16.mxu1 %v9077_v35  ;;  %v9123_v34 = vcombine.high %v1127_v26, %v1131_v27  ;;  %v9125_v35 = vcombine.high %v1128_v29, %v1132_v31  ;;  %v1171_v2 = vld [vmem:[%s9965_s12 + $0x1b20] sm:$0xff]  ;;  %v1172_v19 = vld [vmem:[%s9965_s12 + $0x1b28] sm:$0xff] }
 0x1fb   : > { %6841 = vmatprep.mubr.bf16.mxu0 %v10492_v38  ;;  %7169 = vmatprep.mubr.bf16.mxu1 %v10492_v38 }
 0x1fd   : > { %6812 = vmatpush1.bf16.msra.mxu0 %v9074_v42  ;;  %7140 = vmatpush1.bf16.msra.mxu1 %v9076_v43  ;;  %v9122_v42 = vcombine.low %v1127_v26, %v1131_v27  ;;  %v9124_v43 = vcombine.low %v1128_v29, %v1132_v31  ;;  %v1175_v26 = vld [vmem:[%s9965_s12 + $0x1b40] sm:$0xff]  ;;  %v1176_v29 = vld [vmem:[%s9965_s12 + $0x1b48] sm:$0xff] }
 0x1fe   : > { %6813 = vmatprep.subr.bf16.mxu0 %v9083_v44  ;;  %7141 = vmatprep.subr.bf16.mxu1 %v9085_v46  ;;  %v9131_v44 = vcombine.high %v1135_v36, %v1139_v37  ;;  %v9133_v46 = vcombine.high %v1136_v40, %v1140_v41  ;;  %v1179_v27 = vld [vmem:[%s9965_s12 + $0x1b60] sm:$0xff]  ;;  %v1180_v31 = vld [vmem:[%s9965_s12 + $0x1b68] sm:$0xff] }
 0x201   : > { %6814 = vmatpush1.bf16.msra.mxu0 %v9082_v53  ;;  %7142 = vmatpush1.bf16.msra.mxu1 %v9084_v55  ;;  %v9130_v53 = vcombine.low %v1135_v36, %v1139_v37  ;;  %v9132_v55 = vcombine.low %v1136_v40, %v1140_v41  ;;  %v1183_v36 = vld [vmem:[%s9965_s12 + $0x1b80] sm:$0xff]  ;;  %v1184_v40 = vld [vmem:[%s9965_s12 + $0x1b88] sm:$0xff] }
 0x202   : > { %6815 = vmatprep.subr.bf16.mxu0 %v9091_v56  ;;  %7143 = vmatprep.subr.bf16.mxu1 %v9093_v57  ;;  %v9139_v56 = vcombine.high %v1143_v47, %v1147_v48  ;;  %v9141_v57 = vcombine.high %v1144_v50, %v1148_v51  ;;  %v1187_v37 = vld [vmem:[%s9965_s12 + $0x1ba0] sm:$0xff]  ;;  %v1188_v41 = vld [vmem:[%s9965_s12 + $0x1ba8] sm:$0xff] }
 0x205   : > { %6816 = vmatpush1.bf16.msra.mxu0 %v9090_v9  ;;  %7144 = vmatpush1.bf16.msra.mxu1 %v9092_v3  ;;  %v9138_v9 = vcombine.low %v1143_v47, %v1147_v48  ;;  %v9140_v3 = vcombine.low %v1144_v50, %v1148_v51  ;;  %v1191_v47 = vld [vmem:[%s9965_s12 + $0x1bc0] sm:$0xff]  ;;  %v1192_v50 = vld [vmem:[%s9965_s12 + $0x1bc8] sm:$0xff] }
 0x206   : > { %6817 = vmatprep.subr.bf16.mxu0 %v9099_v4  ;;  %7145 = vmatprep.subr.bf16.mxu1 %v9101_v5  ;;  %v9147_v4 = vcombine.high %v1151_v58, %v1155_v61  ;;  %v9149_v5 = vcombine.high %v1152_v62, %v1156_v63  ;;  %v1195_v48 = vld [vmem:[%s9965_s12 + $0x1be0] sm:$0xff]  ;;  %v1196_v51 = vld [vmem:[%s9965_s12 + $0x1be8] sm:$0xff] }
 0x209   : > { %6818 = vmatpush1.bf16.msra.mxu0 %v9098_v12  ;;  %7146 = vmatpush1.bf16.msra.mxu1 %v9100_v13  ;;  %v9146_v12 = vcombine.low %v1151_v58, %v1155_v61  ;;  %v9148_v13 = vcombine.low %v1152_v62, %v1156_v63  ;;  %v1199_v58 = vld [vmem:[%s9965_s12 + $0x1c00] sm:$0xff]  ;;  %v1200_v62 = vld [vmem:[%s9965_s12 + $0x1c08] sm:$0xff] }
 0x20a   : > { %6819 = vmatprep.subr.bf16.mxu0 %v9107_v14  ;;  %7147 = vmatprep.subr.bf16.mxu1 %v9109_v15  ;;  %v9155_v14 = vcombine.high %v1159_v30, %v1163_v7  ;;  %v9157_v15 = vcombine.high %v1160_v8, %v1164_v11  ;;  %v1203_v61 = vld [vmem:[%s9965_s12 + $0x1c20] sm:$0xff]  ;;  %v1204_v63 = vld [vmem:[%s9965_s12 + $0x1c28] sm:$0xff] }
 0x20d   : > { %6820 = vmatpush1.bf16.msra.mxu0 %v9106_v21  ;;  %7148 = vmatpush1.bf16.msra.mxu1 %v9108_v22  ;;  %v9154_v21 = vcombine.low %v1159_v30, %v1163_v7  ;;  %v9156_v22 = vcombine.low %v1160_v8, %v1164_v11  ;;  %v1207_v30 = vld [vmem:[%s9965_s12 + $0x1c40] sm:$0xff]  ;;  %v10560_v8 = vrot.slane %v10475_v17, %v10022_v54  ;;  %v1208_v11 = vld [vmem:[%s9965_s12 + $0x1c48] sm:$0xff] }
 0x20e   : > { %6821 = vmatprep.subr.bf16.mxu0 %v9115_v23  ;;  %7149 = vmatprep.subr.bf16.mxu1 %v9117_v25  ;;  %v9163_v23 = vcombine.high %v1167_v16, %v1171_v2  ;;  %v9165_v25 = vcombine.high %v1168_v18, %v1172_v19  ;;  %v1211_v7 = vld [vmem:[%s9965_s12 + $0x1c60] sm:$0xff]  ;;  %v1216_v17 = vld [vmem:[%s9965_s12 + $0x1c88] sm:$0xff] }
 0x211   : > { %6822 = vmatpush1.bf16.msra.mxu0 %v9114_v32  ;;  %7150 = vmatpush1.bf16.msra.mxu1 %v9116_v0  ;;  %v9162_v32 = vcombine.low %v1167_v16, %v1171_v2  ;;  %v9164_v0 = vcombine.low %v1168_v18, %v1172_v19  ;;  %v1215_v2 = vld [vmem:[%s9965_s12 + $0x1c80] sm:$0xff]  ;;  %v10568_v19 = vcombine.high %v10492_v38, %v10492_v38 }
 0x212   : > { %6823 = vmatprep.subr.bf16.mxu0 %v9123_v34  ;;  %7151 = vmatprep.subr.bf16.mxu1 %v9125_v35  ;;  %v9171_v34 = vcombine.high %v1175_v26, %v1179_v27  ;;  %v9173_v35 = vcombine.high %v1176_v29, %v1180_v31  ;;  %v1219_v18 = vld [vmem:[%s9965_s12 + $0x1ca0] sm:$0xff] }
 0x215   : > { %6824 = vmatpush1.bf16.msra.mxu0 %v9122_v42  ;;  %7152 = vmatpush1.bf16.msra.mxu1 %v9124_v43  ;;  %v9170_v42 = vcombine.low %v1175_v26, %v1179_v27  ;;  %v9172_v43 = vcombine.low %v1176_v29, %v1180_v31  ;;  %v1223_v27 = vld [vmem:[%s9965_s12 + $0x1cc0] sm:$0xff]  ;;  %v1224_v31 = vld [vmem:[%s9965_s12 + $0x1cc8] sm:$0xff] }
 0x216   : > { %6825 = vmatprep.subr.bf16.mxu0 %v9131_v44  ;;  %7153 = vmatprep.subr.bf16.mxu1 %v9133_v46  ;;  %v9179_v44 = vcombine.high %v1183_v36, %v1187_v37  ;;  %v9181_v46 = vcombine.high %v1184_v40, %v1188_v41  ;;  %v1227_v29 = vld [vmem:[%s9965_s12 + $0x1ce0] sm:$0xff] }
 0x219   : > { %6826 = vmatpush1.bf16.msra.mxu0 %v9130_v53  ;;  %7154 = vmatpush1.bf16.msra.mxu1 %v9132_v55  ;;  %v9178_v53 = vcombine.low %v1183_v36, %v1187_v37  ;;  %v9180_v55 = vcombine.low %v1184_v40, %v1188_v41  ;;  %v1231_v37 = vld [vmem:[%s9965_s12 + $0x1d00] sm:$0xff]  ;;  %v1232_v41 = vld [vmem:[%s9965_s12 + $0x1d08] sm:$0xff] }
 0x21a   : > { %6827 = vmatprep.subr.bf16.mxu0 %v9139_v56  ;;  %7155 = vmatprep.subr.bf16.mxu1 %v9141_v57  ;;  %v9187_v56 = vcombine.high %v1191_v47, %v1195_v48  ;;  %v9189_v57 = vcombine.high %v1192_v50, %v1196_v51  ;;  %v1235_v40 = vld [vmem:[%s9965_s12 + $0x1d20] sm:$0xff] }
 0x21d   : > { %6828 = vmatpush1.bf16.msra.mxu0 %v9138_v9  ;;  %7156 = vmatpush1.bf16.msra.mxu1 %v9140_v3  ;;  %v9186_v9 = vcombine.low %v1191_v47, %v1195_v48  ;;  %v9188_v3 = vcombine.low %v1192_v50, %v1196_v51  ;;  %v1239_v48 = vld [vmem:[%s9965_s12 + $0x1d40] sm:$0xff]  ;;  %v1240_v51 = vld [vmem:[%s9965_s12 + $0x1d48] sm:$0xff] }
 0x21e   : > { %6829 = vmatprep.subr.bf16.mxu0 %v9147_v4  ;;  %7157 = vmatprep.subr.bf16.mxu1 %v9149_v5  ;;  %v9195_v4 = vcombine.high %v1199_v58, %v1203_v61  ;;  %v9197_v5 = vcombine.high %v1200_v62, %v1204_v63  ;;  %v1243_v50 = vld [vmem:[%s9965_s12 + $0x1d60] sm:$0xff] }
 0x221   : > { %6830 = vmatpush1.bf16.msra.mxu0 %v9146_v12  ;;  %7158 = vmatpush1.bf16.msra.mxu1 %v9148_v13  ;;  %v1212_v12 = vld [vmem:[%s9965_s12 + $0x1c68] sm:$0xff]  ;;  %v9194_v13 = vcombine.low %v1199_v58, %v1203_v61  ;;  %v1247_v61 = vld [vmem:[%s9965_s12 + $0x1d80] sm:$0xff] }
 0x222   : > { %6831 = vmatprep.subr.bf16.mxu0 %v9155_v14  ;;  %7159 = vmatprep.subr.bf16.mxu1 %v9157_v15  ;;  %v9196_v14 = vcombine.low %v1200_v62, %v1204_v63  ;;  %v9203_v15 = vcombine.high %v1207_v30, %v1211_v7  ;;  %v9205_v16 = vcombine.high %v1208_v11, %v1212_v12  ;;  %v1251_v62 = vld [vmem:[%s9965_s12 + $0x1da0] sm:$0xff]  ;;  %v1248_v63 = vld [vmem:[%s9965_s12 + $0x1d88] sm:$0xff] }
 0x225   : > { %6832 = vmatpush1.bf16.msra.mxu0 %v9154_v21  ;;  %7160 = vmatpush1.bf16.msra.mxu1 %v9156_v22  ;;  %v1220_v21 = vld [vmem:[%s9965_s12 + $0x1ca8] sm:$0xff]  ;;  %v9202_v22 = vcombine.low %v1207_v30, %v1211_v7  ;;  %v1255_v7 = vld [vmem:[%s9965_s12 + $0x1dc0] sm:$0xff] }
 0x226   : > { %6833 = vmatprep.subr.bf16.mxu0 %v9163_v23  ;;  %7161 = vmatprep.subr.bf16.mxu1 %v9165_v25  ;;  %v9204_v23 = vcombine.low %v1208_v11, %v1212_v12  ;;  %v9211_v25 = vcombine.high %v1215_v2, %v1219_v18  ;;  %v9213_v26 = vcombine.high %v1216_v17, %v1220_v21  ;;  %v1259_v11 = vld [vmem:[%s9965_s12 + $0x1de0] sm:$0xff]  ;;  %v1256_v12 = vld [vmem:[%s9965_s12 + $0x1dc8] sm:$0xff] }
 0x229   : > { %6834 = vmatpush1.bf16.msra.mxu0 %v9162_v32  ;;  %7162 = vmatpush1.bf16.msra.mxu1 %v9164_v0  ;;  %v1228_v32 = vld [vmem:[%s9965_s12 + $0x1ce8] sm:$0xff]  ;;  %v9210_v0 = vcombine.low %v1215_v2, %v1219_v18  ;;  %v1263_v18 = vld [vmem:[%s9965_s12 + $0x1e00] sm:$0xff] }
 0x22a   : > { %6835 = vmatprep.subr.bf16.mxu0 %v9171_v34  ;;  %7163 = vmatprep.subr.bf16.mxu1 %v9173_v35  ;;  %v9212_v34 = vcombine.low %v1216_v17, %v1220_v21  ;;  %v9219_v35 = vcombine.high %v1223_v27, %v1227_v29  ;;  %v9221_v36 = vcombine.high %v1224_v31, %v1228_v32  ;;  %v1267_v17 = vld [vmem:[%s9965_s12 + $0x1e20] sm:$0xff]  ;;  %v1264_v21 = vld [vmem:[%s9965_s12 + $0x1e08] sm:$0xff] }
 0x22d   : > { %6836 = vmatpush1.bf16.msra.mxu0 %v9170_v42  ;;  %7164 = vmatpush1.bf16.msra.mxu1 %v9172_v43  ;;  %v1236_v42 = vld [vmem:[%s9965_s12 + $0x1d28] sm:$0xff]  ;;  %v9218_v43 = vcombine.low %v1223_v27, %v1227_v29  ;;  %v1271_v29 = vld [vmem:[%s9965_s12 + $0x1e40] sm:$0xff] }
 0x22e   : > { %6837 = vmatprep.subr.bf16.mxu0 %v9179_v44  ;;  %7165 = vmatprep.subr.bf16.mxu1 %v9181_v46  ;;  %v9220_v44 = vcombine.low %v1224_v31, %v1228_v32  ;;  %v9227_v46 = vcombine.high %v1231_v37, %v1235_v40  ;;  %v9229_v47 = vcombine.high %v1232_v41, %v1236_v42  ;;  %v1275_v31 = vld [vmem:[%s9965_s12 + $0x1e60] sm:$0xff]  ;;  %v1272_v32 = vld [vmem:[%s9965_s12 + $0x1e48] sm:$0xff] }
 0x231   : > { %6838 = vmatpush1.bf16.msra.mxu0 %v9178_v53  ;;  %7166 = vmatpush1.bf16.msra.mxu1 %v9180_v55  ;;  %v1244_v53 = vld [vmem:[%s9965_s12 + $0x1d68] sm:$0xff]  ;;  %v9226_v55 = vcombine.low %v1231_v37, %v1235_v40  ;;  %v1279_v40 = vld [vmem:[%s9965_s12 + $0x1e80] sm:$0xff] }
 0x232   : > { %6839 = vmatprep.subr.bf16.mxu0 %v9187_v56  ;;  %7167 = vmatprep.subr.bf16.mxu1 %v9189_v57  ;;  %v9228_v56 = vcombine.low %v1232_v41, %v1236_v42  ;;  %v9235_v57 = vcombine.high %v1239_v48, %v1243_v50  ;;  %v9237_v58 = vcombine.high %v1240_v51, %v1244_v53  ;;  %v1283_v41 = vld [vmem:[%s9965_s12 + $0x1ea0] sm:$0xff]  ;;  %v1280_v42 = vld [vmem:[%s9965_s12 + $0x1e88] sm:$0xff] }
 0x235   : > { %6840 = vmatpush1.bf16.msra.mxu0 %v9186_v9  ;;  %7168 = vmatpush1.bf16.msra.mxu1 %v9188_v3  ;;  %v1252_v9 = vld [vmem:[%s9965_s12 + $0x1da8] sm:$0xff]  ;;  %v9234_v3 = vcombine.low %v1239_v48, %v1243_v50  ;;  %v1287_v50 = vld [vmem:[%s9965_s12 + $0x1ec0] sm:$0xff] }
 0x236   : > { %6850 = vmatprep.subr.bf16.mxu0 %v9195_v4  ;;  %7178 = vmatprep.subr.bf16.mxu1 %v9197_v5  ;;  %v9236_v4 = vcombine.low %v1240_v51, %v1244_v53  ;;  %v9243_v5 = vcombine.high %v1247_v61, %v1251_v62  ;;  %v9245_v30 = vcombine.high %v1248_v63, %v1252_v9  ;;  %v1291_v51 = vld [vmem:[%s9965_s12 + $0x1ee0] sm:$0xff]  ;;  %v1288_v53 = vld [vmem:[%s9965_s12 + $0x1ec8] sm:$0xff] }
 0x238   : > { %6842 = vmatmul.mubr.bf16.vlgmr.msra.gmra.mrb[0].mxu0 %v10560_v8  ;;  %7170 = vmatmul.mubr.bf16.vlgmr.msra.gmra.mrb[0].mxu1 %v10560_v8 }
 0x239   : > { %6851 = vmatpush1.bf16.msra.mxu0 %v9194_v13  ;;  %7179 = vmatpush1.bf16.msra.mxu1 %v9196_v14  ;;  %v1260_v13 = vld [vmem:[%s9965_s12 + $0x1de8] sm:$0xff]  ;;  %v9242_v14 = vcombine.low %v1247_v61, %v1251_v62  ;;  %v1295_v62 = vld [vmem:[%s9965_s12 + $0x1f00] sm:$0xff] }
 0x23a   : > { %6852 = vmatprep.subr.bf16.mxu0 %v9203_v15  ;;  %7180 = vmatprep.subr.bf16.mxu1 %v9205_v16  ;;  %v9244_v15 = vcombine.low %v1248_v63, %v1252_v9  ;;  %v9251_v16 = vcombine.high %v1255_v7, %v1259_v11  ;;  %v9253_v2 = vcombine.high %v1256_v12, %v1260_v13  ;;  %v1299_v63 = vld [vmem:[%s9965_s12 + $0x1f20] sm:$0xff]  ;;  %v1296_v9 = vld [vmem:[%s9965_s12 + $0x1f08] sm:$0xff] }
 0x23b   : > { %6882 = vmatprep.mubr.bf16.mxu0 %v10568_v19  ;;  %7210 = vmatprep.mubr.bf16.mxu1 %v10568_v19 }
 0x23d   : > { %6853 = vmatpush1.bf16.msra.mxu0 %v9202_v22  ;;  %7181 = vmatpush1.bf16.msra.mxu1 %v9204_v23  ;;  %v1268_v22 = vld [vmem:[%s9965_s12 + $0x1e28] sm:$0xff]  ;;  %v9250_v23 = vcombine.low %v1255_v7, %v1259_v11  ;;  %v1303_v11 = vld [vmem:[%s9965_s12 + $0x1f40] sm:$0xff] }
 0x23e   : > { %6854 = vmatprep.subr.bf16.mxu0 %v9211_v25  ;;  %7182 = vmatprep.subr.bf16.mxu1 %v9213_v26  ;;  %v9252_v25 = vcombine.low %v1256_v12, %v1260_v13  ;;  %v9259_v26 = vcombine.high %v1263_v18, %v1267_v17  ;;  %v9261_v27 = vcombine.high %v1264_v21, %v1268_v22  ;;  %v1307_v12 = vld [vmem:[%s9965_s12 + $0x1f60] sm:$0xff]  ;;  %v1304_v13 = vld [vmem:[%s9965_s12 + $0x1f48] sm:$0xff] }
 0x241   : > { %6855 = vmatpush1.bf16.msra.mxu0 %v9210_v0  ;;  %7183 = vmatpush1.bf16.msra.mxu1 %v9212_v34  ;;  %v1276_v0 = vld [vmem:[%s9965_s12 + $0x1e68] sm:$0xff]  ;;  %v9258_v34 = vcombine.low %v1263_v18, %v1267_v17  ;;  %v1311_v17 = vld [vmem:[%s9965_s12 + $0x1f80] sm:$0xff] }
 0x242   : > { %6856 = vmatprep.subr.bf16.mxu0 %v9219_v35  ;;  %7184 = vmatprep.subr.bf16.mxu1 %v9221_v36  ;;  %v9260_v35 = vcombine.low %v1264_v21, %v1268_v22  ;;  %v9267_v36 = vcombine.high %v1271_v29, %v1275_v31  ;;  %v9269_v37 = vcombine.high %v1272_v32, %v1276_v0  ;;  %v1315_v21 = vld [vmem:[%s9965_s12 + $0x1fa0] sm:$0xff]  ;;  %v1312_v22 = vld [vmem:[%s9965_s12 + $0x1f88] sm:$0xff] }
 0x245   : > { %6857 = vmatpush1.bf16.msra.mxu0 %v9218_v43  ;;  %7185 = vmatpush1.bf16.msra.mxu1 %v9220_v44  ;;  %v1284_v43 = vld [vmem:[%s9965_s12 + $0x1ea8] sm:$0xff]  ;;  %v9266_v44 = vcombine.low %v1271_v29, %v1275_v31  ;;  %v1319_v31 = vld [vmem:[%s9965_s12 + $0x1fc0] sm:$0xff] }
 0x246   : > { %6858 = vmatprep.subr.bf16.mxu0 %v9227_v46  ;;  %7186 = vmatprep.subr.bf16.mxu1 %v9229_v47  ;;  %v9268_v46 = vcombine.low %v1272_v32, %v1276_v0  ;;  %v9275_v47 = vcombine.high %v1279_v40, %v1283_v41  ;;  %v9277_v48 = vcombine.high %v1280_v42, %v1284_v43  ;;  %v1323_v32 = vld [vmem:[%s9965_s12 + $0x1fe0] sm:$0xff]  ;;  %v1320_v0 = vld [vmem:[%s9965_s12 + $0x1fc8] sm:$0xff] }
 0x249   : > { %6859 = vmatpush1.bf16.msra.mxu0 %v9226_v55  ;;  %7187 = vmatpush1.bf16.msra.mxu1 %v9228_v56  ;;  %v1292_v55 = vld [vmem:[%s9965_s12 + $0x1ee8] sm:$0xff]  ;;  %v9274_v56 = vcombine.low %v1279_v40, %v1283_v41  ;;  %v305_v41 = vld [vmem:[%s9965_s12 + $0x10] sm:$0xff] }
 0x24a   : > { %6860 = vmatprep.subr.bf16.mxu0 %v9235_v57  ;;  %7188 = vmatprep.subr.bf16.mxu1 %v9237_v58  ;;  %v9276_v57 = vcombine.low %v1280_v42, %v1284_v43  ;;  %v9283_v58 = vcombine.high %v1287_v50, %v1291_v51  ;;  %v9285_v61 = vcombine.high %v1288_v53, %v1292_v55  ;;  %v309_v42 = vld [vmem:[%s9965_s12 + $0x30] sm:$0xff]  ;;  %v306_v43 = vld [vmem:[%s9965_s12 + $0x18] sm:$0xff] }
 0x24d   : > { %6861 = vmatpush1.bf16.msra.mxu0 %v9234_v3  ;;  %7189 = vmatpush1.bf16.msra.mxu1 %v9236_v4  ;;  %v1300_v3 = vld [vmem:[%s9965_s12 + $0x1f28] sm:$0xff]  ;;  %v9282_v4 = vcombine.low %v1287_v50, %v1291_v51  ;;  %v313_v51 = vld [vmem:[%s9965_s12 + $0x50] sm:$0xff] }
 0x24e   : > { %6862 = vmatprep.subr.bf16.mxu0 %v9243_v5  ;;  %7190 = vmatprep.subr.bf16.mxu1 %v9245_v30  ;;  %v9284_v5 = vcombine.low %v1288_v53, %v1292_v55  ;;  %v9291_v30 = vcombine.high %v1295_v62, %v1299_v63  ;;  %v9293_v7 = vcombine.high %v1296_v9, %v1300_v3  ;;  %v317_v53 = vld [vmem:[%s9965_s12 + $0x70] sm:$0xff] }
 0x24f   : > { %v10636_v55 = vcombine.high %v10560_v8, %v10560_v8 }
 0x251   : > { %6863 = vmatpush1.bf16.msra.mxu0 %v9242_v14  ;;  %7191 = vmatpush1.bf16.msra.mxu1 %v9244_v15  ;;  %v1308_v14 = vld [vmem:[%s9965_s12 + $0x1f68] sm:$0xff]  ;;  %v9290_v15 = vcombine.low %v1295_v62, %v1299_v63  ;;  %v8311_v62 = vcombine.high %v313_v51, %v317_v53 }
 0x252   : > { %6864 = vmatprep.subr.bf16.mxu0 %v9251_v16  ;;  %7192 = vmatprep.subr.bf16.mxu1 %v9253_v2  ;;  %v9292_v16 = vcombine.low %v1296_v9, %v1300_v3  ;;  %v9299_v2 = vcombine.high %v1303_v11, %v1307_v12  ;;  %v9301_v18 = vcombine.high %v1304_v13, %v1308_v14  ;;  %v321_v9 = vld [vmem:[%s9965_s12 + $0x90] sm:$0xff] }
 0x253   : > { %v325_v3 = vld [vmem:[%s9965_s12 + $0xb0] sm:$0xff] }
 0x255   : > { %6865 = vmatpush1.bf16.msra.mxu0 %v9250_v23  ;;  %7193 = vmatpush1.bf16.msra.mxu1 %v9252_v25  ;;  %v1316_v23 = vld [vmem:[%s9965_s12 + $0x1fa8] sm:$0xff]  ;;  %v9298_v25 = vcombine.low %v1303_v11, %v1307_v12  ;;  %v8319_v11 = vcombine.high %v321_v9, %v325_v3 }
 0x256   : > { %6866 = vmatprep.subr.bf16.mxu0 %v9259_v26  ;;  %7194 = vmatprep.subr.bf16.mxu1 %v9261_v27  ;;  %v9300_v26 = vcombine.low %v1304_v13, %v1308_v14  ;;  %v9307_v27 = vcombine.high %v1311_v17, %v1315_v21  ;;  %v9309_v29 = vcombine.high %v1312_v22, %v1316_v23  ;;  %v329_v13 = vld [vmem:[%s9965_s12 + $0xd0] sm:$0xff] }
 0x257   : > { %v333_v14 = vld [vmem:[%s9965_s12 + $0xf0] sm:$0xff] }
 0x259   : > { %6867 = vmatpush1.bf16.msra.mxu0 %v9258_v34  ;;  %7195 = vmatpush1.bf16.msra.mxu1 %v9260_v35  ;;  %v1324_v34 = vld [vmem:[%s9965_s12 + $0x1fe8] sm:$0xff]  ;;  %v9306_v35 = vcombine.low %v1311_v17, %v1315_v21  ;;  %v8327_v17 = vcombine.high %v329_v13, %v333_v14 }
 0x25a   : > { %6868 = vmatprep.subr.bf16.mxu0 %v9267_v36  ;;  %7196 = vmatprep.subr.bf16.mxu1 %v9269_v37  ;;  %v9308_v36 = vcombine.low %v1312_v22, %v1316_v23  ;;  %v9315_v37 = vcombine.high %v1319_v31, %v1323_v32  ;;  %v9317_v40 = vcombine.high %v1320_v0, %v1324_v34  ;;  %v337_v22 = vld [vmem:[%s9965_s12 + $0x110] sm:$0xff] }
 0x25b   : > { %v341_v23 = vld [vmem:[%s9965_s12 + $0x130] sm:$0xff] }
 0x25d   : > { %6869 = vmatpush1.bf16.msra.mxu0 %v9266_v44  ;;  %7197 = vmatpush1.bf16.msra.mxu1 %v9268_v46  ;;  %v310_v44 = vld [vmem:[%s9965_s12 + $0x38] sm:$0xff]  ;;  %v9314_v46 = vcombine.low %v1319_v31, %v1323_v32  ;;  %v345_v32 = vld [vmem:[%s9965_s12 + $0x150] sm:$0xff] }
 0x25e   : > { %6870 = vmatprep.subr.bf16.mxu0 %v9275_v47  ;;  %7198 = vmatprep.subr.bf16.mxu1 %v9277_v48  ;;  %v9316_v47 = vcombine.low %v1320_v0, %v1324_v34  ;;  %v8303_v48 = vcombine.high %v305_v41, %v309_v42  ;;  %v8305_v50 = vcombine.high %v306_v43, %v310_v44  ;;  %v349_v0 = vld [vmem:[%s9965_s12 + $0x170] sm:$0xff]  ;;  %v346_v34 = vld [vmem:[%s9965_s12 + $0x158] sm:$0xff] }
 0x261   : > { %6871 = vmatpush1.bf16.msra.mxu0 %v9274_v56  ;;  %7199 = vmatpush1.bf16.msra.mxu1 %v9276_v57  ;;  %v314_v56 = vld [vmem:[%s9965_s12 + $0x58] sm:$0xff] }
 0x262   : > { %6872 = vmatprep.subr.bf16.mxu0 %v9283_v58  ;;  %7200 = vmatprep.subr.bf16.mxu1 %v9285_v61  ;;  %v318_v57 = vld [vmem:[%s9965_s12 + $0x78] sm:$0xff]  ;;  %v8302_v58 = vcombine.low %v305_v41, %v309_v42  ;;  %v8304_v61 = vcombine.low %v306_v43, %v310_v44  ;;  %v353_v42 = vld [vmem:[%s9965_s12 + $0x190] sm:$0xff] }
 0x263   : > { %v8313_v63 = vcombine.high %v314_v56, %v318_v57  ;;  %v357_v43 = vld [vmem:[%s9965_s12 + $0x1b0] sm:$0xff]  ;;  %v354_v44 = vld [vmem:[%s9965_s12 + $0x198] sm:$0xff] }
 0x265   : > { %6873 = vmatpush1.bf16.msra.mxu0 %v9282_v4  ;;  %7201 = vmatpush1.bf16.msra.mxu1 %v9284_v5  ;;  %v322_v4 = vld [vmem:[%s9965_s12 + $0x98] sm:$0xff] }
 0x266   : > { %6874 = vmatprep.subr.bf16.mxu0 %v9291_v30  ;;  %7202 = vmatprep.subr.bf16.mxu1 %v9293_v7  ;;  %v326_v5 = vld [vmem:[%s9965_s12 + $0xb8] sm:$0xff]  ;;  %v8310_v30 = vcombine.low %v313_v51, %v317_v53  ;;  %v8312_v7 = vcombine.low %v314_v56, %v318_v57  ;;  %v361_v53 = vld [vmem:[%s9965_s12 + $0x1d0] sm:$0xff] }
 0x267   : > { %v8321_v12 = vcombine.high %v322_v4, %v326_v5  ;;  %v365_v56 = vld [vmem:[%s9965_s12 + $0x1f0] sm:$0xff]  ;;  %v362_v57 = vld [vmem:[%s9965_s12 + $0x1d8] sm:$0xff] }
 0x269   : > { %6875 = vmatpush1.bf16.msra.mxu0 %v9290_v15  ;;  %7203 = vmatpush1.bf16.msra.mxu1 %v9292_v16  ;;  %v330_v15 = vld [vmem:[%s9965_s12 + $0xd8] sm:$0xff] }
 0x26a   : > { %6876 = vmatprep.subr.bf16.mxu0 %v9299_v2  ;;  %7204 = vmatprep.subr.bf16.mxu1 %v9301_v18  ;;  %v334_v16 = vld [vmem:[%s9965_s12 + $0xf8] sm:$0xff]  ;;  %v8318_v2 = vcombine.low %v321_v9, %v325_v3  ;;  %v8320_v18 = vcombine.low %v322_v4, %v326_v5  ;;  %v369_v3 = vld [vmem:[%s9965_s12 + $0x210] sm:$0xff] }
 0x26b   : > { %v8329_v21 = vcombine.high %v330_v15, %v334_v16  ;;  %v373_v4 = vld [vmem:[%s9965_s12 + $0x230] sm:$0xff]  ;;  %v370_v5 = vld [vmem:[%s9965_s12 + $0x218] sm:$0xff] }
 0x26d   : > { %6877 = vmatpush1.bf16.msra.mxu0 %v9298_v25  ;;  %7205 = vmatpush1.bf16.msra.mxu1 %v9300_v26  ;;  %v338_v25 = vld [vmem:[%s9965_s12 + $0x118] sm:$0xff] }
 0x26e   : > { %6878 = vmatprep.subr.bf16.mxu0 %v9307_v27  ;;  %7206 = vmatprep.subr.bf16.mxu1 %v9309_v29  ;;  %v342_v26 = vld [vmem:[%s9965_s12 + $0x138] sm:$0xff]  ;;  %v8326_v27 = vcombine.low %v329_v13, %v333_v14  ;;  %v8335_v29 = vcombine.high %v337_v22, %v341_v23  ;;  %v377_v14 = vld [vmem:[%s9965_s12 + $0x250] sm:$0xff] }
 0x26f   : > { %v8337_v31 = vcombine.high %v338_v25, %v342_v26 }
 0x271   : > { %6879 = vmatpush1.bf16.msra.mxu0 %v9306_v35  ;;  %7207 = vmatpush1.bf16.msra.mxu1 %v9308_v36  ;;  %v350_v35 = vld [vmem:[%s9965_s12 + $0x178] sm:$0xff]  ;;  %v8334_v36 = vcombine.low %v337_v22, %v341_v23  ;;  %v385_v23 = vld [vmem:[%s9965_s12 + $0x290] sm:$0xff] }
 0x272   : > { %6880 = vmatprep.subr.bf16.mxu0 %v9315_v37  ;;  %7208 = vmatprep.subr.bf16.mxu1 %v9317_v40  ;;  %v8336_v37 = vcombine.low %v338_v25, %v342_v26  ;;  %v8343_v40 = vcombine.high %v345_v32, %v349_v0  ;;  %v8345_v41 = vcombine.high %v346_v34, %v350_v35  ;;  %v389_v25 = vld [vmem:[%s9965_s12 + $0x2b0] sm:$0xff]  ;;  %v386_v26 = vld [vmem:[%s9965_s12 + $0x298] sm:$0xff] }
 0x275   : > { %6881 = vmatpush1.bf16.msra.mxu0 %v9314_v46  ;;  %7209 = vmatpush1.bf16.msra.mxu1 %v9316_v47  ;;  %v358_v46 = vld [vmem:[%s9965_s12 + $0x1b8] sm:$0xff]  ;;  %v8342_v47 = vcombine.low %v345_v32, %v349_v0  ;;  %v393_v0 = vld [vmem:[%s9965_s12 + $0x2d0] sm:$0xff] }
 0x276   : > { %7219 = vmatprep.subr.bf16.mxu0 %v8303_v48  ;;  %7547 = vmatprep.subr.bf16.mxu1 %v8305_v50  ;;  %v8344_v48 = vcombine.low %v346_v34, %v350_v35  ;;  %v8351_v50 = vcombine.high %v353_v42, %v357_v43  ;;  %v8353_v51 = vcombine.high %v354_v44, %v358_v46  ;;  %v397_v34 = vld [vmem:[%s9965_s12 + $0x2f0] sm:$0xff]  ;;  %v394_v35 = vld [vmem:[%s9965_s12 + $0x2d8] sm:$0xff] }
 0x278   : > { %6883 = vmatmul.mubr.bf16.vlgmr.msra.gmra.mrb[0].mxu0 %v10636_v55  ;;  %7211 = vmatmul.mubr.bf16.vlgmr.msra.gmra.mrb[0].mxu1 %v10636_v55 }
 0x279   : > { %7220 = vmatpush1.bf16.msra.mxu0 %v8302_v58  ;;  %7548 = vmatpush1.bf16.msra.mxu1 %v8304_v61  ;;  %v366_v58 = vld [vmem:[%s9965_s12 + $0x1f8] sm:$0xff]  ;;  %v8350_v61 = vcombine.low %v353_v42, %v357_v43  ;;  %v401_v43 = vld [vmem:[%s9965_s12 + $0x310] sm:$0xff] }
 0x27a   : > { %7221 = vmatprep.subr.bf16.mxu0 %v8311_v62  ;;  %7549 = vmatprep.subr.bf16.mxu1 %v8313_v63  ;;  %v8352_v62 = vcombine.low %v354_v44, %v358_v46  ;;  %v8359_v63 = vcombine.high %v361_v53, %v365_v56  ;;  %v8361_v9 = vcombine.high %v362_v57, %v366_v58  ;;  %v405_v44 = vld [vmem:[%s9965_s12 + $0x330] sm:$0xff]  ;;  %v402_v46 = vld [vmem:[%s9965_s12 + $0x318] sm:$0xff] }
 0x27b   : > { %7251 = vmatprep.mubr.bf16.mxu0 %v10042_v10  ;;  %7579 = vmatprep.mubr.bf16.mxu1 %v10042_v10  ;;  %v8328_v10 = vcombine.low %v330_v15, %v334_v16  ;;  %v381_v15 = vld [vmem:[%s9965_s12 + $0x270] sm:$0xff]  ;;  %v378_v16 = vld [vmem:[%s9965_s12 + $0x258] sm:$0xff] }
 0x27d   : > { %7222 = vmatpush1.bf16.msra.mxu0 %v8310_v30  ;;  %7550 = vmatpush1.bf16.msra.mxu1 %v8312_v7  ;;  %v374_v30 = vld [vmem:[%s9965_s12 + $0x238] sm:$0xff]  ;;  %v8358_v7 = vcombine.low %v361_v53, %v365_v56  ;;  %v409_v56 = vld [vmem:[%s9965_s12 + $0x350] sm:$0xff] }
 0x27e   : > { %7223 = vmatprep.subr.bf16.mxu0 %v8319_v11  ;;  %7551 = vmatprep.subr.bf16.mxu1 %v8321_v12  ;;  %v8360_v11 = vcombine.low %v362_v57, %v366_v58  ;;  %v8367_v12 = vcombine.high %v369_v3, %v373_v4  ;;  %v8369_v13 = vcombine.high %v370_v5, %v374_v30  ;;  %v413_v57 = vld [vmem:[%s9965_s12 + $0x370] sm:$0xff]  ;;  %v410_v58 = vld [vmem:[%s9965_s12 + $0x358] sm:$0xff] }
 0x281   : > { %7224 = vmatpush1.bf16.msra.mxu0 %v8318_v2  ;;  %7552 = vmatpush1.bf16.msra.mxu1 %v8320_v18  ;;  %v382_v2 = vld [vmem:[%s9965_s12 + $0x278] sm:$0xff]  ;;  %v8366_v18 = vcombine.low %v369_v3, %v373_v4  ;;  %v417_v4 = vld [vmem:[%s9965_s12 + $0x390] sm:$0xff] }
 0x282   : > { %7225 = vmatprep.subr.bf16.mxu0 %v8327_v17  ;;  %7553 = vmatprep.subr.bf16.mxu1 %v8329_v21  ;;  %v8368_v17 = vcombine.low %v370_v5, %v374_v30  ;;  %v8375_v21 = vcombine.high %v377_v14, %v381_v15  ;;  %v8377_v22 = vcombine.high %v378_v16, %v382_v2  ;;  %v421_v5 = vld [vmem:[%s9965_s12 + $0x3b0] sm:$0xff]  ;;  %v418_v30 = vld [vmem:[%s9965_s12 + $0x398] sm:$0xff] }
 0x285   : > { %7226 = vmatpush1.bf16.msra.mxu0 %v8326_v27  ;;  %7554 = vmatpush1.bf16.msra.mxu1 %v8328_v10  ;;  %v390_v27 = vld [vmem:[%s9965_s12 + $0x2b8] sm:$0xff]  ;;  %v8374_v10 = vcombine.low %v377_v14, %v381_v15  ;;  %v425_v15 = vld [vmem:[%s9965_s12 + $0x3d0] sm:$0xff] }
 0x286   : > { %7227 = vmatprep.subr.bf16.mxu0 %v8335_v29  ;;  %7555 = vmatprep.subr.bf16.mxu1 %v8337_v31  ;;  %v8376_v29 = vcombine.low %v378_v16, %v382_v2  ;;  %v8383_v31 = vcombine.high %v385_v23, %v389_v25  ;;  %v8385_v32 = vcombine.high %v386_v26, %v390_v27  ;;  %v429_v16 = vld [vmem:[%s9965_s12 + $0x3f0] sm:$0xff]  ;;  %v426_v2 = vld [vmem:[%s9965_s12 + $0x3d8] sm:$0xff] }
 0x289   : > { %7228 = vmatpush1.bf16.msra.mxu0 %v8334_v36  ;;  %7556 = vmatpush1.bf16.msra.mxu1 %v8336_v37  ;;  %v398_v36 = vld [vmem:[%s9965_s12 + $0x2f8] sm:$0xff]  ;;  %v8382_v37 = vcombine.low %v385_v23, %v389_v25  ;;  %v433_v25 = vld [vmem:[%s9965_s12 + $0x410] sm:$0xff] }
 0x28a   : > { %7229 = vmatprep.subr.bf16.mxu0 %v8343_v40  ;;  %7557 = vmatprep.subr.bf16.mxu1 %v8345_v41  ;;  %v8384_v40 = vcombine.low %v386_v26, %v390_v27  ;;  %v8391_v41 = vcombine.high %v393_v0, %v397_v34  ;;  %v8393_v42 = vcombine.high %v394_v35, %v398_v36  ;;  %v437_v26 = vld [vmem:[%s9965_s12 + $0x430] sm:$0xff]  ;;  %v434_v27 = vld [vmem:[%s9965_s12 + $0x418] sm:$0xff] }
 0x28d   : > { %7230 = vmatpush1.bf16.msra.mxu0 %v8342_v47  ;;  %7558 = vmatpush1.bf16.msra.mxu1 %v8344_v48  ;;  %v406_v47 = vld [vmem:[%s9965_s12 + $0x338] sm:$0xff]  ;;  %v8390_v48 = vcombine.low %v393_v0, %v397_v34  ;;  %v441_v34 = vld [vmem:[%s9965_s12 + $0x450] sm:$0xff] }
 0x28e   : > { %7231 = vmatprep.subr.bf16.mxu0 %v8351_v50  ;;  %7559 = vmatprep.subr.bf16.mxu1 %v8353_v51  ;;  %v8392_v50 = vcombine.low %v394_v35, %v398_v36  ;;  %v8399_v51 = vcombine.high %v401_v43, %v405_v44  ;;  %v8401_v53 = vcombine.high %v402_v46, %v406_v47  ;;  %v445_v35 = vld [vmem:[%s9965_s12 + $0x470] sm:$0xff]  ;;  %v442_v36 = vld [vmem:[%s9965_s12 + $0x458] sm:$0xff] }
 0x291   : > { %7232 = vmatpush1.bf16.msra.mxu0 %v8350_v61  ;;  %7560 = vmatpush1.bf16.msra.mxu1 %v8352_v62  ;;  %v414_v61 = vld [vmem:[%s9965_s12 + $0x378] sm:$0xff]  ;;  %v8398_v62 = vcombine.low %v401_v43, %v405_v44  ;;  %v449_v44 = vld [vmem:[%s9965_s12 + $0x490] sm:$0xff] }
 0x292   : > { %7233 = vmatprep.subr.bf16.mxu0 %v8359_v63  ;;  %7561 = vmatprep.subr.bf16.mxu1 %v8361_v9  ;;  %v8400_v63 = vcombine.low %v402_v46, %v406_v47  ;;  %v8407_v9 = vcombine.high %v409_v56, %v413_v57  ;;  %v8409_v3 = vcombine.high %v410_v58, %v414_v61  ;;  %v453_v46 = vld [vmem:[%s9965_s12 + $0x4b0] sm:$0xff]  ;;  %v450_v47 = vld [vmem:[%s9965_s12 + $0x498] sm:$0xff] }
 0x295   : > { %7234 = vmatpush1.bf16.msra.mxu0 %v8358_v7  ;;  %7562 = vmatpush1.bf16.msra.mxu1 %v8360_v11  ;;  %v422_v7 = vld [vmem:[%s9965_s12 + $0x3b8] sm:$0xff]  ;;  %v8406_v11 = vcombine.low %v409_v56, %v413_v57  ;;  %v457_v57 = vld [vmem:[%s9965_s12 + $0x4d0] sm:$0xff] }
 0x296   : > { %7235 = vmatprep.subr.bf16.mxu0 %v8367_v12  ;;  %7563 = vmatprep.subr.bf16.mxu1 %v8369_v13  ;;  %v8408_v12 = vcombine.low %v410_v58, %v414_v61  ;;  %v8415_v13 = vcombine.high %v417_v4, %v421_v5  ;;  %v8417_v14 = vcombine.high %v418_v30, %v422_v7  ;;  %v461_v58 = vld [vmem:[%s9965_s12 + $0x4f0] sm:$0xff]  ;;  %v458_v61 = vld [vmem:[%s9965_s12 + $0x4d8] sm:$0xff] }
 0x299   : > { %7236 = vmatpush1.bf16.msra.mxu0 %v8366_v18  ;;  %7564 = vmatpush1.bf16.msra.mxu1 %v8368_v17  ;;  %v430_v18 = vld [vmem:[%s9965_s12 + $0x3f8] sm:$0xff]  ;;  %v8414_v17 = vcombine.low %v417_v4, %v421_v5  ;;  %v465_v4 = vld [vmem:[%s9965_s12 + $0x510] sm:$0xff] }
 0x29a   : > { %7237 = vmatprep.subr.bf16.mxu0 %v8375_v21  ;;  %7565 = vmatprep.subr.bf16.mxu1 %v8377_v22  ;;  %v8416_v21 = vcombine.low %v418_v30, %v422_v7  ;;  %v8423_v22 = vcombine.high %v425_v15, %v429_v16  ;;  %v8425_v23 = vcombine.high %v426_v2, %v430_v18  ;;  %v469_v5 = vld [vmem:[%s9965_s12 + $0x530] sm:$0xff]  ;;  %v466_v30 = vld [vmem:[%s9965_s12 + $0x518] sm:$0xff] }
 0x29b   : > { %v470_v7 = vld [vmem:[%s9965_s12 + $0x538] sm:$0xff] }
 0x29d   : > { %7238 = vmatpush1.bf16.msra.mxu0 %v8374_v10  ;;  %7566 = vmatpush1.bf16.msra.mxu1 %v8376_v29  ;;  %v438_v10 = vld [vmem:[%s9965_s12 + $0x438] sm:$0xff]  ;;  %v8422_v29 = vcombine.low %v425_v15, %v429_v16  ;;  %v477_v15 = vld [vmem:[%s9965_s12 + $0x570] sm:$0xff] }
 0x29e   : > { %7239 = vmatprep.subr.bf16.mxu0 %v8383_v31  ;;  %7567 = vmatprep.subr.bf16.mxu1 %v8385_v32  ;;  %v8424_v31 = vcombine.low %v426_v2, %v430_v18  ;;  %v8431_v32 = vcombine.high %v433_v25, %v437_v26  ;;  %v8433_v0 = vcombine.high %v434_v27, %v438_v10  ;;  %v474_v16 = vld [vmem:[%s9965_s12 + $0x558] sm:$0xff] }
 0x29f   : > { %v478_v2 = vld [vmem:[%s9965_s12 + $0x578] sm:$0xff]  ;;  %v8462_v18 = vcombine.low %v465_v4, %v469_v5 }
 0x2a1   : > { %7240 = vmatpush1.bf16.msra.mxu0 %v8382_v37  ;;  %7568 = vmatpush1.bf16.msra.mxu1 %v8384_v40  ;;  %v446_v37 = vld [vmem:[%s9965_s12 + $0x478] sm:$0xff]  ;;  %v8430_v40 = vcombine.low %v433_v25, %v437_v26  ;;  %v485_v25 = vld [vmem:[%s9965_s12 + $0x5b0] sm:$0xff] }
 0x2a2   : > { %7241 = vmatprep.subr.bf16.mxu0 %v8391_v41  ;;  %7569 = vmatprep.subr.bf16.mxu1 %v8393_v42  ;;  %v8432_v41 = vcombine.low %v434_v27, %v438_v10  ;;  %v8439_v42 = vcombine.high %v441_v34, %v445_v35  ;;  %v8441_v43 = vcombine.high %v442_v36, %v446_v37  ;;  %v482_v26 = vld [vmem:[%s9965_s12 + $0x598] sm:$0xff] }
 0x2a3   : > { %v486_v27 = vld [vmem:[%s9965_s12 + $0x5b8] sm:$0xff] }
 0x2a5   : > { %7242 = vmatpush1.bf16.msra.mxu0 %v8390_v48  ;;  %7570 = vmatpush1.bf16.msra.mxu1 %v8392_v50  ;;  %v454_v48 = vld [vmem:[%s9965_s12 + $0x4b8] sm:$0xff]  ;;  %v8438_v50 = vcombine.low %v441_v34, %v445_v35  ;;  %v493_v34 = vld [vmem:[%s9965_s12 + $0x5f0] sm:$0xff] }
 0x2a6   : > { %7243 = vmatprep.subr.bf16.mxu0 %v8399_v51  ;;  %7571 = vmatprep.subr.bf16.mxu1 %v8401_v53  ;;  %v8440_v51 = vcombine.low %v442_v36, %v446_v37  ;;  %v8447_v53 = vcombine.high %v449_v44, %v453_v46  ;;  %v8449_v56 = vcombine.high %v450_v47, %v454_v48  ;;  %v490_v35 = vld [vmem:[%s9965_s12 + $0x5d8] sm:$0xff] }
 0x2a7   : > { %v494_v36 = vld [vmem:[%s9965_s12 + $0x5f8] sm:$0xff] }
 0x2a9   : > { %7244 = vmatpush1.bf16.msra.mxu0 %v8398_v62  ;;  %7572 = vmatpush1.bf16.msra.mxu1 %v8400_v63  ;;  %v462_v62 = vld [vmem:[%s9965_s12 + $0x4f8] sm:$0xff]  ;;  %v8448_v63 = vcombine.low %v450_v47, %v454_v48 }
 0x2aa   : > { %7245 = vmatprep.subr.bf16.mxu0 %v8407_v9  ;;  %7573 = vmatprep.subr.bf16.mxu1 %v8409_v3  ;;  %v8455_v9 = vcombine.high %v457_v57, %v461_v58  ;;  %v8457_v3 = vcombine.high %v458_v61, %v462_v62  ;;  %v502_v47 = vld [vmem:[%s9965_s12 + $0x638] sm:$0xff] }
 0x2ad   : > { %7246 = vmatpush1.bf16.msra.mxu0 %v8406_v11  ;;  %7574 = vmatpush1.bf16.msra.mxu1 %v8408_v12  ;;  %v8454_v11 = vcombine.low %v457_v57, %v461_v58  ;;  %v8463_v12 = vcombine.high %v465_v4, %v469_v5  ;;  %v509_v57 = vld [vmem:[%s9965_s12 + $0x670] sm:$0xff]  ;;  %v506_v58 = vld [vmem:[%s9965_s12 + $0x658] sm:$0xff] }
 0x2ae   : > { %7247 = vmatprep.subr.bf16.mxu0 %v8415_v13  ;;  %7575 = vmatprep.subr.bf16.mxu1 %v8417_v14  ;;  %v8465_v13 = vcombine.high %v466_v30, %v470_v7  ;;  %v473_v14 = vld [vmem:[%s9965_s12 + $0x550] sm:$0xff]  ;;  %v514_v5 = vld [vmem:[%s9965_s12 + $0x698] sm:$0xff] }
 0x2af   : > { %v8470_v10 = vcombine.low %v473_v14, %v477_v15  ;;  %v517_v4 = vld [vmem:[%s9965_s12 + $0x6b0] sm:$0xff] }
 0x2b1   : > { %7248 = vmatpush1.bf16.msra.mxu0 %v8414_v17  ;;  %7576 = vmatpush1.bf16.msra.mxu1 %v8416_v21  ;;  %v8464_v17 = vcombine.low %v466_v30, %v470_v7  ;;  %v8471_v21 = vcombine.high %v473_v14, %v477_v15  ;;  %v518_v30 = vld [vmem:[%s9965_s12 + $0x6b8] sm:$0xff]  ;;  %v525_v14 = vld [vmem:[%s9965_s12 + $0x6f0] sm:$0xff] }
 0x2b2   : > { %7249 = vmatprep.subr.bf16.mxu0 %v8423_v22  ;;  %7577 = vmatprep.subr.bf16.mxu1 %v8425_v23  ;;  %v8473_v22 = vcombine.high %v474_v16, %v478_v2  ;;  %v481_v23 = vld [vmem:[%s9965_s12 + $0x590] sm:$0xff]  ;;  %v522_v15 = vld [vmem:[%s9965_s12 + $0x6d8] sm:$0xff] }
 0x2b3   : > { %v8478_v37 = vcombine.low %v481_v23, %v485_v25 }
 0x2b5   : > { %7250 = vmatpush1.bf16.msra.mxu0 %v8422_v29  ;;  %7578 = vmatpush1.bf16.msra.mxu1 %v8424_v31  ;;  %v8472_v29 = vcombine.low %v474_v16, %v478_v2  ;;  %v8479_v31 = vcombine.high %v481_v23, %v485_v25  ;;  %v526_v16 = vld [vmem:[%s9965_s12 + $0x6f8] sm:$0xff]  ;;  %v533_v23 = vld [vmem:[%s9965_s12 + $0x730] sm:$0xff] }
 0x2b6   : > { %7260 = vmatprep.subr.bf16.mxu0 %v8431_v32  ;;  %7588 = vmatprep.subr.bf16.mxu1 %v8433_v0  ;;  %v8481_v32 = vcombine.high %v482_v26, %v486_v27  ;;  %v489_v0 = vld [vmem:[%s9965_s12 + $0x5d0] sm:$0xff]  ;;  %v530_v25 = vld [vmem:[%s9965_s12 + $0x718] sm:$0xff] }
 0x2b7   : > { %v8486_v48 = vcombine.low %v489_v0, %v493_v34 }
 0x2b8   : > { %7252 = vmatmul.mubr.bf16.vlgmr.msra.gmra.mrb[4].mxu0 %v10084_v24  ;;  %7580 = vmatmul.mubr.bf16.vlgmr.msra.gmra.mrb[4].mxu1 %v10084_v24  ;;  %v8446_v24 = vcombine.low %v449_v44, %v453_v46  ;;  %v501_v44 = vld [vmem:[%s9965_s12 + $0x630] sm:$0xff]  ;;  %v498_v46 = vld [vmem:[%s9965_s12 + $0x618] sm:$0xff] }
 0x2b9   : > { %7261 = vmatpush1.bf16.msra.mxu0 %v8430_v40  ;;  %7589 = vmatpush1.bf16.msra.mxu1 %v8432_v41  ;;  %v8480_v40 = vcombine.low %v482_v26, %v486_v27  ;;  %v8487_v41 = vcombine.high %v489_v0, %v493_v34  ;;  %v534_v26 = vld [vmem:[%s9965_s12 + $0x738] sm:$0xff]  ;;  %v541_v0 = vld [vmem:[%s9965_s12 + $0x770] sm:$0xff] }
 0x2ba   : > { %7262 = vmatprep.subr.bf16.mxu0 %v8439_v42  ;;  %7590 = vmatprep.subr.bf16.mxu1 %v8441_v43  ;;  %v8489_v42 = vcombine.high %v490_v35, %v494_v36  ;;  %v497_v43 = vld [vmem:[%s9965_s12 + $0x610] sm:$0xff]  ;;  %v538_v34 = vld [vmem:[%s9965_s12 + $0x758] sm:$0xff] }
 0x2bb   : > { %7292 = vmatprep.mubr.bf16.mxu0 %v10092_v33  ;;  %7620 = vmatprep.mubr.bf16.mxu1 %v10092_v33  ;;  %v8456_v33 = vcombine.low %v458_v61, %v462_v62  ;;  %v510_v61 = vld [vmem:[%s9965_s12 + $0x678] sm:$0xff]  ;;  %v8494_v62 = vcombine.low %v497_v43, %v501_v44 }
 0x2bd   : > { %7263 = vmatpush1.bf16.msra.mxu0 %v8438_v50  ;;  %7591 = vmatpush1.bf16.msra.mxu1 %v8440_v51  ;;  %v8488_v50 = vcombine.low %v490_v35, %v494_v36  ;;  %v8495_v51 = vcombine.high %v497_v43, %v501_v44  ;;  %v542_v35 = vld [vmem:[%s9965_s12 + $0x778] sm:$0xff]  ;;  %v549_v43 = vld [vmem:[%s9965_s12 + $0x7b0] sm:$0xff] }
 0x2be   : > { %7264 = vmatprep.subr.bf16.mxu0 %v8447_v53  ;;  %7592 = vmatprep.subr.bf16.mxu1 %v8449_v56  ;;  %v8497_v53 = vcombine.high %v498_v46, %v502_v47  ;;  %v505_v56 = vld [vmem:[%s9965_s12 + $0x650] sm:$0xff]  ;;  %v546_v44 = vld [vmem:[%s9965_s12 + $0x798] sm:$0xff] }
 0x2bf   : > { %v8502_v7 = vcombine.low %v505_v56, %v509_v57 }
 0x2c1   : > { %7265 = vmatpush1.bf16.msra.mxu0 %v8446_v24  ;;  %7593 = vmatpush1.bf16.msra.mxu1 %v8448_v63  ;;  %v8496_v24 = vcombine.low %v498_v46, %v502_v47  ;;  %v8503_v63 = vcombine.high %v505_v56, %v509_v57  ;;  %v550_v46 = vld [vmem:[%s9965_s12 + $0x7b8] sm:$0xff]  ;;  %v557_v56 = vld [vmem:[%s9965_s12 + $0x7f0] sm:$0xff] }
 0x2c2   : > { %7266 = vmatprep.subr.bf16.mxu0 %v8455_v9  ;;  %7594 = vmatprep.subr.bf16.mxu1 %v8457_v3  ;;  %v8505_v9 = vcombine.high %v506_v58, %v510_v61  ;;  %v513_v3 = vld [vmem:[%s9965_s12 + $0x690] sm:$0xff]  ;;  %v554_v57 = vld [vmem:[%s9965_s12 + $0x7d8] sm:$0xff] }
 0x2c3   : > { %v8510_v2 = vcombine.low %v513_v3, %v517_v4 }
 0x2c5   : > { %7267 = vmatpush1.bf16.msra.mxu0 %v8454_v11  ;;  %7595 = vmatpush1.bf16.msra.mxu1 %v8456_v33  ;;  %v8504_v11 = vcombine.low %v506_v58, %v510_v61  ;;  %v8511_v33 = vcombine.high %v513_v3, %v517_v4  ;;  %v558_v58 = vld [vmem:[%s9965_s12 + $0x7f8] sm:$0xff]  ;;  %v565_v3 = vld [vmem:[%s9965_s12 + $0x830] sm:$0xff] }
 0x2c6   : > { %7268 = vmatprep.subr.bf16.mxu0 %v8463_v12  ;;  %7596 = vmatprep.subr.bf16.mxu1 %v8465_v13  ;;  %v8513_v12 = vcombine.high %v514_v5, %v518_v30  ;;  %v521_v13 = vld [vmem:[%s9965_s12 + $0x6d0] sm:$0xff]  ;;  %v562_v4 = vld [vmem:[%s9965_s12 + $0x818] sm:$0xff] }
 0x2c7   : > { %v8518_v27 = vcombine.low %v521_v13, %v525_v14 }
 0x2c9   : > { %7269 = vmatpush1.bf16.msra.mxu0 %v8462_v18  ;;  %7597 = vmatpush1.bf16.msra.mxu1 %v8464_v17  ;;  %v8512_v18 = vcombine.low %v514_v5, %v518_v30  ;;  %v8519_v17 = vcombine.high %v521_v13, %v525_v14  ;;  %v566_v5 = vld [vmem:[%s9965_s12 + $0x838] sm:$0xff]  ;;  %v573_v13 = vld [vmem:[%s9965_s12 + $0x870] sm:$0xff] }
 0x2ca   : > { %7270 = vmatprep.subr.bf16.mxu0 %v8471_v21  ;;  %7598 = vmatprep.subr.bf16.mxu1 %v8473_v22  ;;  %v8521_v21 = vcombine.high %v522_v15, %v526_v16  ;;  %v529_v22 = vld [vmem:[%s9965_s12 + $0x710] sm:$0xff]  ;;  %v570_v14 = vld [vmem:[%s9965_s12 + $0x858] sm:$0xff] }
 0x2cb   : > { %v8526_v36 = vcombine.low %v529_v22, %v533_v23 }
 0x2cd   : > { %7271 = vmatpush1.bf16.msra.mxu0 %v8470_v10  ;;  %7599 = vmatpush1.bf16.msra.mxu1 %v8472_v29  ;;  %v8520_v10 = vcombine.low %v522_v15, %v526_v16  ;;  %v8527_v29 = vcombine.high %v529_v22, %v533_v23  ;;  %v574_v15 = vld [vmem:[%s9965_s12 + $0x878] sm:$0xff]  ;;  %v581_v22 = vld [vmem:[%s9965_s12 + $0x8b0] sm:$0xff] }
 0x2ce   : > { %7272 = vmatprep.subr.bf16.mxu0 %v8479_v31  ;;  %7600 = vmatprep.subr.bf16.mxu1 %v8481_v32  ;;  %v8529_v31 = vcombine.high %v530_v25, %v534_v26  ;;  %v537_v32 = vld [vmem:[%s9965_s12 + $0x750] sm:$0xff]  ;;  %v578_v23 = vld [vmem:[%s9965_s12 + $0x898] sm:$0xff] }
 0x2cf   : > { %v8534_v47 = vcombine.low %v537_v32, %v541_v0 }
 0x2d1   : > { %7273 = vmatpush1.bf16.msra.mxu0 %v8478_v37  ;;  %7601 = vmatpush1.bf16.msra.mxu1 %v8480_v40  ;;  %v8528_v37 = vcombine.low %v530_v25, %v534_v26  ;;  %v8535_v40 = vcombine.high %v537_v32, %v541_v0  ;;  %v582_v25 = vld [vmem:[%s9965_s12 + $0x8b8] sm:$0xff]  ;;  %v589_v32 = vld [vmem:[%s9965_s12 + $0x8f0] sm:$0xff] }
 0x2d2   : > { %7274 = vmatprep.subr.bf16.mxu0 %v8487_v41  ;;  %7602 = vmatprep.subr.bf16.mxu1 %v8489_v42  ;;  %v8537_v41 = vcombine.high %v538_v34, %v542_v35  ;;  %v545_v42 = vld [vmem:[%s9965_s12 + $0x790] sm:$0xff]  ;;  %v586_v0 = vld [vmem:[%s9965_s12 + $0x8d8] sm:$0xff] }
 0x2d3   : > { %v8542_v61 = vcombine.low %v545_v42, %v549_v43 }
 0x2d5   : > { %7275 = vmatpush1.bf16.msra.mxu0 %v8486_v48  ;;  %7603 = vmatpush1.bf16.msra.mxu1 %v8488_v50  ;;  %v8536_v48 = vcombine.low %v538_v34, %v542_v35  ;;  %v8543_v50 = vcombine.high %v545_v42, %v549_v43  ;;  %v590_v34 = vld [vmem:[%s9965_s12 + $0x8f8] sm:$0xff]  ;;  %v8576_v35 = vcombine.low %v578_v23, %v582_v25 }
 0x2d6   : > { %7276 = vmatprep.subr.bf16.mxu0 %v8495_v51  ;;  %7604 = vmatprep.subr.bf16.mxu1 %v8497_v53  ;;  %v8545_v51 = vcombine.high %v546_v44, %v550_v46  ;;  %v553_v53 = vld [vmem:[%s9965_s12 + $0x7d0] sm:$0xff]  ;;  %v594_v42 = vld [vmem:[%s9965_s12 + $0x918] sm:$0xff] }
 0x2d7   : > { %v8550_v30 = vcombine.low %v553_v53, %v557_v56  ;;  %v598_v43 = vld [vmem:[%s9965_s12 + $0x938] sm:$0xff] }
 0x2d9   : > { %7277 = vmatpush1.bf16.msra.mxu0 %v8494_v62  ;;  %7605 = vmatpush1.bf16.msra.mxu1 %v8496_v24  ;;  %v8544_v62 = vcombine.low %v546_v44, %v550_v46  ;;  %v8551_v24 = vcombine.high %v553_v53, %v557_v56  ;;  %v606_v53 = vld [vmem:[%s9965_s12 + $0x978] sm:$0xff] }
 0x2da   : > { %7278 = vmatprep.subr.bf16.mxu0 %v8503_v63  ;;  %7606 = vmatprep.subr.bf16.mxu1 %v8505_v9  ;;  %v8553_v63 = vcombine.high %v554_v57, %v558_v58  ;;  %v561_v9 = vld [vmem:[%s9965_s12 + $0x810] sm:$0xff] }
 0x2db   : > { %v8558_v16 = vcombine.low %v561_v9, %v565_v3 }
 0x2dd   : > { %7279 = vmatpush1.bf16.msra.mxu0 %v8502_v7  ;;  %7607 = vmatpush1.bf16.msra.mxu1 %v8504_v11  ;;  %v8552_v7 = vcombine.low %v554_v57, %v558_v58  ;;  %v8559_v11 = vcombine.high %v561_v9, %v565_v3  ;;  %v8592_v57 = vcombine.low %v594_v42, %v598_v43  ;;  %v614_v9 = vld [vmem:[%s9965_s12 + $0x9b8] sm:$0xff] }
 0x2de   : > { %7280 = vmatprep.subr.bf16.mxu0 %v8511_v33  ;;  %7608 = vmatprep.subr.bf16.mxu1 %v8513_v12  ;;  %v8561_v33 = vcombine.high %v562_v4, %v566_v5  ;;  %v569_v12 = vld [vmem:[%s9965_s12 + $0x850] sm:$0xff] }
 0x2df   : > { %v8566_v26 = vcombine.low %v569_v12, %v573_v13 }
 0x2e1   : > { %7281 = vmatpush1.bf16.msra.mxu0 %v8510_v2  ;;  %7609 = vmatpush1.bf16.msra.mxu1 %v8512_v18  ;;  %v8560_v2 = vcombine.low %v562_v4, %v566_v5  ;;  %v8567_v18 = vcombine.high %v569_v12, %v573_v13  ;;  %v622_v12 = vld [vmem:[%s9965_s12 + $0x9f8] sm:$0xff] }
 0x2e2   : > { %7282 = vmatprep.subr.bf16.mxu0 %v8519_v17  ;;  %7610 = vmatprep.subr.bf16.mxu1 %v8521_v21  ;;  %v8569_v17 = vcombine.high %v570_v14, %v574_v15  ;;  %v577_v21 = vld [vmem:[%s9965_s12 + $0x890] sm:$0xff] }
 0x2e5   : > { %7283 = vmatpush1.bf16.msra.mxu0 %v8518_v27  ;;  %7611 = vmatpush1.bf16.msra.mxu1 %v8520_v10  ;;  %v8568_v27 = vcombine.low %v570_v14, %v574_v15  ;;  %v8575_v10 = vcombine.high %v577_v21, %v581_v22 }
 0x2e6   : > { %7284 = vmatprep.subr.bf16.mxu0 %v8527_v29  ;;  %7612 = vmatprep.subr.bf16.mxu1 %v8529_v31  ;;  %v8577_v29 = vcombine.high %v578_v23, %v582_v25  ;;  %v585_v31 = vld [vmem:[%s9965_s12 + $0x8d0] sm:$0xff] }
 0x2e7   : > { %v8582_v44 = vcombine.low %v585_v31, %v589_v32 }
 0x2e9   : > { %7285 = vmatpush1.bf16.msra.mxu0 %v8526_v36  ;;  %7613 = vmatpush1.bf16.msra.mxu1 %v8528_v37  ;;  %v8583_v36 = vcombine.high %v585_v31, %v589_v32  ;;  %v8585_v37 = vcombine.high %v586_v0, %v590_v34  ;;  %v638_v31 = vld [vmem:[%s9965_s12 + $0xa78] sm:$0xff] }
 0x2ea   : > { %7286 = vmatprep.subr.bf16.mxu0 %v8535_v40  ;;  %7614 = vmatprep.subr.bf16.mxu1 %v8537_v41  ;;  %v593_v40 = vld [vmem:[%s9965_s12 + $0x910] sm:$0xff] }
 0x2eb   : > { %v597_v41 = vld [vmem:[%s9965_s12 + $0x930] sm:$0xff] }
 0x2ec   : > { %v8591_v46 = vcombine.high %v593_v40, %v597_v41  ;;  %v8590_v56 = vcombine.low %v593_v40, %v597_v41  ;;  %v646_v40 = vld [vmem:[%s9965_s12 + $0xab8] sm:$0xff] }
 0x2ed   : > { %7287 = vmatpush1.bf16.msra.mxu0 %v8534_v47  ;;  %7615 = vmatpush1.bf16.msra.mxu1 %v8536_v48  ;;  %v8593_v47 = vcombine.high %v594_v42, %v598_v43  ;;  %v601_v48 = vld [vmem:[%s9965_s12 + $0x950] sm:$0xff] }
 0x2ee   : > { %7288 = vmatprep.subr.bf16.mxu0 %v8543_v50  ;;  %7616 = vmatprep.subr.bf16.mxu1 %v8545_v51  ;;  %v605_v50 = vld [vmem:[%s9965_s12 + $0x970] sm:$0xff]  ;;  %v602_v51 = vld [vmem:[%s9965_s12 + $0x958] sm:$0xff] }
 0x2ef   : > { %v8599_v58 = vcombine.high %v601_v48, %v605_v50  ;;  %v8598_v3 = vcombine.low %v601_v48, %v605_v50  ;;  %v8600_v4 = vcombine.low %v602_v51, %v606_v53  ;;  %v654_v48 = vld [vmem:[%s9965_s12 + $0xaf8] sm:$0xff] }
 0x2f1   : > { %7289 = vmatpush1.bf16.msra.mxu0 %v8542_v61  ;;  %7617 = vmatpush1.bf16.msra.mxu1 %v8544_v62  ;;  %v8601_v61 = vcombine.high %v602_v51, %v606_v53  ;;  %v609_v62 = vld [vmem:[%s9965_s12 + $0x990] sm:$0xff] }
 0x2f2   : > { %7290 = vmatprep.subr.bf16.mxu0 %v8551_v24  ;;  %7618 = vmatprep.subr.bf16.mxu1 %v8553_v63  ;;  %v613_v24 = vld [vmem:[%s9965_s12 + $0x9b0] sm:$0xff]  ;;  %v610_v63 = vld [vmem:[%s9965_s12 + $0x998] sm:$0xff] }
 0x2f3   : > { %v8607_v5 = vcombine.high %v609_v62, %v613_v24  ;;  %v8606_v13 = vcombine.low %v609_v62, %v613_v24  ;;  %v8608_v14 = vcombine.low %v610_v63, %v614_v9  ;;  %v662_v62 = vld [vmem:[%s9965_s12 + $0xb38] sm:$0xff] }
 0x2f5   : > { %7291 = vmatpush1.bf16.msra.mxu0 %v8550_v30  ;;  %7619 = vmatpush1.bf16.msra.mxu1 %v8552_v7  ;;  %v8609_v30 = vcombine.high %v610_v63, %v614_v9  ;;  %v617_v7 = vld [vmem:[%s9965_s12 + $0x9d0] sm:$0xff] }
 0x2f6   : > { %7301 = vmatprep.subr.bf16.mxu0 %v8559_v11  ;;  %7629 = vmatprep.subr.bf16.mxu1 %v8561_v33  ;;  %v621_v11 = vld [vmem:[%s9965_s12 + $0x9f0] sm:$0xff]  ;;  %v618_v33 = vld [vmem:[%s9965_s12 + $0x9d8] sm:$0xff] }
 0x2f7   : > { %v8615_v15 = vcombine.high %v617_v7, %v621_v11  ;;  %v8616_v23 = vcombine.low %v618_v33, %v622_v12 }
 0x2f8   : > { %7293 = vmatmul.mubr.bf16.vlgmr.msra.gmra.mrb[4].mxu0 %v10167_v39  ;;  %7621 = vmatmul.mubr.bf16.vlgmr.msra.gmra.mrb[4].mxu1 %v10167_v39  ;;  %v8574_v39 = vcombine.low %v577_v21, %v581_v22  ;;  %v630_v21 = vld [vmem:[%s9965_s12 + $0xa38] sm:$0xff]  ;;  %v8614_v22 = vcombine.low %v617_v7, %v621_v11 }
 0x2f9   : > { %7302 = vmatpush1.bf16.msra.mxu0 %v8558_v16  ;;  %7630 = vmatpush1.bf16.msra.mxu1 %v8560_v2  ;;  %v8617_v16 = vcombine.high %v618_v33, %v622_v12  ;;  %v625_v2 = vld [vmem:[%s9965_s12 + $0xa10] sm:$0xff]  ;;  %v670_v7 = vld [vmem:[%s9965_s12 + $0xb78] sm:$0xff] }
 0x2fa   : > { %7303 = vmatprep.subr.bf16.mxu0 %v8567_v18  ;;  %7631 = vmatprep.subr.bf16.mxu1 %v8569_v17  ;;  %v629_v18 = vld [vmem:[%s9965_s12 + $0xa30] sm:$0xff]  ;;  %v626_v17 = vld [vmem:[%s9965_s12 + $0xa18] sm:$0xff] }
 0x2fb   : > { %7333 = vmatprep.mubr.bf16.mxu0 %v10174_v49  ;;  %7661 = vmatprep.mubr.bf16.mxu1 %v10174_v49  ;;  %v8584_v49 = vcombine.low %v586_v0, %v590_v34  ;;  %v8623_v25 = vcombine.high %v625_v2, %v629_v18  ;;  %v8622_v32 = vcombine.low %v625_v2, %v629_v18  ;;  %v678_v2 = vld [vmem:[%s9965_s12 + $0xbb8] sm:$0xff] }
 0x2fc   : > { %v8624_v0 = vcombine.low %v626_v17, %v630_v21 }
 0x2fd   : > { %7304 = vmatpush1.bf16.msra.mxu0 %v8566_v26  ;;  %7632 = vmatpush1.bf16.msra.mxu1 %v8568_v27  ;;  %v8625_v26 = vcombine.high %v626_v17, %v630_v21  ;;  %v633_v27 = vld [vmem:[%s9965_s12 + $0xa50] sm:$0xff] }
 0x2fe   : > { %7305 = vmatprep.subr.bf16.mxu0 %v8575_v10  ;;  %7633 = vmatprep.subr.bf16.mxu1 %v8577_v29  ;;  %v637_v10 = vld [vmem:[%s9965_s12 + $0xa70] sm:$0xff]  ;;  %v634_v29 = vld [vmem:[%s9965_s12 + $0xa58] sm:$0xff] }
 0x2ff   : > { %v8631_v34 = vcombine.high %v633_v27, %v637_v10  ;;  %v8630_v41 = vcombine.low %v633_v27, %v637_v10  ;;  %v8632_v42 = vcombine.low %v634_v29, %v638_v31  ;;  %v686_v27 = vld [vmem:[%s9965_s12 + $0xbf8] sm:$0xff] }
 0x301   : > { %7306 = vmatpush1.bf16.msra.mxu0 %v8574_v39  ;;  %7634 = vmatpush1.bf16.msra.mxu1 %v8576_v35  ;;  %v8633_v39 = vcombine.high %v634_v29, %v638_v31  ;;  %v641_v35 = vld [vmem:[%s9965_s12 + $0xa90] sm:$0xff] }
 0x302   : > { %7307 = vmatprep.subr.bf16.mxu0 %v8583_v36  ;;  %7635 = vmatprep.subr.bf16.mxu1 %v8585_v37  ;;  %v645_v36 = vld [vmem:[%s9965_s12 + $0xab0] sm:$0xff]  ;;  %v642_v37 = vld [vmem:[%s9965_s12 + $0xa98] sm:$0xff] }
 0x303   : > { %v8639_v43 = vcombine.high %v641_v35, %v645_v36  ;;  %v8638_v50 = vcombine.low %v641_v35, %v645_v36  ;;  %v8640_v51 = vcombine.low %v642_v37, %v646_v40  ;;  %v694_v35 = vld [vmem:[%s9965_s12 + $0xc38] sm:$0xff] }
 0x305   : > { %7308 = vmatpush1.bf16.msra.mxu0 %v8582_v44  ;;  %7636 = vmatpush1.bf16.msra.mxu1 %v8584_v49  ;;  %v8641_v44 = vcombine.high %v642_v37, %v646_v40  ;;  %v649_v49 = vld [vmem:[%s9965_s12 + $0xad0] sm:$0xff] }
 0x306   : > { %7309 = vmatprep.subr.bf16.mxu0 %v8591_v46  ;;  %7637 = vmatprep.subr.bf16.mxu1 %v8593_v47  ;;  %v653_v46 = vld [vmem:[%s9965_s12 + $0xaf0] sm:$0xff]  ;;  %v650_v47 = vld [vmem:[%s9965_s12 + $0xad8] sm:$0xff] }
 0x307   : > { %v8647_v53 = vcombine.high %v649_v49, %v653_v46  ;;  %v8646_v24 = vcombine.low %v649_v49, %v653_v46  ;;  %v8648_v63 = vcombine.low %v650_v47, %v654_v48  ;;  %v702_v49 = vld [vmem:[%s9965_s12 + $0xc78] sm:$0xff] }
 0x309   : > { %7310 = vmatpush1.bf16.msra.mxu0 %v8590_v56  ;;  %7638 = vmatpush1.bf16.msra.mxu1 %v8592_v57  ;;  %v8649_v56 = vcombine.high %v650_v47, %v654_v48  ;;  %v657_v57 = vld [vmem:[%s9965_s12 + $0xb10] sm:$0xff] }
 0x30a   : > { %7311 = vmatprep.subr.bf16.mxu0 %v8599_v58  ;;  %7639 = vmatprep.subr.bf16.mxu1 %v8601_v61  ;;  %v661_v58 = vld [vmem:[%s9965_s12 + $0xb30] sm:$0xff]  ;;  %v658_v61 = vld [vmem:[%s9965_s12 + $0xb18] sm:$0xff] }
 0x30b   : > { %v8655_v9 = vcombine.high %v657_v57, %v661_v58  ;;  %v8654_v11 = vcombine.low %v657_v57, %v661_v58  ;;  %v8656_v33 = vcombine.low %v658_v61, %v662_v62  ;;  %v710_v57 = vld [vmem:[%s9965_s12 + $0xcb8] sm:$0xff] }
 0x30d   : > { %7312 = vmatpush1.bf16.msra.mxu0 %v8598_v3  ;;  %7640 = vmatpush1.bf16.msra.mxu1 %v8600_v4  ;;  %v8657_v3 = vcombine.high %v658_v61, %v662_v62  ;;  %v665_v4 = vld [vmem:[%s9965_s12 + $0xb50] sm:$0xff] }
 0x30e   : > { %7313 = vmatprep.subr.bf16.mxu0 %v8607_v5  ;;  %7641 = vmatprep.subr.bf16.mxu1 %v8609_v30  ;;  %v669_v5 = vld [vmem:[%s9965_s12 + $0xb70] sm:$0xff]  ;;  %v666_v30 = vld [vmem:[%s9965_s12 + $0xb58] sm:$0xff] }
 0x30f   : > { %v8663_v12 = vcombine.high %v665_v4, %v669_v5  ;;  %v8662_v18 = vcombine.low %v665_v4, %v669_v5  ;;  %v8664_v17 = vcombine.low %v666_v30, %v670_v7  ;;  %v718_v4 = vld [vmem:[%s9965_s12 + $0xcf8] sm:$0xff] }
 0x311   : > { %7314 = vmatpush1.bf16.msra.mxu0 %v8606_v13  ;;  %7642 = vmatpush1.bf16.msra.mxu1 %v8608_v14  ;;  %v8665_v13 = vcombine.high %v666_v30, %v670_v7  ;;  %v673_v14 = vld [vmem:[%s9965_s12 + $0xb90] sm:$0xff] }
 0x312   : > { %7315 = vmatprep.subr.bf16.mxu0 %v8615_v15  ;;  %7643 = vmatprep.subr.bf16.mxu1 %v8617_v16  ;;  %v677_v15 = vld [vmem:[%s9965_s12 + $0xbb0] sm:$0xff]  ;;  %v674_v16 = vld [vmem:[%s9965_s12 + $0xb98] sm:$0xff] }
 0x313   : > { %v8671_v21 = vcombine.high %v673_v14, %v677_v15  ;;  %v8670_v10 = vcombine.low %v673_v14, %v677_v15  ;;  %v8672_v29 = vcombine.low %v674_v16, %v678_v2 }
 0x315   : > { %7316 = vmatpush1.bf16.msra.mxu0 %v8614_v22  ;;  %7644 = vmatpush1.bf16.msra.mxu1 %v8616_v23  ;;  %v8673_v22 = vcombine.high %v674_v16, %v678_v2  ;;  %v681_v23 = vld [vmem:[%s9965_s12 + $0xbd0] sm:$0xff] }
 0x316   : > { %7317 = vmatprep.subr.bf16.mxu0 %v8623_v25  ;;  %7645 = vmatprep.subr.bf16.mxu1 %v8625_v26  ;;  %v685_v25 = vld [vmem:[%s9965_s12 + $0xbf0] sm:$0xff]  ;;  %v682_v26 = vld [vmem:[%s9965_s12 + $0xbd8] sm:$0xff] }
 0x317   : > { %v8679_v31 = vcombine.high %v681_v23, %v685_v25  ;;  %v8678_v36 = vcombine.low %v681_v23, %v685_v25  ;;  %v8680_v37 = vcombine.low %v682_v26, %v686_v27  ;;  %v729_v2 = vld [vmem:[%s9965_s12 + $0xd50] sm:$0xff] }
 0x319   : > { %7318 = vmatpush1.bf16.msra.mxu0 %v8622_v32  ;;  %7646 = vmatpush1.bf16.msra.mxu1 %v8624_v0  ;;  %v8681_v32 = vcombine.high %v682_v26, %v686_v27  ;;  %v689_v0 = vld [vmem:[%s9965_s12 + $0xc10] sm:$0xff] }
 0x31a   : > { %7319 = vmatprep.subr.bf16.mxu0 %v8631_v34  ;;  %7647 = vmatprep.subr.bf16.mxu1 %v8633_v39  ;;  %v693_v34 = vld [vmem:[%s9965_s12 + $0xc30] sm:$0xff]  ;;  %v690_v39 = vld [vmem:[%s9965_s12 + $0xc18] sm:$0xff] }
 0x31b   : > { %v8687_v40 = vcombine.high %v689_v0, %v693_v34  ;;  %v8686_v46 = vcombine.low %v689_v0, %v693_v34  ;;  %v8688_v47 = vcombine.low %v690_v39, %v694_v35  ;;  %v737_v27 = vld [vmem:[%s9965_s12 + $0xd90] sm:$0xff] }
 0x31d   : > { %7320 = vmatpush1.bf16.msra.mxu0 %v8630_v41  ;;  %7648 = vmatpush1.bf16.msra.mxu1 %v8632_v42  ;;  %v8689_v41 = vcombine.high %v690_v39, %v694_v35  ;;  %v697_v42 = vld [vmem:[%s9965_s12 + $0xc50] sm:$0xff] }
 0x31e   : > { %7321 = vmatprep.subr.bf16.mxu0 %v8639_v43  ;;  %7649 = vmatprep.subr.bf16.mxu1 %v8641_v44  ;;  %v701_v43 = vld [vmem:[%s9965_s12 + $0xc70] sm:$0xff]  ;;  %v698_v44 = vld [vmem:[%s9965_s12 + $0xc58] sm:$0xff] }
 0x31f   : > { %v8695_v48 = vcombine.high %v697_v42, %v701_v43  ;;  %v8694_v58 = vcombine.low %v697_v42, %v701_v43  ;;  %v8696_v61 = vcombine.low %v698_v44, %v702_v49  ;;  %v746_v42 = vld [vmem:[%s9965_s12 + $0xdd8] sm:$0xff] }
 0x320   : > { %v750_v43 = vld [vmem:[%s9965_s12 + $0xdf8] sm:$0xff] }
 0x321   : > { %7322 = vmatpush1.bf16.msra.mxu0 %v8638_v50  ;;  %7650 = vmatpush1.bf16.msra.mxu1 %v8640_v51  ;;  %v8697_v50 = vcombine.high %v698_v44, %v702_v49  ;;  %v705_v51 = vld [vmem:[%s9965_s12 + $0xc90] sm:$0xff] }
 0x322   : > { %7323 = vmatprep.subr.bf16.mxu0 %v8647_v53  ;;  %7651 = vmatprep.subr.bf16.mxu1 %v8649_v56  ;;  %v709_v53 = vld [vmem:[%s9965_s12 + $0xcb0] sm:$0xff]  ;;  %v706_v56 = vld [vmem:[%s9965_s12 + $0xc98] sm:$0xff] }
 0x323   : > { %v8703_v62 = vcombine.high %v705_v51, %v709_v53  ;;  %v8704_v5 = vcombine.low %v706_v56, %v710_v57 }
 0x325   : > { %7324 = vmatpush1.bf16.msra.mxu0 %v8646_v24  ;;  %7652 = vmatpush1.bf16.msra.mxu1 %v8648_v63  ;;  %v8705_v24 = vcombine.high %v706_v56, %v710_v57  ;;  %v713_v63 = vld [vmem:[%s9965_s12 + $0xcd0] sm:$0xff]  ;;  %v8745_v56 = vcombine.high %v746_v42, %v750_v43 }
 0x326   : > { %7325 = vmatprep.subr.bf16.mxu0 %v8655_v9  ;;  %7653 = vmatprep.subr.bf16.mxu1 %v8657_v3  ;;  %v717_v9 = vld [vmem:[%s9965_s12 + $0xcf0] sm:$0xff]  ;;  %v714_v3 = vld [vmem:[%s9965_s12 + $0xcd8] sm:$0xff] }
 0x327   : > { %v8711_v30 = vcombine.high %v713_v63, %v717_v9  ;;  %v8713_v7 = vcombine.high %v714_v3, %v718_v4  ;;  %v8710_v14 = vcombine.low %v713_v63, %v717_v9  ;;  %v753_v57 = vld [vmem:[%s9965_s12 + $0xe10] sm:$0xff]  ;;  %v8744_v63 = vcombine.low %v746_v42, %v750_v43 }
 0x328   : > { %v793_v43 = vld [vmem:[%s9965_s12 + $0xf50] sm:$0xff] }
 0x329   : > { %7326 = vmatpush1.bf16.msra.mxu0 %v8654_v11  ;;  %7654 = vmatpush1.bf16.msra.mxu1 %v8656_v33  ;;  %v721_v11 = vld [vmem:[%s9965_s12 + $0xd10] sm:$0xff] }
 0x32a   : > { %7327 = vmatprep.subr.bf16.mxu0 %v8663_v12  ;;  %7655 = vmatprep.subr.bf16.mxu1 %v8665_v13  ;;  %v725_v33 = vld [vmem:[%s9965_s12 + $0xd30] sm:$0xff]  ;;  %v722_v12 = vld [vmem:[%s9965_s12 + $0xd18] sm:$0xff] }
 0x32b   : > { %v726_v13 = vld [vmem:[%s9965_s12 + $0xd38] sm:$0xff]  ;;  %v8719_v15 = vcombine.high %v721_v11, %v725_v33 }
 0x32c   : > { %v8721_v16 = vcombine.high %v722_v12, %v726_v13  ;;  %v8720_v23 = vcombine.low %v722_v12, %v726_v13  ;;  %v769_v13 = vld [vmem:[%s9965_s12 + $0xe90] sm:$0xff] }
 0x32d   : > { %7328 = vmatpush1.bf16.msra.mxu0 %v8662_v18  ;;  %7656 = vmatpush1.bf16.msra.mxu1 %v8664_v17  ;;  %v733_v18 = vld [vmem:[%s9965_s12 + $0xd70] sm:$0xff]  ;;  %v730_v17 = vld [vmem:[%s9965_s12 + $0xd58] sm:$0xff] }
 0x32e   : > { %7329 = vmatprep.subr.bf16.mxu0 %v8671_v21  ;;  %7657 = vmatprep.subr.bf16.mxu1 %v8673_v22  ;;  %v734_v21 = vld [vmem:[%s9965_s12 + $0xd78] sm:$0xff]  ;;  %v8718_v22 = vcombine.low %v721_v11, %v725_v33  ;;  %v8727_v25 = vcombine.high %v729_v2, %v733_v18 }
 0x32f   : > { %v8729_v26 = vcombine.high %v730_v17, %v734_v21  ;;  %v8728_v0 = vcombine.low %v730_v17, %v734_v21  ;;  %v777_v21 = vld [vmem:[%s9965_s12 + $0xed0] sm:$0xff] }
 0x331   : > { %7330 = vmatpush1.bf16.msra.mxu0 %v8670_v10  ;;  %7658 = vmatpush1.bf16.msra.mxu1 %v8672_v29  ;;  %v741_v10 = vld [vmem:[%s9965_s12 + $0xdb0] sm:$0xff]  ;;  %v738_v29 = vld [vmem:[%s9965_s12 + $0xd98] sm:$0xff] }
 0x332   : > { %7331 = vmatprep.subr.bf16.mxu0 %v8679_v31  ;;  %7659 = vmatprep.subr.bf16.mxu1 %v8681_v32  ;;  %v742_v31 = vld [vmem:[%s9965_s12 + $0xdb8] sm:$0xff]  ;;  %v8726_v32 = vcombine.low %v729_v2, %v733_v18  ;;  %v8735_v34 = vcombine.high %v737_v27, %v741_v10 }
 0x333   : > { %v8737_v35 = vcombine.high %v738_v29, %v742_v31 }
 0x335   : > { %7332 = vmatpush1.bf16.msra.mxu0 %v8678_v36  ;;  %7660 = vmatpush1.bf16.msra.mxu1 %v8680_v37  ;;  %v745_v36 = vld [vmem:[%s9965_s12 + $0xdd0] sm:$0xff] }
 0x336   : > { %7342 = vmatprep.subr.bf16.mxu0 %v8687_v40  ;;  %7670 = vmatprep.subr.bf16.mxu1 %v8689_v41  ;;  %v749_v37 = vld [vmem:[%s9965_s12 + $0xdf0] sm:$0xff] }
 0x338   : > { %7334 = vmatmul.mubr.bf16.vlgmr.msra.gmra.mrb[4].mxu0 %v10242_v59  ;;  %7662 = vmatmul.mubr.bf16.vlgmr.msra.gmra.mrb[4].mxu1 %v10242_v59  ;;  %v8702_v59 = vcombine.low %v705_v51, %v709_v53  ;;  %v8743_v51 = vcombine.high %v745_v36, %v749_v37 }
 0x339   : > { %7343 = vmatpush1.bf16.msra.mxu0 %v8686_v46  ;;  %7671 = vmatpush1.bf16.msra.mxu1 %v8688_v47  ;;  %v8734_v46 = vcombine.low %v737_v27, %v741_v10 }
 0x33a   : > { %7344 = vmatprep.subr.bf16.mxu0 %v8695_v48  ;;  %7672 = vmatprep.subr.bf16.mxu1 %v8697_v50  ;;  %v8736_v50 = vcombine.low %v738_v29, %v742_v31  ;;  %v785_v31 = vld [vmem:[%s9965_s12 + $0xf10] sm:$0xff] }
 0x33b   : > { %7374 = vmatprep.mubr.bf16.mxu0 %v10250_v6  ;;  %7702 = vmatprep.mubr.bf16.mxu1 %v10250_v6  ;;  %v8712_v6 = vcombine.low %v714_v3, %v718_v4  ;;  %v761_v4 = vld [vmem:[%s9965_s12 + $0xe50] sm:$0xff] }
 0x33d   : > { %7345 = vmatpush1.bf16.msra.mxu0 %v8694_v58  ;;  %7673 = vmatpush1.bf16.msra.mxu1 %v8696_v61  ;;  %v757_v58 = vld [vmem:[%s9965_s12 + $0xe30] sm:$0xff]  ;;  %v754_v61 = vld [vmem:[%s9965_s12 + $0xe18] sm:$0xff] }
 0x33e   : > { %7346 = vmatprep.subr.bf16.mxu0 %v8703_v62  ;;  %7674 = vmatprep.subr.bf16.mxu1 %v8705_v24  ;;  %v758_v62 = vld [vmem:[%s9965_s12 + $0xe38] sm:$0xff]  ;;  %v8742_v24 = vcombine.low %v745_v36, %v749_v37  ;;  %v8751_v9 = vcombine.high %v753_v57, %v757_v58 }
 0x33f   : > { %v8753_v3 = vcombine.high %v754_v61, %v758_v62  ;;  %v8752_v11 = vcombine.low %v754_v61, %v758_v62  ;;  %v806_v61 = vld [vmem:[%s9965_s12 + $0xfb8] sm:$0xff] }
 0x341   : > { %7347 = vmatpush1.bf16.msra.mxu0 %v8702_v59  ;;  %7675 = vmatpush1.bf16.msra.mxu1 %v8704_v5  ;;  %v765_v59 = vld [vmem:[%s9965_s12 + $0xe70] sm:$0xff]  ;;  %v762_v5 = vld [vmem:[%s9965_s12 + $0xe58] sm:$0xff] }
 0x342   : > { %7348 = vmatprep.subr.bf16.mxu0 %v8711_v30  ;;  %7676 = vmatprep.subr.bf16.mxu1 %v8713_v7  ;;  %v766_v30 = vld [vmem:[%s9965_s12 + $0xe78] sm:$0xff]  ;;  %v8750_v7 = vcombine.low %v753_v57, %v757_v58  ;;  %v8759_v33 = vcombine.high %v761_v4, %v765_v59  ;;  %v805_v57 = vld [vmem:[%s9965_s12 + $0xfb0] sm:$0xff] }
 0x343   : > { %v8761_v12 = vcombine.high %v762_v5, %v766_v30  ;;  %v8760_v2 = vcombine.low %v762_v5, %v766_v30  ;;  %v802_v58 = vld [vmem:[%s9965_s12 + $0xf98] sm:$0xff] }
 0x344   : > { %v814_v5 = vld [vmem:[%s9965_s12 + $0xff8] sm:$0xff] }
 0x345   : > { %7349 = vmatpush1.bf16.msra.mxu0 %v8710_v14  ;;  %7677 = vmatpush1.bf16.msra.mxu1 %v8712_v6  ;;  %v773_v14 = vld [vmem:[%s9965_s12 + $0xeb0] sm:$0xff]  ;;  %v770_v6 = vld [vmem:[%s9965_s12 + $0xe98] sm:$0xff] }
 0x346   : > { %7350 = vmatprep.subr.bf16.mxu0 %v8719_v15  ;;  %7678 = vmatprep.subr.bf16.mxu1 %v8721_v16  ;;  %v774_v15 = vld [vmem:[%s9965_s12 + $0xeb8] sm:$0xff]  ;;  %v8758_v16 = vcombine.low %v761_v4, %v765_v59  ;;  %v8767_v18 = vcombine.high %v769_v13, %v773_v14  ;;  %v813_v4 = vld [vmem:[%s9965_s12 + $0xff0] sm:$0xff] }
 0x347   : > { %v8769_v17 = vcombine.high %v770_v6, %v774_v15  ;;  %v8768_v27 = vcombine.low %v770_v6, %v774_v15  ;;  %v810_v59 = vld [vmem:[%s9965_s12 + $0xfd8] sm:$0xff] }
 0x348   : > { %v822_v6 = vld [vmem:[%s9965_s12 + $0x1038] sm:$0xff] }
 0x349   : > { %7351 = vmatpush1.bf16.msra.mxu0 %v8718_v22  ;;  %7679 = vmatpush1.bf16.msra.mxu1 %v8720_v23  ;;  %v781_v22 = vld [vmem:[%s9965_s12 + $0xef0] sm:$0xff]  ;;  %v778_v23 = vld [vmem:[%s9965_s12 + $0xed8] sm:$0xff] }
 0x34a   : > { %7352 = vmatprep.subr.bf16.mxu0 %v8727_v25  ;;  %7680 = vmatprep.subr.bf16.mxu1 %v8729_v26  ;;  %v782_v25 = vld [vmem:[%s9965_s12 + $0xef8] sm:$0xff]  ;;  %v8766_v26 = vcombine.low %v769_v13, %v773_v14  ;;  %v8775_v10 = vcombine.high %v777_v21, %v781_v22  ;;  %v821_v13 = vld [vmem:[%s9965_s12 + $0x1030] sm:$0xff] }
 0x34b   : > { %v10868_v39 = vpop.f32.mrb[0].mxu0  ;;  %v10872_v40 = vpop.f32.mrb[0].mxu1  ;;  %v8777_v29 = vcombine.high %v778_v23, %v782_v25  ;;  %v8776_v36 = vcombine.low %v778_v23, %v782_v25  ;;  %v818_v14 = vld [vmem:[%s9965_s12 + $0x1018] sm:$0xff] }
 0x34c   : > { %v10874_v41 = vpop.f32.mrb[1].mxu0  ;;  %v10878_v44 = vpop.f32.mrb[1].mxu1  ;;  %v830_v23 = vld [vmem:[%s9965_s12 + $0x1078] sm:$0xff] }
 0x34d   : > { %v6888_v49 = vpop.f32.mrb[2].mxu0  ;;  %7353 = vmatpush1.bf16.msra.mxu0 %v8726_v32  ;;  %v7216_v47 = vpop.f32.mrb[2].mxu1  ;;  %7681 = vmatpush1.bf16.msra.mxu1 %v8728_v0  ;;  %v789_v32 = vld [vmem:[%s9965_s12 + $0xf30] sm:$0xff]  ;;  %v786_v0 = vld [vmem:[%s9965_s12 + $0xf18] sm:$0xff] }
 0x34e   : > { %v6889_v48 = vpop.f32.mrb[3].mxu0  ;;  %7354 = vmatprep.subr.bf16.mxu0 %v8735_v34  ;;  %v7217_v53 = vpop.f32.mrb[3].mxu1  ;;  %7682 = vmatprep.subr.bf16.mxu1 %v8737_v35  ;;  %v790_v34 = vld [vmem:[%s9965_s12 + $0xf38] sm:$0xff]  ;;  %v8774_v35 = vcombine.low %v777_v21, %v781_v22  ;;  %v8783_v37 = vcombine.high %v785_v31, %v789_v32  ;;  %v797_v49 = vld [vmem:[%s9965_s12 + $0xf70] sm:$0xff] }
 0x34f   : > { %v8785_v42 = vcombine.high %v786_v0, %v790_v34  ;;  %v798_v47 = vld [vmem:[%s9965_s12 + $0xf78] sm:$0xff]  ;;  %v8782_v48 = vcombine.low %v785_v31, %v789_v32  ;;  %v8790_v62 = vcombine.low %v793_v43, %v797_v49  ;;  %v829_v21 = vld [vmem:[%s9965_s12 + $0x1070] sm:$0xff] }
 0x350   : > { %v826_v22 = vld [vmem:[%s9965_s12 + $0x1058] sm:$0xff]  ;;  %v837_v31 = vld [vmem:[%s9965_s12 + $0x10b0] sm:$0xff] }
 0x351   : > { %7355 = vmatpush1.bf16.msra.mxu0 %v8734_v46  ;;  %7683 = vmatpush1.bf16.msra.mxu1 %v8736_v50  ;;  %v794_v46 = vld [vmem:[%s9965_s12 + $0xf58] sm:$0xff]  ;;  %v8784_v50 = vcombine.low %v786_v0, %v790_v34 }
 0x352   : > { %7356 = vmatprep.subr.bf16.mxu0 %v8743_v51  ;;  %7684 = vmatprep.subr.bf16.mxu1 %v8745_v56  ;;  %v8791_v51 = vcombine.high %v793_v43, %v797_v49  ;;  %v8793_v53 = vcombine.high %v794_v46, %v798_v47  ;;  %v801_v56 = vld [vmem:[%s9965_s12 + $0xf90] sm:$0xff]  ;;  %v834_v32 = vld [vmem:[%s9965_s12 + $0x1098] sm:$0xff] }
 0x353   : > { %v8798_v30 = vcombine.low %v801_v56, %v805_v57  ;;  %v838_v0 = vld [vmem:[%s9965_s12 + $0x10b8] sm:$0xff]  ;;  %v845_v43 = vld [vmem:[%s9965_s12 + $0x10f0] sm:$0xff] }
 0x354   : > { %v842_v49 = vld [vmem:[%s9965_s12 + $0x10d8] sm:$0xff] }
 0x355   : > { %7357 = vmatpush1.bf16.msra.mxu0 %v8742_v24  ;;  %7685 = vmatpush1.bf16.msra.mxu1 %v8744_v63  ;;  %v8792_v24 = vcombine.low %v794_v46, %v798_v47  ;;  %v8799_v63 = vcombine.high %v801_v56, %v805_v57  ;;  %v846_v46 = vld [vmem:[%s9965_s12 + $0x10f8] sm:$0xff]  ;;  %v8832_v47 = vcombine.low %v834_v32, %v838_v0 }
 0x356   : > { %7358 = vmatprep.subr.bf16.mxu0 %v8751_v9  ;;  %7686 = vmatprep.subr.bf16.mxu1 %v8753_v3  ;;  %v8801_v9 = vcombine.high %v802_v58, %v806_v61  ;;  %v809_v3 = vld [vmem:[%s9965_s12 + $0xfd0] sm:$0xff]  ;;  %v850_v56 = vld [vmem:[%s9965_s12 + $0x1118] sm:$0xff] }
 0x357   : > { %v8806_v15 = vcombine.low %v809_v3, %v813_v4  ;;  %v854_v57 = vld [vmem:[%s9965_s12 + $0x1138] sm:$0xff] }
 0x359   : > { %7359 = vmatpush1.bf16.msra.mxu0 %v8750_v7  ;;  %7687 = vmatpush1.bf16.msra.mxu1 %v8752_v11  ;;  %v8800_v7 = vcombine.low %v802_v58, %v806_v61  ;;  %v8807_v11 = vcombine.high %v809_v3, %v813_v4  ;;  %v862_v3 = vld [vmem:[%s9965_s12 + $0x1178] sm:$0xff] }
 0x35a   : > { %7360 = vmatprep.subr.bf16.mxu0 %v8759_v33  ;;  %7688 = vmatprep.subr.bf16.mxu1 %v8761_v12  ;;  %v8809_v33 = vcombine.high %v810_v59, %v814_v5  ;;  %v817_v12 = vld [vmem:[%s9965_s12 + $0x1010] sm:$0xff] }
 0x35b   : > { %v8814_v25 = vcombine.low %v817_v12, %v821_v13 }
 0x35d   : > { %7361 = vmatpush1.bf16.msra.mxu0 %v8758_v16  ;;  %7689 = vmatpush1.bf16.msra.mxu1 %v8760_v2  ;;  %v8808_v16 = vcombine.low %v810_v59, %v814_v5  ;;  %v8815_v2 = vcombine.high %v817_v12, %v821_v13  ;;  %v8848_v59 = vcombine.low %v850_v56, %v854_v57  ;;  %v870_v12 = vld [vmem:[%s9965_s12 + $0x11b8] sm:$0xff] }
 0x35e   : > { %7362 = vmatprep.subr.bf16.mxu0 %v8767_v18  ;;  %7690 = vmatprep.subr.bf16.mxu1 %v8769_v17  ;;  %v8817_v18 = vcombine.high %v818_v14, %v822_v6  ;;  %v825_v17 = vld [vmem:[%s9965_s12 + $0x1050] sm:$0xff] }
 0x35f   : > { %v8822_v34 = vcombine.low %v825_v17, %v829_v21 }
 0x361   : > { %7363 = vmatpush1.bf16.msra.mxu0 %v8766_v26  ;;  %7691 = vmatpush1.bf16.msra.mxu1 %v8768_v27  ;;  %v8816_v26 = vcombine.low %v818_v14, %v822_v6  ;;  %v8823_v27 = vcombine.high %v825_v17, %v829_v21  ;;  %v878_v17 = vld [vmem:[%s9965_s12 + $0x11f8] sm:$0xff] }
 0x362   : > { %7364 = vmatprep.subr.bf16.mxu0 %v8775_v10  ;;  %7692 = vmatprep.subr.bf16.mxu1 %v8777_v29  ;;  %v8825_v10 = vcombine.high %v826_v22, %v830_v23  ;;  %v833_v29 = vld [vmem:[%s9965_s12 + $0x1090] sm:$0xff] }
 0x365   : > { %7365 = vmatpush1.bf16.msra.mxu0 %v8774_v35  ;;  %7693 = vmatpush1.bf16.msra.mxu1 %v8776_v36  ;;  %v8824_v35 = vcombine.low %v826_v22, %v830_v23  ;;  %v8831_v36 = vcombine.high %v833_v29, %v837_v31 }
 0x366   : > { %7366 = vmatprep.subr.bf16.mxu0 %v8783_v37  ;;  %7694 = vmatprep.subr.bf16.mxu1 %v8785_v42  ;;  %v8833_v37 = vcombine.high %v834_v32, %v838_v0  ;;  %v841_v42 = vld [vmem:[%s9965_s12 + $0x10d0] sm:$0xff] }
 0x367   : > { %v8838_v58 = vcombine.low %v841_v42, %v845_v43 }
 0x369   : > { %7367 = vmatpush1.bf16.msra.mxu0 %v8782_v48  ;;  %7695 = vmatpush1.bf16.msra.mxu1 %v8784_v50  ;;  %v8839_v48 = vcombine.high %v841_v42, %v845_v43  ;;  %v8841_v50 = vcombine.high %v842_v49, %v846_v46  ;;  %v894_v42 = vld [vmem:[%s9965_s12 + $0x1278] sm:$0xff] }
 0x36a   : > { %7368 = vmatprep.subr.bf16.mxu0 %v8791_v51  ;;  %7696 = vmatprep.subr.bf16.mxu1 %v8793_v53  ;;  %v849_v51 = vld [vmem:[%s9965_s12 + $0x1110] sm:$0xff] }
 0x36b   : > { %v853_v53 = vld [vmem:[%s9965_s12 + $0x1130] sm:$0xff] }
 0x36c   : > { %v8847_v61 = vcombine.high %v849_v51, %v853_v53  ;;  %v8846_v4 = vcombine.low %v849_v51, %v853_v53  ;;  %v902_v51 = vld [vmem:[%s9965_s12 + $0x12b8] sm:$0xff] }
 0x36d   : > { %7369 = vmatpush1.bf16.msra.mxu0 %v8790_v62  ;;  %7697 = vmatpush1.bf16.msra.mxu1 %v8792_v24  ;;  %v8849_v62 = vcombine.high %v850_v56, %v854_v57  ;;  %v857_v24 = vld [vmem:[%s9965_s12 + $0x1150] sm:$0xff] }
 0x36e   : > { %7370 = vmatprep.subr.bf16.mxu0 %v8799_v63  ;;  %7698 = vmatprep.subr.bf16.mxu1 %v8801_v9  ;;  %v861_v63 = vld [vmem:[%s9965_s12 + $0x1170] sm:$0xff]  ;;  %v858_v9 = vld [vmem:[%s9965_s12 + $0x1158] sm:$0xff] }
 0x36f   : > { %v8855_v5 = vcombine.high %v857_v24, %v861_v63  ;;  %v8854_v13 = vcombine.low %v857_v24, %v861_v63  ;;  %v8856_v14 = vcombine.low %v858_v9, %v862_v3  ;;  %v910_v24 = vld [vmem:[%s9965_s12 + $0x12f8] sm:$0xff] }
 0x371   : > { %7371 = vmatpush1.bf16.msra.mxu0 %v8798_v30  ;;  %7699 = vmatpush1.bf16.msra.mxu1 %v8800_v7  ;;  %v8857_v30 = vcombine.high %v858_v9, %v862_v3  ;;  %v865_v7 = vld [vmem:[%s9965_s12 + $0x1190] sm:$0xff] }
 0x372   : > { %7372 = vmatprep.subr.bf16.mxu0 %v8807_v11  ;;  %7700 = vmatprep.subr.bf16.mxu1 %v8809_v33  ;;  %v869_v11 = vld [vmem:[%s9965_s12 + $0x11b0] sm:$0xff]  ;;  %v866_v33 = vld [vmem:[%s9965_s12 + $0x1198] sm:$0xff] }
 0x373   : > { %v8863_v6 = vcombine.high %v865_v7, %v869_v11  ;;  %v8862_v21 = vcombine.low %v865_v7, %v869_v11  ;;  %v8864_v22 = vcombine.low %v866_v33, %v870_v12  ;;  %v918_v7 = vld [vmem:[%s9965_s12 + $0x1338] sm:$0xff] }
 0x375   : > { %7373 = vmatpush1.bf16.msra.mxu0 %v8806_v15  ;;  %7701 = vmatpush1.bf16.msra.mxu1 %v8808_v16  ;;  %v8865_v15 = vcombine.high %v866_v33, %v870_v12  ;;  %v873_v16 = vld [vmem:[%s9965_s12 + $0x11d0] sm:$0xff] }
 0x376   : > { %7383 = vmatprep.subr.bf16.mxu0 %v8815_v2  ;;  %7711 = vmatprep.subr.bf16.mxu1 %v8817_v18  ;;  %v877_v2 = vld [vmem:[%s9965_s12 + $0x11f0] sm:$0xff]  ;;  %v874_v18 = vld [vmem:[%s9965_s12 + $0x11d8] sm:$0xff] }
 0x377   : > { %v8871_v23 = vcombine.high %v873_v16, %v877_v2  ;;  %v8872_v32 = vcombine.low %v874_v18, %v878_v17 }
 0x378   : > { %7375 = vmatmul.mubr.bf16.vlgmr.msra.gmra.mrb[4].mxu0 %v10327_v20  ;;  %7703 = vmatmul.mubr.bf16.vlgmr.msra.gmra.mrb[4].mxu1 %v10327_v20  ;;  %v8830_v20 = vcombine.low %v833_v29, %v837_v31  ;;  %v886_v29 = vld [vmem:[%s9965_s12 + $0x1238] sm:$0xff]  ;;  %v8870_v31 = vcombine.low %v873_v16, %v877_v2 }
 0x379   : > { %7384 = vmatpush1.bf16.msra.mxu0 %v8814_v25  ;;  %7712 = vmatpush1.bf16.msra.mxu1 %v8816_v26  ;;  %v8873_v25 = vcombine.high %v874_v18, %v878_v17  ;;  %v881_v26 = vld [vmem:[%s9965_s12 + $0x1210] sm:$0xff]  ;;  %v926_v16 = vld [vmem:[%s9965_s12 + $0x1378] sm:$0xff] }
 0x37a   : > { %7385 = vmatprep.subr.bf16.mxu0 %v8823_v27  ;;  %7713 = vmatprep.subr.bf16.mxu1 %v8825_v10  ;;  %v885_v27 = vld [vmem:[%s9965_s12 + $0x1230] sm:$0xff]  ;;  %v882_v10 = vld [vmem:[%s9965_s12 + $0x1218] sm:$0xff] }
 0x37b   : > { %7415 = vmatprep.mubr.bf16.mxu0 %v10334_v60  ;;  %7743 = vmatprep.mubr.bf16.mxu1 %v10334_v60  ;;  %v8840_v60 = vcombine.low %v842_v49, %v846_v46  ;;  %v8879_v0 = vcombine.high %v881_v26, %v885_v27  ;;  %v8878_v43 = vcombine.low %v881_v26, %v885_v27  ;;  %v934_v26 = vld [vmem:[%s9965_s12 + $0x13b8] sm:$0xff] }
 0x37c   : > { %v8880_v49 = vcombine.low %v882_v10, %v886_v29 }
 0x37d   : > { %7386 = vmatpush1.bf16.msra.mxu0 %v8822_v34  ;;  %7714 = vmatpush1.bf16.msra.mxu1 %v8824_v35  ;;  %v8881_v34 = vcombine.high %v882_v10, %v886_v29  ;;  %v889_v35 = vld [vmem:[%s9965_s12 + $0x1250] sm:$0xff] }
 0x37e   : > { %7387 = vmatprep.subr.bf16.mxu0 %v8831_v36  ;;  %7715 = vmatprep.subr.bf16.mxu1 %v8833_v37  ;;  %v893_v36 = vld [vmem:[%s9965_s12 + $0x1270] sm:$0xff]  ;;  %v890_v37 = vld [vmem:[%s9965_s12 + $0x1258] sm:$0xff] }
 0x37f   : > { %v8887_v46 = vcombine.high %v889_v35, %v893_v36  ;;  %v8886_v53 = vcombine.low %v889_v35, %v893_v36  ;;  %v8888_v56 = vcombine.low %v890_v37, %v894_v42  ;;  %v942_v35 = vld [vmem:[%s9965_s12 + $0x13f8] sm:$0xff] }
 0x381   : > { %7388 = vmatpush1.bf16.msra.mxu0 %v8830_v20  ;;  %7716 = vmatpush1.bf16.msra.mxu1 %v8832_v47  ;;  %v8889_v20 = vcombine.high %v890_v37, %v894_v42  ;;  %v897_v47 = vld [vmem:[%s9965_s12 + $0x1290] sm:$0xff] }
 0x382   : > { %7389 = vmatprep.subr.bf16.mxu0 %v8839_v48  ;;  %7717 = vmatprep.subr.bf16.mxu1 %v8841_v50  ;;  %v901_v48 = vld [vmem:[%s9965_s12 + $0x12b0] sm:$0xff]  ;;  %v898_v50 = vld [vmem:[%s9965_s12 + $0x1298] sm:$0xff] }
 0x383   : > { %v8895_v57 = vcombine.high %v897_v47, %v901_v48  ;;  %v8894_v63 = vcombine.low %v897_v47, %v901_v48  ;;  %v8896_v9 = vcombine.low %v898_v50, %v902_v51  ;;  %v950_v47 = vld [vmem:[%s9965_s12 + $0x1438] sm:$0xff] }
 0x385   : > { %7390 = vmatpush1.bf16.msra.mxu0 %v8838_v58  ;;  %7718 = vmatpush1.bf16.msra.mxu1 %v8840_v60  ;;  %v8897_v58 = vcombine.high %v898_v50, %v902_v51  ;;  %v905_v60 = vld [vmem:[%s9965_s12 + $0x12d0] sm:$0xff] }
 0x386   : > { %7391 = vmatprep.subr.bf16.mxu0 %v8847_v61  ;;  %7719 = vmatprep.subr.bf16.mxu1 %v8849_v62  ;;  %v909_v61 = vld [vmem:[%s9965_s12 + $0x12f0] sm:$0xff]  ;;  %v906_v62 = vld [vmem:[%s9965_s12 + $0x12d8] sm:$0xff] }
 0x387   : > { %v8903_v3 = vcombine.high %v905_v60, %v909_v61  ;;  %v8902_v11 = vcombine.low %v905_v60, %v909_v61  ;;  %v8904_v33 = vcombine.low %v906_v62, %v910_v24  ;;  %v958_v60 = vld [vmem:[%s9965_s12 + $0x1478] sm:$0xff] }
 0x389   : > { %7392 = vmatpush1.bf16.msra.mxu0 %v8846_v4  ;;  %7720 = vmatpush1.bf16.msra.mxu1 %v8848_v59  ;;  %v8905_v4 = vcombine.high %v906_v62, %v910_v24  ;;  %v913_v59 = vld [vmem:[%s9965_s12 + $0x1310] sm:$0xff] }
 0x38a   : > { %7393 = vmatprep.subr.bf16.mxu0 %v8855_v5  ;;  %7721 = vmatprep.subr.bf16.mxu1 %v8857_v30  ;;  %v917_v5 = vld [vmem:[%s9965_s12 + $0x1330] sm:$0xff]  ;;  %v914_v30 = vld [vmem:[%s9965_s12 + $0x1318] sm:$0xff] }
 0x38b   : > { %v8911_v12 = vcombine.high %v913_v59, %v917_v5  ;;  %v8910_v2 = vcombine.low %v913_v59, %v917_v5  ;;  %v8912_v18 = vcombine.low %v914_v30, %v918_v7  ;;  %v966_v59 = vld [vmem:[%s9965_s12 + $0x14b8] sm:$0xff] }
 0x38d   : > { %7394 = vmatpush1.bf16.msra.mxu0 %v8854_v13  ;;  %7722 = vmatpush1.bf16.msra.mxu1 %v8856_v14  ;;  %v8913_v13 = vcombine.high %v914_v30, %v918_v7  ;;  %v921_v14 = vld [vmem:[%s9965_s12 + $0x1350] sm:$0xff] }
 0x38e   : > { %7395 = vmatprep.subr.bf16.mxu0 %v8863_v6  ;;  %7723 = vmatprep.subr.bf16.mxu1 %v8865_v15  ;;  %v925_v6 = vld [vmem:[%s9965_s12 + $0x1370] sm:$0xff]  ;;  %v922_v15 = vld [vmem:[%s9965_s12 + $0x1358] sm:$0xff] }
 0x38f   : > { %v8919_v17 = vcombine.high %v921_v14, %v925_v6  ;;  %v8918_v27 = vcombine.low %v921_v14, %v925_v6  ;;  %v8920_v10 = vcombine.low %v922_v15, %v926_v16  ;;  %v974_v14 = vld [vmem:[%s9965_s12 + $0x14f8] sm:$0xff] }
 0x391   : > { %7396 = vmatpush1.bf16.msra.mxu0 %v8862_v21  ;;  %7724 = vmatpush1.bf16.msra.mxu1 %v8864_v22  ;;  %v8921_v21 = vcombine.high %v922_v15, %v926_v16  ;;  %v929_v22 = vld [vmem:[%s9965_s12 + $0x1390] sm:$0xff] }
 0x392   : > { %7397 = vmatprep.subr.bf16.mxu0 %v8871_v23  ;;  %7725 = vmatprep.subr.bf16.mxu1 %v8873_v25  ;;  %v933_v23 = vld [vmem:[%s9965_s12 + $0x13b0] sm:$0xff]  ;;  %v930_v25 = vld [vmem:[%s9965_s12 + $0x1398] sm:$0xff] }
 0x393   : > { %v8927_v29 = vcombine.high %v929_v22, %v933_v23  ;;  %v8926_v36 = vcombine.low %v929_v22, %v933_v23  ;;  %v8928_v37 = vcombine.low %v930_v25, %v934_v26 }
 0x395   : > { %7398 = vmatpush1.bf16.msra.mxu0 %v8870_v31  ;;  %7726 = vmatpush1.bf16.msra.mxu1 %v8872_v32  ;;  %v8929_v31 = vcombine.high %v930_v25, %v934_v26  ;;  %v937_v32 = vld [vmem:[%s9965_s12 + $0x13d0] sm:$0xff] }
 0x396   : > { %7399 = vmatprep.subr.bf16.mxu0 %v8879_v0  ;;  %7727 = vmatprep.subr.bf16.mxu1 %v8881_v34  ;;  %v941_v0 = vld [vmem:[%s9965_s12 + $0x13f0] sm:$0xff]  ;;  %v938_v34 = vld [vmem:[%s9965_s12 + $0x13d8] sm:$0xff] }
 0x397   : > { %v8935_v42 = vcombine.high %v937_v32, %v941_v0  ;;  %v8934_v48 = vcombine.low %v937_v32, %v941_v0  ;;  %v8936_v50 = vcombine.low %v938_v34, %v942_v35  ;;  %v985_v26 = vld [vmem:[%s9965_s12 + $0x1550] sm:$0xff] }
 0x399   : > { %7400 = vmatpush1.bf16.msra.mxu0 %v8878_v43  ;;  %7728 = vmatpush1.bf16.msra.mxu1 %v8880_v49  ;;  %v8937_v43 = vcombine.high %v938_v34, %v942_v35  ;;  %v945_v49 = vld [vmem:[%s9965_s12 + $0x1410] sm:$0xff] }
 0x39a   : > { %7401 = vmatprep.subr.bf16.mxu0 %v8887_v46  ;;  %7729 = vmatprep.subr.bf16.mxu1 %v8889_v20  ;;  %v949_v46 = vld [vmem:[%s9965_s12 + $0x1430] sm:$0xff]  ;;  %v946_v20 = vld [vmem:[%s9965_s12 + $0x1418] sm:$0xff] }
 0x39b   : > { %v8943_v51 = vcombine.high %v945_v49, %v949_v46  ;;  %v8942_v61 = vcombine.low %v945_v49, %v949_v46  ;;  %v8944_v62 = vcombine.low %v946_v20, %v950_v47  ;;  %v993_v35 = vld [vmem:[%s9965_s12 + $0x1590] sm:$0xff] }
 0x39d   : > { %7402 = vmatpush1.bf16.msra.mxu0 %v8886_v53  ;;  %7730 = vmatpush1.bf16.msra.mxu1 %v8888_v56  ;;  %v8945_v53 = vcombine.high %v946_v20, %v950_v47  ;;  %v953_v56 = vld [vmem:[%s9965_s12 + $0x1450] sm:$0xff] }
 0x39e   : > { %7403 = vmatprep.subr.bf16.mxu0 %v8895_v57  ;;  %7731 = vmatprep.subr.bf16.mxu1 %v8897_v58  ;;  %v957_v57 = vld [vmem:[%s9965_s12 + $0x1470] sm:$0xff]  ;;  %v954_v58 = vld [vmem:[%s9965_s12 + $0x1458] sm:$0xff] }
 0x39f   : > { %v8951_v24 = vcombine.high %v953_v56, %v957_v57  ;;  %v8950_v5 = vcombine.low %v953_v56, %v957_v57  ;;  %v8952_v30 = vcombine.low %v954_v58, %v958_v60  ;;  %v1001_v47 = vld [vmem:[%s9965_s12 + $0x15d0] sm:$0xff] }
 0x3a1   : > { %7404 = vmatpush1.bf16.msra.mxu0 %v8894_v63  ;;  %7732 = vmatpush1.bf16.msra.mxu1 %v8896_v9  ;;  %v8953_v63 = vcombine.high %v954_v58, %v958_v60  ;;  %v961_v9 = vld [vmem:[%s9965_s12 + $0x1490] sm:$0xff] }
 0x3a2   : > { %7405 = vmatprep.subr.bf16.mxu0 %v8903_v3  ;;  %7733 = vmatprep.subr.bf16.mxu1 %v8905_v4  ;;  %v965_v3 = vld [vmem:[%s9965_s12 + $0x14b0] sm:$0xff]  ;;  %v962_v4 = vld [vmem:[%s9965_s12 + $0x1498] sm:$0xff] }
 0x3a3   : > { %v8959_v7 = vcombine.high %v961_v9, %v965_v3  ;;  %v8960_v6 = vcombine.low %v962_v4, %v966_v59  ;;  %v1009_v60 = vld [vmem:[%s9965_s12 + $0x1610] sm:$0xff] }
 0x3a5   : > { %7406 = vmatpush1.bf16.msra.mxu0 %v8902_v11  ;;  %7734 = vmatpush1.bf16.msra.mxu1 %v8904_v33  ;;  %v8961_v11 = vcombine.high %v962_v4, %v966_v59  ;;  %v969_v33 = vld [vmem:[%s9965_s12 + $0x14d0] sm:$0xff] }
 0x3a6   : > { %7407 = vmatprep.subr.bf16.mxu0 %v8911_v12  ;;  %7735 = vmatprep.subr.bf16.mxu1 %v8913_v13  ;;  %v973_v12 = vld [vmem:[%s9965_s12 + $0x14f0] sm:$0xff]  ;;  %v970_v13 = vld [vmem:[%s9965_s12 + $0x14d8] sm:$0xff] }
 0x3a7   : > { %v8967_v15 = vcombine.high %v969_v33, %v973_v12  ;;  %v8969_v16 = vcombine.high %v970_v13, %v974_v14  ;;  %v8966_v22 = vcombine.low %v969_v33, %v973_v12  ;;  %v1017_v59 = vld [vmem:[%s9965_s12 + $0x1650] sm:$0xff] }
 0x3a9   : > { %7408 = vmatpush1.bf16.msra.mxu0 %v8910_v2  ;;  %7736 = vmatpush1.bf16.msra.mxu1 %v8912_v18  ;;  %v977_v2 = vld [vmem:[%s9965_s12 + $0x1510] sm:$0xff] }
 0x3aa   : > { %7409 = vmatprep.subr.bf16.mxu0 %v8919_v17  ;;  %7737 = vmatprep.subr.bf16.mxu1 %v8921_v21  ;;  %v981_v18 = vld [vmem:[%s9965_s12 + $0x1530] sm:$0xff]  ;;  %v978_v17 = vld [vmem:[%s9965_s12 + $0x1518] sm:$0xff] }
 0x3ab   : > { %v982_v21 = vld [vmem:[%s9965_s12 + $0x1538] sm:$0xff]  ;;  %v8975_v23 = vcombine.high %v977_v2, %v981_v18 }
 0x3ac   : > { %v8977_v25 = vcombine.high %v978_v17, %v982_v21  ;;  %v8976_v32 = vcombine.low %v978_v17, %v982_v21  ;;  %v1033_v21 = vld [vmem:[%s9965_s12 + $0x16d0] sm:$0xff] }
 0x3ad   : > { %7410 = vmatpush1.bf16.msra.mxu0 %v8918_v27  ;;  %7738 = vmatpush1.bf16.msra.mxu1 %v8920_v10  ;;  %v989_v27 = vld [vmem:[%s9965_s12 + $0x1570] sm:$0xff]  ;;  %v986_v10 = vld [vmem:[%s9965_s12 + $0x1558] sm:$0xff] }
 0x3ae   : > { %7411 = vmatprep.subr.bf16.mxu0 %v8927_v29  ;;  %7739 = vmatprep.subr.bf16.mxu1 %v8929_v31  ;;  %v990_v29 = vld [vmem:[%s9965_s12 + $0x1578] sm:$0xff]  ;;  %v8974_v31 = vcombine.low %v977_v2, %v981_v18  ;;  %v8983_v0 = vcombine.high %v985_v26, %v989_v27 }
 0x3af   : > { %v8985_v34 = vcombine.high %v986_v10, %v990_v29  ;;  %v8984_v49 = vcombine.low %v986_v10, %v990_v29  ;;  %v1041_v29 = vld [vmem:[%s9965_s12 + $0x1710] sm:$0xff] }
 0x3b1   : > { %7412 = vmatpush1.bf16.msra.mxu0 %v8926_v36  ;;  %7740 = vmatpush1.bf16.msra.mxu1 %v8928_v37  ;;  %v997_v36 = vld [vmem:[%s9965_s12 + $0x15b0] sm:$0xff]  ;;  %v994_v37 = vld [vmem:[%s9965_s12 + $0x1598] sm:$0xff] }
 0x3b2   : > { %7413 = vmatprep.subr.bf16.mxu0 %v8935_v42  ;;  %7741 = vmatprep.subr.bf16.mxu1 %v8937_v43  ;;  %v998_v42 = vld [vmem:[%s9965_s12 + $0x15b8] sm:$0xff]  ;;  %v8982_v43 = vcombine.low %v985_v26, %v989_v27  ;;  %v8991_v46 = vcombine.high %v993_v35, %v997_v36 }
 0x3b3   : > { %v8993_v20 = vcombine.high %v994_v37, %v998_v42  ;;  %v8992_v56 = vcombine.low %v994_v37, %v998_v42  ;;  %v1049_v42 = vld [vmem:[%s9965_s12 + $0x1750] sm:$0xff] }
 0x3b5   : > { %7414 = vmatpush1.bf16.msra.mxu0 %v8934_v48  ;;  %7742 = vmatpush1.bf16.msra.mxu1 %v8936_v50  ;;  %v1005_v48 = vld [vmem:[%s9965_s12 + $0x15f0] sm:$0xff]  ;;  %v1002_v50 = vld [vmem:[%s9965_s12 + $0x15d8] sm:$0xff] }
 0x3b6   : > { %7424 = vmatprep.subr.bf16.mxu0 %v8943_v51  ;;  %7752 = vmatprep.subr.bf16.mxu1 %v8945_v53  ;;  %v1006_v51 = vld [vmem:[%s9965_s12 + $0x15f8] sm:$0xff]  ;;  %v8990_v53 = vcombine.low %v993_v35, %v997_v36  ;;  %v8999_v57 = vcombine.high %v1001_v47, %v1005_v48 }
 0x3b7   : > { %v9001_v58 = vcombine.high %v1002_v50, %v1006_v51 }
 0x3b8   : > { %7416 = vmatmul.mubr.bf16.vlgmr.msra.gmra.mrb[4].mxu0 %v10402_v52  ;;  %7744 = vmatmul.mubr.bf16.vlgmr.msra.gmra.mrb[4].mxu1 %v10402_v52  ;;  %v8958_v52 = vcombine.low %v961_v9, %v965_v3  ;;  %v9000_v9 = vcombine.low %v1002_v50, %v1006_v51  ;;  %v1057_v51 = vld [vmem:[%s9965_s12 + $0x1790] sm:$0xff] }
 0x3b9   : > { %7425 = vmatpush1.bf16.msra.mxu0 %v8942_v61  ;;  %7753 = vmatpush1.bf16.msra.mxu1 %v8944_v62  ;;  %v1013_v61 = vld [vmem:[%s9965_s12 + $0x1630] sm:$0xff]  ;;  %v1010_v62 = vld [vmem:[%s9965_s12 + $0x1618] sm:$0xff] }
 0x3ba   : > { %7426 = vmatprep.subr.bf16.mxu0 %v8951_v24  ;;  %7754 = vmatprep.subr.bf16.mxu1 %v8953_v63  ;;  %v1014_v24 = vld [vmem:[%s9965_s12 + $0x1638] sm:$0xff]  ;;  %v8998_v63 = vcombine.low %v1001_v47, %v1005_v48  ;;  %v9007_v3 = vcombine.high %v1009_v60, %v1013_v61 }
 0x3bb   : > { %7456 = vmatprep.mubr.bf16.mxu0 %v10410_v1  ;;  %7784 = vmatprep.mubr.bf16.mxu1 %v10410_v1  ;;  %v8968_v1 = vcombine.low %v970_v13, %v974_v14  ;;  %v9009_v4 = vcombine.high %v1010_v62, %v1014_v24  ;;  %v9008_v33 = vcombine.low %v1010_v62, %v1014_v24  ;;  %v1025_v14 = vld [vmem:[%s9965_s12 + $0x1690] sm:$0xff] }
 0x3bc   : > { %v1065_v24 = vld [vmem:[%s9965_s12 + $0x17d0] sm:$0xff] }
 0x3bd   : > { %7427 = vmatpush1.bf16.msra.mxu0 %v8950_v5  ;;  %7755 = vmatpush1.bf16.msra.mxu1 %v8952_v30  ;;  %v1021_v5 = vld [vmem:[%s9965_s12 + $0x1670] sm:$0xff]  ;;  %v1018_v30 = vld [vmem:[%s9965_s12 + $0x1658] sm:$0xff] }
 0x3be   : > { %7428 = vmatprep.subr.bf16.mxu0 %v8959_v7  ;;  %7756 = vmatprep.subr.bf16.mxu1 %v8961_v11  ;;  %v1022_v7 = vld [vmem:[%s9965_s12 + $0x1678] sm:$0xff]  ;;  %v9006_v11 = vcombine.low %v1009_v60, %v1013_v61  ;;  %v9015_v12 = vcombine.high %v1017_v59, %v1021_v5 }
 0x3bf   : > { %v9017_v13 = vcombine.high %v1018_v30, %v1022_v7  ;;  %v9016_v2 = vcombine.low %v1018_v30, %v1022_v7  ;;  %v1073_v7 = vld [vmem:[%s9965_s12 + $0x1810] sm:$0xff] }
 0x3c1   : > { %7429 = vmatpush1.bf16.msra.mxu0 %v8958_v52  ;;  %7757 = vmatpush1.bf16.msra.mxu1 %v8960_v6  ;;  %v1029_v52 = vld [vmem:[%s9965_s12 + $0x16b0] sm:$0xff]  ;;  %v1026_v6 = vld [vmem:[%s9965_s12 + $0x1698] sm:$0xff] }
 0x3c2   : > { %7430 = vmatprep.subr.bf16.mxu0 %v8967_v15  ;;  %7758 = vmatprep.subr.bf16.mxu1 %v8969_v16  ;;  %v1030_v15 = vld [vmem:[%s9965_s12 + $0x16b8] sm:$0xff]  ;;  %v9014_v16 = vcombine.low %v1017_v59, %v1021_v5  ;;  %v9023_v18 = vcombine.high %v1025_v14, %v1029_v52 }
 0x3c3   : > { %v9025_v17 = vcombine.high %v1026_v6, %v1030_v15  ;;  %v9024_v26 = vcombine.low %v1026_v6, %v1030_v15  ;;  %v1081_v15 = vld [vmem:[%s9965_s12 + $0x1850] sm:$0xff] }
 0x3c5   : > { %7431 = vmatpush1.bf16.msra.mxu0 %v8966_v22  ;;  %7759 = vmatpush1.bf16.msra.mxu1 %v8968_v1  ;;  %v1037_v22 = vld [vmem:[%s9965_s12 + $0x16f0] sm:$0xff]  ;;  %v1034_v1 = vld [vmem:[%s9965_s12 + $0x16d8] sm:$0xff] }
 0x3c6   : > { %7432 = vmatprep.subr.bf16.mxu0 %v8975_v23  ;;  %7760 = vmatprep.subr.bf16.mxu1 %v8977_v25  ;;  %v1038_v23 = vld [vmem:[%s9965_s12 + $0x16f8] sm:$0xff]  ;;  %v9022_v25 = vcombine.low %v1025_v14, %v1029_v52  ;;  %v9031_v27 = vcombine.high %v1033_v21, %v1037_v22 }
 0x3c7   : > { %v9033_v10 = vcombine.high %v1034_v1, %v1038_v23  ;;  %v9032_v35 = vcombine.low %v1034_v1, %v1038_v23  ;;  %v1089_v23 = vld [vmem:[%s9965_s12 + $0x1890] sm:$0xff] }
 0x3c9   : > { %7433 = vmatpush1.bf16.msra.mxu0 %v8974_v31  ;;  %7761 = vmatpush1.bf16.msra.mxu1 %v8976_v32  ;;  %v1045_v31 = vld [vmem:[%s9965_s12 + $0x1730] sm:$0xff]  ;;  %v1042_v32 = vld [vmem:[%s9965_s12 + $0x1718] sm:$0xff] }
 0x3ca   : > { %7434 = vmatprep.subr.bf16.mxu0 %v8983_v0  ;;  %7762 = vmatprep.subr.bf16.mxu1 %v8985_v34  ;;  %v1046_v0 = vld [vmem:[%s9965_s12 + $0x1738] sm:$0xff]  ;;  %v9030_v34 = vcombine.low %v1033_v21, %v1037_v22  ;;  %v9039_v36 = vcombine.high %v1041_v29, %v1045_v31 }
 0x3cb   : > { %v9041_v37 = vcombine.high %v1042_v32, %v1046_v0  ;;  %v9040_v47 = vcombine.low %v1042_v32, %v1046_v0  ;;  %v1097_v0 = vld [vmem:[%s9965_s12 + $0x18d0] sm:$0xff] }
 0x3cd   : > { %7435 = vmatpush1.bf16.msra.mxu0 %v8982_v43  ;;  %7763 = vmatpush1.bf16.msra.mxu1 %v8984_v49  ;;  %v1053_v43 = vld [vmem:[%s9965_s12 + $0x1770] sm:$0xff]  ;;  %v1050_v49 = vld [vmem:[%s9965_s12 + $0x1758] sm:$0xff] }
 0x3ce   : > { %7436 = vmatprep.subr.bf16.mxu0 %v8991_v46  ;;  %7764 = vmatprep.subr.bf16.mxu1 %v8993_v20  ;;  %v1054_v46 = vld [vmem:[%s9965_s12 + $0x1778] sm:$0xff]  ;;  %v9038_v20 = vcombine.low %v1041_v29, %v1045_v31  ;;  %v9047_v48 = vcombine.high %v1049_v42, %v1053_v43 }
 0x3cf   : > { %v9049_v50 = vcombine.high %v1050_v49, %v1054_v46  ;;  %v9048_v60 = vcombine.low %v1050_v49, %v1054_v46  ;;  %v1105_v49 = vld [vmem:[%s9965_s12 + $0x1910] sm:$0xff] }
 0x3d0   : > { %v1109_v46 = vld [vmem:[%s9965_s12 + $0x1930] sm:$0xff] }
 0x3d1   : > { %7437 = vmatpush1.bf16.msra.mxu0 %v8990_v53  ;;  %7765 = vmatpush1.bf16.msra.mxu1 %v8992_v56  ;;  %v1061_v53 = vld [vmem:[%s9965_s12 + $0x17b0] sm:$0xff]  ;;  %v1058_v56 = vld [vmem:[%s9965_s12 + $0x1798] sm:$0xff] }
 0x3d2   : > { %7438 = vmatprep.subr.bf16.mxu0 %v8999_v57  ;;  %7766 = vmatprep.subr.bf16.mxu1 %v9001_v58  ;;  %v1062_v57 = vld [vmem:[%s9965_s12 + $0x17b8] sm:$0xff]  ;;  %v9046_v58 = vcombine.low %v1049_v42, %v1053_v43  ;;  %v9055_v61 = vcombine.high %v1057_v51, %v1061_v53 }
 0x3d3   : > { %v9057_v62 = vcombine.high %v1058_v56, %v1062_v57  ;;  %v9056_v59 = vcombine.low %v1058_v56, %v1062_v57  ;;  %v1117_v56 = vld [vmem:[%s9965_s12 + $0x1970] sm:$0xff]  ;;  %v1114_v57 = vld [vmem:[%s9965_s12 + $0x1958] sm:$0xff] }
 0x3d5   : > { %7439 = vmatpush1.bf16.msra.mxu0 %v8998_v63  ;;  %7767 = vmatpush1.bf16.msra.mxu1 %v9000_v9  ;;  %v1069_v63 = vld [vmem:[%s9965_s12 + $0x17f0] sm:$0xff]  ;;  %v1066_v9 = vld [vmem:[%s9965_s12 + $0x17d8] sm:$0xff] }
 0x3d6   : > { %7440 = vmatprep.subr.bf16.mxu0 %v9007_v3  ;;  %7768 = vmatprep.subr.bf16.mxu1 %v9009_v4  ;;  %v1070_v3 = vld [vmem:[%s9965_s12 + $0x17f8] sm:$0xff]  ;;  %v9054_v4 = vcombine.low %v1057_v51, %v1061_v53  ;;  %v9063_v5 = vcombine.high %v1065_v24, %v1069_v63  ;;  %v1113_v53 = vld [vmem:[%s9965_s12 + $0x1950] sm:$0xff] }
 0x3d7   : > { %v9065_v30 = vcombine.high %v1066_v9, %v1070_v3  ;;  %v9064_v14 = vcombine.low %v1066_v9, %v1070_v3  ;;  %v1125_v9 = vld [vmem:[%s9965_s12 + $0x19b0] sm:$0xff]  ;;  %v1122_v3 = vld [vmem:[%s9965_s12 + $0x1998] sm:$0xff] }
 0x3d9   : > { %7441 = vmatpush1.bf16.msra.mxu0 %v9006_v11  ;;  %7769 = vmatpush1.bf16.msra.mxu1 %v9008_v33  ;;  %v1077_v11 = vld [vmem:[%s9965_s12 + $0x1830] sm:$0xff]  ;;  %v1074_v33 = vld [vmem:[%s9965_s12 + $0x1818] sm:$0xff] }
 0x3da   : > { %7442 = vmatprep.subr.bf16.mxu0 %v9015_v12  ;;  %7770 = vmatprep.subr.bf16.mxu1 %v9017_v13  ;;  %v1078_v12 = vld [vmem:[%s9965_s12 + $0x1838] sm:$0xff]  ;;  %v9062_v13 = vcombine.low %v1065_v24, %v1069_v63  ;;  %v9071_v52 = vcombine.high %v1073_v7, %v1077_v11  ;;  %v1121_v63 = vld [vmem:[%s9965_s12 + $0x1990] sm:$0xff] }
 0x3db   : > { %v9073_v6 = vcombine.high %v1074_v33, %v1078_v12  ;;  %v9072_v21 = vcombine.low %v1074_v33, %v1078_v12  ;;  %v1133_v33 = vld [vmem:[%s9965_s12 + $0x19f0] sm:$0xff]  ;;  %v1130_v12 = vld [vmem:[%s9965_s12 + $0x19d8] sm:$0xff] }
 0x3dd   : > { %7443 = vmatpush1.bf16.msra.mxu0 %v9014_v16  ;;  %7771 = vmatpush1.bf16.msra.mxu1 %v9016_v2  ;;  %v1085_v16 = vld [vmem:[%s9965_s12 + $0x1870] sm:$0xff]  ;;  %v1082_v2 = vld [vmem:[%s9965_s12 + $0x1858] sm:$0xff] }
 0x3de   : > { %7444 = vmatprep.subr.bf16.mxu0 %v9023_v18  ;;  %7772 = vmatprep.subr.bf16.mxu1 %v9025_v17  ;;  %v1086_v18 = vld [vmem:[%s9965_s12 + $0x1878] sm:$0xff]  ;;  %v9070_v17 = vcombine.low %v1073_v7, %v1077_v11  ;;  %v9079_v22 = vcombine.high %v1081_v15, %v1085_v16  ;;  %v1129_v11 = vld [vmem:[%s9965_s12 + $0x19d0] sm:$0xff] }
 0x3df   : > { %v9081_v1 = vcombine.high %v1082_v2, %v1086_v18  ;;  %v9080_v29 = vcombine.low %v1082_v2, %v1086_v18  ;;  %v1141_v2 = vld [vmem:[%s9965_s12 + $0x1a30] sm:$0xff]  ;;  %v1138_v18 = vld [vmem:[%s9965_s12 + $0x1a18] sm:$0xff] }
 0x3e1   : > { %7445 = vmatpush1.bf16.msra.mxu0 %v9022_v25  ;;  %7773 = vmatpush1.bf16.msra.mxu1 %v9024_v26  ;;  %v1093_v25 = vld [vmem:[%s9965_s12 + $0x18b0] sm:$0xff]  ;;  %v1090_v26 = vld [vmem:[%s9965_s12 + $0x1898] sm:$0xff] }
 0x3e2   : > { %7446 = vmatprep.subr.bf16.mxu0 %v9031_v27  ;;  %7774 = vmatprep.subr.bf16.mxu1 %v9033_v10  ;;  %v1094_v27 = vld [vmem:[%s9965_s12 + $0x18b8] sm:$0xff]  ;;  %v9078_v10 = vcombine.low %v1081_v15, %v1085_v16  ;;  %v9087_v31 = vcombine.high %v1089_v23, %v1093_v25  ;;  %v1137_v16 = vld [vmem:[%s9965_s12 + $0x1a10] sm:$0xff] }
 0x3e3   : > { %v9089_v32 = vcombine.high %v1090_v26, %v1094_v27 }
 0x3e5   : > { %7447 = vmatpush1.bf16.msra.mxu0 %v9030_v34  ;;  %7775 = vmatpush1.bf16.msra.mxu1 %v9032_v35  ;;  %v1101_v34 = vld [vmem:[%s9965_s12 + $0x18f0] sm:$0xff]  ;;  %v1098_v35 = vld [vmem:[%s9965_s12 + $0x18d8] sm:$0xff] }
 0x3e6   : > { %7448 = vmatprep.subr.bf16.mxu0 %v9039_v36  ;;  %7776 = vmatprep.subr.bf16.mxu1 %v9041_v37  ;;  %v1102_v36 = vld [vmem:[%s9965_s12 + $0x18f8] sm:$0xff]  ;;  %v9088_v37 = vcombine.low %v1090_v26, %v1094_v27  ;;  %v9095_v42 = vcombine.high %v1097_v0, %v1101_v34  ;;  %v1149_v26 = vld [vmem:[%s9965_s12 + $0x1a70] sm:$0xff] }
 0x3e7   : > { %v9097_v43 = vcombine.high %v1098_v35, %v1102_v36  ;;  %v1146_v27 = vld [vmem:[%s9965_s12 + $0x1a58] sm:$0xff] }
 0x3e9   : > { %7449 = vmatpush1.bf16.msra.mxu0 %v9038_v20  ;;  %7777 = vmatpush1.bf16.msra.mxu1 %v9040_v47  ;;  %v1106_v20 = vld [vmem:[%s9965_s12 + $0x1918] sm:$0xff] }
 0x3ea   : > { %7450 = vmatprep.subr.bf16.mxu0 %v9047_v48  ;;  %7778 = vmatprep.subr.bf16.mxu1 %v9049_v50  ;;  %v1110_v47 = vld [vmem:[%s9965_s12 + $0x1938] sm:$0xff]  ;;  %v9094_v48 = vcombine.low %v1097_v0, %v1101_v34  ;;  %v9103_v50 = vcombine.high %v1105_v49, %v1109_v46  ;;  %v1153_v34 = vld [vmem:[%s9965_s12 + $0x1a90] sm:$0xff] }
 0x3eb   : > { %v9105_v51 = vcombine.high %v1106_v20, %v1110_v47 }
 0x3ed   : > { %7451 = vmatpush1.bf16.msra.mxu0 %v9046_v58  ;;  %7779 = vmatpush1.bf16.msra.mxu1 %v9048_v60  ;;  %v1118_v58 = vld [vmem:[%s9965_s12 + $0x1978] sm:$0xff]  ;;  %v9102_v60 = vcombine.low %v1105_v49, %v1109_v46  ;;  %v1161_v46 = vld [vmem:[%s9965_s12 + $0x1ad0] sm:$0xff] }
 0x3ee   : > { %7452 = vmatprep.subr.bf16.mxu0 %v9055_v61  ;;  %7780 = vmatprep.subr.bf16.mxu1 %v9057_v62  ;;  %v9104_v61 = vcombine.low %v1106_v20, %v1110_v47  ;;  %v9111_v62 = vcombine.high %v1113_v53, %v1117_v56  ;;  %v9113_v24 = vcombine.high %v1114_v57, %v1118_v58  ;;  %v1165_v20 = vld [vmem:[%s9965_s12 + $0x1af0] sm:$0xff]  ;;  %v1162_v47 = vld [vmem:[%s9965_s12 + $0x1ad8] sm:$0xff] }
 0x3f1   : > { %7453 = vmatpush1.bf16.msra.mxu0 %v9054_v4  ;;  %7781 = vmatpush1.bf16.msra.mxu1 %v9056_v59  ;;  %v1126_v4 = vld [vmem:[%s9965_s12 + $0x19b8] sm:$0xff]  ;;  %v9110_v59 = vcombine.low %v1113_v53, %v1117_v56  ;;  %v1169_v56 = vld [vmem:[%s9965_s12 + $0x1b10] sm:$0xff] }
 0x3f2   : > { %7454 = vmatprep.subr.bf16.mxu0 %v9063_v5  ;;  %7782 = vmatprep.subr.bf16.mxu1 %v9065_v30  ;;  %v9112_v5 = vcombine.low %v1114_v57, %v1118_v58  ;;  %v9119_v30 = vcombine.high %v1121_v63, %v1125_v9  ;;  %v9121_v7 = vcombine.high %v1122_v3, %v1126_v4  ;;  %v1173_v57 = vld [vmem:[%s9965_s12 + $0x1b30] sm:$0xff]  ;;  %v1170_v58 = vld [vmem:[%s9965_s12 + $0x1b18] sm:$0xff] }
 0x3f5   : > { %7455 = vmatpush1.bf16.msra.mxu0 %v9062_v13  ;;  %7783 = vmatpush1.bf16.msra.mxu1 %v9064_v14  ;;  %v1134_v13 = vld [vmem:[%s9965_s12 + $0x19f8] sm:$0xff]  ;;  %v9118_v14 = vcombine.low %v1121_v63, %v1125_v9  ;;  %v1177_v9 = vld [vmem:[%s9965_s12 + $0x1b50] sm:$0xff] }
 0x3f6   : > { %7465 = vmatprep.subr.bf16.mxu0 %v9071_v52  ;;  %7793 = vmatprep.subr.bf16.mxu1 %v9073_v6  ;;  %v9120_v52 = vcombine.low %v1122_v3, %v1126_v4  ;;  %v9127_v6 = vcombine.high %v1129_v11, %v1133_v33  ;;  %v9129_v15 = vcombine.high %v1130_v12, %v1134_v13  ;;  %v1181_v3 = vld [vmem:[%s9965_s12 + $0x1b70] sm:$0xff]  ;;  %v1178_v4 = vld [vmem:[%s9965_s12 + $0x1b58] sm:$0xff] }
 0x3f8   : > { %7457 = vmatmul.mubr.bf16.vlgmr.msra.gmra.mrb[4].mxu0 %v10485_v28  ;;  %7785 = vmatmul.mubr.bf16.vlgmr.msra.gmra.mrb[4].mxu1 %v10485_v28  ;;  %v9086_v28 = vcombine.low %v1089_v23, %v1093_v25  ;;  %v1145_v25 = vld [vmem:[%s9965_s12 + $0x1a50] sm:$0xff] }
 0x3f9   : > { %7466 = vmatpush1.bf16.msra.mxu0 %v9070_v17  ;;  %7794 = vmatpush1.bf16.msra.mxu1 %v9072_v21  ;;  %v1142_v17 = vld [vmem:[%s9965_s12 + $0x1a38] sm:$0xff]  ;;  %v9126_v21 = vcombine.low %v1129_v11, %v1133_v33  ;;  %v1185_v33 = vld [vmem:[%s9965_s12 + $0x1b90] sm:$0xff] }
 0x3fa   : > { %7467 = vmatprep.subr.bf16.mxu0 %v9079_v22  ;;  %7795 = vmatprep.subr.bf16.mxu1 %v9081_v1  ;;  %v9128_v22 = vcombine.low %v1130_v12, %v1134_v13  ;;  %v9135_v1 = vcombine.high %v1137_v16, %v1141_v2  ;;  %v9137_v23 = vcombine.high %v1138_v18, %v1142_v17  ;;  %v1189_v12 = vld [vmem:[%s9965_s12 + $0x1bb0] sm:$0xff]  ;;  %v1186_v13 = vld [vmem:[%s9965_s12 + $0x1b98] sm:$0xff] }
 0x3fb   : > { %7497 = vmatprep.mubr.bf16.mxu0 %v10492_v38  ;;  %7825 = vmatprep.mubr.bf16.mxu1 %v10492_v38  ;;  %v9096_v38 = vcombine.low %v1098_v35, %v1102_v36  ;;  %v1157_v35 = vld [vmem:[%s9965_s12 + $0x1ab0] sm:$0xff]  ;;  %v1154_v36 = vld [vmem:[%s9965_s12 + $0x1a98] sm:$0xff] }
 0x3fd   : > { %7468 = vmatpush1.bf16.msra.mxu0 %v9078_v10  ;;  %7796 = vmatpush1.bf16.msra.mxu1 %v9080_v29  ;;  %v1150_v10 = vld [vmem:[%s9965_s12 + $0x1a78] sm:$0xff]  ;;  %v9134_v29 = vcombine.low %v1137_v16, %v1141_v2  ;;  %v1193_v2 = vld [vmem:[%s9965_s12 + $0x1bd0] sm:$0xff] }
 0x3fe   : > { %7469 = vmatprep.subr.bf16.mxu0 %v9087_v31  ;;  %7797 = vmatprep.subr.bf16.mxu1 %v9089_v32  ;;  %v9136_v31 = vcombine.low %v1138_v18, %v1142_v17  ;;  %v9143_v32 = vcombine.high %v1145_v25, %v1149_v26  ;;  %v9145_v0 = vcombine.high %v1146_v27, %v1150_v10  ;;  %v1197_v18 = vld [vmem:[%s9965_s12 + $0x1bf0] sm:$0xff]  ;;  %v1194_v17 = vld [vmem:[%s9965_s12 + $0x1bd8] sm:$0xff] }
 0x401   : > { %7470 = vmatpush1.bf16.msra.mxu0 %v9086_v28  ;;  %7798 = vmatpush1.bf16.msra.mxu1 %v9088_v37  ;;  %v1158_v28 = vld [vmem:[%s9965_s12 + $0x1ab8] sm:$0xff]  ;;  %v9142_v37 = vcombine.low %v1145_v25, %v1149_v26  ;;  %v1201_v26 = vld [vmem:[%s9965_s12 + $0x1c10] sm:$0xff] }
 0x402   : > { %7471 = vmatprep.subr.bf16.mxu0 %v9095_v42  ;;  %7799 = vmatprep.subr.bf16.mxu1 %v9097_v43  ;;  %v9144_v42 = vcombine.low %v1146_v27, %v1150_v10  ;;  %v9151_v43 = vcombine.high %v1153_v34, %v1157_v35  ;;  %v9153_v49 = vcombine.high %v1154_v36, %v1158_v28  ;;  %v1205_v27 = vld [vmem:[%s9965_s12 + $0x1c30] sm:$0xff]  ;;  %v1202_v10 = vld [vmem:[%s9965_s12 + $0x1c18] sm:$0xff] }
 0x405   : > { %7472 = vmatpush1.bf16.msra.mxu0 %v9094_v48  ;;  %7800 = vmatpush1.bf16.msra.mxu1 %v9096_v38  ;;  %v1166_v48 = vld [vmem:[%s9965_s12 + $0x1af8] sm:$0xff]  ;;  %v9150_v38 = vcombine.low %v1153_v34, %v1157_v35  ;;  %v1209_v35 = vld [vmem:[%s9965_s12 + $0x1c50] sm:$0xff] }
 0x406   : > { %7473 = vmatprep.subr.bf16.mxu0 %v9103_v50  ;;  %7801 = vmatprep.subr.bf16.mxu1 %v9105_v51  ;;  %v9152_v50 = vcombine.low %v1154_v36, %v1158_v28  ;;  %v9159_v51 = vcombine.high %v1161_v46, %v1165_v20  ;;  %v9161_v53 = vcombine.high %v1162_v47, %v1166_v48  ;;  %v1213_v36 = vld [vmem:[%s9965_s12 + $0x1c70] sm:$0xff]  ;;  %v1210_v28 = vld [vmem:[%s9965_s12 + $0x1c58] sm:$0xff] }
 0x409   : > { %7474 = vmatpush1.bf16.msra.mxu0 %v9102_v60  ;;  %7802 = vmatpush1.bf16.msra.mxu1 %v9104_v61  ;;  %v1174_v60 = vld [vmem:[%s9965_s12 + $0x1b38] sm:$0xff]  ;;  %v9158_v61 = vcombine.low %v1161_v46, %v1165_v20  ;;  %v1217_v20 = vld [vmem:[%s9965_s12 + $0x1c90] sm:$0xff] }
 0x40a   : > { %7475 = vmatprep.subr.bf16.mxu0 %v9111_v62  ;;  %7803 = vmatprep.subr.bf16.mxu1 %v9113_v24  ;;  %v9160_v62 = vcombine.low %v1162_v47, %v1166_v48  ;;  %v9167_v24 = vcombine.high %v1169_v56, %v1173_v57  ;;  %v9169_v63 = vcombine.high %v1170_v58, %v1174_v60  ;;  %v1221_v47 = vld [vmem:[%s9965_s12 + $0x1cb0] sm:$0xff]  ;;  %v1218_v48 = vld [vmem:[%s9965_s12 + $0x1c98] sm:$0xff] }
 0x40d   : > { %7476 = vmatpush1.bf16.msra.mxu0 %v9110_v59  ;;  %7804 = vmatpush1.bf16.msra.mxu1 %v9112_v5  ;;  %v1182_v59 = vld [vmem:[%s9965_s12 + $0x1b78] sm:$0xff]  ;;  %v9166_v5 = vcombine.low %v1169_v56, %v1173_v57  ;;  %v1225_v57 = vld [vmem:[%s9965_s12 + $0x1cd0] sm:$0xff] }
 0x40e   : > { %7477 = vmatprep.subr.bf16.mxu0 %v9119_v30  ;;  %7805 = vmatprep.subr.bf16.mxu1 %v9121_v7  ;;  %v9168_v30 = vcombine.low %v1170_v58, %v1174_v60  ;;  %v9175_v7 = vcombine.high %v1177_v9, %v1181_v3  ;;  %v9177_v11 = vcombine.high %v1178_v4, %v1182_v59  ;;  %v1229_v58 = vld [vmem:[%s9965_s12 + $0x1cf0] sm:$0xff]  ;;  %v1226_v60 = vld [vmem:[%s9965_s12 + $0x1cd8] sm:$0xff] }
 0x411   : > { %7478 = vmatpush1.bf16.msra.mxu0 %v9118_v14  ;;  %7806 = vmatpush1.bf16.msra.mxu1 %v9120_v52  ;;  %v1190_v14 = vld [vmem:[%s9965_s12 + $0x1bb8] sm:$0xff]  ;;  %v9174_v52 = vcombine.low %v1177_v9, %v1181_v3  ;;  %v1233_v9 = vld [vmem:[%s9965_s12 + $0x1d10] sm:$0xff] }
 0x412   : > { %7479 = vmatprep.subr.bf16.mxu0 %v9127_v6  ;;  %7807 = vmatprep.subr.bf16.mxu1 %v9129_v15  ;;  %v9176_v6 = vcombine.low %v1178_v4, %v1182_v59  ;;  %v9183_v15 = vcombine.high %v1185_v33, %v1189_v12  ;;  %v9185_v16 = vcombine.high %v1186_v13, %v1190_v14  ;;  %v1237_v3 = vld [vmem:[%s9965_s12 + $0x1d30] sm:$0xff]  ;;  %v1234_v4 = vld [vmem:[%s9965_s12 + $0x1d18] sm:$0xff] }
 0x413   : > { %v1238_v59 = vld [vmem:[%s9965_s12 + $0x1d38] sm:$0xff] }
 0x415   : > { %7480 = vmatpush1.bf16.msra.mxu0 %v9126_v21  ;;  %7808 = vmatpush1.bf16.msra.mxu1 %v9128_v22  ;;  %v1198_v21 = vld [vmem:[%s9965_s12 + $0x1bf8] sm:$0xff]  ;;  %v9182_v22 = vcombine.low %v1185_v33, %v1189_v12  ;;  %v1245_v33 = vld [vmem:[%s9965_s12 + $0x1d70] sm:$0xff] }
 0x416   : > { %7481 = vmatprep.subr.bf16.mxu0 %v9135_v1  ;;  %7809 = vmatprep.subr.bf16.mxu1 %v9137_v23  ;;  %v9184_v1 = vcombine.low %v1186_v13, %v1190_v14  ;;  %v9191_v23 = vcombine.high %v1193_v2, %v1197_v18  ;;  %v9193_v25 = vcombine.high %v1194_v17, %v1198_v21  ;;  %v1242_v12 = vld [vmem:[%s9965_s12 + $0x1d58] sm:$0xff] }
 0x417   : > { %v1246_v13 = vld [vmem:[%s9965_s12 + $0x1d78] sm:$0xff]  ;;  %v9230_v14 = vcombine.low %v1233_v9, %v1237_v3 }
 0x419   : > { %7482 = vmatpush1.bf16.msra.mxu0 %v9134_v29  ;;  %7810 = vmatpush1.bf16.msra.mxu1 %v9136_v31  ;;  %v1206_v29 = vld [vmem:[%s9965_s12 + $0x1c38] sm:$0xff]  ;;  %v9190_v31 = vcombine.low %v1193_v2, %v1197_v18  ;;  %v1253_v2 = vld [vmem:[%s9965_s12 + $0x1db0] sm:$0xff] }
 0x41a   : > { %7483 = vmatprep.subr.bf16.mxu0 %v9143_v32  ;;  %7811 = vmatprep.subr.bf16.mxu1 %v9145_v0  ;;  %v9192_v32 = vcombine.low %v1194_v17, %v1198_v21  ;;  %v9199_v0 = vcombine.high %v1201_v26, %v1205_v27  ;;  %v9201_v34 = vcombine.high %v1202_v10, %v1206_v29  ;;  %v1250_v18 = vld [vmem:[%s9965_s12 + $0x1d98] sm:$0xff] }
 0x41b   : > { %v1254_v17 = vld [vmem:[%s9965_s12 + $0x1db8] sm:$0xff] }
 0x41d   : > { %7484 = vmatpush1.bf16.msra.mxu0 %v9142_v37  ;;  %7812 = vmatpush1.bf16.msra.mxu1 %v9144_v42  ;;  %v1214_v37 = vld [vmem:[%s9965_s12 + $0x1c78] sm:$0xff]  ;;  %v9198_v42 = vcombine.low %v1201_v26, %v1205_v27  ;;  %v1261_v26 = vld [vmem:[%s9965_s12 + $0x1df0] sm:$0xff] }
 0x41e   : > { %7485 = vmatprep.subr.bf16.mxu0 %v9151_v43  ;;  %7813 = vmatprep.subr.bf16.mxu1 %v9153_v49  ;;  %v9200_v43 = vcombine.low %v1202_v10, %v1206_v29  ;;  %v9207_v49 = vcombine.high %v1209_v35, %v1213_v36  ;;  %v9209_v46 = vcombine.high %v1210_v28, %v1214_v37  ;;  %v1258_v27 = vld [vmem:[%s9965_s12 + $0x1dd8] sm:$0xff] }
 0x41f   : > { %v1262_v10 = vld [vmem:[%s9965_s12 + $0x1df8] sm:$0xff] }
 0x421   : > { %7486 = vmatpush1.bf16.msra.mxu0 %v9150_v38  ;;  %7814 = vmatpush1.bf16.msra.mxu1 %v9152_v50  ;;  %v1222_v38 = vld [vmem:[%s9965_s12 + $0x1cb8] sm:$0xff]  ;;  %v9206_v50 = vcombine.low %v1209_v35, %v1213_v36  ;;  %v1269_v35 = vld [vmem:[%s9965_s12 + $0x1e30] sm:$0xff] }
 0x422   : > { %7487 = vmatprep.subr.bf16.mxu0 %v9159_v51  ;;  %7815 = vmatprep.subr.bf16.mxu1 %v9161_v53  ;;  %v9208_v51 = vcombine.low %v1210_v28, %v1214_v37  ;;  %v9215_v53 = vcombine.high %v1217_v20, %v1221_v47  ;;  %v9217_v56 = vcombine.high %v1218_v48, %v1222_v38  ;;  %v1266_v36 = vld [vmem:[%s9965_s12 + $0x1e18] sm:$0xff] }
 0x423   : > { %v1270_v28 = vld [vmem:[%s9965_s12 + $0x1e38] sm:$0xff] }
 0x425   : > { %7488 = vmatpush1.bf16.msra.mxu0 %v9158_v61  ;;  %7816 = vmatpush1.bf16.msra.mxu1 %v9160_v62  ;;  %v1230_v61 = vld [vmem:[%s9965_s12 + $0x1cf8] sm:$0xff]  ;;  %v9216_v62 = vcombine.low %v1218_v48, %v1222_v38 }
 0x426   : > { %7489 = vmatprep.subr.bf16.mxu0 %v9167_v24  ;;  %7817 = vmatprep.subr.bf16.mxu1 %v9169_v63  ;;  %v9223_v24 = vcombine.high %v1225_v57, %v1229_v58  ;;  %v9225_v63 = vcombine.high %v1226_v60, %v1230_v61  ;;  %v1278_v48 = vld [vmem:[%s9965_s12 + $0x1e78] sm:$0xff] }
 0x429   : > { %7490 = vmatpush1.bf16.msra.mxu0 %v9166_v5  ;;  %7818 = vmatpush1.bf16.msra.mxu1 %v9168_v30  ;;  %v9222_v5 = vcombine.low %v1225_v57, %v1229_v58  ;;  %v9231_v30 = vcombine.high %v1233_v9, %v1237_v3  ;;  %v1285_v57 = vld [vmem:[%s9965_s12 + $0x1eb0] sm:$0xff]  ;;  %v1282_v58 = vld [vmem:[%s9965_s12 + $0x1e98] sm:$0xff] }
 0x42a   : > { %7491 = vmatprep.subr.bf16.mxu0 %v9175_v7  ;;  %7819 = vmatprep.subr.bf16.mxu1 %v9177_v11  ;;  %v9233_v7 = vcombine.high %v1234_v4, %v1238_v59  ;;  %v1241_v11 = vld [vmem:[%s9965_s12 + $0x1d50] sm:$0xff]  ;;  %v1290_v3 = vld [vmem:[%s9965_s12 + $0x1ed8] sm:$0xff] }
 0x42b   : > { %v9238_v21 = vcombine.low %v1241_v11, %v1245_v33  ;;  %v1293_v9 = vld [vmem:[%s9965_s12 + $0x1ef0] sm:$0xff] }
 0x42d   : > { %7492 = vmatpush1.bf16.msra.mxu0 %v9174_v52  ;;  %7820 = vmatpush1.bf16.msra.mxu1 %v9176_v6  ;;  %v9232_v52 = vcombine.low %v1234_v4, %v1238_v59  ;;  %v9239_v6 = vcombine.high %v1241_v11, %v1245_v33  ;;  %v1294_v4 = vld [vmem:[%s9965_s12 + $0x1ef8] sm:$0xff]  ;;  %v1301_v11 = vld [vmem:[%s9965_s12 + $0x1f30] sm:$0xff] }
 0x42e   : > { %7493 = vmatprep.subr.bf16.mxu0 %v9183_v15  ;;  %7821 = vmatprep.subr.bf16.mxu1 %v9185_v16  ;;  %v9241_v15 = vcombine.high %v1242_v12, %v1246_v13  ;;  %v1249_v16 = vld [vmem:[%s9965_s12 + $0x1d90] sm:$0xff]  ;;  %v1298_v33 = vld [vmem:[%s9965_s12 + $0x1f18] sm:$0xff] }
 0x42f   : > { %v9246_v29 = vcombine.low %v1249_v16, %v1253_v2 }
 0x431   : > { %7494 = vmatpush1.bf16.msra.mxu0 %v9182_v22  ;;  %7822 = vmatpush1.bf16.msra.mxu1 %v9184_v1  ;;  %v9240_v22 = vcombine.low %v1242_v12, %v1246_v13  ;;  %v9247_v1 = vcombine.high %v1249_v16, %v1253_v2  ;;  %v1302_v12 = vld [vmem:[%s9965_s12 + $0x1f38] sm:$0xff]  ;;  %v1309_v16 = vld [vmem:[%s9965_s12 + $0x1f70] sm:$0xff] }
 0x432   : > { %7495 = vmatprep.subr.bf16.mxu0 %v9191_v23  ;;  %7823 = vmatprep.subr.bf16.mxu1 %v9193_v25  ;;  %v9249_v23 = vcombine.high %v1250_v18, %v1254_v17  ;;  %v1257_v25 = vld [vmem:[%s9965_s12 + $0x1dd0] sm:$0xff]  ;;  %v1306_v2 = vld [vmem:[%s9965_s12 + $0x1f58] sm:$0xff] }
 0x433   : > { %v9254_v37 = vcombine.low %v1257_v25, %v1261_v26 }
 0x435   : > { %7496 = vmatpush1.bf16.msra.mxu0 %v9190_v31  ;;  %7824 = vmatpush1.bf16.msra.mxu1 %v9192_v32  ;;  %v9248_v31 = vcombine.low %v1250_v18, %v1254_v17  ;;  %v9255_v32 = vcombine.high %v1257_v25, %v1261_v26  ;;  %v1310_v18 = vld [vmem:[%s9965_s12 + $0x1f78] sm:$0xff]  ;;  %v1317_v25 = vld [vmem:[%s9965_s12 + $0x1fb0] sm:$0xff] }
 0x436   : > { %7506 = vmatprep.subr.bf16.mxu0 %v9199_v0  ;;  %7834 = vmatprep.subr.bf16.mxu1 %v9201_v34  ;;  %v9257_v0 = vcombine.high %v1258_v27, %v1262_v10  ;;  %v1265_v34 = vld [vmem:[%s9965_s12 + $0x1e10] sm:$0xff]  ;;  %v1314_v26 = vld [vmem:[%s9965_s12 + $0x1f98] sm:$0xff] }
 0x437   : > { %v9262_v38 = vcombine.low %v1265_v34, %v1269_v35 }
 0x438   : > { %7498 = vmatmul.mubr.bf16.vlgmr.msra.gmra.mrb[4].mxu0 %v10560_v8  ;;  %7826 = vmatmul.mubr.bf16.vlgmr.msra.gmra.mrb[4].mxu1 %v10560_v8  ;;  %v9214_v8 = vcombine.low %v1217_v20, %v1221_v47  ;;  %v1277_v20 = vld [vmem:[%s9965_s12 + $0x1e70] sm:$0xff]  ;;  %v1274_v47 = vld [vmem:[%s9965_s12 + $0x1e58] sm:$0xff] }
 0x439   : > { %7507 = vmatpush1.bf16.msra.mxu0 %v9198_v42  ;;  %7835 = vmatpush1.bf16.msra.mxu1 %v9200_v43  ;;  %v9256_v42 = vcombine.low %v1258_v27, %v1262_v10  ;;  %v9263_v43 = vcombine.high %v1265_v34, %v1269_v35  ;;  %v1318_v27 = vld [vmem:[%s9965_s12 + $0x1fb8] sm:$0xff]  ;;  %v1325_v34 = vld [vmem:[%s9965_s12 + $0x1ff0] sm:$0xff] }
 0x43a   : > { %7508 = vmatprep.subr.bf16.mxu0 %v9207_v49  ;;  %7836 = vmatprep.subr.bf16.mxu1 %v9209_v46  ;;  %v9265_v49 = vcombine.high %v1266_v36, %v1270_v28  ;;  %v1273_v46 = vld [vmem:[%s9965_s12 + $0x1e50] sm:$0xff]  ;;  %v1322_v35 = vld [vmem:[%s9965_s12 + $0x1fd8] sm:$0xff] }
 0x43b   : > { %7538 = vmatprep.mubr.bf16.mxu0 %v10568_v19  ;;  %7866 = vmatprep.mubr.bf16.mxu1 %v10568_v19  ;;  %v9224_v19 = vcombine.low %v1226_v60, %v1230_v61  ;;  %v1286_v60 = vld [vmem:[%s9965_s12 + $0x1eb8] sm:$0xff]  ;;  %v9270_v61 = vcombine.low %v1273_v46, %v1277_v20 }
 0x43d   : > { %7509 = vmatpush1.bf16.msra.mxu0 %v9206_v50  ;;  %7837 = vmatpush1.bf16.msra.mxu1 %v9208_v51  ;;  %v9264_v50 = vcombine.low %v1266_v36, %v1270_v28  ;;  %v9271_v51 = vcombine.high %v1273_v46, %v1277_v20  ;;  %v1326_v36 = vld [vmem:[%s9965_s12 + $0x1ff8] sm:$0xff] }
 0x43e   : > { %7510 = vmatprep.subr.bf16.mxu0 %v9215_v53  ;;  %7838 = vmatprep.subr.bf16.mxu1 %v9217_v56  ;;  %v9273_v53 = vcombine.high %v1274_v47, %v1278_v48  ;;  %v1281_v56 = vld [vmem:[%s9965_s12 + $0x1e90] sm:$0xff]  ;;  %v9320_v46 = vcombine.low %v1322_v35, %v1326_v36 }
 0x43f   : > { %v9278_v59 = vcombine.low %v1281_v56, %v1285_v57 }
 0x441   : > { %7511 = vmatpush1.bf16.msra.mxu0 %v9214_v8  ;;  %7839 = vmatpush1.bf16.msra.mxu1 %v9216_v62  ;;  %v9272_v8 = vcombine.low %v1274_v47, %v1278_v48  ;;  %v9279_v62 = vcombine.high %v1281_v56, %v1285_v57  ;;  %v9716_v57 = vmov (!%p9322_p3), 1983009808  }
 0x442   : > { %7512 = vmatprep.subr.bf16.mxu0 %v9223_v24  ;;  %7840 = vmatprep.subr.bf16.mxu1 %v9225_v63  ;;  %v9281_v24 = vcombine.high %v1282_v58, %v1286_v60  ;;  %v1289_v63 = vld [vmem:[%s9965_s12 + $0x1ed0] sm:$0xff] }
 0x443   : > { %v9286_v13 = vcombine.low %v1289_v63, %v1293_v9 }
 0x445   : > { %7513 = vmatpush1.bf16.msra.mxu0 %v9222_v5  ;;  %7841 = vmatpush1.bf16.msra.mxu1 %v9224_v19  ;;  %v9280_v5 = vcombine.low %v1282_v58, %v1286_v60  ;;  %v9287_v19 = vcombine.high %v1289_v63, %v1293_v9  ;;  %v7892_v58 = vunpack.c.l.s4 (!%p9322_p3), %v9716_v57  ;;  %v7889_v60 = vcombine.low (!%p9322_p3), %v10868_v39, %v10874_v41 }
 0x446   : > { %7514 = vmatprep.subr.bf16.mxu0 %v9231_v30  ;;  %7842 = vmatprep.subr.bf16.mxu1 %v9233_v7  ;;  %v9289_v30 = vcombine.high %v1290_v3, %v1294_v4  ;;  %v1297_v7 = vld [vmem:[%s9965_s12 + $0x1f10] sm:$0xff] }
 0x447   : > { %v9294_v17 = vcombine.low %v1297_v7, %v1301_v11 }
 0x449   : > { %7515 = vmatpush1.bf16.msra.mxu0 %v9230_v14  ;;  %7843 = vmatpush1.bf16.msra.mxu1 %v9232_v52  ;;  %v9288_v14 = vcombine.low %v1290_v3, %v1294_v4  ;;  %v9295_v52 = vcombine.high %v1297_v7, %v1301_v11 }
 0x44a   : > { %7516 = vmatprep.subr.bf16.mxu0 %v9239_v6  ;;  %7844 = vmatprep.subr.bf16.mxu1 %v9241_v15  ;;  %v9297_v6 = vcombine.high %v1298_v33, %v1302_v12  ;;  %v1305_v15 = vld [vmem:[%s9965_s12 + $0x1f50] sm:$0xff] }
 0x44b   : > { %v9302_v10 = vcombine.low %v1305_v15, %v1309_v16 }
 0x44d   : > { %7517 = vmatpush1.bf16.msra.mxu0 %v9238_v21  ;;  %7845 = vmatpush1.bf16.msra.mxu1 %v9240_v22  ;;  %v9296_v21 = vcombine.low %v1298_v33, %v1302_v12  ;;  %v9303_v22 = vcombine.high %v1305_v15, %v1309_v16 }
 0x44e   : > { %7518 = vmatprep.subr.bf16.mxu0 %v9247_v1  ;;  %7846 = vmatprep.subr.bf16.mxu1 %v9249_v23  ;;  %v9305_v1 = vcombine.high %v1306_v2, %v1310_v18  ;;  %v1313_v23 = vld [vmem:[%s9965_s12 + $0x1f90] sm:$0xff] }
 0x44f   : > { %v9310_v28 = vcombine.low %v1313_v23, %v1317_v25 }
 0x451   : > { %7519 = vmatpush1.bf16.msra.mxu0 %v9246_v29  ;;  %7847 = vmatpush1.bf16.msra.mxu1 %v9248_v31  ;;  %v9304_v29 = vcombine.low %v1306_v2, %v1310_v18  ;;  %v9311_v31 = vcombine.high %v1313_v23, %v1317_v25 }
 0x452   : > { %7520 = vmatprep.subr.bf16.mxu0 %v9255_v32  ;;  %7848 = vmatprep.subr.bf16.mxu1 %v9257_v0  ;;  %v9313_v32 = vcombine.high %v1314_v26, %v1318_v27  ;;  %v1321_v0 = vld [vmem:[%s9965_s12 + $0x1fd0] sm:$0xff] }
 0x455   : > { %7521 = vmatpush1.bf16.msra.mxu0 %v9254_v37  ;;  %7849 = vmatpush1.bf16.msra.mxu1 %v9256_v42  ;;  %v9312_v37 = vcombine.low %v1314_v26, %v1318_v27  ;;  %v9319_v42 = vcombine.high %v1321_v0, %v1325_v34 }
 0x456   : > { %7522 = vmatprep.subr.bf16.mxu0 %v9263_v43  ;;  %7850 = vmatprep.subr.bf16.mxu1 %v9265_v49  ;;  %v9321_v43 = vcombine.high %v1322_v35, %v1326_v36  ;;  %v9318_v49 = vcombine.low %v1321_v0, %v1325_v34 }
 0x459   : > { %7523 = vmatpush1.bf16.msra.mxu0 %v9262_v38  ;;  %7851 = vmatpush1.bf16.msra.mxu1 %v9264_v50 }
 0x45a   : > { %7524 = vmatprep.subr.bf16.mxu0 %v9271_v51  ;;  %7852 = vmatprep.subr.bf16.mxu1 %v9273_v53 }
 0x45d   : > { %7525 = vmatpush1.bf16.msra.mxu0 %v9270_v61  ;;  %7853 = vmatpush1.bf16.msra.mxu1 %v9272_v8  ;;  %v7893_v61 = vunpack.c.0.s8 (!%p9322_p3), %v7892_v58 }
 0x45e   : > { %7526 = vmatprep.subr.bf16.mxu0 %v9279_v62  ;;  %7854 = vmatprep.subr.bf16.mxu1 %v9281_v24 }
 0x45f   : > { %v7896_v24 = vsub.s32 (!%p9322_p3), %v7893_v61, %v10015_v45 }
 0x461   : > { %7527 = vmatpush1.bf16.msra.mxu0 %v9278_v59  ;;  %7855 = vmatpush1.bf16.msra.mxu1 %v9280_v5  ;;  %v7897_v63 = vrot.slane (!%p9322_p3), %v7889_v60, %v7896_v24  ;;  %v7879_v59 = vld [vmem:[#allocation2] sm:$0xff] (!%p9322_p3)  ;;  %v7880_v5 = vld [vmem:[#allocation2 + $0x8] sm:$0xff] (!%p9322_p3) }
 0x462   : > { %7528 = vmatprep.subr.bf16.mxu0 %v9287_v19  ;;  %7856 = vmatprep.subr.bf16.mxu1 %v9289_v30 }
 0x465   : > { %7529 = vmatpush1.bf16.msra.mxu0 %v9286_v13  ;;  %7857 = vmatpush1.bf16.msra.mxu1 %v9288_v14 }
 0x466   : > { %7530 = vmatprep.subr.bf16.mxu0 %v9295_v52  ;;  %7858 = vmatprep.subr.bf16.mxu1 %v9297_v6 }
 0x469   : > { %7531 = vmatpush1.bf16.msra.mxu0 %v9294_v17  ;;  %7859 = vmatpush1.bf16.msra.mxu1 %v9296_v21 }
 0x46a   : > { %7532 = vmatprep.subr.bf16.mxu0 %v9303_v22  ;;  %7860 = vmatprep.subr.bf16.mxu1 %v9305_v1 }
 0x46d   : > { %7533 = vmatpush1.bf16.msra.mxu0 %v9302_v10  ;;  %7861 = vmatpush1.bf16.msra.mxu1 %v9304_v29 }
 0x46e   : > { %7534 = vmatprep.subr.bf16.mxu0 %v9311_v31  ;;  %7862 = vmatprep.subr.bf16.mxu1 %v9313_v32 }
 0x471   : > { %7535 = vmatpush1.bf16.msra.mxu0 %v9310_v28  ;;  %7863 = vmatpush1.bf16.msra.mxu1 %v9312_v37 }
 0x472   : > { %7536 = vmatprep.subr.bf16.mxu0 %v9319_v42  ;;  %7864 = vmatprep.subr.bf16.mxu1 %v9321_v43 }
 0x475   : > { %7537 = vmatpush1.bf16.msra.mxu0 %v9318_v49  ;;  %7865 = vmatpush1.bf16.msra.mxu1 %v9320_v46 }
 0x478   : > { %7539 = vmatmul.mubr.bf16.vlgmr.msra.gmra.mrb[4].mxu0 %v10636_v55  ;;  %7867 = vmatmul.mubr.bf16.vlgmr.msra.gmra.mrb[4].mxu1 %v10636_v55  ;;  %v7890_v55 = vcombine.low (!%p9322_p3), %v10872_v40, %v10878_v44 }
 0x47a   : > { %v7904_v9 = vrot.slane (!%p9322_p3), %v7890_v55, %v7896_v24 }
 0x47c   : > { %v7905_v19 = vcombine.low (!%p9322_p3), %v7897_v63, %v7904_v9 }
 0x47e   : > { %v7925_v7 = vadd.f32 (!%p9322_p3), %v7905_v19, %v7879_v59 }
 0x480   : > { %7927 = vst [vmem:[#allocation2] sm:$0xff] (!%p9322_p3), %v7925_v7 }
 0x548   : > { %7878 = sbr.rel (%p9322_p3) target bundleno = 1366 (0x556), region = 52 }
 0x54b   : > { %v11186_v20 = vpop.f32.mrb[4].mxu0  ;;  %v11188_v47 = vpop.f32.mrb[4].mxu1 }
 0x54c   : > { %v7542_v48 = vpop.f32.mrb[5].mxu0  ;;  %v7870_v38 = vpop.f32.mrb[5].mxu1 }
 0x54d   : > { %v7544_v50 = vpop.f32.mrb[6].mxu0  ;;  %v7872_v51 = vpop.f32.mrb[6].mxu1  ;;  %v7906_v8 = vcombine.low (!%p9322_p3), %v11186_v20, %v7542_v48  ;;  %v7907_v62 = vcombine.low (!%p9322_p3), %v11188_v47, %v7870_v38 }
 0x54e   : > { %v7545_v53 = vpop.f32.mrb[7].mxu0  ;;  %v7873_v56 = vpop.f32.mrb[7].mxu1 }
 0x54f   : > { %v7914_v3 = vrot.slane %v7906_v8, %v7896_v24  ;;  %v7921_v4 = vrot.slane %v7907_v62, %v7896_v24 }
 0x551   : > { %v7922_v30 = vcombine.low %v7914_v3, %v7921_v4 }
 0x553   : > { %v7926_v11 = vadd.f32 %v7922_v30, %v7880_v5 }
 0x555   : > { %7928 = vst [vmem:[#allocation2 + $0x8] sm:$0xff] %v7926_v11 }
 0x556 PF: > { %p9323_p11 = scmp.ne.s32.totalorder %s9691_s23, 3 }
 0x557   : > { %v7943_v33 = vcombine.low (!%p9323_p11), %v10868_v39, %v10874_v41  ;;  %v7944_v12 = vcombine.low (!%p9323_p11), %v10872_v40, %v10878_v44  ;;  %v7960_v13 = vcombine.low (!%p9323_p11), %v11186_v20, %v7542_v48  ;;  %v7981_v14 = vld [vmem:[%s249_s15] sm:$0xff] (!%p9323_p11)  ;;  %v9717_v52 = vmov (!%p9323_p11), 1983009808   ;;  %s11214_s23 = sld [smem:[#allocation3]] (!%p9323_p11)  ;;  %v7933_v37 = vld [vmem:[#allocation2] sm:$0xff] (!%p9323_p11) }
 0x558   : > { %7932 = sbr.rel (%p9323_p11) target bundleno = 1405 (0x57d), region = 56  ;;  %v7946_v6 = vunpack.c.l.s4 (!%p9323_p11), %v9717_v52  ;;  %v7961_v15 = vcombine.low (!%p9323_p11), %v11188_v47, %v7870_v38  ;;  %v7985_v16 = vsub.s32 (!%p9323_p11), 0, %v10015_v45  ;;  %v7989_v2 = vsub.s32 (!%p9323_p11), 1, %v10015_v45 }
 0x559   : > { %v7993_v18 = vsub.s32 (!%p9323_p11), 2, %v10015_v45  ;;  %v7997_v17 = vsub.s32 (!%p9323_p11), 3, %v10015_v45  ;;  %v8001_v39 = vsub.s32 (!%p9323_p11), 4, %v10015_v45  ;;  %v8005_v40 = vsub.s32 (!%p9323_p11), 5, %v10015_v45 }
 0x55a   : > { %v7947_v41 = vunpack.c.0.s8 (!%p9323_p11), %v7946_v6  ;;  %v7986_v44 = vrot.slane (!%p9323_p11), %v7981_v14, %v7985_v16  ;;  %v7990_v21 = vrot.slane (!%p9323_p11), %v7981_v14, %v7989_v2  ;;  %v8009_v22 = vsub.s32 (!%p9323_p11), 6, %v10015_v45 }
 0x55b   : > { %v7994_v1 = vrot.slane (!%p9323_p11), %v7981_v14, %v7993_v18  ;;  %v7998_v23 = vrot.slane (!%p9323_p11), %v7981_v14, %v7997_v17  ;;  %v8002_v25 = vrot.slane (!%p9323_p11), %v7981_v14, %v8001_v39  ;;  %v8006_v26 = vrot.slane (!%p9323_p11), %v7981_v14, %v8005_v40 }
 0x55c   : > { %v7950_v27 = vsub.s32 (!%p9323_p11), %v7947_v41, %v10015_v45  ;;  %v8013_v10 = vsub.s32 (!%p9323_p11), 7, %v10015_v45  ;;  %v8015_v29 = vcombine.low (!%p9323_p11), %v7986_v44, %v7990_v21  ;;  %v8010_v31 = vrot.slane (!%p9323_p11), %v7981_v14, %v8009_v22  ;;  %v7934_v46 = vld [vmem:[#allocation2 + $0x8] sm:$0xff] (!%p9323_p11) }
 0x55d   : > { %v8016_v32 = vcombine.low (!%p9323_p11), %v7994_v1, %v7998_v23  ;;  %v8032_v0 = vcombine.low (!%p9323_p11), %v8002_v25, %v8006_v26  ;;  %v8056_v56 = vstv (!%p9323_p11), %s11214_s23 }
 0x55e   : > { %v7951_v34 = vrot.slane (!%p9323_p11), %v7943_v33, %v7950_v27  ;;  %v7958_v35 = vrot.slane (!%p9323_p11), %v7944_v12, %v7950_v27  ;;  %v7968_v36 = vrot.slane (!%p9323_p11), %v7960_v13, %v7950_v27  ;;  %v7975_v28 = vrot.slane (!%p9323_p11), %v7961_v15, %v7950_v27 }
 0x55f   : > { %v8014_v42 = vrot.slane %v7981_v14, %v8013_v10  ;;  %v8023_v43 = vrot.slane %v8015_v29, %v7950_v27  ;;  %v8030_v49 = vrot.slane %v8016_v32, %v7950_v27  ;;  %v8040_v50 = vrot.slane %v8032_v0, %v7950_v27 }
 0x560   : > { %v7959_v20 = vcombine.low %v7951_v34, %v7958_v35  ;;  %v7976_v47 = vcombine.low %v7968_v36, %v7975_v28 }
 0x561   : > { %v8031_v48 = vcombine.low %v8023_v43, %v8030_v49  ;;  %v8033_v38 = vcombine.low %v8010_v31, %v8014_v42 }
 0x562   : > { %v7979_v45 = vadd.f32 %v7959_v20, %v7933_v37  ;;  %v7980_v51 = vadd.f32 %v7976_v47, %v7934_v46 }
 0x563   : > { %v8047_v53 = vrot.slane %v8033_v38, %v7950_v27 }
 0x564   : > { %v8051_v57 = vadd.f32 %v8031_v48, %v7979_v45 }
 0x565   : > { %v8048_v58 = vcombine.low %v8040_v50, %v8047_v53 }
 0x566   : > { %vm8054_vm0 = vcmp.gt.f32.partialorder %v8051_v57, 0.0  ;;  %v8057_v60 = vmul.f32 %v8056_v56, %v8051_v57 }
 0x567   : > { %v8052_v55 = vadd.f32 %v8048_v58, %v7980_v51 }
 0x568   : > { %v8059_v61 = vsel %vm8054_vm0, %v8051_v57, %v8057_v60 }
 0x569   : > { %vm8055_vm1 = vcmp.gt.f32.partialorder %v8052_v55, 0.0  ;;  %v8058_v8 = vmul.f32 %v8056_v56, %v8052_v55  ;;  %v8063_v62 = vcombine.high %v8059_v61, %v8059_v61  ;;  %v8070_v24 = vrot.slane %v8059_v61, %v7950_v27 }
 0x56b   : > { %v8060_v63 = vsel %vm8055_vm1, %v8052_v55, %v8058_v8  ;;  %v8077_v9 = vrot.slane %v8063_v62, %v7950_v27  ;;  %v8078_v3 = vcombine.high %v8070_v24, %v8070_v24 }
 0x56c   : > { %v8080_v4 = vcombine.high %v8060_v63, %v8060_v63  ;;  %v8087_v59 = vrot.slane %v8060_v63, %v7950_v27 }
 0x56d   : > { %v8079_v5 = vcombine.high %v8077_v9, %v8077_v9  ;;  %v9324_v19 = vpack.c.bf16 %v8078_v3, %v8070_v24 }
 0x56e   : > { %v8094_v30 = vrot.slane %v8080_v4, %v7950_v27  ;;  %v8095_v7 = vcombine.high %v8087_v59, %v8087_v59 }
 0x56f   : > { %v9325_v11 = vpack.c.bf16 %v8079_v5, %v8077_v9  ;;  %v8131_v33 = vrot.slane %v9324_v19, %v10022_v54 }
 0x570   : > { %v8096_v12 = vcombine.high %v8094_v30, %v8094_v30  ;;  %v9326_v13 = vpack.c.bf16 %v8095_v7, %v8087_v59 }
 0x571   : > { %v8138_v14 = vrot.slane %v9325_v11, %v10022_v54 }
 0x572   : > { %v9327_v52 = vpack.c.bf16 %v8096_v12, %v8094_v30  ;;  %v8145_v6 = vrot.slane %v9326_v13, %v10022_v54 }
 0x573   : > { %v8153_v15 = vcombine.low %v8131_v33, %v8138_v14 }
 0x574   : > { %v8152_v16 = vrot.slane %v9327_v52, %v10022_v54 }
 0x575   : > { %v8161_v18 = vrot.slane %v8153_v15, %v10022_v54 }
 0x576   : > { %v8154_v2 = vcombine.low %v8145_v6, %v8152_v16 }
 0x578   : > { %v8168_v17 = vrot.slane %v8154_v2, %v10022_v54 }
 0x57a   : > { %v8169_v39 = vcombine.low %v8161_v18, %v8168_v17 }
 0x57c   : > { %8171 = vst [vmem:[%s293_s9] sm:$0xff] %v8169_v39 }
 0x57d PF: > { %s21_s26 = sadd.s32 1, %s9707_s26   ;;  %s11289_s8 = sld [smem:[#allocation10_spill]] }
 0x57e   : > { %p18_p12 = scmp.ge.s32.totalorder %s21_s26, 10   ;;  %s11290_s17 = smov %s9671_s18 }
 0x57f   : > { %s11291_s18 = smov %s9675_s19  ;;  %s11292_s19 = smov %s9914_s7 }
 0x580   : > { %s11293_s20 = smov %s9683_s21  ;;  %s11294_s21 = smov %s9687_s22 }
 0x581   : > { %s11295_s22 = smov %s9919_s11  ;;  %s11296_s23 = smov %s9699_s0 }
 0x582   : > { %s11297_s24 = smov %s9703_s25  ;;  %s11298_s0 = smov %s11301_s27 }
 0x583   : > { %s11299_s25 = smov %s11289_s8  ;;  %20 = sbr.rel (!%p18_p12) target bundleno = 12 (0xc), region = 104 }
 0x58a   :  { %8192 = vsyncpa [#allocation5], 1 }
 0x58b   :  { %8194 = vsyncpa [#allocation5 + $0x1], 1 }
 0x58c   :  { %8195 = vsyncpa [#allocation7], 1 }
 0x58d   :  { %8197 = vsyncpa [#allocation7 + $0x1], 1 }

// kernel: combine_net_forward.3
= control target key start
LH: loop header
LB: loop body
LE: loop exit
PB: predicated region body
PF: predicated region fallthrough
CT: control target
= control target key end

     0   :  { %17 = vsyncpa [#allocation5], 0  ;;  %s5278_s0 = inlined_call_operand.vmem [shape: f32[2], index: 0, kind: input, shape index: {}]   ;;  %s5279_s1 = inlined_call_operand.vmem [shape: bf16[2,2048], index: 1, kind: input, shape index: {}]   ;;  %s5280_s2 = inlined_call_operand.vmem [shape: bf16[2048,512], index: 2, kind: input, shape index: {}]   ;;  %s5281_s3 = inlined_call_operand.vmem [shape: f32[1,512], index: 3, kind: input, shape index: {}]   ;;  %s5282_s4 = inlined_call_operand.vmem [shape: bf16[512,256], index: 4, kind: input, shape index: {}]   ;;  %s5283_s5 = inlined_call_operand.vmem [shape: f32[1,256], index: 5, kind: input, shape index: {}]   ;;  %s5284_s6 = inlined_call_operand.vmem [shape: bf16[256,128], index: 6, kind: input, shape index: {}]   ;;  %s5285_s7 = inlined_call_operand.vmem [shape: f32[1,128], index: 7, kind: input, shape index: {}]   ;;  %s5286_s8 = inlined_call_operand.vmem [shape: bf16[256,16], index: 8, kind: input, shape index: {}]   ;;  %s5287_s9 = inlined_call_operand.vmem [shape: f32[1,16], index: 9, kind: input, shape index: {}]   ;;  %s5288_s10 = inlined_call_operand.hbm [shape: f32[2,128], index: 10, kind: output, shape index: {0}]   ;;  %s5289_s11 = inlined_call_operand.hbm [shape: f32[2,16], index: 11, kind: output, shape index: {1}]  }
   0x1   :  { %18 = vsyncpa [#allocation4], 0 }
   0x2   :  { %19 = vsyncpa [#allocation8], 0  ;;  %s4566_s17 = smov 0  }
   0x3 LB: > { %s4572_s18 = sadd.s32 4294967295, %s4497_s17   ;;  %p3410_p0 = scmp.ge.s32.totalorder %s4497_s17, 1  ;;  %s4497_s17 = sphi %s4566_s17, %s25_s17  }
   0x4   : > { %p292_p1 = scmp.lt.s32.totalorder %s4497_s17, 3  ;;  %s305_s21 = sshll.u32 %s5278_s0, 4  ;;  %s306_s21 = int_to_ptr.vmem [resolvable:$true] %s305_s21 }
   0x5   : > { %p3874_p4 = scmp.eq.s32.totalorder %s4572_s18, 0  ;;  %s4412_s23 = scalar_lea.vmem %s306_s21, 16 }
   0x6   : > { %p4580_p3 = pnand %p3410_p0, %p292_p1  ;;  %p4413_p7 = scmp.ne.s32.totalorder %s306_s21, %s4412_s23 }
   0x7   : > { %p4420_p11 = scmp.lt.s32.totalorder %s306_s21, %s306_s21  ;;  %p4421_p12 = scmp.lt.s32.totalorder %s4412_s23, %s4412_s23 }
   0x8   : > { %p3870_p5 = pneg %p4580_p3 }
   0x9   : > { %p4422_p13 = por %p4421_p12, %p4420_p11 }
   0xa   : > { %p3871_p6 = pnand %p3874_p4, %p3870_p5 }
   0xc   : > { %p4414_p8 = pneg %p3871_p6 }
   0xe   : > { %p4415_p9 = pnand %p4414_p8, %p4413_p7 }
  0x10   : > { %p4416_p10 = pneg %p4415_p9 }
  0x12   : > { %p4423_p2 = pnand %p4422_p13, %p4416_p10 }
  0x14   : > { %4426 = shalt.err (!%p4423_p2)
}
  0x15   : > { %s4499_s24 = smov [#allocation3]   ;;  %357 = sbr.rel (%p4580_p3) target bundleno = 1314 (0x522), region = 60 }
  0x16   : > { %3873 = dma.vmem_to_smem (!%p3871_p6), %s306_s21, 16, %s4499_s24, [#allocation5]  }
  0x1c   : > { %4484 = dma.done.wait (%p3874_p4), [#allocation5], 16  }
  0x1d   : > { %4486 = vsyncadd (%p3874_p4), [#allocation5], 4294967280 }
  0x1e   : > { %363 = sfence }
  0x1f   : > { %s3415_s25 = sshll.u32 %s4572_s18, 3  ;;  %s3416_s26 = sshll.u32 %s4572_s18, 7 }
  0x20   : > { %p399_p0 = scmp.lt.s32.totalorder %s3415_s25, 15  ;;  %p404_p1 = scmp.lt.s32.totalorder %s3416_s26, 255 }
  0x21   : > { %p5291_p2 = scmp.ne.s32.totalorder %s4572_s18, 0 }
  0x22   : > { %s5293_s25 = smov (!%p399_p0, %s3415_s25), 15  ;;  %s5295_s26 = smov (!%p404_p1, %s3416_s26), 255 }
  0x23   : > { %s401_s29 = scalar_lea.vmem %s5279_s1, %s5293_s25  ;;  %s3783_s30 = sshll.u32 %s5295_s26, 4  ;;  %v4500_v0 = vmov (!%p5291_p2), 0.0  }
  0x24   : > { %s4606_s14 = scalar_lea.vmem %s5280_s2, %s3783_s30  ;;  %414 = sbr.rel (%p5291_p2) target bundleno = 43 (0x2b), region = 68  ;;  %415 = vst [vmem:[#allocation2] sm:$0xff] (!%p5291_p2), %v4500_v0 }
  0x2b PF: > { %v3895_v1 = vld [vmem:[%s4606_s14 + $0x4] ss:$16 sps:$4 sm:$0xff]   ;;  %v3897_v2 = vld [vmem:[%s4606_s14 + $0xc] ss:$16 sps:$4 sm:$0xff]   ;;  %v3899_v3 = vld [vmem:[%s4606_s14] ss:$16 sps:$4 sm:$0xff]   ;;  %v678_v39 = vlaneseq }
  0x2c   : > { %2011 = vmatprep.subr.bf16.mxu0 %v3895_v1  ;;  %v3900_v4 = vld [vmem:[%s4606_s14 + $0x8] ss:$16 sps:$4 sm:$0xff]   ;;  %2175 = vmatprep.subr.bf16.mxu1 %v3897_v2  ;;  %v3901_v5 = vld [vmem:[%s4606_s14 + $0x24] ss:$16 sps:$4 sm:$0xff]   ;;  %v3903_v6 = vld [vmem:[%s4606_s14 + $0x2c] ss:$16 sps:$4 sm:$0xff]  }
  0x2d   : > { %2012 = vmatpush1.bf16.msra.mxu0 %v3899_v3  ;;  %2176 = vmatpush1.bf16.msra.mxu1 %v3900_v4  ;;  %v3905_v7 = vld [vmem:[%s4606_s14 + $0x20] ss:$16 sps:$4 sm:$0xff]   ;;  %v3906_v8 = vld [vmem:[%s4606_s14 + $0x28] ss:$16 sps:$4 sm:$0xff]   ;;  %v3907_v9 = vld [vmem:[%s4606_s14 + $0x44] ss:$16 sps:$4 sm:$0xff]  }
  0x2e   : > { %2013 = vmatprep.subr.bf16.mxu0 %v3901_v5  ;;  %2177 = vmatprep.subr.bf16.mxu1 %v3903_v6  ;;  %v3909_v10 = vld [vmem:[%s4606_s14 + $0x4c] ss:$16 sps:$4 sm:$0xff]   ;;  %v3911_v11 = vld [vmem:[%s4606_s14 + $0x40] ss:$16 sps:$4 sm:$0xff]   ;;  %v3912_v12 = vld [vmem:[%s4606_s14 + $0x48] ss:$16 sps:$4 sm:$0xff]  }
  0x2f   : > { %v3913_v13 = vld [vmem:[%s4606_s14 + $0x64] ss:$16 sps:$4 sm:$0xff]   ;;  %v3915_v14 = vld [vmem:[%s4606_s14 + $0x6c] ss:$16 sps:$4 sm:$0xff]   ;;  %v3917_v15 = vld [vmem:[%s4606_s14 + $0x60] ss:$16 sps:$4 sm:$0xff]  }
  0x30   : > { %v3918_v16 = vld [vmem:[%s4606_s14 + $0x68] ss:$16 sps:$4 sm:$0xff]   ;;  %v3919_v17 = vld [vmem:[%s4606_s14 + $0x84] ss:$16 sps:$4 sm:$0xff]   ;;  %v3921_v18 = vld [vmem:[%s4606_s14 + $0x8c] ss:$16 sps:$4 sm:$0xff]  }
  0x31   : > { %2014 = vmatpush1.bf16.msra.mxu0 %v3905_v7  ;;  %2178 = vmatpush1.bf16.msra.mxu1 %v3906_v8  ;;  %v3923_v19 = vld [vmem:[%s4606_s14 + $0x80] ss:$16 sps:$4 sm:$0xff]   ;;  %v3924_v20 = vld [vmem:[%s4606_s14 + $0x88] ss:$16 sps:$4 sm:$0xff]   ;;  %v3925_v21 = vld [vmem:[%s4606_s14 + $0xa4] ss:$16 sps:$4 sm:$0xff]  }
  0x32   : > { %2015 = vmatprep.subr.bf16.mxu0 %v3907_v9  ;;  %2179 = vmatprep.subr.bf16.mxu1 %v3909_v10  ;;  %v3927_v22 = vld [vmem:[%s4606_s14 + $0xac] ss:$16 sps:$4 sm:$0xff]   ;;  %v3929_v23 = vld [vmem:[%s4606_s14 + $0xa0] ss:$16 sps:$4 sm:$0xff]   ;;  %v3930_v24 = vld [vmem:[%s4606_s14 + $0xa8] ss:$16 sps:$4 sm:$0xff]  }
  0x33   : > { %v3931_v25 = vld [vmem:[%s4606_s14 + $0xc4] ss:$16 sps:$4 sm:$0xff]   ;;  %v3933_v26 = vld [vmem:[%s4606_s14 + $0xcc] ss:$16 sps:$4 sm:$0xff]   ;;  %v3935_v27 = vld [vmem:[%s4606_s14 + $0xc0] ss:$16 sps:$4 sm:$0xff]  }
  0x34   : > { %v3936_v28 = vld [vmem:[%s4606_s14 + $0xc8] ss:$16 sps:$4 sm:$0xff]   ;;  %v3937_v29 = vld [vmem:[%s4606_s14 + $0xe4] ss:$16 sps:$4 sm:$0xff]   ;;  %v3939_v30 = vld [vmem:[%s4606_s14 + $0xec] ss:$16 sps:$4 sm:$0xff]  }
  0x35   : > { %2016 = vmatpush1.bf16.msra.mxu0 %v3911_v11  ;;  %2180 = vmatpush1.bf16.msra.mxu1 %v3912_v12  ;;  %v3941_v31 = vld [vmem:[%s4606_s14 + $0xe0] ss:$16 sps:$4 sm:$0xff]   ;;  %v3942_v32 = vld [vmem:[%s4606_s14 + $0xe8] ss:$16 sps:$4 sm:$0xff]   ;;  %v3943_v33 = vld [vmem:[%s4606_s14 + $0x104] ss:$16 sps:$4 sm:$0xff]  }
  0x36   : > { %2017 = vmatprep.subr.bf16.mxu0 %v3913_v13  ;;  %2181 = vmatprep.subr.bf16.mxu1 %v3915_v14  ;;  %v3945_v34 = vld [vmem:[%s4606_s14 + $0x10c] ss:$16 sps:$4 sm:$0xff]   ;;  %v3947_v35 = vld [vmem:[%s4606_s14 + $0x100] ss:$16 sps:$4 sm:$0xff]   ;;  %v3948_v36 = vld [vmem:[%s4606_s14 + $0x108] ss:$16 sps:$4 sm:$0xff]  }
  0x37   : > { %v4501_v37 = vmov 1966171168   ;;  %v3949_v40 = vld [vmem:[%s4606_s14 + $0x124] ss:$16 sps:$4 sm:$0xff]   ;;  %v3951_v41 = vld [vmem:[%s4606_s14 + $0x12c] ss:$16 sps:$4 sm:$0xff]  }
  0x38   : > { %v676_v38 = vunpack.c.l.s4 %v4501_v37  ;;  %v3953_v42 = vld [vmem:[%s4606_s14 + $0x120] ss:$16 sps:$4 sm:$0xff]   ;;  %v4649_v44 = vshrl.u32 %v678_v39, 7  ;;  %v3954_v45 = vld [vmem:[%s4606_s14 + $0x128] ss:$16 sps:$4 sm:$0xff]   ;;  %p3676_p3 = scmp.ge.s32.totalorder %s4572_s18, 1 }
  0x39   : > { %2018 = vmatpush1.bf16.msra.mxu0 %v3917_v15  ;;  %2182 = vmatpush1.bf16.msra.mxu1 %v3918_v16  ;;  %v3955_v46 = vld [vmem:[%s4606_s14 + $0x144] ss:$16 sps:$4 sm:$0xff]   ;;  %v3957_v47 = vld [vmem:[%s4606_s14 + $0x14c] ss:$16 sps:$4 sm:$0xff]   ;;  %v3959_v48 = vld [vmem:[%s4606_s14 + $0x140] ss:$16 sps:$4 sm:$0xff]  }
  0x3a   : > { %2019 = vmatprep.subr.bf16.mxu0 %v3919_v17  ;;  %2183 = vmatprep.subr.bf16.mxu1 %v3921_v18  ;;  %v677_v43 = vunpack.c.0.s8 %v676_v38  ;;  %v3960_v49 = vld [vmem:[%s4606_s14 + $0x148] ss:$16 sps:$4 sm:$0xff]   ;;  %v3961_v51 = vld [vmem:[%s4606_s14 + $0x164] ss:$16 sps:$4 sm:$0xff]   ;;  %v3963_v52 = vld [vmem:[%s4606_s14 + $0x16c] ss:$16 sps:$4 sm:$0xff]  }
  0x3b   : > { %v416_v53 = vld [vmem:[%s401_s29] sm:$0xff]  ;;  %v3966_v56 = vld [vmem:[%s4606_s14 + $0x168] ss:$16 sps:$4 sm:$0xff]   ;;  %v3969_v58 = vld [vmem:[%s4606_s14 + $0x18c] ss:$16 sps:$4 sm:$0xff]  }
  0x3c   : > { %v4657_v50 = vsub.s32 %v677_v43, %v4649_v44  ;;  %v3965_v54 = vld [vmem:[%s4606_s14 + $0x160] ss:$16 sps:$4 sm:$0xff]   ;;  %v3967_v57 = vld [vmem:[%s4606_s14 + $0x184] ss:$16 sps:$4 sm:$0xff]   ;;  %v3972_v62 = vld [vmem:[%s4606_s14 + $0x188] ss:$16 sps:$4 sm:$0xff]   ;;  %v674_v10 = vcombine.high %v416_v53, %v416_v53 }
  0x3d   : > { %2020 = vmatpush1.bf16.msra.mxu0 %v3923_v19  ;;  %2184 = vmatpush1.bf16.msra.mxu1 %v3924_v20  ;;  %v3971_v60 = vld [vmem:[%s4606_s14 + $0x180] ss:$16 sps:$4 sm:$0xff]   ;;  %v3973_v63 = vld [vmem:[%s4606_s14 + $0x1a4] ss:$16 sps:$4 sm:$0xff]   ;;  %v3975_v0 = vld [vmem:[%s4606_s14 + $0x1ac] ss:$16 sps:$4 sm:$0xff]  }
  0x3e   : > { %2021 = vmatprep.subr.bf16.mxu0 %v3925_v21  ;;  %2185 = vmatprep.subr.bf16.mxu1 %v3927_v22  ;;  %v681_v55 = vrot.slane %v416_v53, %v4657_v50  ;;  %v3977_v1 = vld [vmem:[%s4606_s14 + $0x1a0] ss:$16 sps:$4 sm:$0xff]   ;;  %v3978_v2 = vld [vmem:[%s4606_s14 + $0x1a8] ss:$16 sps:$4 sm:$0xff]   ;;  %v3979_v3 = vld [vmem:[%s4606_s14 + $0x1c4] ss:$16 sps:$4 sm:$0xff]   ;;  %v688_v14 = vrot.slane %v674_v10, %v4657_v50 }
  0x3f   : > { %v3981_v4 = vld [vmem:[%s4606_s14 + $0x1cc] ss:$16 sps:$4 sm:$0xff]   ;;  %v3983_v5 = vld [vmem:[%s4606_s14 + $0x1c0] ss:$16 sps:$4 sm:$0xff]   ;;  %v3984_v6 = vld [vmem:[%s4606_s14 + $0x1c8] ss:$16 sps:$4 sm:$0xff]  }
  0x40   : > { %v689_v59 = vcombine.high %v681_v55, %v681_v55  ;;  %v3985_v7 = vld [vmem:[%s4606_s14 + $0x1e4] ss:$16 sps:$4 sm:$0xff]   ;;  %v3987_v8 = vld [vmem:[%s4606_s14 + $0x1ec] ss:$16 sps:$4 sm:$0xff]   ;;  %v3989_v9 = vld [vmem:[%s4606_s14 + $0x1e0] ss:$16 sps:$4 sm:$0xff]   ;;  %v4691_v16 = vrot.slane %v681_v55, %v4657_v50  ;;  %v690_v17 = vcombine.high %v688_v14, %v688_v14  ;;  %v4700_v22 = vrot.slane %v688_v14, %v4657_v50 }
  0x41   : > { %2022 = vmatpush1.bf16.msra.mxu0 %v3929_v23  ;;  %2186 = vmatpush1.bf16.msra.mxu1 %v3930_v24  ;;  %v3990_v11 = vld [vmem:[%s4606_s14 + $0x1e8] ss:$16 sps:$4 sm:$0xff]   ;;  %v3993_v12 = vld [vmem:[%s4606_s14 + $0x204] ss:$16 sps:$4 sm:$0xff]   ;;  %v3996_v13 = vld [vmem:[%s4606_s14 + $0x20c] ss:$16 sps:$4 sm:$0xff]  }
  0x42   : > { %2023 = vmatprep.subr.bf16.mxu0 %v3931_v25  ;;  %2187 = vmatprep.subr.bf16.mxu1 %v3933_v26  ;;  %v711_v61 = vrot.slane %v689_v59, %v4657_v50  ;;  %v3991_v15 = vld [vmem:[%s4606_s14 + $0x200] ss:$16 sps:$4 sm:$0xff]   ;;  %v3994_v18 = vld [vmem:[%s4606_s14 + $0x208] ss:$16 sps:$4 sm:$0xff]   ;;  %v3999_v19 = vld [vmem:[%s4606_s14 + $0x224] ss:$16 sps:$4 sm:$0xff]   ;;  %v4697_v21 = vrot.slane %v690_v17, %v4657_v50 }
  0x43   : > { %v4002_v20 = vld [vmem:[%s4606_s14 + $0x22c] ss:$16 sps:$4 sm:$0xff]   ;;  %v3997_v24 = vld [vmem:[%s4606_s14 + $0x220] ss:$16 sps:$4 sm:$0xff]   ;;  %v4000_v25 = vld [vmem:[%s4606_s14 + $0x228] ss:$16 sps:$4 sm:$0xff]  }
  0x44   : > { %2043 = vmatprep.mubr.bf16.mxu0 %v711_v61  ;;  %2207 = vmatprep.mubr.bf16.mxu1 %v711_v61  ;;  %v721_v23 = vcombine.high %v711_v61, %v711_v61  ;;  %v4005_v26 = vld [vmem:[%s4606_s14 + $0x244] ss:$16 sps:$4 sm:$0xff]   ;;  %v4018_v37 = vld [vmem:[%s4606_s14 + $0x288] ss:$16 sps:$4 sm:$0xff]   ;;  %v4026_v39 = vld [vmem:[%s4606_s14 + $0x2ac] ss:$16 sps:$4 sm:$0xff]  }
  0x45   : > { %2024 = vmatpush1.bf16.msra.mxu0 %v3935_v27  ;;  %2188 = vmatpush1.bf16.msra.mxu1 %v3936_v28  ;;  %v4008_v27 = vld [vmem:[%s4606_s14 + $0x24c] ss:$16 sps:$4 sm:$0xff]   ;;  %v4003_v28 = vld [vmem:[%s4606_s14 + $0x240] ss:$16 sps:$4 sm:$0xff]   ;;  %v4023_v38 = vld [vmem:[%s4606_s14 + $0x2a4] ss:$16 sps:$4 sm:$0xff]  }
  0x46   : > { %2025 = vmatprep.subr.bf16.mxu0 %v3937_v29  ;;  %2189 = vmatprep.subr.bf16.mxu1 %v3939_v30  ;;  %v4006_v29 = vld [vmem:[%s4606_s14 + $0x248] ss:$16 sps:$4 sm:$0xff]   ;;  %v4011_v30 = vld [vmem:[%s4606_s14 + $0x264] ss:$16 sps:$4 sm:$0xff]   ;;  %v4032_v43 = vld [vmem:[%s4606_s14 + $0x2cc] ss:$16 sps:$4 sm:$0xff]  }
  0x47   : > { %v4036_v50 = vld [vmem:[%s4606_s14 + $0x2e8] ss:$16 sps:$4 sm:$0xff]   ;;  %v4039_v53 = vld [vmem:[%s4606_s14 + $0x300] ss:$16 sps:$4 sm:$0xff]   ;;  %v4047_v55 = vld [vmem:[%s4606_s14 + $0x324] ss:$16 sps:$4 sm:$0xff]  }
  0x48   : > { %v4053_v59 = vld [vmem:[%s4606_s14 + $0x344] ss:$16 sps:$4 sm:$0xff]   ;;  %v4051_v61 = vld [vmem:[%s4606_s14 + $0x340] ss:$16 sps:$4 sm:$0xff]   ;;  %v4072_v10 = vld [vmem:[%s4606_s14 + $0x3a8] ss:$16 sps:$4 sm:$0xff]  }
  0x49   : > { %2026 = vmatpush1.bf16.msra.mxu0 %v3941_v31  ;;  %2190 = vmatpush1.bf16.msra.mxu1 %v3942_v32  ;;  %v4014_v31 = vld [vmem:[%s4606_s14 + $0x26c] ss:$16 sps:$4 sm:$0xff]   ;;  %v4009_v32 = vld [vmem:[%s4606_s14 + $0x260] ss:$16 sps:$4 sm:$0xff]   ;;  %v4078_v14 = vld [vmem:[%s4606_s14 + $0x3c8] ss:$16 sps:$4 sm:$0xff]  }
  0x4a   : > { %2027 = vmatprep.subr.bf16.mxu0 %v3943_v33  ;;  %2191 = vmatprep.subr.bf16.mxu1 %v3945_v34  ;;  %v4012_v33 = vld [vmem:[%s4606_s14 + $0x268] ss:$16 sps:$4 sm:$0xff]   ;;  %v4017_v34 = vld [vmem:[%s4606_s14 + $0x284] ss:$16 sps:$4 sm:$0xff]   ;;  %v4086_v17 = vld [vmem:[%s4606_s14 + $0x3ec] ss:$16 sps:$4 sm:$0xff]  }
  0x4d   : > { %2028 = vmatpush1.bf16.msra.mxu0 %v3947_v35  ;;  %2192 = vmatpush1.bf16.msra.mxu1 %v3948_v36  ;;  %v4020_v35 = vld [vmem:[%s4606_s14 + $0x28c] ss:$16 sps:$4 sm:$0xff]   ;;  %v4015_v36 = vld [vmem:[%s4606_s14 + $0x280] ss:$16 sps:$4 sm:$0xff]  }
  0x4e   : > { %2029 = vmatprep.subr.bf16.mxu0 %v3949_v40  ;;  %2193 = vmatprep.subr.bf16.mxu1 %v3951_v41  ;;  %v4021_v40 = vld [vmem:[%s4606_s14 + $0x2a0] ss:$16 sps:$4 sm:$0xff]   ;;  %v4024_v41 = vld [vmem:[%s4606_s14 + $0x2a8] ss:$16 sps:$4 sm:$0xff]  }
  0x51   : > { %2030 = vmatpush1.bf16.msra.mxu0 %v3953_v42  ;;  %2194 = vmatpush1.bf16.msra.mxu1 %v3954_v45  ;;  %v4029_v42 = vld [vmem:[%s4606_s14 + $0x2c4] ss:$16 sps:$4 sm:$0xff]   ;;  %v4027_v45 = vld [vmem:[%s4606_s14 + $0x2c0] ss:$16 sps:$4 sm:$0xff]  }
  0x52   : > { %2031 = vmatprep.subr.bf16.mxu0 %v3955_v46  ;;  %2195 = vmatprep.subr.bf16.mxu1 %v3957_v47  ;;  %v4030_v46 = vld [vmem:[%s4606_s14 + $0x2c8] ss:$16 sps:$4 sm:$0xff]   ;;  %v4035_v47 = vld [vmem:[%s4606_s14 + $0x2e4] ss:$16 sps:$4 sm:$0xff]  }
  0x55   : > { %2032 = vmatpush1.bf16.msra.mxu0 %v3959_v48  ;;  %2196 = vmatpush1.bf16.msra.mxu1 %v3960_v49  ;;  %v4038_v48 = vld [vmem:[%s4606_s14 + $0x2ec] ss:$16 sps:$4 sm:$0xff]   ;;  %v4033_v49 = vld [vmem:[%s4606_s14 + $0x2e0] ss:$16 sps:$4 sm:$0xff]  }
  0x56   : > { %2033 = vmatprep.subr.bf16.mxu0 %v3961_v51  ;;  %2197 = vmatprep.subr.bf16.mxu1 %v3963_v52  ;;  %v4041_v51 = vld [vmem:[%s4606_s14 + $0x304] ss:$16 sps:$4 sm:$0xff]   ;;  %v4044_v52 = vld [vmem:[%s4606_s14 + $0x30c] ss:$16 sps:$4 sm:$0xff]  }
  0x59   : > { %2034 = vmatpush1.bf16.msra.mxu0 %v3965_v54  ;;  %2198 = vmatpush1.bf16.msra.mxu1 %v3966_v56  ;;  %v4042_v54 = vld [vmem:[%s4606_s14 + $0x308] ss:$16 sps:$4 sm:$0xff]   ;;  %v4050_v56 = vld [vmem:[%s4606_s14 + $0x32c] ss:$16 sps:$4 sm:$0xff]  }
  0x5a   : > { %2035 = vmatprep.subr.bf16.mxu0 %v3967_v57  ;;  %2199 = vmatprep.subr.bf16.mxu1 %v3969_v58  ;;  %v4045_v57 = vld [vmem:[%s4606_s14 + $0x320] ss:$16 sps:$4 sm:$0xff]   ;;  %v4048_v58 = vld [vmem:[%s4606_s14 + $0x328] ss:$16 sps:$4 sm:$0xff]  }
  0x5d   : > { %2036 = vmatpush1.bf16.msra.mxu0 %v3971_v60  ;;  %2200 = vmatpush1.bf16.msra.mxu1 %v3972_v62  ;;  %v4056_v60 = vld [vmem:[%s4606_s14 + $0x34c] ss:$16 sps:$4 sm:$0xff]   ;;  %v4054_v62 = vld [vmem:[%s4606_s14 + $0x348] ss:$16 sps:$4 sm:$0xff]  }
  0x5e   : > { %2037 = vmatprep.subr.bf16.mxu0 %v3973_v63  ;;  %2201 = vmatprep.subr.bf16.mxu1 %v3975_v0  ;;  %v4059_v63 = vld [vmem:[%s4606_s14 + $0x364] ss:$16 sps:$4 sm:$0xff]   ;;  %v4062_v0 = vld [vmem:[%s4606_s14 + $0x36c] ss:$16 sps:$4 sm:$0xff]  }
  0x61   : > { %2038 = vmatpush1.bf16.msra.mxu0 %v3977_v1  ;;  %2202 = vmatpush1.bf16.msra.mxu1 %v3978_v2  ;;  %v4057_v1 = vld [vmem:[%s4606_s14 + $0x360] ss:$16 sps:$4 sm:$0xff]   ;;  %v4060_v2 = vld [vmem:[%s4606_s14 + $0x368] ss:$16 sps:$4 sm:$0xff]  }
  0x62   : > { %2039 = vmatprep.subr.bf16.mxu0 %v3979_v3  ;;  %2203 = vmatprep.subr.bf16.mxu1 %v3981_v4  ;;  %v4065_v3 = vld [vmem:[%s4606_s14 + $0x384] ss:$16 sps:$4 sm:$0xff]   ;;  %v4068_v4 = vld [vmem:[%s4606_s14 + $0x38c] ss:$16 sps:$4 sm:$0xff]  }
  0x65   : > { %2040 = vmatpush1.bf16.msra.mxu0 %v3983_v5  ;;  %2204 = vmatpush1.bf16.msra.mxu1 %v3984_v6  ;;  %v4063_v5 = vld [vmem:[%s4606_s14 + $0x380] ss:$16 sps:$4 sm:$0xff]   ;;  %v4066_v6 = vld [vmem:[%s4606_s14 + $0x388] ss:$16 sps:$4 sm:$0xff]  }
  0x66   : > { %2041 = vmatprep.subr.bf16.mxu0 %v3985_v7  ;;  %2205 = vmatprep.subr.bf16.mxu1 %v3987_v8  ;;  %v4071_v7 = vld [vmem:[%s4606_s14 + $0x3a4] ss:$16 sps:$4 sm:$0xff]   ;;  %v4074_v8 = vld [vmem:[%s4606_s14 + $0x3ac] ss:$16 sps:$4 sm:$0xff]  }
  0x69   : > { %2042 = vmatpush1.bf16.msra.mxu0 %v3989_v9  ;;  %2206 = vmatpush1.bf16.msra.mxu1 %v3990_v11  ;;  %v4069_v9 = vld [vmem:[%s4606_s14 + $0x3a0] ss:$16 sps:$4 sm:$0xff]   ;;  %v4077_v11 = vld [vmem:[%s4606_s14 + $0x3c4] ss:$16 sps:$4 sm:$0xff]  }
  0x6a   : > { %2052 = vmatprep.subr.bf16.mxu0 %v3993_v12  ;;  %2216 = vmatprep.subr.bf16.mxu1 %v3996_v13  ;;  %v4080_v12 = vld [vmem:[%s4606_s14 + $0x3cc] ss:$16 sps:$4 sm:$0xff]   ;;  %v4075_v13 = vld [vmem:[%s4606_s14 + $0x3c0] ss:$16 sps:$4 sm:$0xff]  }
  0x6c   : > { %2044 = vmatmul.mubr.bf16.vlgmr.msra.gmra.mrb[0].mxu0 %v4691_v16  ;;  %2208 = vmatmul.mubr.bf16.vlgmr.msra.gmra.mrb[0].mxu1 %v4691_v16 }
  0x6d   : > { %2053 = vmatpush1.bf16.msra.mxu0 %v3991_v15  ;;  %2217 = vmatpush1.bf16.msra.mxu1 %v3994_v18  ;;  %v4083_v15 = vld [vmem:[%s4606_s14 + $0x3e4] ss:$16 sps:$4 sm:$0xff]   ;;  %v4081_v18 = vld [vmem:[%s4606_s14 + $0x3e0] ss:$16 sps:$4 sm:$0xff]  }
  0x6e   : > { %2054 = vmatprep.subr.bf16.mxu0 %v3999_v19  ;;  %2218 = vmatprep.subr.bf16.mxu1 %v4002_v20  ;;  %v4084_v19 = vld [vmem:[%s4606_s14 + $0x3e8] ss:$16 sps:$4 sm:$0xff]   ;;  %v4089_v20 = vld [vmem:[%s4606_s14 + $0x404] ss:$16 sps:$4 sm:$0xff]  }
  0x6f   : > { %2084 = vmatprep.mubr.bf16.mxu0 %v721_v23  ;;  %2248 = vmatprep.mubr.bf16.mxu1 %v721_v23  ;;  %v4092_v23 = vld [vmem:[%s4606_s14 + $0x40c] ss:$16 sps:$4 sm:$0xff]  }
  0x71   : > { %2055 = vmatpush1.bf16.msra.mxu0 %v3997_v24  ;;  %2219 = vmatpush1.bf16.msra.mxu1 %v4000_v25  ;;  %v4087_v24 = vld [vmem:[%s4606_s14 + $0x400] ss:$16 sps:$4 sm:$0xff]   ;;  %v719_v25 = vcombine.high %v4691_v16, %v4691_v16  ;;  %v4096_v16 = vld [vmem:[%s4606_s14 + $0x428] ss:$16 sps:$4 sm:$0xff]  }
  0x72   : > { %2056 = vmatprep.subr.bf16.mxu0 %v4005_v26  ;;  %2220 = vmatprep.subr.bf16.mxu1 %v4008_v27  ;;  %v4090_v26 = vld [vmem:[%s4606_s14 + $0x408] ss:$16 sps:$4 sm:$0xff]   ;;  %v4095_v27 = vld [vmem:[%s4606_s14 + $0x424] ss:$16 sps:$4 sm:$0xff]  }
  0x75   : > { %2057 = vmatpush1.bf16.msra.mxu0 %v4003_v28  ;;  %2221 = vmatpush1.bf16.msra.mxu1 %v4006_v29  ;;  %v4098_v28 = vld [vmem:[%s4606_s14 + $0x42c] ss:$16 sps:$4 sm:$0xff]   ;;  %v4093_v29 = vld [vmem:[%s4606_s14 + $0x420] ss:$16 sps:$4 sm:$0xff]  }
  0x76   : > { %2058 = vmatprep.subr.bf16.mxu0 %v4011_v30  ;;  %2222 = vmatprep.subr.bf16.mxu1 %v4014_v31  ;;  %v4101_v30 = vld [vmem:[%s4606_s14 + $0x444] ss:$16 sps:$4 sm:$0xff]   ;;  %v4104_v31 = vld [vmem:[%s4606_s14 + $0x44c] ss:$16 sps:$4 sm:$0xff]  }
  0x79   : > { %2059 = vmatpush1.bf16.msra.mxu0 %v4009_v32  ;;  %2223 = vmatpush1.bf16.msra.mxu1 %v4012_v33  ;;  %v4099_v32 = vld [vmem:[%s4606_s14 + $0x440] ss:$16 sps:$4 sm:$0xff]   ;;  %v4102_v33 = vld [vmem:[%s4606_s14 + $0x448] ss:$16 sps:$4 sm:$0xff]  }
  0x7a   : > { %2060 = vmatprep.subr.bf16.mxu0 %v4017_v34  ;;  %2224 = vmatprep.subr.bf16.mxu1 %v4020_v35  ;;  %v4107_v34 = vld [vmem:[%s4606_s14 + $0x464] ss:$16 sps:$4 sm:$0xff]   ;;  %v4110_v35 = vld [vmem:[%s4606_s14 + $0x46c] ss:$16 sps:$4 sm:$0xff]  }
  0x7d   : > { %2061 = vmatpush1.bf16.msra.mxu0 %v4015_v36  ;;  %2225 = vmatpush1.bf16.msra.mxu1 %v4018_v37  ;;  %v4105_v36 = vld [vmem:[%s4606_s14 + $0x460] ss:$16 sps:$4 sm:$0xff]   ;;  %v4108_v37 = vld [vmem:[%s4606_s14 + $0x468] ss:$16 sps:$4 sm:$0xff]  }
  0x7e   : > { %2062 = vmatprep.subr.bf16.mxu0 %v4023_v38  ;;  %2226 = vmatprep.subr.bf16.mxu1 %v4026_v39  ;;  %v4113_v38 = vld [vmem:[%s4606_s14 + $0x484] ss:$16 sps:$4 sm:$0xff]   ;;  %v4116_v39 = vld [vmem:[%s4606_s14 + $0x48c] ss:$16 sps:$4 sm:$0xff]  }
  0x81   : > { %2063 = vmatpush1.bf16.msra.mxu0 %v4021_v40  ;;  %2227 = vmatpush1.bf16.msra.mxu1 %v4024_v41  ;;  %v4111_v40 = vld [vmem:[%s4606_s14 + $0x480] ss:$16 sps:$4 sm:$0xff]   ;;  %v4114_v41 = vld [vmem:[%s4606_s14 + $0x488] ss:$16 sps:$4 sm:$0xff]  }
  0x82   : > { %2064 = vmatprep.subr.bf16.mxu0 %v4029_v42  ;;  %2228 = vmatprep.subr.bf16.mxu1 %v4032_v43  ;;  %v4119_v42 = vld [vmem:[%s4606_s14 + $0x4a4] ss:$16 sps:$4 sm:$0xff]   ;;  %v4122_v43 = vld [vmem:[%s4606_s14 + $0x4ac] ss:$16 sps:$4 sm:$0xff]  }
  0x85   : > { %2065 = vmatpush1.bf16.msra.mxu0 %v4027_v45  ;;  %2229 = vmatpush1.bf16.msra.mxu1 %v4030_v46  ;;  %v4117_v45 = vld [vmem:[%s4606_s14 + $0x4a0] ss:$16 sps:$4 sm:$0xff]   ;;  %v4120_v46 = vld [vmem:[%s4606_s14 + $0x4a8] ss:$16 sps:$4 sm:$0xff]  }
  0x86   : > { %2066 = vmatprep.subr.bf16.mxu0 %v4035_v47  ;;  %2230 = vmatprep.subr.bf16.mxu1 %v4038_v48  ;;  %v4125_v47 = vld [vmem:[%s4606_s14 + $0x4c4] ss:$16 sps:$4 sm:$0xff]   ;;  %v4128_v48 = vld [vmem:[%s4606_s14 + $0x4cc] ss:$16 sps:$4 sm:$0xff]  }
  0x89   : > { %2067 = vmatpush1.bf16.msra.mxu0 %v4033_v49  ;;  %2231 = vmatpush1.bf16.msra.mxu1 %v4036_v50  ;;  %v4123_v49 = vld [vmem:[%s4606_s14 + $0x4c0] ss:$16 sps:$4 sm:$0xff]   ;;  %v4126_v50 = vld [vmem:[%s4606_s14 + $0x4c8] ss:$16 sps:$4 sm:$0xff]  }
  0x8a   : > { %2068 = vmatprep.subr.bf16.mxu0 %v4041_v51  ;;  %2232 = vmatprep.subr.bf16.mxu1 %v4044_v52  ;;  %v4131_v51 = vld [vmem:[%s4606_s14 + $0x4e4] ss:$16 sps:$4 sm:$0xff]   ;;  %v4134_v52 = vld [vmem:[%s4606_s14 + $0x4ec] ss:$16 sps:$4 sm:$0xff]  }
  0x8d   : > { %2069 = vmatpush1.bf16.msra.mxu0 %v4039_v53  ;;  %2233 = vmatpush1.bf16.msra.mxu1 %v4042_v54  ;;  %v4129_v53 = vld [vmem:[%s4606_s14 + $0x4e0] ss:$16 sps:$4 sm:$0xff]   ;;  %v4132_v54 = vld [vmem:[%s4606_s14 + $0x4e8] ss:$16 sps:$4 sm:$0xff]  }
  0x8e   : > { %2070 = vmatprep.subr.bf16.mxu0 %v4047_v55  ;;  %2234 = vmatprep.subr.bf16.mxu1 %v4050_v56  ;;  %v4137_v55 = vld [vmem:[%s4606_s14 + $0x504] ss:$16 sps:$4 sm:$0xff]   ;;  %v4140_v56 = vld [vmem:[%s4606_s14 + $0x50c] ss:$16 sps:$4 sm:$0xff]  }
  0x91   : > { %2071 = vmatpush1.bf16.msra.mxu0 %v4045_v57  ;;  %2235 = vmatpush1.bf16.msra.mxu1 %v4048_v58  ;;  %v4135_v57 = vld [vmem:[%s4606_s14 + $0x500] ss:$16 sps:$4 sm:$0xff]   ;;  %v4138_v58 = vld [vmem:[%s4606_s14 + $0x508] ss:$16 sps:$4 sm:$0xff]  }
  0x92   : > { %2072 = vmatprep.subr.bf16.mxu0 %v4053_v59  ;;  %2236 = vmatprep.subr.bf16.mxu1 %v4056_v60  ;;  %v4143_v59 = vld [vmem:[%s4606_s14 + $0x524] ss:$16 sps:$4 sm:$0xff]   ;;  %v4146_v60 = vld [vmem:[%s4606_s14 + $0x52c] ss:$16 sps:$4 sm:$0xff]  }
  0x95   : > { %2073 = vmatpush1.bf16.msra.mxu0 %v4051_v61  ;;  %2237 = vmatpush1.bf16.msra.mxu1 %v4054_v62  ;;  %v4141_v61 = vld [vmem:[%s4606_s14 + $0x520] ss:$16 sps:$4 sm:$0xff]   ;;  %v4144_v62 = vld [vmem:[%s4606_s14 + $0x528] ss:$16 sps:$4 sm:$0xff]  }
  0x96   : > { %2074 = vmatprep.subr.bf16.mxu0 %v4059_v63  ;;  %2238 = vmatprep.subr.bf16.mxu1 %v4062_v0  ;;  %v4149_v63 = vld [vmem:[%s4606_s14 + $0x544] ss:$16 sps:$4 sm:$0xff]   ;;  %v4152_v0 = vld [vmem:[%s4606_s14 + $0x54c] ss:$16 sps:$4 sm:$0xff]  }
  0x99   : > { %2075 = vmatpush1.bf16.msra.mxu0 %v4057_v1  ;;  %2239 = vmatpush1.bf16.msra.mxu1 %v4060_v2  ;;  %v4147_v1 = vld [vmem:[%s4606_s14 + $0x540] ss:$16 sps:$4 sm:$0xff]   ;;  %v4150_v2 = vld [vmem:[%s4606_s14 + $0x548] ss:$16 sps:$4 sm:$0xff]  }
  0x9a   : > { %2076 = vmatprep.subr.bf16.mxu0 %v4065_v3  ;;  %2240 = vmatprep.subr.bf16.mxu1 %v4068_v4  ;;  %v4155_v3 = vld [vmem:[%s4606_s14 + $0x564] ss:$16 sps:$4 sm:$0xff]   ;;  %v4158_v4 = vld [vmem:[%s4606_s14 + $0x56c] ss:$16 sps:$4 sm:$0xff]  }
  0x9d   : > { %2077 = vmatpush1.bf16.msra.mxu0 %v4063_v5  ;;  %2241 = vmatpush1.bf16.msra.mxu1 %v4066_v6  ;;  %v4153_v5 = vld [vmem:[%s4606_s14 + $0x560] ss:$16 sps:$4 sm:$0xff]   ;;  %v4156_v6 = vld [vmem:[%s4606_s14 + $0x568] ss:$16 sps:$4 sm:$0xff]  }
  0x9e   : > { %2078 = vmatprep.subr.bf16.mxu0 %v4071_v7  ;;  %2242 = vmatprep.subr.bf16.mxu1 %v4074_v8  ;;  %v4161_v7 = vld [vmem:[%s4606_s14 + $0x584] ss:$16 sps:$4 sm:$0xff]   ;;  %v4164_v8 = vld [vmem:[%s4606_s14 + $0x58c] ss:$16 sps:$4 sm:$0xff]  }
  0xa1   : > { %2079 = vmatpush1.bf16.msra.mxu0 %v4069_v9  ;;  %2243 = vmatpush1.bf16.msra.mxu1 %v4072_v10  ;;  %v4159_v9 = vld [vmem:[%s4606_s14 + $0x580] ss:$16 sps:$4 sm:$0xff]   ;;  %v4162_v10 = vld [vmem:[%s4606_s14 + $0x588] ss:$16 sps:$4 sm:$0xff]  }
  0xa2   : > { %2080 = vmatprep.subr.bf16.mxu0 %v4077_v11  ;;  %2244 = vmatprep.subr.bf16.mxu1 %v4080_v12  ;;  %v4167_v11 = vld [vmem:[%s4606_s14 + $0x5a4] ss:$16 sps:$4 sm:$0xff]   ;;  %v4170_v12 = vld [vmem:[%s4606_s14 + $0x5ac] ss:$16 sps:$4 sm:$0xff]  }
  0xa5   : > { %2081 = vmatpush1.bf16.msra.mxu0 %v4075_v13  ;;  %2245 = vmatpush1.bf16.msra.mxu1 %v4078_v14  ;;  %v4165_v13 = vld [vmem:[%s4606_s14 + $0x5a0] ss:$16 sps:$4 sm:$0xff]   ;;  %v4168_v14 = vld [vmem:[%s4606_s14 + $0x5a8] ss:$16 sps:$4 sm:$0xff]  }
  0xa6   : > { %2082 = vmatprep.subr.bf16.mxu0 %v4083_v15  ;;  %2246 = vmatprep.subr.bf16.mxu1 %v4086_v17  ;;  %v4173_v15 = vld [vmem:[%s4606_s14 + $0x5c4] ss:$16 sps:$4 sm:$0xff]   ;;  %v4176_v17 = vld [vmem:[%s4606_s14 + $0x5cc] ss:$16 sps:$4 sm:$0xff]  }
  0xa9   : > { %2083 = vmatpush1.bf16.msra.mxu0 %v4081_v18  ;;  %2247 = vmatpush1.bf16.msra.mxu1 %v4084_v19  ;;  %v4171_v18 = vld [vmem:[%s4606_s14 + $0x5c0] ss:$16 sps:$4 sm:$0xff]   ;;  %v4174_v19 = vld [vmem:[%s4606_s14 + $0x5c8] ss:$16 sps:$4 sm:$0xff]  }
  0xaa   : > { %2093 = vmatprep.subr.bf16.mxu0 %v4089_v20  ;;  %2257 = vmatprep.subr.bf16.mxu1 %v4092_v23  ;;  %v4179_v20 = vld [vmem:[%s4606_s14 + $0x5e4] ss:$16 sps:$4 sm:$0xff]   ;;  %v4182_v23 = vld [vmem:[%s4606_s14 + $0x5ec] ss:$16 sps:$4 sm:$0xff]  }
  0xac   : > { %2085 = vmatmul.mubr.bf16.vlgmr.msra.gmra.mrb[0].mxu0 %v719_v25  ;;  %2249 = vmatmul.mubr.bf16.vlgmr.msra.gmra.mrb[0].mxu1 %v719_v25  ;;  %v4180_v25 = vld [vmem:[%s4606_s14 + $0x5e8] ss:$16 sps:$4 sm:$0xff]  }
  0xad   : > { %2094 = vmatpush1.bf16.msra.mxu0 %v4087_v24  ;;  %2258 = vmatpush1.bf16.msra.mxu1 %v4090_v26  ;;  %v4177_v24 = vld [vmem:[%s4606_s14 + $0x5e0] ss:$16 sps:$4 sm:$0xff]   ;;  %v4186_v26 = vld [vmem:[%s4606_s14 + $0x604] ss:$16 sps:$4 sm:$0xff]  }
  0xae   : > { %2095 = vmatprep.subr.bf16.mxu0 %v4095_v27  ;;  %2259 = vmatprep.subr.bf16.mxu1 %v4098_v28  ;;  %v4189_v27 = vld [vmem:[%s4606_s14 + $0x60c] ss:$16 sps:$4 sm:$0xff]   ;;  %v4184_v28 = vld [vmem:[%s4606_s14 + $0x600] ss:$16 sps:$4 sm:$0xff]  }
  0xaf   : > { %2125 = vmatprep.mubr.bf16.mxu0 %v4697_v21  ;;  %2289 = vmatprep.mubr.bf16.mxu1 %v4697_v21 }
  0xb1   : > { %2096 = vmatpush1.bf16.msra.mxu0 %v4093_v29  ;;  %2260 = vmatpush1.bf16.msra.mxu1 %v4096_v16  ;;  %v4187_v29 = vld [vmem:[%s4606_s14 + $0x608] ss:$16 sps:$4 sm:$0xff]   ;;  %v4192_v16 = vld [vmem:[%s4606_s14 + $0x624] ss:$16 sps:$4 sm:$0xff]  }
  0xb2   : > { %2097 = vmatprep.subr.bf16.mxu0 %v4101_v30  ;;  %2261 = vmatprep.subr.bf16.mxu1 %v4104_v31  ;;  %v4195_v30 = vld [vmem:[%s4606_s14 + $0x62c] ss:$16 sps:$4 sm:$0xff]   ;;  %v722_v31 = vcombine.high %v4697_v21, %v4697_v21  ;;  %v4196_v21 = vld [vmem:[%s4606_s14 + $0x640] ss:$16 sps:$4 sm:$0xff]  }
  0xb5   : > { %2098 = vmatpush1.bf16.msra.mxu0 %v4099_v32  ;;  %2262 = vmatpush1.bf16.msra.mxu1 %v4102_v33  ;;  %v4190_v32 = vld [vmem:[%s4606_s14 + $0x620] ss:$16 sps:$4 sm:$0xff]   ;;  %v4193_v33 = vld [vmem:[%s4606_s14 + $0x628] ss:$16 sps:$4 sm:$0xff]  }
  0xb6   : > { %2099 = vmatprep.subr.bf16.mxu0 %v4107_v34  ;;  %2263 = vmatprep.subr.bf16.mxu1 %v4110_v35  ;;  %v4198_v34 = vld [vmem:[%s4606_s14 + $0x644] ss:$16 sps:$4 sm:$0xff]   ;;  %v4201_v35 = vld [vmem:[%s4606_s14 + $0x64c] ss:$16 sps:$4 sm:$0xff]  }
  0xb9   : > { %2100 = vmatpush1.bf16.msra.mxu0 %v4105_v36  ;;  %2264 = vmatpush1.bf16.msra.mxu1 %v4108_v37  ;;  %v4199_v36 = vld [vmem:[%s4606_s14 + $0x648] ss:$16 sps:$4 sm:$0xff]   ;;  %v4204_v37 = vld [vmem:[%s4606_s14 + $0x664] ss:$16 sps:$4 sm:$0xff]  }
  0xba   : > { %2101 = vmatprep.subr.bf16.mxu0 %v4113_v38  ;;  %2265 = vmatprep.subr.bf16.mxu1 %v4116_v39  ;;  %v4207_v38 = vld [vmem:[%s4606_s14 + $0x66c] ss:$16 sps:$4 sm:$0xff]   ;;  %v4202_v39 = vld [vmem:[%s4606_s14 + $0x660] ss:$16 sps:$4 sm:$0xff]  }
  0xbd   : > { %2102 = vmatpush1.bf16.msra.mxu0 %v4111_v40  ;;  %2266 = vmatpush1.bf16.msra.mxu1 %v4114_v41  ;;  %v4205_v40 = vld [vmem:[%s4606_s14 + $0x668] ss:$16 sps:$4 sm:$0xff]   ;;  %v4210_v41 = vld [vmem:[%s4606_s14 + $0x684] ss:$16 sps:$4 sm:$0xff]  }
  0xbe   : > { %2103 = vmatprep.subr.bf16.mxu0 %v4119_v42  ;;  %2267 = vmatprep.subr.bf16.mxu1 %v4122_v43  ;;  %v4213_v42 = vld [vmem:[%s4606_s14 + $0x68c] ss:$16 sps:$4 sm:$0xff]   ;;  %v4208_v43 = vld [vmem:[%s4606_s14 + $0x680] ss:$16 sps:$4 sm:$0xff]  }
  0xc1   : > { %2104 = vmatpush1.bf16.msra.mxu0 %v4117_v45  ;;  %2268 = vmatpush1.bf16.msra.mxu1 %v4120_v46  ;;  %v4211_v45 = vld [vmem:[%s4606_s14 + $0x688] ss:$16 sps:$4 sm:$0xff]   ;;  %v4216_v46 = vld [vmem:[%s4606_s14 + $0x6a4] ss:$16 sps:$4 sm:$0xff]  }
  0xc2   : > { %2105 = vmatprep.subr.bf16.mxu0 %v4125_v47  ;;  %2269 = vmatprep.subr.bf16.mxu1 %v4128_v48  ;;  %v4219_v47 = vld [vmem:[%s4606_s14 + $0x6ac] ss:$16 sps:$4 sm:$0xff]   ;;  %v4214_v48 = vld [vmem:[%s4606_s14 + $0x6a0] ss:$16 sps:$4 sm:$0xff]  }
  0xc5   : > { %2106 = vmatpush1.bf16.msra.mxu0 %v4123_v49  ;;  %2270 = vmatpush1.bf16.msra.mxu1 %v4126_v50  ;;  %v4217_v49 = vld [vmem:[%s4606_s14 + $0x6a8] ss:$16 sps:$4 sm:$0xff]   ;;  %v4222_v50 = vld [vmem:[%s4606_s14 + $0x6c4] ss:$16 sps:$4 sm:$0xff]  }
  0xc6   : > { %2107 = vmatprep.subr.bf16.mxu0 %v4131_v51  ;;  %2271 = vmatprep.subr.bf16.mxu1 %v4134_v52  ;;  %v4225_v51 = vld [vmem:[%s4606_s14 + $0x6cc] ss:$16 sps:$4 sm:$0xff]   ;;  %v4220_v52 = vld [vmem:[%s4606_s14 + $0x6c0] ss:$16 sps:$4 sm:$0xff]  }
  0xc9   : > { %2108 = vmatpush1.bf16.msra.mxu0 %v4129_v53  ;;  %2272 = vmatpush1.bf16.msra.mxu1 %v4132_v54  ;;  %v4223_v53 = vld [vmem:[%s4606_s14 + $0x6c8] ss:$16 sps:$4 sm:$0xff]   ;;  %v4228_v54 = vld [vmem:[%s4606_s14 + $0x6e4] ss:$16 sps:$4 sm:$0xff]  }
  0xca   : > { %2109 = vmatprep.subr.bf16.mxu0 %v4137_v55  ;;  %2273 = vmatprep.subr.bf16.mxu1 %v4140_v56  ;;  %v4231_v55 = vld [vmem:[%s4606_s14 + $0x6ec] ss:$16 sps:$4 sm:$0xff]   ;;  %v4226_v56 = vld [vmem:[%s4606_s14 + $0x6e0] ss:$16 sps:$4 sm:$0xff]  }
  0xcd   : > { %2110 = vmatpush1.bf16.msra.mxu0 %v4135_v57  ;;  %2274 = vmatpush1.bf16.msra.mxu1 %v4138_v58  ;;  %v4229_v57 = vld [vmem:[%s4606_s14 + $0x6e8] ss:$16 sps:$4 sm:$0xff]   ;;  %v4234_v58 = vld [vmem:[%s4606_s14 + $0x704] ss:$16 sps:$4 sm:$0xff]  }
  0xce   : > { %2111 = vmatprep.subr.bf16.mxu0 %v4143_v59  ;;  %2275 = vmatprep.subr.bf16.mxu1 %v4146_v60  ;;  %v4237_v59 = vld [vmem:[%s4606_s14 + $0x70c] ss:$16 sps:$4 sm:$0xff]   ;;  %v4232_v60 = vld [vmem:[%s4606_s14 + $0x700] ss:$16 sps:$4 sm:$0xff]  }
  0xd1   : > { %2112 = vmatpush1.bf16.msra.mxu0 %v4141_v61  ;;  %2276 = vmatpush1.bf16.msra.mxu1 %v4144_v62  ;;  %v4235_v61 = vld [vmem:[%s4606_s14 + $0x708] ss:$16 sps:$4 sm:$0xff]   ;;  %v4240_v62 = vld [vmem:[%s4606_s14 + $0x724] ss:$16 sps:$4 sm:$0xff]  }
  0xd2   : > { %2113 = vmatprep.subr.bf16.mxu0 %v4149_v63  ;;  %2277 = vmatprep.subr.bf16.mxu1 %v4152_v0  ;;  %v4243_v63 = vld [vmem:[%s4606_s14 + $0x72c] ss:$16 sps:$4 sm:$0xff]   ;;  %v4238_v0 = vld [vmem:[%s4606_s14 + $0x720] ss:$16 sps:$4 sm:$0xff]  }
  0xd5   : > { %2114 = vmatpush1.bf16.msra.mxu0 %v4147_v1  ;;  %2278 = vmatpush1.bf16.msra.mxu1 %v4150_v2  ;;  %v4241_v1 = vld [vmem:[%s4606_s14 + $0x728] ss:$16 sps:$4 sm:$0xff]   ;;  %v4246_v2 = vld [vmem:[%s4606_s14 + $0x744] ss:$16 sps:$4 sm:$0xff]  }
  0xd6   : > { %2115 = vmatprep.subr.bf16.mxu0 %v4155_v3  ;;  %2279 = vmatprep.subr.bf16.mxu1 %v4158_v4  ;;  %v4249_v3 = vld [vmem:[%s4606_s14 + $0x74c] ss:$16 sps:$4 sm:$0xff]   ;;  %v4244_v4 = vld [vmem:[%s4606_s14 + $0x740] ss:$16 sps:$4 sm:$0xff]  }
  0xd9   : > { %2116 = vmatpush1.bf16.msra.mxu0 %v4153_v5  ;;  %2280 = vmatpush1.bf16.msra.mxu1 %v4156_v6  ;;  %v4247_v5 = vld [vmem:[%s4606_s14 + $0x748] ss:$16 sps:$4 sm:$0xff]   ;;  %v4252_v6 = vld [vmem:[%s4606_s14 + $0x764] ss:$16 sps:$4 sm:$0xff]  }
  0xda   : > { %2117 = vmatprep.subr.bf16.mxu0 %v4161_v7  ;;  %2281 = vmatprep.subr.bf16.mxu1 %v4164_v8  ;;  %v4255_v7 = vld [vmem:[%s4606_s14 + $0x76c] ss:$16 sps:$4 sm:$0xff]   ;;  %v4250_v8 = vld [vmem:[%s4606_s14 + $0x760] ss:$16 sps:$4 sm:$0xff]  }
  0xdd   : > { %2118 = vmatpush1.bf16.msra.mxu0 %v4159_v9  ;;  %2282 = vmatpush1.bf16.msra.mxu1 %v4162_v10  ;;  %v4253_v9 = vld [vmem:[%s4606_s14 + $0x768] ss:$16 sps:$4 sm:$0xff]   ;;  %v4258_v10 = vld [vmem:[%s4606_s14 + $0x784] ss:$16 sps:$4 sm:$0xff]  }
  0xde   : > { %2119 = vmatprep.subr.bf16.mxu0 %v4167_v11  ;;  %2283 = vmatprep.subr.bf16.mxu1 %v4170_v12  ;;  %v4261_v11 = vld [vmem:[%s4606_s14 + $0x78c] ss:$16 sps:$4 sm:$0xff]   ;;  %v4256_v12 = vld [vmem:[%s4606_s14 + $0x780] ss:$16 sps:$4 sm:$0xff]  }
  0xe1   : > { %2120 = vmatpush1.bf16.msra.mxu0 %v4165_v13  ;;  %2284 = vmatpush1.bf16.msra.mxu1 %v4168_v14  ;;  %v4259_v13 = vld [vmem:[%s4606_s14 + $0x788] ss:$16 sps:$4 sm:$0xff]   ;;  %v4264_v14 = vld [vmem:[%s4606_s14 + $0x7a4] ss:$16 sps:$4 sm:$0xff]  }
  0xe2   : > { %2121 = vmatprep.subr.bf16.mxu0 %v4173_v15  ;;  %2285 = vmatprep.subr.bf16.mxu1 %v4176_v17  ;;  %v4267_v15 = vld [vmem:[%s4606_s14 + $0x7ac] ss:$16 sps:$4 sm:$0xff]   ;;  %v4262_v17 = vld [vmem:[%s4606_s14 + $0x7a0] ss:$16 sps:$4 sm:$0xff]  }
  0xe5   : > { %2122 = vmatpush1.bf16.msra.mxu0 %v4171_v18  ;;  %2286 = vmatpush1.bf16.msra.mxu1 %v4174_v19  ;;  %v4265_v18 = vld [vmem:[%s4606_s14 + $0x7a8] ss:$16 sps:$4 sm:$0xff]   ;;  %v4270_v19 = vld [vmem:[%s4606_s14 + $0x7c4] ss:$16 sps:$4 sm:$0xff]  }
  0xe6   : > { %2123 = vmatprep.subr.bf16.mxu0 %v4179_v20  ;;  %2287 = vmatprep.subr.bf16.mxu1 %v4182_v23  ;;  %v4273_v20 = vld [vmem:[%s4606_s14 + $0x7cc] ss:$16 sps:$4 sm:$0xff]   ;;  %v4268_v23 = vld [vmem:[%s4606_s14 + $0x7c0] ss:$16 sps:$4 sm:$0xff]  }
  0xe9   : > { %2124 = vmatpush1.bf16.msra.mxu0 %v4177_v24  ;;  %2288 = vmatpush1.bf16.msra.mxu1 %v4180_v25  ;;  %v4271_v24 = vld [vmem:[%s4606_s14 + $0x7c8] ss:$16 sps:$4 sm:$0xff]   ;;  %v4276_v25 = vld [vmem:[%s4606_s14 + $0x7e4] ss:$16 sps:$4 sm:$0xff]  }
  0xea   : > { %2134 = vmatprep.subr.bf16.mxu0 %v4186_v26  ;;  %2298 = vmatprep.subr.bf16.mxu1 %v4189_v27  ;;  %v4279_v26 = vld [vmem:[%s4606_s14 + $0x7ec] ss:$16 sps:$4 sm:$0xff]   ;;  %v4274_v27 = vld [vmem:[%s4606_s14 + $0x7e0] ss:$16 sps:$4 sm:$0xff]  }
  0xec   : > { %2126 = vmatmul.mubr.bf16.vlgmr.msra.gmra.mrb[0].mxu0 %v4700_v22  ;;  %2290 = vmatmul.mubr.bf16.vlgmr.msra.gmra.mrb[0].mxu1 %v4700_v22 }
  0xed   : > { %2135 = vmatpush1.bf16.msra.mxu0 %v4184_v28  ;;  %2299 = vmatpush1.bf16.msra.mxu1 %v4187_v29  ;;  %v4277_v28 = vld [vmem:[%s4606_s14 + $0x7e8] ss:$16 sps:$4 sm:$0xff]   ;;  %v720_v29 = vcombine.high %v4700_v22, %v4700_v22 }
  0xee   : > { %2136 = vmatprep.subr.bf16.mxu0 %v4192_v16  ;;  %2300 = vmatprep.subr.bf16.mxu1 %v4195_v30 }
  0xef   : > { %2166 = vmatprep.mubr.bf16.mxu0 %v722_v31  ;;  %2330 = vmatprep.mubr.bf16.mxu1 %v722_v31 }
  0xf1   : > { %2137 = vmatpush1.bf16.msra.mxu0 %v4190_v32  ;;  %2301 = vmatpush1.bf16.msra.mxu1 %v4193_v33 }
  0xf2   : > { %2138 = vmatprep.subr.bf16.mxu0 %v4198_v34  ;;  %2302 = vmatprep.subr.bf16.mxu1 %v4201_v35 }
  0xf5   : > { %2139 = vmatpush1.bf16.msra.mxu0 %v4196_v21  ;;  %2303 = vmatpush1.bf16.msra.mxu1 %v4199_v36  ;;  %v4502_v36 = vmov (!%p3676_p3), 1983009808  }
  0xf6   : > { %2140 = vmatprep.subr.bf16.mxu0 %v4204_v37  ;;  %2304 = vmatprep.subr.bf16.mxu1 %v4207_v38  ;;  %v2351_v37 = vunpack.c.l.s4 (!%p3676_p3), %v4502_v36 }
  0xf8   : > { %v2352_v22 = vunpack.c.0.s8 (!%p3676_p3), %v2351_v37 }
  0xf9   : > { %2141 = vmatpush1.bf16.msra.mxu0 %v4202_v39  ;;  %2305 = vmatpush1.bf16.msra.mxu1 %v4205_v40 }
  0xfa   : > { %2142 = vmatprep.subr.bf16.mxu0 %v4210_v41  ;;  %2306 = vmatprep.subr.bf16.mxu1 %v4213_v42  ;;  %v2355_v40 = vsub.s32 (!%p3676_p3), %v2352_v22, %v4649_v44 }
  0xfd   : > { %2143 = vmatpush1.bf16.msra.mxu0 %v4208_v43  ;;  %2307 = vmatpush1.bf16.msra.mxu1 %v4211_v45  ;;  %v2343_v43 = vld [vmem:[#allocation2] sm:$0xff] (!%p3676_p3) }
  0xfe   : > { %2144 = vmatprep.subr.bf16.mxu0 %v4216_v46  ;;  %2308 = vmatprep.subr.bf16.mxu1 %v4219_v47 }
 0x101   : > { %2145 = vmatpush1.bf16.msra.mxu0 %v4214_v48  ;;  %2309 = vmatpush1.bf16.msra.mxu1 %v4217_v49 }
 0x102   : > { %2146 = vmatprep.subr.bf16.mxu0 %v4222_v50  ;;  %2310 = vmatprep.subr.bf16.mxu1 %v4225_v51 }
 0x105   : > { %2147 = vmatpush1.bf16.msra.mxu0 %v4220_v52  ;;  %2311 = vmatpush1.bf16.msra.mxu1 %v4223_v53 }
 0x106   : > { %2148 = vmatprep.subr.bf16.mxu0 %v4228_v54  ;;  %2312 = vmatprep.subr.bf16.mxu1 %v4231_v55 }
 0x109   : > { %2149 = vmatpush1.bf16.msra.mxu0 %v4226_v56  ;;  %2313 = vmatpush1.bf16.msra.mxu1 %v4229_v57 }
 0x10a   : > { %2150 = vmatprep.subr.bf16.mxu0 %v4234_v58  ;;  %2314 = vmatprep.subr.bf16.mxu1 %v4237_v59 }
 0x10d   : > { %2151 = vmatpush1.bf16.msra.mxu0 %v4232_v60  ;;  %2315 = vmatpush1.bf16.msra.mxu1 %v4235_v61 }
 0x10e   : > { %2152 = vmatprep.subr.bf16.mxu0 %v4240_v62  ;;  %2316 = vmatprep.subr.bf16.mxu1 %v4243_v63 }
 0x111   : > { %2153 = vmatpush1.bf16.msra.mxu0 %v4238_v0  ;;  %2317 = vmatpush1.bf16.msra.mxu1 %v4241_v1 }
 0x112   : > { %2154 = vmatprep.subr.bf16.mxu0 %v4246_v2  ;;  %2318 = vmatprep.subr.bf16.mxu1 %v4249_v3 }
 0x115   : > { %2155 = vmatpush1.bf16.msra.mxu0 %v4244_v4  ;;  %2319 = vmatpush1.bf16.msra.mxu1 %v4247_v5 }
 0x116   : > { %2156 = vmatprep.subr.bf16.mxu0 %v4252_v6  ;;  %2320 = vmatprep.subr.bf16.mxu1 %v4255_v7 }
 0x119   : > { %2157 = vmatpush1.bf16.msra.mxu0 %v4250_v8  ;;  %2321 = vmatpush1.bf16.msra.mxu1 %v4253_v9 }
 0x11a   : > { %2158 = vmatprep.subr.bf16.mxu0 %v4258_v10  ;;  %2322 = vmatprep.subr.bf16.mxu1 %v4261_v11 }
 0x11d   : > { %2159 = vmatpush1.bf16.msra.mxu0 %v4256_v12  ;;  %2323 = vmatpush1.bf16.msra.mxu1 %v4259_v13 }
 0x11e   : > { %2160 = vmatprep.subr.bf16.mxu0 %v4264_v14  ;;  %2324 = vmatprep.subr.bf16.mxu1 %v4267_v15 }
 0x121   : > { %2161 = vmatpush1.bf16.msra.mxu0 %v4262_v17  ;;  %2325 = vmatpush1.bf16.msra.mxu1 %v4265_v18 }
 0x122   : > { %2162 = vmatprep.subr.bf16.mxu0 %v4270_v19  ;;  %2326 = vmatprep.subr.bf16.mxu1 %v4273_v20 }
 0x125   : > { %2163 = vmatpush1.bf16.msra.mxu0 %v4268_v23  ;;  %2327 = vmatpush1.bf16.msra.mxu1 %v4271_v24 }
 0x126   : > { %2164 = vmatprep.subr.bf16.mxu0 %v4276_v25  ;;  %2328 = vmatprep.subr.bf16.mxu1 %v4279_v26 }
 0x129   : > { %2165 = vmatpush1.bf16.msra.mxu0 %v4274_v27  ;;  %2329 = vmatpush1.bf16.msra.mxu1 %v4277_v28 }
 0x12c   : > { %2167 = vmatmul.mubr.bf16.vlgmr.msra.gmra.mrb[0].mxu0 %v720_v29  ;;  %2331 = vmatmul.mubr.bf16.vlgmr.msra.gmra.mrb[0].mxu1 %v720_v29 }
 0x1fc   : > { %2342 = sbr.rel (%p3676_p3) target bundleno = 522 (0x20a), region = 72 }
 0x1ff   : > { %v2168_v16 = vpop.f32.mrb[0].mxu0  ;;  %v2332_v30 = vpop.f32.mrb[0].mxu1 }
 0x200   : > { %v2170_v31 = vpop.f32.mrb[1].mxu0  ;;  %v2334_v32 = vpop.f32.mrb[1].mxu1 }
 0x201   : > { %v2172_v33 = vpop.f32.mrb[2].mxu0  ;;  %v2336_v34 = vpop.f32.mrb[2].mxu1  ;;  %v2348_v38 = vcombine.low (!%p3676_p3), %v2168_v16, %v2170_v31  ;;  %v2349_v39 = vcombine.low (!%p3676_p3), %v2332_v30, %v2334_v32 }
 0x202   : > { %v2173_v35 = vpop.f32.mrb[3].mxu0  ;;  %v2337_v21 = vpop.f32.mrb[3].mxu1 }
 0x203   : > { %v2356_v41 = vrot.slane %v2348_v38, %v2355_v40  ;;  %v2363_v42 = vrot.slane %v2349_v39, %v2355_v40 }
 0x205   : > { %v2364_v45 = vcombine.low %v2356_v41, %v2363_v42 }
 0x207   : > { %v2366_v46 = vadd.f32 %v2364_v45, %v2343_v43 }
 0x209   : > { %2367 = vst [vmem:[#allocation2] sm:$0xff] %v2366_v46 }
 0x20a PF: > { %p3677_p4 = scmp.ne.s32.totalorder %s4572_s18, 1 }
 0x20b   : > { %v4280_v47 = vld [vmem:[%s5282_s4 + $0x4] ss:$8 sps:$4 sm:$0xff] (!%p3677_p4)   ;;  %v4282_v48 = vld [vmem:[%s5282_s4] ss:$8 sps:$4 sm:$0xff] (!%p3677_p4)   ;;  %v4283_v49 = vld [vmem:[%s5282_s4 + $0x14] ss:$8 sps:$4 sm:$0xff] (!%p3677_p4)   ;;  %v2379_v60 = vcombine.low (!%p3677_p4), %v2168_v16, %v2170_v31  ;;  %v2380_v61 = vcombine.low (!%p3677_p4), %v2332_v30, %v2334_v32 }
 0x20c   : > { %2371 = sbr.rel (%p3677_p4) target bundleno = 1266 (0x4f2), region = 76  ;;  %2861 = vmatprep.subr.bf16.mxu0 (!%p3677_p4), %v4280_v47  ;;  %v4285_v50 = vld [vmem:[%s5282_s4 + $0x10] ss:$8 sps:$4 sm:$0xff] (!%p3677_p4)   ;;  %v4286_v51 = vld [vmem:[%s5282_s4 + $0x24] ss:$8 sps:$4 sm:$0xff] (!%p3677_p4)   ;;  %v2402_v0 = vsub.s32 (!%p3677_p4), 0, %v4649_v44 }
 0x20d   : > { %2862 = vmatpush1.bf16.msra.mxu0 (!%p3677_p4), %v4282_v48  ;;  %v4288_v52 = vld [vmem:[%s5282_s4 + $0x20] ss:$8 sps:$4 sm:$0xff] (!%p3677_p4)   ;;  %v4503_v53 = vmov (!%p3677_p4), 1983009808   ;;  %v4289_v55 = vld [vmem:[%s5282_s4 + $0x34] ss:$8 sps:$4 sm:$0xff] (!%p3677_p4)  }
 0x20e   : > { %2863 = vmatprep.subr.bf16.mxu0 (!%p3677_p4), %v4283_v49  ;;  %v2382_v54 = vunpack.c.l.s4 (!%p3677_p4), %v4503_v53  ;;  %v4291_v56 = vld [vmem:[%s5282_s4 + $0x30] ss:$8 sps:$4 sm:$0xff] (!%p3677_p4)   ;;  %v4292_v58 = vld [vmem:[%s5282_s4 + $0x44] ss:$8 sps:$4 sm:$0xff] (!%p3677_p4)   ;;  %v4294_v59 = vld [vmem:[%s5282_s4 + $0x40] ss:$8 sps:$4 sm:$0xff] (!%p3677_p4)  }
 0x20f   : > { %v4295_v63 = vld [vmem:[%s5282_s4 + $0x54] ss:$8 sps:$4 sm:$0xff] (!%p3677_p4)   ;;  %v2406_v1 = vsub.s32 (!%p3677_p4), 1, %v4649_v44  ;;  %v2410_v2 = vsub.s32 (!%p3677_p4), 2, %v4649_v44  ;;  %v4297_v3 = vld [vmem:[%s5282_s4 + $0x50] ss:$8 sps:$4 sm:$0xff] (!%p3677_p4)  }
 0x210   : > { %v2383_v57 = vunpack.c.0.s8 (!%p3677_p4), %v2382_v54  ;;  %v2414_v6 = vsub.s32 (!%p3677_p4), 3, %v4649_v44  ;;  %v4298_v7 = vld [vmem:[%s5282_s4 + $0x64] ss:$8 sps:$4 sm:$0xff] (!%p3677_p4)   ;;  %v2398_v8 = vld [vmem:[%s5281_s3] sm:$0xf] (!%p3677_p4)  ;;  %s2372_s30 = sld [smem:[#allocation3]] (!%p3677_p4) }
 0x211   : > { %2864 = vmatpush1.bf16.msra.mxu0 (!%p3677_p4), %v4285_v50  ;;  %v2403_v9 = vrot.slane (!%p3677_p4), %v2398_v8, %v2402_v0  ;;  %v2407_v10 = vrot.slane (!%p3677_p4), %v2398_v8, %v2406_v1  ;;  %v2411_v11 = vrot.slane (!%p3677_p4), %v2398_v8, %v2410_v2  ;;  %v4300_v12 = vld [vmem:[%s5282_s4 + $0x60] ss:$8 sps:$4 sm:$0xff] (!%p3677_p4)   ;;  %v4301_v15 = vld [vmem:[%s5282_s4 + $0x74] ss:$8 sps:$4 sm:$0xff] (!%p3677_p4)   ;;  %v4303_v23 = vld [vmem:[%s5282_s4 + $0x70] ss:$8 sps:$4 sm:$0xff] (!%p3677_p4)  }
 0x212   : > { %2865 = vmatprep.subr.bf16.mxu0 (!%p3677_p4), %v4286_v51  ;;  %v4934_v62 = vsub.s32 (!%p3677_p4), %v2383_v57, %v4649_v44  ;;  %v2415_v14 = vrot.slane (!%p3677_p4), %v2398_v8, %v2414_v6  ;;  %v2374_v17 = vld [vmem:[#allocation2] sm:$0xff] (!%p3677_p4)  ;;  %v4307_v30 = vld [vmem:[%s5282_s4 + $0x94] ss:$8 sps:$4 sm:$0xff] (!%p3677_p4)   ;;  %v4309_v32 = vld [vmem:[%s5282_s4 + $0x90] ss:$8 sps:$4 sm:$0xff] (!%p3677_p4)   ;;  %s3678_s12 = sld [smem:[#allocation3 + $0x1]] (!%p3677_p4) }
 0x213   : > { %v2416_v18 = vcombine.low %v2403_v9, %v2407_v10  ;;  %v4304_v26 = vld [vmem:[%s5282_s4 + $0x84] ss:$8 sps:$4 sm:$0xff]   ;;  %v4306_v29 = vld [vmem:[%s5282_s4 + $0x80] ss:$8 sps:$4 sm:$0xff]   ;;  %v4313_v37 = vld [vmem:[%s5282_s4 + $0xb4] ss:$8 sps:$4 sm:$0xff]  }
 0x214   : > { %v2387_v4 = vrot.slane %v2379_v60, %v4934_v62  ;;  %v2394_v5 = vrot.slane %v2380_v61, %v4934_v62  ;;  %v2417_v19 = vcombine.low %v2411_v11, %v2415_v14  ;;  %v4310_v34 = vld [vmem:[%s5282_s4 + $0xa4] ss:$8 sps:$4 sm:$0xff]   ;;  %v4312_v36 = vld [vmem:[%s5282_s4 + $0xa0] ss:$8 sps:$4 sm:$0xff]   ;;  %v4315_v39 = vld [vmem:[%s5282_s4 + $0xb0] ss:$8 sps:$4 sm:$0xff]  }
 0x215   : > { %2866 = vmatpush1.bf16.msra.mxu0 %v4288_v52  ;;  %v2424_v20 = vrot.slane %v2416_v18, %v4934_v62  ;;  %v4316_v22 = vld [vmem:[%s5282_s4 + $0xc4] ss:$8 sps:$4 sm:$0xff]   ;;  %v4318_v41 = vld [vmem:[%s5282_s4 + $0xc0] ss:$8 sps:$4 sm:$0xff]   ;;  %v4319_v43 = vld [vmem:[%s5282_s4 + $0xd4] ss:$8 sps:$4 sm:$0xff]  }
 0x216   : > { %2867 = vmatprep.subr.bf16.mxu0 %v4289_v55  ;;  %v2395_v13 = vcombine.low %v2387_v4, %v2394_v5  ;;  %v2431_v25 = vrot.slane %v2417_v19, %v4934_v62  ;;  %v2436_v28 = vstv %s2372_s30  ;;  %v4376_v40 = vld [vmem:[%s5284_s6 + $0x40] sm:$0xff]   ;;  %v4378_v45 = vld [vmem:[%s5284_s6 + $0x48] sm:$0xff]   ;;  %v4380_v47 = vld [vmem:[%s5284_s6 + $0x50] sm:$0xff]   ;;  %vm3303_vm3 = vcmask 1041408  }
 0x217   : > { %v4377_v42 = vld [vmem:[%s5284_s6] sm:$0xff]   ;;  %3784 = vmatprep.subr.bf16.mxu1 %v4376_v40  ;;  %v4379_v46 = vld [vmem:[%s5284_s6 + $0x8] sm:$0xff]   ;;  %v4321_v48 = vld [vmem:[%s5282_s4 + $0xd0] ss:$8 sps:$4 sm:$0xff]   ;;  %vm3318_vm4 = vcmask 123904  }
 0x218   : > { %v2397_v24 = vadd.f32 %v2395_v13, %v2374_v17  ;;  %v2432_v27 = vcombine.low %v2424_v20, %v2431_v25  ;;  %3785 = vmatpush3.bf16.msra.mxu1 %v4377_v42  ;;  %v4322_v49 = vld [vmem:[%s5282_s4 + $0xe4] ss:$8 sps:$4 sm:$0xff]   ;;  %v4381_v51 = vld [vmem:[%s5284_s6 + $0x10] sm:$0xff]   ;;  %v4382_v52 = vld [vmem:[%s5284_s6 + $0x58] sm:$0xff]  }
 0x219   : > { %2868 = vmatpush1.bf16.msra.mxu0 %v4291_v56  ;;  %3786 = vmatprep.subr.bf16.mxu1 %v4378_v45  ;;  %v4324_v53 = vld [vmem:[%s5282_s4 + $0xe0] ss:$8 sps:$4 sm:$0xff]   ;;  %v4325_v54 = vld [vmem:[%s5282_s4 + $0xf4] ss:$8 sps:$4 sm:$0xff]   ;;  %v4330_v60 = vld [vmem:[%s5282_s4 + $0x104] ss:$8 sps:$4 sm:$0xff]  }
 0x21a   : > { %2869 = vmatprep.subr.bf16.mxu0 %v4292_v58  ;;  %v2434_v16 = vadd.f32 %v2432_v27, %v2397_v24  ;;  %v4383_v56 = vld [vmem:[%s5284_s6 + $0x18] sm:$0xff]   ;;  %v4384_v57 = vld [vmem:[%s5284_s6 + $0x60] sm:$0xff]   ;;  %v4386_v61 = vld [vmem:[%s5284_s6 + $0x68] sm:$0xff]  }
 0x21b   : > { %v4327_v58 = vld [vmem:[%s5282_s4 + $0xf0] ss:$8 sps:$4 sm:$0xff]   ;;  %v4387_v4 = vld [vmem:[%s5284_s6 + $0x28] sm:$0xff]   ;;  %v4339_v9 = vld [vmem:[%s5282_s4 + $0x134] ss:$8 sps:$4 sm:$0xff]  }
 0x21c   : > { %vm2435_vm0 = vcmp.gt.f32.partialorder %v2434_v16, 0.0  ;;  %v2437_v31 = vmul.f32 %v2436_v28, %v2434_v16  ;;  %3787 = vmatpush3.bf16.msra.mxu1 %v4379_v46  ;;  %v4331_v6 = vld [vmem:[%s5282_s4 + $0x110] ss:$8 sps:$4 sm:$0xff]   ;;  %v4334_v8 = vld [vmem:[%s5282_s4 + $0x120] ss:$8 sps:$4 sm:$0xff]   ;;  %v2945_v46 = vstv %s3678_s12 }
 0x21d   : > { %2870 = vmatpush1.bf16.msra.mxu0 %v4294_v59  ;;  %3788 = vmatprep.subr.bf16.mxu1 %v4380_v47  ;;  %v4385_v59 = vld [vmem:[%s5284_s6 + $0x20] sm:$0xff]   ;;  %v4337_v10 = vld [vmem:[%s5282_s4 + $0x130] ss:$8 sps:$4 sm:$0xff]   ;;  %v4345_v13 = vld [vmem:[%s5282_s4 + $0x154] ss:$8 sps:$4 sm:$0xff]  }
 0x21e   : > { %2871 = vmatprep.subr.bf16.mxu0 %v4295_v63  ;;  %v2438_v33 = vsel %vm2435_vm0, %v2434_v16, %v2437_v31  ;;  %v4328_v63 = vld [vmem:[%s5282_s4 + $0x100] ss:$8 sps:$4 sm:$0xff]   ;;  %v4342_v11 = vld [vmem:[%s5282_s4 + $0x144] ss:$8 sps:$4 sm:$0xff]   ;;  %v4343_v14 = vld [vmem:[%s5282_s4 + $0x150] ss:$8 sps:$4 sm:$0xff]  }
 0x21f   : > { %v2447_v35 = vrot.slane %v2438_v33, %v4934_v62  ;;  %v2440_v50 = vcombine.high %v2438_v33, %v2438_v33  ;;  %v4346_v17 = vld [vmem:[%s5282_s4 + $0x160] ss:$8 sps:$4 sm:$0xff]   ;;  %v4351_v18 = vld [vmem:[%s5282_s4 + $0x174] ss:$8 sps:$4 sm:$0xff]   ;;  %v4349_v19 = vld [vmem:[%s5282_s4 + $0x170] ss:$8 sps:$4 sm:$0xff]  }
 0x220   : > { %3789 = vmatpush3.bf16.msra.mxu1 %v4381_v51  ;;  %v4354_v20 = vld [vmem:[%s5282_s4 + $0x184] ss:$8 sps:$4 sm:$0xff]   ;;  %v4357_v24 = vld [vmem:[%s5282_s4 + $0x194] ss:$8 sps:$4 sm:$0xff]   ;;  %v4355_v25 = vld [vmem:[%s5282_s4 + $0x190] ss:$8 sps:$4 sm:$0xff]  }
 0x221   : > { %2872 = vmatpush1.bf16.msra.mxu0 %v4297_v3  ;;  %v2455_v21 = vcombine.high %v2447_v35, %v2447_v35  ;;  %v5037_v55 = vrot.slane %v2440_v50, %v4934_v62  ;;  %3790 = vmatprep.subr.bf16.mxu1 %v4382_v52  ;;  %v2461_v2 = vpack.c.bf16 %v2447_v35, %v2447_v35  ;;  %v4333_v3 = vld [vmem:[%s5282_s4 + $0x114] ss:$8 sps:$4 sm:$0xff]   ;;  %v4358_v27 = vld [vmem:[%s5282_s4 + $0x1a0] ss:$8 sps:$4 sm:$0xff]   ;;  %v4366_v16 = vld [vmem:[%s5282_s4 + $0x1c4] ss:$8 sps:$4 sm:$0xff]  }
 0x222   : > { %2873 = vmatprep.subr.bf16.mxu0 %v4298_v7  ;;  %v4336_v7 = vld [vmem:[%s5282_s4 + $0x124] ss:$8 sps:$4 sm:$0xff]   ;;  %v4363_v28 = vld [vmem:[%s5282_s4 + $0x1b4] ss:$8 sps:$4 sm:$0xff]  }
 0x223   : > { %v2462_v38 = vpack.c.bf16 %v2455_v21, %v2455_v21  ;;  %v2456_v62 = vcombine.high %v5037_v55, %v5037_v55  ;;  %v4369_v31 = vld [vmem:[%s5282_s4 + $0x1d4] ss:$8 sps:$4 sm:$0xff]   ;;  %v4372_v33 = vld [vmem:[%s5282_s4 + $0x1e4] ss:$8 sps:$4 sm:$0xff]   ;;  %v4373_v21 = vld [vmem:[%s5282_s4 + $0x1f0] ss:$8 sps:$4 sm:$0xff]  }
 0x224   : > { %3791 = vmatpush3.bf16.msra.mxu1 %v4383_v56  ;;  %v4375_v35 = vld [vmem:[%s5282_s4 + $0x1f4] ss:$8 sps:$4 sm:$0xff]   ;;  %v4392_v40 = vld [vmem:[%s5286_s8 + $0x40] sm:$0xff]  }
 0x225   : > { %2874 = vmatpush1.bf16.msra.mxu0 %v4300_v12  ;;  %2893 = vmatprep.mubr.bf16.mxu0 %v2462_v38  ;;  %v2464_v5 = vpack.c.bf16 %v2456_v62, %v2456_v62  ;;  %v4340_v12 = vld [vmem:[%s5282_s4 + $0x140] ss:$8 sps:$4 sm:$0xff]   ;;  %v4389_v38 = vld [vmem:[%s5284_s6 + $0x30] sm:$0xff]  }
 0x226   : > { %2875 = vmatprep.subr.bf16.mxu0 %v4301_v15  ;;  %3792 = vmatprep.subr.bf16.mxu1 %v4384_v57  ;;  %v4348_v15 = vld [vmem:[%s5282_s4 + $0x164] ss:$8 sps:$4 sm:$0xff]  }
 0x227   : > { %v4395_v57 = vld [vmem:[%s5286_s8 + $0x8] sm:$0xff]   ;;  %v4400_v62 = vld [vmem:[%s5286_s8 + $0x60] sm:$0xff]  }
 0x228   : > { %3793 = vmatpush3.bf16.msra.mxu1 %v4385_v59  ;;  %v4397_v59 = vld [vmem:[%s5286_s8 + $0x10] sm:$0xff]  }
 0x229   : > { %2876 = vmatpush1.bf16.msra.mxu0 %v4303_v23  ;;  %3794 = vmatprep.subr.bf16.mxu1 %v4386_v61  ;;  %v4352_v23 = vld [vmem:[%s5282_s4 + $0x180] ss:$8 sps:$4 sm:$0xff]   ;;  %v4399_v61 = vld [vmem:[%s5286_s8 + $0x18] sm:$0xff]  }
 0x22a   : > { %2877 = vmatprep.subr.bf16.mxu0 %v4304_v26  ;;  %v4360_v26 = vld [vmem:[%s5282_s4 + $0x1a4] ss:$8 sps:$4 sm:$0xff]  }
 0x22c   : > { %3795 = vmatpush3.bf16.msra.mxu1 %v4387_v4  ;;  %v4404_v4 = vld [vmem:[%s5286_s8 + $0x70] sm:$0xff]  }
 0x22d   : > { %2878 = vmatpush1.bf16.msra.mxu0 %v4306_v29  ;;  %v4361_v29 = vld [vmem:[%s5282_s4 + $0x1b0] ss:$8 sps:$4 sm:$0xff]  }
 0x22e   : > { %2879 = vmatprep.subr.bf16.mxu0 %v4307_v30  ;;  %v4364_v30 = vld [vmem:[%s5282_s4 + $0x1c0] ss:$8 sps:$4 sm:$0xff]  }
 0x231   : > { %2880 = vmatpush1.bf16.msra.mxu0 %v4309_v32  ;;  %v4367_v32 = vld [vmem:[%s5282_s4 + $0x1d0] ss:$8 sps:$4 sm:$0xff]  }
 0x232   : > { %2881 = vmatprep.subr.bf16.mxu0 %v4310_v34  ;;  %v4370_v34 = vld [vmem:[%s5282_s4 + $0x1e0] ss:$8 sps:$4 sm:$0xff]  }
 0x235   : > { %2882 = vmatpush1.bf16.msra.mxu0 %v4312_v36  ;;  %v2463_v36 = vpack.c.bf16 %v5037_v55, %v5037_v55 }
 0x236   : > { %2883 = vmatprep.subr.bf16.mxu0 %v4313_v37  ;;  %v4388_v37 = vld [vmem:[%s5284_s6 + $0x70] sm:$0xff]  }
 0x237   : > { %3796 = vmatprep.subr.bf16.mxu1 %v4388_v37 }
 0x238   : > { %3797 = vmatpush3.bf16.msra.mxu1 %v4389_v38 }
 0x239   : > { %2884 = vmatpush1.bf16.msra.mxu0 %v4315_v39  ;;  %v4390_v39 = vld [vmem:[%s5284_s6 + $0x78] sm:$0xff]  }
 0x23a   : > { %2885 = vmatprep.subr.bf16.mxu0 %v4316_v22  ;;  %v4391_v22 = vld [vmem:[%s5284_s6 + $0x38] sm:$0xff]   ;;  %3798 = vmatprep.subr.bf16.mxu1 %v4390_v39 }
 0x23c   : > { %3799 = vmatpush3.bf16.msra.mxu1 %v4391_v22 }
 0x23d   : > { %2886 = vmatpush1.bf16.msra.mxu0 %v4318_v41  ;;  %3806 = vmatprep.subr.bf16.mxu1 %v4392_v40  ;;  %v2529_v41 = vld [vmem:[%s5283_s5] sm:$0x3] }
 0x23e   : > { %2887 = vmatprep.subr.bf16.mxu0 %v4319_v43  ;;  %v2534_v42 = vrot.slane %v2529_v41, %v2402_v0  ;;  %v2538_v43 = vrot.slane %v2529_v41, %v2406_v1  ;;  %v4393_v0 = vld [vmem:[%s5286_s8] sm:$0xff]   ;;  %v4394_v1 = vld [vmem:[%s5286_s8 + $0x48] sm:$0xff]  }
 0x241   : > { %2888 = vmatpush1.bf16.msra.mxu0 %v4321_v48 }
 0x242   : > { %2889 = vmatprep.subr.bf16.mxu0 %v4322_v49 }
 0x245   : > { %2890 = vmatpush1.bf16.msra.mxu0 %v4324_v53 }
 0x246   : > { %2891 = vmatprep.subr.bf16.mxu0 %v4325_v54 }
 0x249   : > { %2892 = vmatpush1.bf16.msra.mxu0 %v4327_v58  ;;  %v4396_v58 = vld [vmem:[%s5286_s8 + $0x50] sm:$0xff]  }
 0x24a   : > { %2902 = vmatprep.subr.bf16.mxu0 %v4330_v60  ;;  %v4398_v60 = vld [vmem:[%s5286_s8 + $0x58] sm:$0xff]  }
 0x24c   : > { %2894 = vmatmul.mubr.bf16.vlgmr.msra.gmra.mrb[0].mxu0 %v2461_v2  ;;  %v4402_v2 = vld [vmem:[%s5286_s8 + $0x68] sm:$0xff]  }
 0x24d   : > { %2903 = vmatpush1.bf16.msra.mxu0 %v4328_v63  ;;  %2934 = vmatprep.mubr.bf16.mxu0 %v2464_v5  ;;  %v4401_v63 = vld [vmem:[%s5286_s8 + $0x20] sm:$0xff]   ;;  %v4405_v5 = vld [vmem:[%s5286_s8 + $0x30] sm:$0xff]  }
 0x24e   : > { %2904 = vmatprep.subr.bf16.mxu0 %v4333_v3  ;;  %v4403_v3 = vld [vmem:[%s5286_s8 + $0x28] sm:$0xff]  }
 0x251   : > { %2905 = vmatpush1.bf16.msra.mxu0 %v4331_v6  ;;  %v4406_v6 = vld [vmem:[%s5286_s8 + $0x78] sm:$0xff]  }
 0x252   : > { %2906 = vmatprep.subr.bf16.mxu0 %v4336_v7  ;;  %v4407_v7 = vld [vmem:[%s5286_s8 + $0x38] sm:$0xff]  }
 0x255   : > { %2907 = vmatpush1.bf16.msra.mxu0 %v4334_v8 }
 0x256   : > { %2908 = vmatprep.subr.bf16.mxu0 %v4339_v9  ;;  %v3743_v9 = vld [vmem:[%s5285_s7] ss:$0 sm:$0xff] }
 0x259   : > { %2909 = vmatpush1.bf16.msra.mxu0 %v4337_v10 }
 0x25a   : > { %2910 = vmatprep.subr.bf16.mxu0 %v4342_v11 }
 0x25d   : > { %2911 = vmatpush1.bf16.msra.mxu0 %v4340_v12 }
 0x25e   : > { %2912 = vmatprep.subr.bf16.mxu0 %v4345_v13 }
 0x261   : > { %2913 = vmatpush1.bf16.msra.mxu0 %v4343_v14 }
 0x262   : > { %2914 = vmatprep.subr.bf16.mxu0 %v4348_v15 }
 0x265   : > { %2915 = vmatpush1.bf16.msra.mxu0 %v4346_v17 }
 0x266   : > { %2916 = vmatprep.subr.bf16.mxu0 %v4351_v18 }
 0x269   : > { %2917 = vmatpush1.bf16.msra.mxu0 %v4349_v19  ;;  %v3760_v19 = vld [vmem:[%s5287_s9] ss:$0 sm:$0xff] }
 0x26a   : > { %2918 = vmatprep.subr.bf16.mxu0 %v4354_v20 }
 0x26d   : > { %2919 = vmatpush1.bf16.msra.mxu0 %v4352_v23 }
 0x26e   : > { %2920 = vmatprep.subr.bf16.mxu0 %v4357_v24 }
 0x271   : > { %2921 = vmatpush1.bf16.msra.mxu0 %v4355_v25 }
 0x272   : > { %2922 = vmatprep.subr.bf16.mxu0 %v4360_v26 }
 0x275   : > { %2923 = vmatpush1.bf16.msra.mxu0 %v4358_v27 }
 0x276   : > { %2924 = vmatprep.subr.bf16.mxu0 %v4363_v28 }
 0x279   : > { %2925 = vmatpush1.bf16.msra.mxu0 %v4361_v29 }
 0x27a   : > { %2926 = vmatprep.subr.bf16.mxu0 %v4366_v16 }
 0x27d   : > { %2927 = vmatpush1.bf16.msra.mxu0 %v4364_v30 }
 0x27e   : > { %2928 = vmatprep.subr.bf16.mxu0 %v4369_v31 }
 0x281   : > { %2929 = vmatpush1.bf16.msra.mxu0 %v4367_v32 }
 0x282   : > { %2930 = vmatprep.subr.bf16.mxu0 %v4372_v33 }
 0x285   : > { %2931 = vmatpush1.bf16.msra.mxu0 %v4370_v34 }
 0x286   : > { %2932 = vmatprep.subr.bf16.mxu0 %v4375_v35 }
 0x289   : > { %2933 = vmatpush1.bf16.msra.mxu0 %v4373_v21 }
 0x28c   : > { %2935 = vmatmul.mubr.bf16.vlgmr.msra.gmra.mrb[0].mxu0 %v2463_v36 }
 0x35f   : > { %v2936_v45 = vpop.f32.mrb[0].mxu0 }
 0x360   : > { %v3852_v47 = vadd.f32 %v2936_v45, %v2534_v42  ;;  %v2938_v48 = vpop.f32.mrb[1].mxu0 }
 0x361   : > { %v3853_v49 = vadd.f32 %v2938_v48, %v2538_v43  ;;  %v2940_v50 = vpop.f32.mrb[2].mxu0 }
 0x362   : > { %vm2943_vm1 = vcmp.gt.f32.partialorder %v3852_v47, 0.0  ;;  %v2946_v51 = vmul.f32 %v3852_v47, %v2945_v46  ;;  %v2941_v52 = vpop.f32.mrb[3].mxu0 }
 0x363   : > { %v2947_v53 = vmul.f32 %v3853_v49, %v2945_v46  ;;  %vm2944_vm2 = vcmp.gt.f32.partialorder %v3853_v49, 0.0 }
 0x364   : > { %v2948_v54 = vsel %vm2943_vm1, %v3852_v47, %v2946_v51 }
 0x365   : > { %v2949_v55 = vsel %vm2944_vm2, %v3853_v49, %v2947_v53  ;;  %v2950_v44 = vpack.c.bf16 %v2948_v54, %v2948_v54 }
 0x366   : > { %v2951_v56 = vpack.c.bf16 %v2949_v55, %v2949_v55 }
 0x368   : > { %3119 = vmatprep.mubr.bf16.mxu1 %v2951_v56 }
 0x369   : > { %3120 = vmatmul.mubr.bf16.vlgmr.msra.gmra.mrb[0].mxu1 %v2950_v44 }
 0x36a   : > { %3807 = vmatpush3.bf16.msra.mxu1 %v4393_v0  ;;  %3294 = vmatprep.mubr.bf16.mxu1 %v2951_v56 }
 0x36b   : > { %3808 = vmatprep.subr.bf16.mxu1 %v4394_v1 }
 0x36e   : > { %3809 = vmatpush3.bf16.msra.mxu1 %v4395_v57 }
 0x36f   : > { %3810 = vmatprep.subr.bf16.mxu1 %v4396_v58 }
 0x372   : > { %3811 = vmatpush3.bf16.msra.mxu1 %v4397_v59 }
 0x373   : > { %3812 = vmatprep.subr.bf16.mxu1 %v4398_v60 }
 0x376   : > { %3813 = vmatpush3.bf16.msra.mxu1 %v4399_v61 }
 0x377   : > { %3814 = vmatprep.subr.bf16.mxu1 %v4400_v62 }
 0x37a   : > { %3815 = vmatpush3.bf16.msra.mxu1 %v4401_v63 }
 0x37b   : > { %3816 = vmatprep.subr.bf16.mxu1 %v4402_v2 }
 0x37e   : > { %3817 = vmatpush3.bf16.msra.mxu1 %v4403_v3 }
 0x37f   : > { %3818 = vmatprep.subr.bf16.mxu1 %v4404_v4 }
 0x382   : > { %3819 = vmatpush3.bf16.msra.mxu1 %v4405_v5 }
 0x383   : > { %3820 = vmatprep.subr.bf16.mxu1 %v4406_v6 }
 0x386   : > { %3821 = vmatpush3.bf16.msra.mxu1 %v4407_v7 }
 0x389   : > { %3295 = vmatmul.mubr.bf16.vlgmr.msra.gmra.mrb[4].mxu1 %v2950_v44 }
 0x43c   : > { %v3800_v8 = vpop.f32.mrb[0].mxu1 }
 0x43d   : > { %v3801_v10 = vpop.f32.mrb[1].mxu1 }
 0x43e   : > { %v3802_v11 = vadd.f32 %v3801_v10, %v3800_v8  ;;  %v3803_v12 = vpop.f32.mrb[2].mxu1 }
 0x43f   : > { %v3804_v13 = vpop.f32.mrb[3].mxu1 }
 0x440   : > { %v3122_v14 = vadd.f32 %v3802_v11, %v3743_v9 }
 0x442   : > { %v3302_v15 = vmul.f32 %v3122_v14, %v3122_v14 }
 0x444   : > { %v3304_v17 = vsel %vm3303_vm3, %v3302_v15, 0.0 }
 0x445   : > { %3305 = vadd.xlane.f32.xlu0 %v3304_v17 }
 0x45c   : > { %v3822_v18 = vpop.f32.mrb[4].mxu1 }
 0x45d   : > { %v3823_v20 = vpop.f32.mrb[5].mxu1 }
 0x45e   : > { %v3824_v23 = vadd.f32 %v3823_v20, %v3822_v18  ;;  %v3825_v24 = vpop.f32.mrb[6].mxu1 }
 0x45f   : > { %v3826_v25 = vpop.f32.mrb[7].mxu1 }
 0x460   : > { %v3297_v26 = vadd.f32 %v3824_v23, %v3760_v19 }
 0x462   : > { %3319 = vst.msk [vmem:[#allocation7] sm:$0x3] %vm3318_vm4, %v3297_v26 }
 0x4d2   : > { %v3306_v27 = vpop.xlane.xlu0 %3305 }
 0x4d3   : > { %4408 = vrsqrt.f32 %v3306_v27  ;;  %vm3309_vm5 = vcmp.eq.f32.partialorder %v3306_v27, inf  ;;  %v3312_v16 = vand.u32 2147483648, %v3306_v27  ;;  %vm3311_vm6 = vcmp.eq.f32.partialorder %v3306_v27, 0.0 }
 0x4dd   : > { %v4409_v28 = vpop.eup %4408 }
 0x4de   : > { %v3308_v29 = vmul.f32 %v4409_v28, %v3306_v27 }
 0x4e0   : > { %v3310_v30 = vsel %vm3309_vm5, %v3306_v27, %v3308_v29 }
 0x4e1   : > { %v3313_v31 = vsel %vm3311_vm6, %v3312_v16, %v3310_v30 }
 0x4e2   : > { %v3314_v32 = vmax.f32 %v3313_v31, 1e-12 }
 0x4e4   : > { %4410 = vrcp.f32 %v3314_v32 }
 0x4ee   : > { %v4411_v33 = vpop.eup %4410 }
 0x4ef   : > { %v3316_v34 = vmul.f32 %v4411_v33, %v3122_v14 }
 0x4f1   : > { %3317 = vst [vmem:[#allocation6] sm:$0x3] %v3316_v34 }
 0x4f2 PF: > { %p3876_p5 = scmp.eq.s32.totalorder %s4572_s18, 1  ;;  %s4504_s15 = smov [#allocation6]  }
 0x4f3   : > { %s3327_s16 = sshll.u32 %s4504_s15, 4  ;;  %s4505_s19 = smov [#allocation7]   ;;  %s3328_s16 = int_to_ptr.vmem [resolvable:$true] %s3327_s16 }
 0x4f4   : > { %s3338_s20 = sshll.u32 %s4505_s19, 4  ;;  %s4427_s21 = scalar_lea.vmem %s3328_s16, 32  ;;  %s3339_s20 = int_to_ptr.vmem [resolvable:$true] %s3338_s20 }
 0x4f5   : > { %p4428_p6 = scmp.ne.s32.totalorder %s3328_s16, %s4427_s21  ;;  %p4434_p9 = scmp.lt.s32.totalorder %s3328_s16, %s3328_s16 }
 0x4f6   : > { %p4435_p10 = scmp.lt.s32.totalorder %s4427_s21, %s4427_s21 }
 0x4f7   : > { %p4429_p7 = pnand %p4428_p6, %p3876_p5 }
 0x4f8   : > { %p4436_p11 = por %p4435_p10, %p4434_p9 }
 0x4f9   : > { %p4430_p8 = pneg %p4429_p7 }
 0x4fb   : > { %p4437_p12 = pnand %p4436_p11, %p4430_p8 }
 0x4fd   : > { %4440 = shalt.err (!%p4437_p12)
}
 0x4fe   : > { %s4441_s24 = scalar_lea.hbm %s5288_s10, 32 }
 0x4ff   : > { %p4442_p13 = scmp.ne.s32.totalorder %s5288_s10, %s4441_s24  ;;  %p4447_p2 = scmp.lt.u32.totalorder %s4441_s24, %s5288_s10 }
 0x501   : > { %p4443_p0 = pnand %p4442_p13, %p3876_p5 }
 0x503   : > { %p4444_p1 = pneg %p4443_p0 }
 0x505   : > { %p4449_p3 = pnand %p4447_p2, %p4444_p1 }
 0x507   : > { %4452 = shalt.err (!%p4449_p3)
}
 0x508   : > { %3863 = dma.vmem_to_hbm [thread:$0]  (%p3876_p5), %s3328_s16, 32, %s5288_s10, [#allocation4]  }
 0x509   : > { %s4453_s12 = scalar_lea.vmem %s3339_s20, 32  ;;  %p4460_p8 = scmp.lt.s32.totalorder %s3339_s20, %s3339_s20 }
 0x50a   : > { %p4454_p4 = scmp.ne.s32.totalorder %s3339_s20, %s4453_s12  ;;  %p4461_p9 = scmp.lt.s32.totalorder %s4453_s12, %s4453_s12 }
 0x50c   : > { %p4455_p6 = pnand %p4454_p4, %p3876_p5  ;;  %p4462_p10 = por %p4461_p9, %p4460_p8 }
 0x50e   : > { %p4456_p7 = pneg %p4455_p6 }
 0x510   : > { %p4463_p11 = pnand %p4462_p10, %p4456_p7 }
 0x512   : > { %4466 = shalt.err (!%p4463_p11)
}
 0x513   : > { %s4467_s15 = scalar_lea.hbm %s5289_s11, 32 }
 0x514   : > { %p4468_p12 = scmp.ne.s32.totalorder %s5289_s11, %s4467_s15  ;;  %p4473_p1 = scmp.lt.u32.totalorder %s4467_s15, %s5289_s11 }
 0x516   : > { %p4469_p13 = pnand %p4468_p12, %p3876_p5 }
 0x518   : > { %p4470_p0 = pneg %p4469_p13 }
 0x51a   : > { %p4475_p2 = pnand %p4473_p1, %p4470_p0 }
 0x51c   : > { %4478 = shalt.err (!%p4475_p2)
}
 0x51d   : > { %3865 = dma.vmem_to_hbm [thread:$0]  (%p3876_p5), %s3339_s20, 32, %s5289_s11, [#allocation8]  }
 0x51e   : > { %4488 = dma.done.wait (%p3876_p5), [#allocation4], 32  }
 0x51f   : > { %4490 = vsyncadd (%p3876_p5), [#allocation4], 4294967264 }
 0x520   : > { %4492 = dma.done.wait (%p3876_p5), [#allocation8], 32  }
 0x521   : > { %4494 = vsyncadd (%p3876_p5), [#allocation8], 4294967264 }
 0x522 PF: > { %s25_s17 = sadd.s32 1, %s4497_s17  }
 0x523   : > { %p22_p3 = scmp.ge.s32.totalorder %s25_s17, 4  }
 0x525   :  { %24 = sbr.rel (!%p22_p3) target bundleno = 3 (0x3), region = 115 }
 0x52c   :  { %3355 = vsyncpa [#allocation4], 1 }
 0x52d   :  { %3357 = vsyncpa [#allocation4 + $0x1], 1 }
 0x52e   :  { %3358 = vsyncpa [#allocation8], 1 }
 0x52f   :  { %3359 = vsyncpa [#allocation5], 1 }
 0x530   :  { %3361 = vsyncpa [#allocation5 + $0x1], 1 }

</bundles_post_ra>
